<compile_context>
chip_gen: v7x
topology: tpu7x:2x2x1
jax: 0.10.0
libtpu: 0.0.40
codegen_flags: <defaults>
</compile_context>

<pallas_src>
import functools

import jax
import jax.numpy as jnp
from jax.experimental import pallas as pl
from jax.experimental.pallas import tpu as pltpu


# -----------------------------------------------------------------------------
# Kernel: one chunk of decoder time steps per grid iteration.
# -----------------------------------------------------------------------------
def _attention_decoder_kernel(
    emb_ref,    # (t_chunk, B, E)  embedded decoder tokens for this chunk
    enc_ref,    # (B, S, H)        encoder outputs (VMEM-resident)
    valid_ref,  # (B, 1)           int32 encoder valid lengths (resident)
    h0_ref,     # (L, B, H)        initial hidden state (resident)
    wq_ref,     # (H, H)           W_q^T
    wk_ref,     # (H, H)           W_k^T
    wv_ref,     # (1, H)           w_v
    *rest,      # fused GRU params, dense params, outputs, scratch
    num_layers,
    num_hiddens,
):
    H = num_hiddens
    L = num_layers
    n_gru = 4 + 3 * (L - 1)            # layer0: Wc,We,Wh,b ; layer>0: Wx,Wh,b
    gru_refs = rest[:n_gru]
    wd_ref = rest[n_gru + 0]           # (H, V)   W_dense^T
    bd_ref = rest[n_gru + 1]           # (1, V)
    out_ref = rest[n_gru + 2]          # (t_chunk, B, V)  logits for this chunk
    attn_ref = rest[n_gru + 3]         # (t_chunk, B, S)  attention weights
    hout_ref = rest[n_gru + 4]         # (L, B, H)        recurrent/final state
    keys_sc = rest[n_gru + 5]          # (B, S, H) scratch: W_k(enc_outputs)

    chunk = pl.program_id(0)
    t_chunk = emb_ref.shape[0]
    B, S, _ = enc_ref.shape

    # ---- chunk 0: load initial state; hoist the loop-invariant key projection
    # as ONE (B*S, H) x (H, H) matmul instead of B tiny ones.
    @pl.when(chunk == 0)
    def _init():
        hout_ref[...] = h0_ref[...]
        keys_sc[...] = jnp.dot(
            enc_ref[...].reshape(B * S, H), wk_ref[...],
            preferred_element_type=jnp.float32).reshape(B, S, H)

    # ---- hoist all loop invariants out of the time loop ----------------------
    enc = enc_ref[...]                                   # (B, S, H)
    keys = keys_sc[...]                                  # (B, S, H)
    wq = wq_ref[...]                                     # (H, H)
    wv = wv_ref[...]                                     # (1, H)
    wd = wd_ref[...]                                     # (H, V)
    bd = bd_ref[...]                                     # (1, V)
    mask = jax.lax.broadcasted_iota(jnp.int32, (B, S), 1) < valid_ref[...]

    w0c = gru_refs[0][...]                               # (H, 4H) context rows
    w0e = gru_refs[1][...]                               # (E, 4H) embedding rows
    w0h = gru_refs[2][...]                               # (H, 4H)
    b0 = gru_refs[3][...]                                # (1, 4H)
    deep = []
    for l in range(1, L):
        base = 4 + 3 * (l - 1)
        deep.append((gru_refs[base][...], gru_refs[base + 1][...],
                     gru_refs[base + 2][...]))

    def gru_gates(g, h_prev):
        # g columns: [r | z | n_ih | n_hh]   (PyTorch gate order r, z, n)
        r = jax.nn.sigmoid(g[:, 0:H])
        z = jax.nn.sigmoid(g[:, H:2 * H])
        n = jnp.tanh(g[:, 2 * H:3 * H] + r * g[:, 3 * H:4 * H])
        return (1.0 - z) * n + z * h_prev

    # ---- decoder time steps inside the kernel --------------------------------
    def step(t, carry):
        emb_t = emb_ref[t]                               # (B, E)

        # additive attention: query = top-layer hidden state (before update)
        q = jnp.dot(hout_ref[L - 1], wq,
                    preferred_element_type=jnp.float32)  # (B, H)
        feat = jnp.tanh(q[:, None, :] + keys)            # (B, S, H)
        scores = jnp.sum(feat * wv[None, :, :], axis=-1)  # (B, S)
        scores = jnp.where(mask, scores, -1e6)           # masked softmax
        scores = scores - jnp.max(scores, axis=-1, keepdims=True)
        e = jnp.exp(scores)
        attn = e * pl.reciprocal(jnp.sum(e, axis=-1, keepdims=True),
                                 approx=True)            # (B, S)
        attn_ref[t] = attn

        # context on the MXU (batched matmul) instead of VPU mul + XLU reduce
        context = jnp.einsum(
            'bqs,bsh->bqh', attn[:, None, :], enc,
            preferred_element_type=jnp.float32)[:, 0, :]  # (B, H)

        # ---- layer 0: fused 4H-wide gates, no lane concatenate --------------
        h_prev = hout_ref[0]
        g = (jnp.dot(context, w0c, preferred_element_type=jnp.float32)
             + jnp.dot(emb_t, w0e, preferred_element_type=jnp.float32)
             + jnp.dot(h_prev, w0h, preferred_element_type=jnp.float32)
             + b0)
        x = gru_gates(g, h_prev)
        hout_ref[0] = x

        # ---- deeper layers ----------------------------------------------------
        for l in range(1, L):
            wlx, wlh, bl = deep[l - 1]
            h_prev = hout_ref[l]
            g = (jnp.dot(x, wlx, preferred_element_type=jnp.float32)
                 + jnp.dot(h_prev, wlh, preferred_element_type=jnp.float32)
                 + bl)
            x = gru_gates(g, h_prev)
            hout_ref[l] = x
            # inter-layer dropout is identity in eval / dropout=0 mode

        # ---- dense vocab projection (lane-dense V) ----------------------------
        out_ref[t] = jnp.dot(x, wd, preferred_element_type=jnp.float32) + bd
        return carry

    jax.lax.fori_loop(0, t_chunk, step, 0, unroll=t_chunk <= 8)


# -----------------------------------------------------------------------------
# Wrapper (mirrors Seq2SeqAttentionDecoder.forward, eval mode)
# -----------------------------------------------------------------------------
def _fuse_gru_params(params, H, E, L):
    """Re-layout GRU weights so gates come out as [r | z | n_ih | n_hh]."""
    fused, specs = [], []
    for l in range(L):
        WihT = params["WihT"][l]                     # (in_l, 3H)
        WhhT = params["WhhT"][l]                     # (H, 3H)
        bih = params["bih"][l]                       # (3H,)
        bhh = params["bhh"][l]                       # (3H,)
        in_l = WihT.shape[0]
        Wx = jnp.concatenate(
            [WihT[:, :2 * H], WihT[:, 2 * H:], jnp.zeros((in_l, H), jnp.float32)],
            axis=1)                                  # (in_l, 4H)
        Wh = jnp.concatenate(
            [WhhT[:, :2 * H], jnp.zeros((H, H), jnp.float32), WhhT[:, 2 * H:]],
            axis=1)                                  # (H, 4H)
        b = jnp.concatenate(
            [bih[:2 * H] + bhh[:2 * H], bih[2 * H:], bhh[2 * H:]]).reshape(1, 4 * H)
        if l == 0:
            # split layer-0 input weights into context / embedding blocks so the
            # kernel never concatenates along the lane axis.
            fused += [Wx[:H], Wx[H:H + E], Wh, b]
            specs += [pl.BlockSpec((H, 4 * H), lambda c: (0, 0)),
                      pl.BlockSpec((E, 4 * H), lambda c: (0, 0)),
                      pl.BlockSpec((H, 4 * H), lambda c: (0, 0)),
                      pl.BlockSpec((1, 4 * H), lambda c: (0, 0))]
        else:
            fused += [Wx, Wh, b]
            specs += [pl.BlockSpec((H, 4 * H), lambda c: (0, 0)),
                      pl.BlockSpec((H, 4 * H), lambda c: (0, 0)),
                      pl.BlockSpec((1, 4 * H), lambda c: (0, 0))]
    return fused, specs


def seq2seq_attention_decoder_forward(emb_X, enc_outputs, hidden_state,
                                      enc_valid_lens, params, t_chunk=None):
    """emb_X: (T,B,E); enc_outputs: (B,S,H); hidden_state: (L,B,H).

    Returns (logits (T,B,V), attention_weights (T,B,S), final_hidden (L,B,H)).
    """
    T, B, E = emb_X.shape
    _, S, H = enc_outputs.shape
    L = hidden_state.shape[0]
    V = params["WdT"].shape[1]

    if t_chunk is None:
        t_chunk = T
    assert T % t_chunk == 0, "t_chunk must divide T"

    valid = enc_valid_lens.astype(jnp.int32).reshape(B, 1)
    gru_args, gru_specs = _fuse_gru_params(params, H, E, L)

    in_specs = [
        pl.BlockSpec((t_chunk, B, E), lambda c: (c, 0, 0)),  # emb chunk (moves)
        pl.BlockSpec((B, S, H), lambda c: (0, 0, 0)),        # encoder outputs
        pl.BlockSpec((B, 1), lambda c: (0, 0)),              # valid lengths
        pl.BlockSpec((L, B, H), lambda c: (0, 0, 0)),        # initial hidden
        pl.BlockSpec((H, H), lambda c: (0, 0)),              # W_q^T
        pl.BlockSpec((H, H), lambda c: (0, 0)),              # W_k^T
        pl.BlockSpec((1, H), lambda c: (0, 0)),              # w_v
    ] + gru_specs + [
        pl.BlockSpec((H, V), lambda c: (0, 0)),              # W_dense^T
        pl.BlockSpec((1, V), lambda c: (0, 0)),              # b_dense
    ]

    out_shape = (
        jax.ShapeDtypeStruct((T, B, V), jnp.float32),        # logits
        jax.ShapeDtypeStruct((T, B, S), jnp.float32),        # attention weights
        jax.ShapeDtypeStruct((L, B, H), jnp.float32),        # final hidden state
    )
    out_specs = (
        pl.BlockSpec((t_chunk, B, V), lambda c: (c, 0, 0)),
        pl.BlockSpec((t_chunk, B, S), lambda c: (c, 0, 0)),
        pl.BlockSpec((L, B, H), lambda c: (0, 0, 0)),        # resident = state
    )

    kernel = functools.partial(_attention_decoder_kernel,
                               num_layers=L, num_hiddens=H)

    return pl.pallas_call(
        kernel,
        out_shape=out_shape,
        grid_spec=pltpu.PrefetchScalarGridSpec(
            num_scalar_prefetch=0,
            grid=(T // t_chunk,),
            in_specs=in_specs,
            out_specs=out_specs,
            scratch_shapes=[
                pltpu.VMEM((B, S, H), jnp.float32),   # W_k(enc) projection
            ],
        ),
        compiler_params=pltpu.CompilerParams(
            # true recurrence over time chunks -> must stay sequential
            dimension_semantics=("arbitrary",)),
    )(emb_X, enc_outputs, valid, hidden_state,
      params["WqT"], params["WkT"], params["wv"],
      *gru_args, params["WdT"], params["bd"])


# -----------------------------------------------------------------------------
# Pure-JAX reference (same math as the PyTorch module, eval mode)
# -----------------------------------------------------------------------------
def _reference_forward(emb_X, enc_outputs, hidden_state, enc_valid_lens, params):
    T, B, E = emb_X.shape
    _, S, H = enc_outputs.shape
    L = hidden_state.shape[0]
    keys = enc_outputs @ params["WkT"]
    h = hidden_state
    outs, attns = [], []
    for t in range(T):
        q = h[-1] @ params["WqT"]
        feat = jnp.tanh(q[:, None, :] + keys)
        scores = jnp.sum(feat * params["wv"][None, :, :], axis=-1)
        mask = jnp.arange(S)[None, :] < enc_valid_lens[:, None]
        scores = jnp.where(mask, scores, -1e6)
        attn = jax.nn.softmax(scores, axis=-1)
        context = jnp.sum(attn[:, :, None] * enc_outputs, axis=1)
        x = jnp.concatenate([context, emb_X[t]], axis=-1)
        new_h = []
        for l in range(L):
            gi = x @ params["WihT"][l] + params["bih"][l][None, :]
            gh = h[l] @ params["WhhT"][l] + params["bhh"][l][None, :]
            r = jax.nn.sigmoid(gi[:, 0:H] + gh[:, 0:H])
            z = jax.nn.sigmoid(gi[:, H:2 * H] + gh[:, H:2 * H])
            n = jnp.tanh(gi[:, 2 * H:3 * H] + r * gh[:, 2 * H:3 * H])
            hl = (1.0 - z) * n + z * h[l]
            new_h.append(hl)
            x = hl
        h = jnp.stack(new_h, axis=0)
        outs.append(x @ params["WdT"] + params["bd"])
        attns.append(attn)
    return jnp.stack(outs, axis=0), jnp.stack(attns, axis=0), h


# -----------------------------------------------------------------------------
# Demo / correctness check
# -----------------------------------------------------------------------------
if __name__ == "__main__":
    VOCAB, E, H, L = 128, 32, 32, 2   # vocab chosen lane-dense (multiple of 128)
    B, T, S = 8, 8, 16                # batch, decoder steps, encoder length

    root = jax.random.PRNGKey(0)
    ks = jax.random.split(root, 20)

    def rnd(k, shape, scale=0.3):
        return (scale * jax.random.normal(k, shape)).astype(jnp.float32)

    embedding_table = rnd(ks[0], (VOCAB, E))
    params = {
        "WqT": rnd(ks[1], (H, H)),
        "WkT": rnd(ks[2], (H, H)),
        "wv": rnd(ks[3], (1, H)),
        "WihT": [rnd(ks[4], (H + E, 3 * H)), rnd(ks[5], (H, 3 * H))],
        "WhhT": [rnd(ks[6], (H, 3 * H)), rnd(ks[7], (H, 3 * H))],
        "bih": [rnd(ks[8], (3 * H,), 0.1), rnd(ks[9], (3 * H,), 0.1)],
        "bhh": [rnd(ks[10], (3 * H,), 0.1), rnd(ks[11], (3 * H,), 0.1)],
        "WdT": rnd(ks[12], (H, VOCAB)),
        "bd": rnd(ks[13], (1, VOCAB), 0.1),
    }

    tokens = jax.random.randint(ks[14], (B, T), 0, VOCAB)          # decoder ids
    enc_outputs = rnd(ks[15], (B, S, H), 1.0)                      # encoder outs
    hidden_state = rnd(ks[16], (L, B, H), 0.5)                     # init hidden
    enc_valid_lens = jnp.array([16, 14, 12, 10, 8, 6, 4, 2], jnp.int32)

    # embedding lookup + permute(1, 0, 2), as in the PyTorch forward
    emb_X = jnp.transpose(embedding_table[tokens], (1, 0, 2))      # (T, B, E)

    logits_tbv, attn_tbs, h_final = seq2seq_attention_decoder_forward(
        emb_X, enc_outputs, hidden_state, enc_valid_lens, params)
    logits_btv = jnp.transpose(logits_tbv, (1, 0, 2))              # .permute(1,0,2)
    logits_btv, attn_tbs, h_final = jax.block_until_ready(
        (logits_btv, attn_tbs, h_final))

    ref_logits, ref_attn, ref_h = _reference_forward(
        emb_X, enc_outputs, hidden_state, enc_valid_lens, params)
    ref_logits_btv = jnp.transpose(ref_logits, (1, 0, 2))

    assert logits_btv.shape == (B, T, VOCAB)
    assert h_final.shape == (L, B, H)
    assert jnp.allclose(logits_btv, ref_logits_btv, atol=3e-2, rtol=3e-2), \
        float(jnp.max(jnp.abs(logits_btv - ref_logits_btv)))
    assert jnp.allclose(attn_tbs, ref_attn, atol=3e-2, rtol=3e-2)
    assert jnp.allclose(h_final, ref_h, atol=3e-2, rtol=3e-2)
    print("KERNEL_OK")
</pallas_src>

<mosaic_0001>
module attributes {stable_mosaic.version = 11 : i64} {
  func.func @_attention_decoder_kernel(%arg0: i32, %arg1: memref<8x8x32xf32, #tpu.memory_space<vmem>>, %arg2: memref<8x16x32xf32, #tpu.memory_space<vmem>>, %arg3: memref<8x1xi32, #tpu.memory_space<vmem>>, %arg4: memref<2x8x32xf32, #tpu.memory_space<vmem>>, %arg5: memref<32x32xf32, #tpu.memory_space<vmem>>, %arg6: memref<32x32xf32, #tpu.memory_space<vmem>>, %arg7: memref<1x32xf32, #tpu.memory_space<vmem>>, %arg8: memref<32x128xf32, #tpu.memory_space<vmem>>, %arg9: memref<32x128xf32, #tpu.memory_space<vmem>>, %arg10: memref<32x128xf32, #tpu.memory_space<vmem>>, %arg11: memref<1x128xf32, #tpu.memory_space<vmem>>, %arg12: memref<32x128xf32, #tpu.memory_space<vmem>>, %arg13: memref<32x128xf32, #tpu.memory_space<vmem>>, %arg14: memref<1x128xf32, #tpu.memory_space<vmem>>, %arg15: memref<32x128xf32, #tpu.memory_space<vmem>>, %arg16: memref<1x128xf32, #tpu.memory_space<vmem>>, %arg17: memref<8x8x128xf32, #tpu.memory_space<vmem>>, %arg18: memref<8x8x16xf32, #tpu.memory_space<vmem>>, %arg19: memref<2x8x32xf32, #tpu.memory_space<vmem>>, %arg20: memref<8x16x32xf32, #tpu.memory_space<vmem>>) attributes {dimension_semantics = [#tpu.dimension_semantics<arbitrary>], iteration_bounds = array<i64: 1>, scalar_prefetch = 0 : i64, scratch_operands = 1 : i64, tpu.core_type = #tpu.core_type<tc>, window_params = [{transform_indices = @transform_0, window_bounds = array<i64: 8, 8, 32>}, {pipeline_mode = #tpu.pipeline_mode<synchronous>, transform_indices = @transform_1, window_bounds = array<i64: 8, 16, 32>}, {pipeline_mode = #tpu.pipeline_mode<synchronous>, transform_indices = @transform_2, window_bounds = array<i64: 8, 1>}, {pipeline_mode = #tpu.pipeline_mode<synchronous>, transform_indices = @transform_3, window_bounds = array<i64: 2, 8, 32>}, {pipeline_mode = #tpu.pipeline_mode<synchronous>, transform_indices = @transform_4, window_bounds = array<i64: 32, 32>}, {pipeline_mode = #tpu.pipeline_mode<synchronous>, transform_indices = @transform_5, window_bounds = array<i64: 32, 32>}, {pipeline_mode = #tpu.pipeline_mode<synchronous>, transform_indices = @transform_6, window_bounds = array<i64: 1, 32>}, {pipeline_mode = #tpu.pipeline_mode<synchronous>, transform_indices = @transform_7, window_bounds = array<i64: 32, 128>}, {pipeline_mode = #tpu.pipeline_mode<synchronous>, transform_indices = @transform_8, window_bounds = array<i64: 32, 128>}, {pipeline_mode = #tpu.pipeline_mode<synchronous>, transform_indices = @transform_9, window_bounds = array<i64: 32, 128>}, {pipeline_mode = #tpu.pipeline_mode<synchronous>, transform_indices = @transform_10, window_bounds = array<i64: 1, 128>}, {pipeline_mode = #tpu.pipeline_mode<synchronous>, transform_indices = @transform_11, window_bounds = array<i64: 32, 128>}, {pipeline_mode = #tpu.pipeline_mode<synchronous>, transform_indices = @transform_12, window_bounds = array<i64: 32, 128>}, {pipeline_mode = #tpu.pipeline_mode<synchronous>, transform_indices = @transform_13, window_bounds = array<i64: 1, 128>}, {pipeline_mode = #tpu.pipeline_mode<synchronous>, transform_indices = @transform_14, window_bounds = array<i64: 32, 128>}, {pipeline_mode = #tpu.pipeline_mode<synchronous>, transform_indices = @transform_15, window_bounds = array<i64: 1, 128>}, {transform_indices = @transform_16, window_bounds = array<i64: 8, 8, 128>}, {transform_indices = @transform_17, window_bounds = array<i64: 8, 8, 16>}, {pipeline_mode = #tpu.pipeline_mode<synchronous>, transform_indices = @transform_18, window_bounds = array<i64: 2, 8, 32>}]} {
    %c0_i32 = arith.constant 0 : i32
    %0 = arith.cmpi eq, %arg0, %c0_i32 : i32
    %1 = arith.extui %0 : i1 to i32
    %c0_i32_0 = arith.constant 0 : i32
    %2 = arith.cmpi ne, %1, %c0_i32_0 : i32
    scf.if %2 {
      %c0_341 = arith.constant 0 : index
      %c0_342 = arith.constant 0 : index
      %c0_343 = arith.constant 0 : index
      %868 = vector.load %arg4[%c0_341, %c0_342, %c0_343] : memref<2x8x32xf32, #tpu.memory_space<vmem>>, vector<2x8x32xf32>
      %c0_344 = arith.constant 0 : index
      %c0_345 = arith.constant 0 : index
      %c0_346 = arith.constant 0 : index
      %869 = vector.load %arg19[%c0_344, %c0_345, %c0_346] : memref<2x8x32xf32, #tpu.memory_space<vmem>>, vector<2x8x32xf32>
      tpu.vector_store %arg19[%c0_344, %c0_345, %c0_346], %868 {strides = array<i32>} : memref<2x8x32xf32, #tpu.memory_space<vmem>>, vector<2x8x32xf32>,
      %c0_347 = arith.constant 0 : index
      %c0_348 = arith.constant 0 : index
      %c0_349 = arith.constant 0 : index
      %870 = vector.load %arg2[%c0_347, %c0_348, %c0_349] : memref<8x16x32xf32, #tpu.memory_space<vmem>>, vector<8x16x32xf32>
      %871 = vector.shape_cast %870 : vector<8x16x32xf32> to vector<128x32xf32>
      %c0_350 = arith.constant 0 : index
      %c0_351 = arith.constant 0 : index
      %872 = vector.load %arg6[%c0_350, %c0_351] : memref<32x32xf32, #tpu.memory_space<vmem>>, vector<32x32xf32>
      %cst_352 = arith.constant dense<0.000000e+00> : vector<128x32xf32>
      %873 = tpu.matmul %871, %872, %cst_352 {dimension_numbers = #tpu.dot_dimension_numbers<[1], [0], [0], [1], [0, 0, 1, 1], [], []>} : vector<128x32xf32>, vector<32x32xf32>, vector<128x32xf32> -> vector<128x32xf32>
      %874 = vector.shape_cast %873 : vector<128x32xf32> to vector<8x16x32xf32>
      %c0_353 = arith.constant 0 : index
      %c0_354 = arith.constant 0 : index
      %c0_355 = arith.constant 0 : index
      %875 = vector.load %arg20[%c0_353, %c0_354, %c0_355] : memref<8x16x32xf32, #tpu.memory_space<vmem>>, vector<8x16x32xf32>
      tpu.vector_store %arg20[%c0_353, %c0_354, %c0_355], %874 {strides = array<i32>} : memref<8x16x32xf32, #tpu.memory_space<vmem>>, vector<8x16x32xf32>,
    } else {
    }
    %c0 = arith.constant 0 : index
    %c0_1 = arith.constant 0 : index
    %c0_2 = arith.constant 0 : index
    %3 = vector.load %arg2[%c0, %c0_1, %c0_2] : memref<8x16x32xf32, #tpu.memory_space<vmem>>, vector<8x16x32xf32>
    %c0_3 = arith.constant 0 : index
    %c0_4 = arith.constant 0 : index
    %c0_5 = arith.constant 0 : index
    %4 = vector.load %arg20[%c0_3, %c0_4, %c0_5] : memref<8x16x32xf32, #tpu.memory_space<vmem>>, vector<8x16x32xf32>
    %c0_6 = arith.constant 0 : index
    %c0_7 = arith.constant 0 : index
    %5 = vector.load %arg5[%c0_6, %c0_7] : memref<32x32xf32, #tpu.memory_space<vmem>>, vector<32x32xf32>
    %c0_8 = arith.constant 0 : index
    %c0_9 = arith.constant 0 : index
    %6 = vector.load %arg7[%c0_8, %c0_9] : memref<1x32xf32, #tpu.memory_space<vmem>>, vector<1x32xf32>
    %c0_10 = arith.constant 0 : index
    %c0_11 = arith.constant 0 : index
    %7 = vector.load %arg15[%c0_10, %c0_11] : memref<32x128xf32, #tpu.memory_space<vmem>>, vector<32x128xf32>
    %c0_12 = arith.constant 0 : index
    %c0_13 = arith.constant 0 : index
    %8 = vector.load %arg16[%c0_12, %c0_13] : memref<1x128xf32, #tpu.memory_space<vmem>>, vector<1x128xf32>
    %9 = tpu.iota {dimensions = array<i32: 1>} : vector<8x16xi32>
    %c0_14 = arith.constant 0 : index
    %c0_15 = arith.constant 0 : index
    %10 = vector.load %arg3[%c0_14, %c0_15] : memref<8x1xi32, #tpu.memory_space<vmem>>, vector<8x1xi32>
    %11 = vector.broadcast %10 : vector<8x1xi32> to vector<8x16xi32>
    %12 = arith.cmpi slt, %9, %11 : vector<8x16xi32>
    %c0_16 = arith.constant 0 : index
    %c0_17 = arith.constant 0 : index
    %13 = vector.load %arg8[%c0_16, %c0_17] : memref<32x128xf32, #tpu.memory_space<vmem>>, vector<32x128xf32>
    %c0_18 = arith.constant 0 : index
    %c0_19 = arith.constant 0 : index
    %14 = vector.load %arg9[%c0_18, %c0_19] : memref<32x128xf32, #tpu.memory_space<vmem>>, vector<32x128xf32>
    %c0_20 = arith.constant 0 : index
    %c0_21 = arith.constant 0 : index
    %15 = vector.load %arg10[%c0_20, %c0_21] : memref<32x128xf32, #tpu.memory_space<vmem>>, vector<32x128xf32>
    %c0_22 = arith.constant 0 : index
    %c0_23 = arith.constant 0 : index
    %16 = vector.load %arg11[%c0_22, %c0_23] : memref<1x128xf32, #tpu.memory_space<vmem>>, vector<1x128xf32>
    %c0_24 = arith.constant 0 : index
    %c0_25 = arith.constant 0 : index
    %17 = vector.load %arg12[%c0_24, %c0_25] : memref<32x128xf32, #tpu.memory_space<vmem>>, vector<32x128xf32>
    %c0_26 = arith.constant 0 : index
    %c0_27 = arith.constant 0 : index
    %18 = vector.load %arg13[%c0_26, %c0_27] : memref<32x128xf32, #tpu.memory_space<vmem>>, vector<32x128xf32>
    %c0_28 = arith.constant 0 : index
    %c0_29 = arith.constant 0 : index
    %19 = vector.load %arg14[%c0_28, %c0_29] : memref<1x128xf32, #tpu.memory_space<vmem>>, vector<1x128xf32>
    %c0_i32_30 = arith.constant 0 : i32
    %20 = arith.index_cast %c0_i32_30 : i32 to index
    %c0_31 = arith.constant 0 : index
    %c0_32 = arith.constant 0 : index
    %21 = vector.load %arg1[%20, %c0_31, %c0_32] : memref<8x8x32xf32, #tpu.memory_space<vmem>>, vector<1x8x32xf32>
    %22 = vector.shape_cast %21 : vector<1x8x32xf32> to vector<8x32xf32>
    %c1 = arith.constant 1 : index
    %c0_33 = arith.constant 0 : index
    %c0_34 = arith.constant 0 : index
    %23 = vector.load %arg19[%c1, %c0_33, %c0_34] : memref<2x8x32xf32, #tpu.memory_space<vmem>>, vector<1x8x32xf32>
    %24 = vector.shape_cast %23 : vector<1x8x32xf32> to vector<8x32xf32>
    %cst = arith.constant dense<0.000000e+00> : vector<8x32xf32>
    %25 = tpu.matmul %24, %5, %cst {dimension_numbers = #tpu.dot_dimension_numbers<[1], [0], [0], [1], [0, 0, 1, 1], [], []>} : vector<8x32xf32>, vector<32x32xf32>, vector<8x32xf32> -> vector<8x32xf32>
    %26 = vector.shape_cast %25 : vector<8x32xf32> to vector<8x1x32xf32>
    %27 = vector.broadcast %26 : vector<8x1x32xf32> to vector<8x16x32xf32>
    %28 = arith.addf %27, %4 : vector<8x16x32xf32>
    %29 = math.tanh %28 : vector<8x16x32xf32>
    %30 = vector.shape_cast %6 : vector<1x32xf32> to vector<1x1x32xf32>
    %31 = vector.broadcast %30 : vector<1x1x32xf32> to vector<8x16x32xf32>
    %32 = arith.mulf %29, %31 : vector<8x16x32xf32>
    %cst_35 = arith.constant dense<0.000000e+00> : vector<8x16xf32>
    %33 = vector.multi_reduction <add>, %32, %cst_35 [2] : vector<8x16x32xf32> to vector<8x16xf32>
    %cst_36 = arith.constant -1.000000e+06 : f32
    %34 = vector.broadcast %cst_36 : f32 to vector<8x16xf32>
    %35 = arith.select %12, %33, %34 : vector<8x16xi1>, vector<8x16xf32>
    %cst_37 = arith.constant dense<0xFF800000> : vector<8xf32>
    %36 = vector.multi_reduction <maximumf>, %35, %cst_37 [1] : vector<8x16xf32> to vector<8xf32>
    %37 = vector.shape_cast %36 : vector<8xf32> to vector<8x1xf32>
    %38 = vector.broadcast %37 : vector<8x1xf32> to vector<8x16xf32>
    %39 = arith.subf %35, %38 : vector<8x16xf32>
    %40 = math.exp %39 : vector<8x16xf32>
    %cst_38 = arith.constant dense<0.000000e+00> : vector<8xf32>
    %41 = vector.multi_reduction <add>, %40, %cst_38 [1] : vector<8x16xf32> to vector<8xf32>
    %42 = vector.shape_cast %41 : vector<8xf32> to vector<8x1xf32>
    %43 = tpu.reciprocal %42 {approx = true} : vector<8x1xf32> -> vector<8x1xf32>
    %44 = vector.broadcast %43 : vector<8x1xf32> to vector<8x16xf32>
    %45 = arith.mulf %40, %44 : vector<8x16xf32>
    %46 = arith.index_cast %c0_i32_30 : i32 to index
    %c0_39 = arith.constant 0 : index
    %c0_40 = arith.constant 0 : index
    %47 = vector.load %arg18[%46, %c0_39, %c0_40] : memref<8x8x16xf32, #tpu.memory_space<vmem>>, vector<1x8x16xf32>
    %48 = vector.shape_cast %47 : vector<1x8x16xf32> to vector<8x16xf32>
    %49 = vector.shape_cast %45 : vector<8x16xf32> to vector<1x8x16xf32>
    tpu.vector_store %arg18[%46, %c0_39, %c0_40], %49 {strides = array<i32>} : memref<8x8x16xf32, #tpu.memory_space<vmem>>, vector<1x8x16xf32>,
    %50 = vector.shape_cast %45 : vector<8x16xf32> to vector<8x1x16xf32>
    "tpu.trace_start"() <{level = 10 : i32, message = "bqs,bsh->bqh"}> : () -> ()
    %cst_41 = arith.constant dense<0.000000e+00> : vector<8x1x32xf32>
    %51 = tpu.matmul %50, %3, %cst_41 {dimension_numbers = #tpu.dot_dimension_numbers<[2], [1], [1], [2], [0, 0, 0, 1, 1, 2], [0], [0]>} : vector<8x1x16xf32>, vector<8x16x32xf32>, vector<8x1x32xf32> -> vector<8x1x32xf32>
    "tpu.trace_stop"() : () -> ()
    %52 = vector.shape_cast %51 : vector<8x1x32xf32> to vector<8x32xf32>
    %c0_42 = arith.constant 0 : index
    %c0_43 = arith.constant 0 : index
    %c0_44 = arith.constant 0 : index
    %53 = vector.load %arg19[%c0_42, %c0_43, %c0_44] : memref<2x8x32xf32, #tpu.memory_space<vmem>>, vector<1x8x32xf32>
    %54 = vector.shape_cast %53 : vector<1x8x32xf32> to vector<8x32xf32>
    %cst_45 = arith.constant dense<0.000000e+00> : vector<8x128xf32>
    %55 = tpu.matmul %52, %13, %cst_45 {dimension_numbers = #tpu.dot_dimension_numbers<[1], [0], [0], [1], [0, 0, 1, 1], [], []>} : vector<8x32xf32>, vector<32x128xf32>, vector<8x128xf32> -> vector<8x128xf32>
    %cst_46 = arith.constant dense<0.000000e+00> : vector<8x128xf32>
    %56 = tpu.matmul %22, %14, %cst_46 {dimension_numbers = #tpu.dot_dimension_numbers<[1], [0], [0], [1], [0, 0, 1, 1], [], []>} : vector<8x32xf32>, vector<32x128xf32>, vector<8x128xf32> -> vector<8x128xf32>
    %57 = arith.addf %55, %56 : vector<8x128xf32>
    %cst_47 = arith.constant dense<0.000000e+00> : vector<8x128xf32>
    %58 = tpu.matmul %54, %15, %cst_47 {dimension_numbers = #tpu.dot_dimension_numbers<[1], [0], [0], [1], [0, 0, 1, 1], [], []>} : vector<8x32xf32>, vector<32x128xf32>, vector<8x128xf32> -> vector<8x128xf32>
    %59 = arith.addf %57, %58 : vector<8x128xf32>
    %60 = vector.broadcast %16 : vector<1x128xf32> to vector<8x128xf32>
    %61 = arith.addf %59, %60 : vector<8x128xf32>
    %62 = vector.extract_strided_slice %61 {offsets = [0, 0], sizes = [8, 32], strides = [1, 1]} : vector<8x128xf32> to vector<8x32xf32>
    %63 = arith.negf %62 : vector<8x32xf32>
    %64 = math.exp %63 : vector<8x32xf32>
    %cst_48 = arith.constant 1.000000e+00 : f32
    %65 = vector.broadcast %cst_48 : f32 to vector<8x32xf32>
    %66 = arith.addf %65, %64 : vector<8x32xf32>
    %67 = arith.divf %65, %66 : vector<8x32xf32>
    %68 = vector.extract_strided_slice %61 {offsets = [0, 32], sizes = [8, 32], strides = [1, 1]} : vector<8x128xf32> to vector<8x32xf32>
    %69 = arith.negf %68 : vector<8x32xf32>
    %70 = math.exp %69 : vector<8x32xf32>
    %cst_49 = arith.constant 1.000000e+00 : f32
    %71 = vector.broadcast %cst_49 : f32 to vector<8x32xf32>
    %72 = arith.addf %71, %70 : vector<8x32xf32>
    %73 = arith.divf %71, %72 : vector<8x32xf32>
    %74 = vector.extract_strided_slice %61 {offsets = [0, 64], sizes = [8, 32], strides = [1, 1]} : vector<8x128xf32> to vector<8x32xf32>
    %75 = vector.extract_strided_slice %61 {offsets = [0, 96], sizes = [8, 32], strides = [1, 1]} : vector<8x128xf32> to vector<8x32xf32>
    %76 = arith.mulf %67, %75 : vector<8x32xf32>
    %77 = arith.addf %74, %76 : vector<8x32xf32>
    %78 = math.tanh %77 : vector<8x32xf32>
    %cst_50 = arith.constant 1.000000e+00 : f32
    %79 = vector.broadcast %cst_50 : f32 to vector<8x32xf32>
    %80 = arith.subf %79, %73 : vector<8x32xf32>
    %81 = arith.mulf %80, %78 : vector<8x32xf32>
    %82 = arith.mulf %73, %54 : vector<8x32xf32>
    %83 = arith.addf %81, %82 : vector<8x32xf32>
    %c0_51 = arith.constant 0 : index
    %c0_52 = arith.constant 0 : index
    %c0_53 = arith.constant 0 : index
    %84 = vector.load %arg19[%c0_51, %c0_52, %c0_53] : memref<2x8x32xf32, #tpu.memory_space<vmem>>, vector<1x8x32xf32>
    %85 = vector.shape_cast %84 : vector<1x8x32xf32> to vector<8x32xf32>
    %86 = vector.shape_cast %83 : vector<8x32xf32> to vector<1x8x32xf32>
    tpu.vector_store %arg19[%c0_51, %c0_52, %c0_53], %86 {strides = array<i32>} : memref<2x8x32xf32, #tpu.memory_space<vmem>>, vector<1x8x32xf32>,
    %c1_54 = arith.constant 1 : index
    %c0_55 = arith.constant 0 : index
    %c0_56 = arith.constant 0 : index
    %87 = vector.load %arg19[%c1_54, %c0_55, %c0_56] : memref<2x8x32xf32, #tpu.memory_space<vmem>>, vector<1x8x32xf32>
    %88 = vector.shape_cast %87 : vector<1x8x32xf32> to vector<8x32xf32>
    %cst_57 = arith.constant dense<0.000000e+00> : vector<8x128xf32>
    %89 = tpu.matmul %83, %17, %cst_57 {dimension_numbers = #tpu.dot_dimension_numbers<[1], [0], [0], [1], [0, 0, 1, 1], [], []>} : vector<8x32xf32>, vector<32x128xf32>, vector<8x128xf32> -> vector<8x128xf32>
    %cst_58 = arith.constant dense<0.000000e+00> : vector<8x128xf32>
    %90 = tpu.matmul %88, %18, %cst_58 {dimension_numbers = #tpu.dot_dimension_numbers<[1], [0], [0], [1], [0, 0, 1, 1], [], []>} : vector<8x32xf32>, vector<32x128xf32>, vector<8x128xf32> -> vector<8x128xf32>
    %91 = arith.addf %89, %90 : vector<8x128xf32>
    %92 = vector.broadcast %19 : vector<1x128xf32> to vector<8x128xf32>
    %93 = arith.addf %91, %92 : vector<8x128xf32>
    %94 = vector.extract_strided_slice %93 {offsets = [0, 0], sizes = [8, 32], strides = [1, 1]} : vector<8x128xf32> to vector<8x32xf32>
    %95 = arith.negf %94 : vector<8x32xf32>
    %96 = math.exp %95 : vector<8x32xf32>
    %cst_59 = arith.constant 1.000000e+00 : f32
    %97 = vector.broadcast %cst_59 : f32 to vector<8x32xf32>
    %98 = arith.addf %97, %96 : vector<8x32xf32>
    %99 = arith.divf %97, %98 : vector<8x32xf32>
    %100 = vector.extract_strided_slice %93 {offsets = [0, 32], sizes = [8, 32], strides = [1, 1]} : vector<8x128xf32> to vector<8x32xf32>
    %101 = arith.negf %100 : vector<8x32xf32>
    %102 = math.exp %101 : vector<8x32xf32>
    %cst_60 = arith.constant 1.000000e+00 : f32
    %103 = vector.broadcast %cst_60 : f32 to vector<8x32xf32>
    %104 = arith.addf %103, %102 : vector<8x32xf32>
    %105 = arith.divf %103, %104 : vector<8x32xf32>
    %106 = vector.extract_strided_slice %93 {offsets = [0, 64], sizes = [8, 32], strides = [1, 1]} : vector<8x128xf32> to vector<8x32xf32>
    %107 = vector.extract_strided_slice %93 {offsets = [0, 96], sizes = [8, 32], strides = [1, 1]} : vector<8x128xf32> to vector<8x32xf32>
    %108 = arith.mulf %99, %107 : vector<8x32xf32>
    %109 = arith.addf %106, %108 : vector<8x32xf32>
    %110 = math.tanh %109 : vector<8x32xf32>
    %cst_61 = arith.constant 1.000000e+00 : f32
    %111 = vector.broadcast %cst_61 : f32 to vector<8x32xf32>
    %112 = arith.subf %111, %105 : vector<8x32xf32>
    %113 = arith.mulf %112, %110 : vector<8x32xf32>
    %114 = arith.mulf %105, %88 : vector<8x32xf32>
    %115 = arith.addf %113, %114 : vector<8x32xf32>
    %c1_62 = arith.constant 1 : index
    %c0_63 = arith.constant 0 : index
    %c0_64 = arith.constant 0 : index
    %116 = vector.load %arg19[%c1_62, %c0_63, %c0_64] : memref<2x8x32xf32, #tpu.memory_space<vmem>>, vector<1x8x32xf32>
    %117 = vector.shape_cast %116 : vector<1x8x32xf32> to vector<8x32xf32>
    %118 = vector.shape_cast %115 : vector<8x32xf32> to vector<1x8x32xf32>
    tpu.vector_store %arg19[%c1_62, %c0_63, %c0_64], %118 {strides = array<i32>} : memref<2x8x32xf32, #tpu.memory_space<vmem>>, vector<1x8x32xf32>,
    %cst_65 = arith.constant dense<0.000000e+00> : vector<8x128xf32>
    %119 = tpu.matmul %115, %7, %cst_65 {dimension_numbers = #tpu.dot_dimension_numbers<[1], [0], [0], [1], [0, 0, 1, 1], [], []>} : vector<8x32xf32>, vector<32x128xf32>, vector<8x128xf32> -> vector<8x128xf32>
    %120 = vector.broadcast %8 : vector<1x128xf32> to vector<8x128xf32>
    %121 = arith.addf %119, %120 : vector<8x128xf32>
    %122 = arith.index_cast %c0_i32_30 : i32 to index
    %c0_66 = arith.constant 0 : index
    %c0_67 = arith.constant 0 : index
    %123 = vector.load %arg17[%122, %c0_66, %c0_67] : memref<8x8x128xf32, #tpu.memory_space<vmem>>, vector<1x8x128xf32>
    %124 = vector.shape_cast %123 : vector<1x8x128xf32> to vector<8x128xf32>
    %125 = vector.shape_cast %121 : vector<8x128xf32> to vector<1x8x128xf32>
    tpu.vector_store %arg17[%122, %c0_66, %c0_67], %125 {strides = array<i32>} : memref<8x8x128xf32, #tpu.memory_space<vmem>>, vector<1x8x128xf32>,
    %c1_i32 = arith.constant 1 : i32
    %126 = arith.index_cast %c1_i32 : i32 to index
    %c0_68 = arith.constant 0 : index
    %c0_69 = arith.constant 0 : index
    %127 = vector.load %arg1[%126, %c0_68, %c0_69] : memref<8x8x32xf32, #tpu.memory_space<vmem>>, vector<1x8x32xf32>
    %128 = vector.shape_cast %127 : vector<1x8x32xf32> to vector<8x32xf32>
    %c1_70 = arith.constant 1 : index
    %c0_71 = arith.constant 0 : index
    %c0_72 = arith.constant 0 : index
    %129 = vector.load %arg19[%c1_70, %c0_71, %c0_72] : memref<2x8x32xf32, #tpu.memory_space<vmem>>, vector<1x8x32xf32>
    %130 = vector.shape_cast %129 : vector<1x8x32xf32> to vector<8x32xf32>
    %cst_73 = arith.constant dense<0.000000e+00> : vector<8x32xf32>
    %131 = tpu.matmul %130, %5, %cst_73 {dimension_numbers = #tpu.dot_dimension_numbers<[1], [0], [0], [1], [0, 0, 1, 1], [], []>} : vector<8x32xf32>, vector<32x32xf32>, vector<8x32xf32> -> vector<8x32xf32>
    %132 = vector.shape_cast %131 : vector<8x32xf32> to vector<8x1x32xf32>
    %133 = vector.broadcast %132 : vector<8x1x32xf32> to vector<8x16x32xf32>
    %134 = arith.addf %133, %4 : vector<8x16x32xf32>
    %135 = math.tanh %134 : vector<8x16x32xf32>
    %136 = vector.shape_cast %6 : vector<1x32xf32> to vector<1x1x32xf32>
    %137 = vector.broadcast %136 : vector<1x1x32xf32> to vector<8x16x32xf32>
    %138 = arith.mulf %135, %137 : vector<8x16x32xf32>
    %cst_74 = arith.constant dense<0.000000e+00> : vector<8x16xf32>
    %139 = vector.multi_reduction <add>, %138, %cst_74 [2] : vector<8x16x32xf32> to vector<8x16xf32>
    %cst_75 = arith.constant -1.000000e+06 : f32
    %140 = vector.broadcast %cst_75 : f32 to vector<8x16xf32>
    %141 = arith.select %12, %139, %140 : vector<8x16xi1>, vector<8x16xf32>
    %cst_76 = arith.constant dense<0xFF800000> : vector<8xf32>
    %142 = vector.multi_reduction <maximumf>, %141, %cst_76 [1] : vector<8x16xf32> to vector<8xf32>
    %143 = vector.shape_cast %142 : vector<8xf32> to vector<8x1xf32>
    %144 = vector.broadcast %143 : vector<8x1xf32> to vector<8x16xf32>
    %145 = arith.subf %141, %144 : vector<8x16xf32>
    %146 = math.exp %145 : vector<8x16xf32>
    %cst_77 = arith.constant dense<0.000000e+00> : vector<8xf32>
    %147 = vector.multi_reduction <add>, %146, %cst_77 [1] : vector<8x16xf32> to vector<8xf32>
    %148 = vector.shape_cast %147 : vector<8xf32> to vector<8x1xf32>
    %149 = tpu.reciprocal %148 {approx = true} : vector<8x1xf32> -> vector<8x1xf32>
    %150 = vector.broadcast %149 : vector<8x1xf32> to vector<8x16xf32>
    %151 = arith.mulf %146, %150 : vector<8x16xf32>
    %152 = arith.index_cast %c1_i32 : i32 to index
    %c0_78 = arith.constant 0 : index
    %c0_79 = arith.constant 0 : index
    %153 = vector.load %arg18[%152, %c0_78, %c0_79] : memref<8x8x16xf32, #tpu.memory_space<vmem>>, vector<1x8x16xf32>
    %154 = vector.shape_cast %153 : vector<1x8x16xf32> to vector<8x16xf32>
    %155 = vector.shape_cast %151 : vector<8x16xf32> to vector<1x8x16xf32>
    tpu.vector_store %arg18[%152, %c0_78, %c0_79], %155 {strides = array<i32>} : memref<8x8x16xf32, #tpu.memory_space<vmem>>, vector<1x8x16xf32>,
    %156 = vector.shape_cast %151 : vector<8x16xf32> to vector<8x1x16xf32>
    "tpu.trace_start"() <{level = 10 : i32, message = "bqs,bsh->bqh"}> : () -> ()
    %cst_80 = arith.constant dense<0.000000e+00> : vector<8x1x32xf32>
    %157 = tpu.matmul %156, %3, %cst_80 {dimension_numbers = #tpu.dot_dimension_numbers<[2], [1], [1], [2], [0, 0, 0, 1, 1, 2], [0], [0]>} : vector<8x1x16xf32>, vector<8x16x32xf32>, vector<8x1x32xf32> -> vector<8x1x32xf32>
    "tpu.trace_stop"() : () -> ()
    %158 = vector.shape_cast %157 : vector<8x1x32xf32> to vector<8x32xf32>
    %c0_81 = arith.constant 0 : index
    %c0_82 = arith.constant 0 : index
    %c0_83 = arith.constant 0 : index
    %159 = vector.load %arg19[%c0_81, %c0_82, %c0_83] : memref<2x8x32xf32, #tpu.memory_space<vmem>>, vector<1x8x32xf32>
    %160 = vector.shape_cast %159 : vector<1x8x32xf32> to vector<8x32xf32>
    %cst_84 = arith.constant dense<0.000000e+00> : vector<8x128xf32>
    %161 = tpu.matmul %158, %13, %cst_84 {dimension_numbers = #tpu.dot_dimension_numbers<[1], [0], [0], [1], [0, 0, 1, 1], [], []>} : vector<8x32xf32>, vector<32x128xf32>, vector<8x128xf32> -> vector<8x128xf32>
    %cst_85 = arith.constant dense<0.000000e+00> : vector<8x128xf32>
    %162 = tpu.matmul %128, %14, %cst_85 {dimension_numbers = #tpu.dot_dimension_numbers<[1], [0], [0], [1], [0, 0, 1, 1], [], []>} : vector<8x32xf32>, vector<32x128xf32>, vector<8x128xf32> -> vector<8x128xf32>
    %163 = arith.addf %161, %162 : vector<8x128xf32>
    %cst_86 = arith.constant dense<0.000000e+00> : vector<8x128xf32>
    %164 = tpu.matmul %160, %15, %cst_86 {dimension_numbers = #tpu.dot_dimension_numbers<[1], [0], [0], [1], [0, 0, 1, 1], [], []>} : vector<8x32xf32>, vector<32x128xf32>, vector<8x128xf32> -> vector<8x128xf32>
    %165 = arith.addf %163, %164 : vector<8x128xf32>
    %166 = vector.broadcast %16 : vector<1x128xf32> to vector<8x128xf32>
    %167 = arith.addf %165, %166 : vector<8x128xf32>
    %168 = vector.extract_strided_slice %167 {offsets = [0, 0], sizes = [8, 32], strides = [1, 1]} : vector<8x128xf32> to vector<8x32xf32>
    %169 = arith.negf %168 : vector<8x32xf32>
    %170 = math.exp %169 : vector<8x32xf32>
    %cst_87 = arith.constant 1.000000e+00 : f32
    %171 = vector.broadcast %cst_87 : f32 to vector<8x32xf32>
    %172 = arith.addf %171, %170 : vector<8x32xf32>
    %173 = arith.divf %171, %172 : vector<8x32xf32>
    %174 = vector.extract_strided_slice %167 {offsets = [0, 32], sizes = [8, 32], strides = [1, 1]} : vector<8x128xf32> to vector<8x32xf32>
    %175 = arith.negf %174 : vector<8x32xf32>
    %176 = math.exp %175 : vector<8x32xf32>
    %cst_88 = arith.constant 1.000000e+00 : f32
    %177 = vector.broadcast %cst_88 : f32 to vector<8x32xf32>
    %178 = arith.addf %177, %176 : vector<8x32xf32>
    %179 = arith.divf %177, %178 : vector<8x32xf32>
    %180 = vector.extract_strided_slice %167 {offsets = [0, 64], sizes = [8, 32], strides = [1, 1]} : vector<8x128xf32> to vector<8x32xf32>
    %181 = vector.extract_strided_slice %167 {offsets = [0, 96], sizes = [8, 32], strides = [1, 1]} : vector<8x128xf32> to vector<8x32xf32>
    %182 = arith.mulf %173, %181 : vector<8x32xf32>
    %183 = arith.addf %180, %182 : vector<8x32xf32>
    %184 = math.tanh %183 : vector<8x32xf32>
    %cst_89 = arith.constant 1.000000e+00 : f32
    %185 = vector.broadcast %cst_89 : f32 to vector<8x32xf32>
    %186 = arith.subf %185, %179 : vector<8x32xf32>
    %187 = arith.mulf %186, %184 : vector<8x32xf32>
    %188 = arith.mulf %179, %160 : vector<8x32xf32>
    %189 = arith.addf %187, %188 : vector<8x32xf32>
    %c0_90 = arith.constant 0 : index
    %c0_91 = arith.constant 0 : index
    %c0_92 = arith.constant 0 : index
    %190 = vector.load %arg19[%c0_90, %c0_91, %c0_92] : memref<2x8x32xf32, #tpu.memory_space<vmem>>, vector<1x8x32xf32>
    %191 = vector.shape_cast %190 : vector<1x8x32xf32> to vector<8x32xf32>
    %192 = vector.shape_cast %189 : vector<8x32xf32> to vector<1x8x32xf32>
    tpu.vector_store %arg19[%c0_90, %c0_91, %c0_92], %192 {strides = array<i32>} : memref<2x8x32xf32, #tpu.memory_space<vmem>>, vector<1x8x32xf32>,
    %c1_93 = arith.constant 1 : index
    %c0_94 = arith.constant 0 : index
    %c0_95 = arith.constant 0 : index
    %193 = vector.load %arg19[%c1_93, %c0_94, %c0_95] : memref<2x8x32xf32, #tpu.memory_space<vmem>>, vector<1x8x32xf32>
    %194 = vector.shape_cast %193 : vector<1x8x32xf32> to vector<8x32xf32>
    %cst_96 = arith.constant dense<0.000000e+00> : vector<8x128xf32>
    %195 = tpu.matmul %189, %17, %cst_96 {dimension_numbers = #tpu.dot_dimension_numbers<[1], [0], [0], [1], [0, 0, 1, 1], [], []>} : vector<8x32xf32>, vector<32x128xf32>, vector<8x128xf32> -> vector<8x128xf32>
    %cst_97 = arith.constant dense<0.000000e+00> : vector<8x128xf32>
    %196 = tpu.matmul %194, %18, %cst_97 {dimension_numbers = #tpu.dot_dimension_numbers<[1], [0], [0], [1], [0, 0, 1, 1], [], []>} : vector<8x32xf32>, vector<32x128xf32>, vector<8x128xf32> -> vector<8x128xf32>
    %197 = arith.addf %195, %196 : vector<8x128xf32>
    %198 = vector.broadcast %19 : vector<1x128xf32> to vector<8x128xf32>
    %199 = arith.addf %197, %198 : vector<8x128xf32>
    %200 = vector.extract_strided_slice %199 {offsets = [0, 0], sizes = [8, 32], strides = [1, 1]} : vector<8x128xf32> to vector<8x32xf32>
    %201 = arith.negf %200 : vector<8x32xf32>
    %202 = math.exp %201 : vector<8x32xf32>
    %cst_98 = arith.constant 1.000000e+00 : f32
    %203 = vector.broadcast %cst_98 : f32 to vector<8x32xf32>
    %204 = arith.addf %203, %202 : vector<8x32xf32>
    %205 = arith.divf %203, %204 : vector<8x32xf32>
    %206 = vector.extract_strided_slice %199 {offsets = [0, 32], sizes = [8, 32], strides = [1, 1]} : vector<8x128xf32> to vector<8x32xf32>
    %207 = arith.negf %206 : vector<8x32xf32>
    %208 = math.exp %207 : vector<8x32xf32>
    %cst_99 = arith.constant 1.000000e+00 : f32
    %209 = vector.broadcast %cst_99 : f32 to vector<8x32xf32>
    %210 = arith.addf %209, %208 : vector<8x32xf32>
    %211 = arith.divf %209, %210 : vector<8x32xf32>
    %212 = vector.extract_strided_slice %199 {offsets = [0, 64], sizes = [8, 32], strides = [1, 1]} : vector<8x128xf32> to vector<8x32xf32>
    %213 = vector.extract_strided_slice %199 {offsets = [0, 96], sizes = [8, 32], strides = [1, 1]} : vector<8x128xf32> to vector<8x32xf32>
    %214 = arith.mulf %205, %213 : vector<8x32xf32>
    %215 = arith.addf %212, %214 : vector<8x32xf32>
    %216 = math.tanh %215 : vector<8x32xf32>
    %cst_100 = arith.constant 1.000000e+00 : f32
    %217 = vector.broadcast %cst_100 : f32 to vector<8x32xf32>
    %218 = arith.subf %217, %211 : vector<8x32xf32>
    %219 = arith.mulf %218, %216 : vector<8x32xf32>
    %220 = arith.mulf %211, %194 : vector<8x32xf32>
    %221 = arith.addf %219, %220 : vector<8x32xf32>
    %c1_101 = arith.constant 1 : index
    %c0_102 = arith.constant 0 : index
    %c0_103 = arith.constant 0 : index
    %222 = vector.load %arg19[%c1_101, %c0_102, %c0_103] : memref<2x8x32xf32, #tpu.memory_space<vmem>>, vector<1x8x32xf32>
    %223 = vector.shape_cast %222 : vector<1x8x32xf32> to vector<8x32xf32>
    %224 = vector.shape_cast %221 : vector<8x32xf32> to vector<1x8x32xf32>
    tpu.vector_store %arg19[%c1_101, %c0_102, %c0_103], %224 {strides = array<i32>} : memref<2x8x32xf32, #tpu.memory_space<vmem>>, vector<1x8x32xf32>,
    %cst_104 = arith.constant dense<0.000000e+00> : vector<8x128xf32>
    %225 = tpu.matmul %221, %7, %cst_104 {dimension_numbers = #tpu.dot_dimension_numbers<[1], [0], [0], [1], [0, 0, 1, 1], [], []>} : vector<8x32xf32>, vector<32x128xf32>, vector<8x128xf32> -> vector<8x128xf32>
    %226 = vector.broadcast %8 : vector<1x128xf32> to vector<8x128xf32>
    %227 = arith.addf %225, %226 : vector<8x128xf32>
    %228 = arith.index_cast %c1_i32 : i32 to index
    %c0_105 = arith.constant 0 : index
    %c0_106 = arith.constant 0 : index
    %229 = vector.load %arg17[%228, %c0_105, %c0_106] : memref<8x8x128xf32, #tpu.memory_space<vmem>>, vector<1x8x128xf32>
    %230 = vector.shape_cast %229 : vector<1x8x128xf32> to vector<8x128xf32>
    %231 = vector.shape_cast %227 : vector<8x128xf32> to vector<1x8x128xf32>
    tpu.vector_store %arg17[%228, %c0_105, %c0_106], %231 {strides = array<i32>} : memref<8x8x128xf32, #tpu.memory_space<vmem>>, vector<1x8x128xf32>,
    %c2_i32 = arith.constant 2 : i32
    %232 = arith.index_cast %c2_i32 : i32 to index
    %c0_107 = arith.constant 0 : index
    %c0_108 = arith.constant 0 : index
    %233 = vector.load %arg1[%232, %c0_107, %c0_108] : memref<8x8x32xf32, #tpu.memory_space<vmem>>, vector<1x8x32xf32>
    %234 = vector.shape_cast %233 : vector<1x8x32xf32> to vector<8x32xf32>
    %c1_109 = arith.constant 1 : index
    %c0_110 = arith.constant 0 : index
    %c0_111 = arith.constant 0 : index
    %235 = vector.load %arg19[%c1_109, %c0_110, %c0_111] : memref<2x8x32xf32, #tpu.memory_space<vmem>>, vector<1x8x32xf32>
    %236 = vector.shape_cast %235 : vector<1x8x32xf32> to vector<8x32xf32>
    %cst_112 = arith.constant dense<0.000000e+00> : vector<8x32xf32>
    %237 = tpu.matmul %236, %5, %cst_112 {dimension_numbers = #tpu.dot_dimension_numbers<[1], [0], [0], [1], [0, 0, 1, 1], [], []>} : vector<8x32xf32>, vector<32x32xf32>, vector<8x32xf32> -> vector<8x32xf32>
    %238 = vector.shape_cast %237 : vector<8x32xf32> to vector<8x1x32xf32>
    %239 = vector.broadcast %238 : vector<8x1x32xf32> to vector<8x16x32xf32>
    %240 = arith.addf %239, %4 : vector<8x16x32xf32>
    %241 = math.tanh %240 : vector<8x16x32xf32>
    %242 = vector.shape_cast %6 : vector<1x32xf32> to vector<1x1x32xf32>
    %243 = vector.broadcast %242 : vector<1x1x32xf32> to vector<8x16x32xf32>
    %244 = arith.mulf %241, %243 : vector<8x16x32xf32>
    %cst_113 = arith.constant dense<0.000000e+00> : vector<8x16xf32>
    %245 = vector.multi_reduction <add>, %244, %cst_113 [2] : vector<8x16x32xf32> to vector<8x16xf32>
    %cst_114 = arith.constant -1.000000e+06 : f32
    %246 = vector.broadcast %cst_114 : f32 to vector<8x16xf32>
    %247 = arith.select %12, %245, %246 : vector<8x16xi1>, vector<8x16xf32>
    %cst_115 = arith.constant dense<0xFF800000> : vector<8xf32>
    %248 = vector.multi_reduction <maximumf>, %247, %cst_115 [1] : vector<8x16xf32> to vector<8xf32>
    %249 = vector.shape_cast %248 : vector<8xf32> to vector<8x1xf32>
    %250 = vector.broadcast %249 : vector<8x1xf32> to vector<8x16xf32>
    %251 = arith.subf %247, %250 : vector<8x16xf32>
    %252 = math.exp %251 : vector<8x16xf32>
    %cst_116 = arith.constant dense<0.000000e+00> : vector<8xf32>
    %253 = vector.multi_reduction <add>, %252, %cst_116 [1] : vector<8x16xf32> to vector<8xf32>
    %254 = vector.shape_cast %253 : vector<8xf32> to vector<8x1xf32>
    %255 = tpu.reciprocal %254 {approx = true} : vector<8x1xf32> -> vector<8x1xf32>
    %256 = vector.broadcast %255 : vector<8x1xf32> to vector<8x16xf32>
    %257 = arith.mulf %252, %256 : vector<8x16xf32>
    %258 = arith.index_cast %c2_i32 : i32 to index
    %c0_117 = arith.constant 0 : index
    %c0_118 = arith.constant 0 : index
    %259 = vector.load %arg18[%258, %c0_117, %c0_118] : memref<8x8x16xf32, #tpu.memory_space<vmem>>, vector<1x8x16xf32>
    %260 = vector.shape_cast %259 : vector<1x8x16xf32> to vector<8x16xf32>
    %261 = vector.shape_cast %257 : vector<8x16xf32> to vector<1x8x16xf32>
    tpu.vector_store %arg18[%258, %c0_117, %c0_118], %261 {strides = array<i32>} : memref<8x8x16xf32, #tpu.memory_space<vmem>>, vector<1x8x16xf32>,
    %262 = vector.shape_cast %257 : vector<8x16xf32> to vector<8x1x16xf32>
    "tpu.trace_start"() <{level = 10 : i32, message = "bqs,bsh->bqh"}> : () -> ()
    %cst_119 = arith.constant dense<0.000000e+00> : vector<8x1x32xf32>
    %263 = tpu.matmul %262, %3, %cst_119 {dimension_numbers = #tpu.dot_dimension_numbers<[2], [1], [1], [2], [0, 0, 0, 1, 1, 2], [0], [0]>} : vector<8x1x16xf32>, vector<8x16x32xf32>, vector<8x1x32xf32> -> vector<8x1x32xf32>
    "tpu.trace_stop"() : () -> ()
    %264 = vector.shape_cast %263 : vector<8x1x32xf32> to vector<8x32xf32>
    %c0_120 = arith.constant 0 : index
    %c0_121 = arith.constant 0 : index
    %c0_122 = arith.constant 0 : index
    %265 = vector.load %arg19[%c0_120, %c0_121, %c0_122] : memref<2x8x32xf32, #tpu.memory_space<vmem>>, vector<1x8x32xf32>
    %266 = vector.shape_cast %265 : vector<1x8x32xf32> to vector<8x32xf32>
    %cst_123 = arith.constant dense<0.000000e+00> : vector<8x128xf32>
    %267 = tpu.matmul %264, %13, %cst_123 {dimension_numbers = #tpu.dot_dimension_numbers<[1], [0], [0], [1], [0, 0, 1, 1], [], []>} : vector<8x32xf32>, vector<32x128xf32>, vector<8x128xf32> -> vector<8x128xf32>
    %cst_124 = arith.constant dense<0.000000e+00> : vector<8x128xf32>
    %268 = tpu.matmul %234, %14, %cst_124 {dimension_numbers = #tpu.dot_dimension_numbers<[1], [0], [0], [1], [0, 0, 1, 1], [], []>} : vector<8x32xf32>, vector<32x128xf32>, vector<8x128xf32> -> vector<8x128xf32>
    %269 = arith.addf %267, %268 : vector<8x128xf32>
    %cst_125 = arith.constant dense<0.000000e+00> : vector<8x128xf32>
    %270 = tpu.matmul %266, %15, %cst_125 {dimension_numbers = #tpu.dot_dimension_numbers<[1], [0], [0], [1], [0, 0, 1, 1], [], []>} : vector<8x32xf32>, vector<32x128xf32>, vector<8x128xf32> -> vector<8x128xf32>
    %271 = arith.addf %269, %270 : vector<8x128xf32>
    %272 = vector.broadcast %16 : vector<1x128xf32> to vector<8x128xf32>
    %273 = arith.addf %271, %272 : vector<8x128xf32>
    %274 = vector.extract_strided_slice %273 {offsets = [0, 0], sizes = [8, 32], strides = [1, 1]} : vector<8x128xf32> to vector<8x32xf32>
    %275 = arith.negf %274 : vector<8x32xf32>
    %276 = math.exp %275 : vector<8x32xf32>
    %cst_126 = arith.constant 1.000000e+00 : f32
    %277 = vector.broadcast %cst_126 : f32 to vector<8x32xf32>
    %278 = arith.addf %277, %276 : vector<8x32xf32>
    %279 = arith.divf %277, %278 : vector<8x32xf32>
    %280 = vector.extract_strided_slice %273 {offsets = [0, 32], sizes = [8, 32], strides = [1, 1]} : vector<8x128xf32> to vector<8x32xf32>
    %281 = arith.negf %280 : vector<8x32xf32>
    %282 = math.exp %281 : vector<8x32xf32>
    %cst_127 = arith.constant 1.000000e+00 : f32
    %283 = vector.broadcast %cst_127 : f32 to vector<8x32xf32>
    %284 = arith.addf %283, %282 : vector<8x32xf32>
    %285 = arith.divf %283, %284 : vector<8x32xf32>
    %286 = vector.extract_strided_slice %273 {offsets = [0, 64], sizes = [8, 32], strides = [1, 1]} : vector<8x128xf32> to vector<8x32xf32>
    %287 = vector.extract_strided_slice %273 {offsets = [0, 96], sizes = [8, 32], strides = [1, 1]} : vector<8x128xf32> to vector<8x32xf32>
    %288 = arith.mulf %279, %287 : vector<8x32xf32>
    %289 = arith.addf %286, %288 : vector<8x32xf32>
    %290 = math.tanh %289 : vector<8x32xf32>
    %cst_128 = arith.constant 1.000000e+00 : f32
    %291 = vector.broadcast %cst_128 : f32 to vector<8x32xf32>
    %292 = arith.subf %291, %285 : vector<8x32xf32>
    %293 = arith.mulf %292, %290 : vector<8x32xf32>
    %294 = arith.mulf %285, %266 : vector<8x32xf32>
    %295 = arith.addf %293, %294 : vector<8x32xf32>
    %c0_129 = arith.constant 0 : index
    %c0_130 = arith.constant 0 : index
    %c0_131 = arith.constant 0 : index
    %296 = vector.load %arg19[%c0_129, %c0_130, %c0_131] : memref<2x8x32xf32, #tpu.memory_space<vmem>>, vector<1x8x32xf32>
    %297 = vector.shape_cast %296 : vector<1x8x32xf32> to vector<8x32xf32>
    %298 = vector.shape_cast %295 : vector<8x32xf32> to vector<1x8x32xf32>
    tpu.vector_store %arg19[%c0_129, %c0_130, %c0_131], %298 {strides = array<i32>} : memref<2x8x32xf32, #tpu.memory_space<vmem>>, vector<1x8x32xf32>,
    %c1_132 = arith.constant 1 : index
    %c0_133 = arith.constant 0 : index
    %c0_134 = arith.constant 0 : index
    %299 = vector.load %arg19[%c1_132, %c0_133, %c0_134] : memref<2x8x32xf32, #tpu.memory_space<vmem>>, vector<1x8x32xf32>
    %300 = vector.shape_cast %299 : vector<1x8x32xf32> to vector<8x32xf32>
    %cst_135 = arith.constant dense<0.000000e+00> : vector<8x128xf32>
    %301 = tpu.matmul %295, %17, %cst_135 {dimension_numbers = #tpu.dot_dimension_numbers<[1], [0], [0], [1], [0, 0, 1, 1], [], []>} : vector<8x32xf32>, vector<32x128xf32>, vector<8x128xf32> -> vector<8x128xf32>
    %cst_136 = arith.constant dense<0.000000e+00> : vector<8x128xf32>
    %302 = tpu.matmul %300, %18, %cst_136 {dimension_numbers = #tpu.dot_dimension_numbers<[1], [0], [0], [1], [0, 0, 1, 1], [], []>} : vector<8x32xf32>, vector<32x128xf32>, vector<8x128xf32> -> vector<8x128xf32>
    %303 = arith.addf %301, %302 : vector<8x128xf32>
    %304 = vector.broadcast %19 : vector<1x128xf32> to vector<8x128xf32>
    %305 = arith.addf %303, %304 : vector<8x128xf32>
    %306 = vector.extract_strided_slice %305 {offsets = [0, 0], sizes = [8, 32], strides = [1, 1]} : vector<8x128xf32> to vector<8x32xf32>
    %307 = arith.negf %306 : vector<8x32xf32>
    %308 = math.exp %307 : vector<8x32xf32>
    %cst_137 = arith.constant 1.000000e+00 : f32
    %309 = vector.broadcast %cst_137 : f32 to vector<8x32xf32>
    %310 = arith.addf %309, %308 : vector<8x32xf32>
    %311 = arith.divf %309, %310 : vector<8x32xf32>
    %312 = vector.extract_strided_slice %305 {offsets = [0, 32], sizes = [8, 32], strides = [1, 1]} : vector<8x128xf32> to vector<8x32xf32>
    %313 = arith.negf %312 : vector<8x32xf32>
    %314 = math.exp %313 : vector<8x32xf32>
    %cst_138 = arith.constant 1.000000e+00 : f32
    %315 = vector.broadcast %cst_138 : f32 to vector<8x32xf32>
    %316 = arith.addf %315, %314 : vector<8x32xf32>
    %317 = arith.divf %315, %316 : vector<8x32xf32>
    %318 = vector.extract_strided_slice %305 {offsets = [0, 64], sizes = [8, 32], strides = [1, 1]} : vector<8x128xf32> to vector<8x32xf32>
    %319 = vector.extract_strided_slice %305 {offsets = [0, 96], sizes = [8, 32], strides = [1, 1]} : vector<8x128xf32> to vector<8x32xf32>
    %320 = arith.mulf %311, %319 : vector<8x32xf32>
    %321 = arith.addf %318, %320 : vector<8x32xf32>
    %322 = math.tanh %321 : vector<8x32xf32>
    %cst_139 = arith.constant 1.000000e+00 : f32
    %323 = vector.broadcast %cst_139 : f32 to vector<8x32xf32>
    %324 = arith.subf %323, %317 : vector<8x32xf32>
    %325 = arith.mulf %324, %322 : vector<8x32xf32>
    %326 = arith.mulf %317, %300 : vector<8x32xf32>
    %327 = arith.addf %325, %326 : vector<8x32xf32>
    %c1_140 = arith.constant 1 : index
    %c0_141 = arith.constant 0 : index
    %c0_142 = arith.constant 0 : index
    %328 = vector.load %arg19[%c1_140, %c0_141, %c0_142] : memref<2x8x32xf32, #tpu.memory_space<vmem>>, vector<1x8x32xf32>
    %329 = vector.shape_cast %328 : vector<1x8x32xf32> to vector<8x32xf32>
    %330 = vector.shape_cast %327 : vector<8x32xf32> to vector<1x8x32xf32>
    tpu.vector_store %arg19[%c1_140, %c0_141, %c0_142], %330 {strides = array<i32>} : memref<2x8x32xf32, #tpu.memory_space<vmem>>, vector<1x8x32xf32>,
    %cst_143 = arith.constant dense<0.000000e+00> : vector<8x128xf32>
    %331 = tpu.matmul %327, %7, %cst_143 {dimension_numbers = #tpu.dot_dimension_numbers<[1], [0], [0], [1], [0, 0, 1, 1], [], []>} : vector<8x32xf32>, vector<32x128xf32>, vector<8x128xf32> -> vector<8x128xf32>
    %332 = vector.broadcast %8 : vector<1x128xf32> to vector<8x128xf32>
    %333 = arith.addf %331, %332 : vector<8x128xf32>
    %334 = arith.index_cast %c2_i32 : i32 to index
    %c0_144 = arith.constant 0 : index
    %c0_145 = arith.constant 0 : index
    %335 = vector.load %arg17[%334, %c0_144, %c0_145] : memref<8x8x128xf32, #tpu.memory_space<vmem>>, vector<1x8x128xf32>
    %336 = vector.shape_cast %335 : vector<1x8x128xf32> to vector<8x128xf32>
    %337 = vector.shape_cast %333 : vector<8x128xf32> to vector<1x8x128xf32>
    tpu.vector_store %arg17[%334, %c0_144, %c0_145], %337 {strides = array<i32>} : memref<8x8x128xf32, #tpu.memory_space<vmem>>, vector<1x8x128xf32>,
    %c3_i32 = arith.constant 3 : i32
    %338 = arith.index_cast %c3_i32 : i32 to index
    %c0_146 = arith.constant 0 : index
    %c0_147 = arith.constant 0 : index
    %339 = vector.load %arg1[%338, %c0_146, %c0_147] : memref<8x8x32xf32, #tpu.memory_space<vmem>>, vector<1x8x32xf32>
    %340 = vector.shape_cast %339 : vector<1x8x32xf32> to vector<8x32xf32>
    %c1_148 = arith.constant 1 : index
    %c0_149 = arith.constant 0 : index
    %c0_150 = arith.constant 0 : index
    %341 = vector.load %arg19[%c1_148, %c0_149, %c0_150] : memref<2x8x32xf32, #tpu.memory_space<vmem>>, vector<1x8x32xf32>
    %342 = vector.shape_cast %341 : vector<1x8x32xf32> to vector<8x32xf32>
    %cst_151 = arith.constant dense<0.000000e+00> : vector<8x32xf32>
    %343 = tpu.matmul %342, %5, %cst_151 {dimension_numbers = #tpu.dot_dimension_numbers<[1], [0], [0], [1], [0, 0, 1, 1], [], []>} : vector<8x32xf32>, vector<32x32xf32>, vector<8x32xf32> -> vector<8x32xf32>
    %344 = vector.shape_cast %343 : vector<8x32xf32> to vector<8x1x32xf32>
    %345 = vector.broadcast %344 : vector<8x1x32xf32> to vector<8x16x32xf32>
    %346 = arith.addf %345, %4 : vector<8x16x32xf32>
    %347 = math.tanh %346 : vector<8x16x32xf32>
    %348 = vector.shape_cast %6 : vector<1x32xf32> to vector<1x1x32xf32>
    %349 = vector.broadcast %348 : vector<1x1x32xf32> to vector<8x16x32xf32>
    %350 = arith.mulf %347, %349 : vector<8x16x32xf32>
    %cst_152 = arith.constant dense<0.000000e+00> : vector<8x16xf32>
    %351 = vector.multi_reduction <add>, %350, %cst_152 [2] : vector<8x16x32xf32> to vector<8x16xf32>
    %cst_153 = arith.constant -1.000000e+06 : f32
    %352 = vector.broadcast %cst_153 : f32 to vector<8x16xf32>
    %353 = arith.select %12, %351, %352 : vector<8x16xi1>, vector<8x16xf32>
    %cst_154 = arith.constant dense<0xFF800000> : vector<8xf32>
    %354 = vector.multi_reduction <maximumf>, %353, %cst_154 [1] : vector<8x16xf32> to vector<8xf32>
    %355 = vector.shape_cast %354 : vector<8xf32> to vector<8x1xf32>
    %356 = vector.broadcast %355 : vector<8x1xf32> to vector<8x16xf32>
    %357 = arith.subf %353, %356 : vector<8x16xf32>
    %358 = math.exp %357 : vector<8x16xf32>
    %cst_155 = arith.constant dense<0.000000e+00> : vector<8xf32>
    %359 = vector.multi_reduction <add>, %358, %cst_155 [1] : vector<8x16xf32> to vector<8xf32>
    %360 = vector.shape_cast %359 : vector<8xf32> to vector<8x1xf32>
    %361 = tpu.reciprocal %360 {approx = true} : vector<8x1xf32> -> vector<8x1xf32>
    %362 = vector.broadcast %361 : vector<8x1xf32> to vector<8x16xf32>
    %363 = arith.mulf %358, %362 : vector<8x16xf32>
    %364 = arith.index_cast %c3_i32 : i32 to index
    %c0_156 = arith.constant 0 : index
    %c0_157 = arith.constant 0 : index
    %365 = vector.load %arg18[%364, %c0_156, %c0_157] : memref<8x8x16xf32, #tpu.memory_space<vmem>>, vector<1x8x16xf32>
    %366 = vector.shape_cast %365 : vector<1x8x16xf32> to vector<8x16xf32>
    %367 = vector.shape_cast %363 : vector<8x16xf32> to vector<1x8x16xf32>
    tpu.vector_store %arg18[%364, %c0_156, %c0_157], %367 {strides = array<i32>} : memref<8x8x16xf32, #tpu.memory_space<vmem>>, vector<1x8x16xf32>,
    %368 = vector.shape_cast %363 : vector<8x16xf32> to vector<8x1x16xf32>
    "tpu.trace_start"() <{level = 10 : i32, message = "bqs,bsh->bqh"}> : () -> ()
    %cst_158 = arith.constant dense<0.000000e+00> : vector<8x1x32xf32>
    %369 = tpu.matmul %368, %3, %cst_158 {dimension_numbers = #tpu.dot_dimension_numbers<[2], [1], [1], [2], [0, 0, 0, 1, 1, 2], [0], [0]>} : vector<8x1x16xf32>, vector<8x16x32xf32>, vector<8x1x32xf32> -> vector<8x1x32xf32>
    "tpu.trace_stop"() : () -> ()
    %370 = vector.shape_cast %369 : vector<8x1x32xf32> to vector<8x32xf32>
    %c0_159 = arith.constant 0 : index
    %c0_160 = arith.constant 0 : index
    %c0_161 = arith.constant 0 : index
    %371 = vector.load %arg19[%c0_159, %c0_160, %c0_161] : memref<2x8x32xf32, #tpu.memory_space<vmem>>, vector<1x8x32xf32>
    %372 = vector.shape_cast %371 : vector<1x8x32xf32> to vector<8x32xf32>
    %cst_162 = arith.constant dense<0.000000e+00> : vector<8x128xf32>
    %373 = tpu.matmul %370, %13, %cst_162 {dimension_numbers = #tpu.dot_dimension_numbers<[1], [0], [0], [1], [0, 0, 1, 1], [], []>} : vector<8x32xf32>, vector<32x128xf32>, vector<8x128xf32> -> vector<8x128xf32>
    %cst_163 = arith.constant dense<0.000000e+00> : vector<8x128xf32>
    %374 = tpu.matmul %340, %14, %cst_163 {dimension_numbers = #tpu.dot_dimension_numbers<[1], [0], [0], [1], [0, 0, 1, 1], [], []>} : vector<8x32xf32>, vector<32x128xf32>, vector<8x128xf32> -> vector<8x128xf32>
    %375 = arith.addf %373, %374 : vector<8x128xf32>
    %cst_164 = arith.constant dense<0.000000e+00> : vector<8x128xf32>
    %376 = tpu.matmul %372, %15, %cst_164 {dimension_numbers = #tpu.dot_dimension_numbers<[1], [0], [0], [1], [0, 0, 1, 1], [], []>} : vector<8x32xf32>, vector<32x128xf32>, vector<8x128xf32> -> vector<8x128xf32>
    %377 = arith.addf %375, %376 : vector<8x128xf32>
    %378 = vector.broadcast %16 : vector<1x128xf32> to vector<8x128xf32>
    %379 = arith.addf %377, %378 : vector<8x128xf32>
    %380 = vector.extract_strided_slice %379 {offsets = [0, 0], sizes = [8, 32], strides = [1, 1]} : vector<8x128xf32> to vector<8x32xf32>
    %381 = arith.negf %380 : vector<8x32xf32>
    %382 = math.exp %381 : vector<8x32xf32>
    %cst_165 = arith.constant 1.000000e+00 : f32
    %383 = vector.broadcast %cst_165 : f32 to vector<8x32xf32>
    %384 = arith.addf %383, %382 : vector<8x32xf32>
    %385 = arith.divf %383, %384 : vector<8x32xf32>
    %386 = vector.extract_strided_slice %379 {offsets = [0, 32], sizes = [8, 32], strides = [1, 1]} : vector<8x128xf32> to vector<8x32xf32>
    %387 = arith.negf %386 : vector<8x32xf32>
    %388 = math.exp %387 : vector<8x32xf32>
    %cst_166 = arith.constant 1.000000e+00 : f32
    %389 = vector.broadcast %cst_166 : f32 to vector<8x32xf32>
    %390 = arith.addf %389, %388 : vector<8x32xf32>
    %391 = arith.divf %389, %390 : vector<8x32xf32>
    %392 = vector.extract_strided_slice %379 {offsets = [0, 64], sizes = [8, 32], strides = [1, 1]} : vector<8x128xf32> to vector<8x32xf32>
    %393 = vector.extract_strided_slice %379 {offsets = [0, 96], sizes = [8, 32], strides = [1, 1]} : vector<8x128xf32> to vector<8x32xf32>
    %394 = arith.mulf %385, %393 : vector<8x32xf32>
    %395 = arith.addf %392, %394 : vector<8x32xf32>
    %396 = math.tanh %395 : vector<8x32xf32>
    %cst_167 = arith.constant 1.000000e+00 : f32
    %397 = vector.broadcast %cst_167 : f32 to vector<8x32xf32>
    %398 = arith.subf %397, %391 : vector<8x32xf32>
    %399 = arith.mulf %398, %396 : vector<8x32xf32>
    %400 = arith.mulf %391, %372 : vector<8x32xf32>
    %401 = arith.addf %399, %400 : vector<8x32xf32>
    %c0_168 = arith.constant 0 : index
    %c0_169 = arith.constant 0 : index
    %c0_170 = arith.constant 0 : index
    %402 = vector.load %arg19[%c0_168, %c0_169, %c0_170] : memref<2x8x32xf32, #tpu.memory_space<vmem>>, vector<1x8x32xf32>
    %403 = vector.shape_cast %402 : vector<1x8x32xf32> to vector<8x32xf32>
    %404 = vector.shape_cast %401 : vector<8x32xf32> to vector<1x8x32xf32>
    tpu.vector_store %arg19[%c0_168, %c0_169, %c0_170], %404 {strides = array<i32>} : memref<2x8x32xf32, #tpu.memory_space<vmem>>, vector<1x8x32xf32>,
    %c1_171 = arith.constant 1 : index
    %c0_172 = arith.constant 0 : index
    %c0_173 = arith.constant 0 : index
    %405 = vector.load %arg19[%c1_171, %c0_172, %c0_173] : memref<2x8x32xf32, #tpu.memory_space<vmem>>, vector<1x8x32xf32>
    %406 = vector.shape_cast %405 : vector<1x8x32xf32> to vector<8x32xf32>
    %cst_174 = arith.constant dense<0.000000e+00> : vector<8x128xf32>
    %407 = tpu.matmul %401, %17, %cst_174 {dimension_numbers = #tpu.dot_dimension_numbers<[1], [0], [0], [1], [0, 0, 1, 1], [], []>} : vector<8x32xf32>, vector<32x128xf32>, vector<8x128xf32> -> vector<8x128xf32>
    %cst_175 = arith.constant dense<0.000000e+00> : vector<8x128xf32>
    %408 = tpu.matmul %406, %18, %cst_175 {dimension_numbers = #tpu.dot_dimension_numbers<[1], [0], [0], [1], [0, 0, 1, 1], [], []>} : vector<8x32xf32>, vector<32x128xf32>, vector<8x128xf32> -> vector<8x128xf32>
    %409 = arith.addf %407, %408 : vector<8x128xf32>
    %410 = vector.broadcast %19 : vector<1x128xf32> to vector<8x128xf32>
    %411 = arith.addf %409, %410 : vector<8x128xf32>
    %412 = vector.extract_strided_slice %411 {offsets = [0, 0], sizes = [8, 32], strides = [1, 1]} : vector<8x128xf32> to vector<8x32xf32>
    %413 = arith.negf %412 : vector<8x32xf32>
    %414 = math.exp %413 : vector<8x32xf32>
    %cst_176 = arith.constant 1.000000e+00 : f32
    %415 = vector.broadcast %cst_176 : f32 to vector<8x32xf32>
    %416 = arith.addf %415, %414 : vector<8x32xf32>
    %417 = arith.divf %415, %416 : vector<8x32xf32>
    %418 = vector.extract_strided_slice %411 {offsets = [0, 32], sizes = [8, 32], strides = [1, 1]} : vector<8x128xf32> to vector<8x32xf32>
    %419 = arith.negf %418 : vector<8x32xf32>
    %420 = math.exp %419 : vector<8x32xf32>
    %cst_177 = arith.constant 1.000000e+00 : f32
    %421 = vector.broadcast %cst_177 : f32 to vector<8x32xf32>
    %422 = arith.addf %421, %420 : vector<8x32xf32>
    %423 = arith.divf %421, %422 : vector<8x32xf32>
    %424 = vector.extract_strided_slice %411 {offsets = [0, 64], sizes = [8, 32], strides = [1, 1]} : vector<8x128xf32> to vector<8x32xf32>
    %425 = vector.extract_strided_slice %411 {offsets = [0, 96], sizes = [8, 32], strides = [1, 1]} : vector<8x128xf32> to vector<8x32xf32>
    %426 = arith.mulf %417, %425 : vector<8x32xf32>
    %427 = arith.addf %424, %426 : vector<8x32xf32>
    %428 = math.tanh %427 : vector<8x32xf32>
    %cst_178 = arith.constant 1.000000e+00 : f32
    %429 = vector.broadcast %cst_178 : f32 to vector<8x32xf32>
    %430 = arith.subf %429, %423 : vector<8x32xf32>
    %431 = arith.mulf %430, %428 : vector<8x32xf32>
    %432 = arith.mulf %423, %406 : vector<8x32xf32>
    %433 = arith.addf %431, %432 : vector<8x32xf32>
    %c1_179 = arith.constant 1 : index
    %c0_180 = arith.constant 0 : index
    %c0_181 = arith.constant 0 : index
    %434 = vector.load %arg19[%c1_179, %c0_180, %c0_181] : memref<2x8x32xf32, #tpu.memory_space<vmem>>, vector<1x8x32xf32>
    %435 = vector.shape_cast %434 : vector<1x8x32xf32> to vector<8x32xf32>
    %436 = vector.shape_cast %433 : vector<8x32xf32> to vector<1x8x32xf32>
    tpu.vector_store %arg19[%c1_179, %c0_180, %c0_181], %436 {strides = array<i32>} : memref<2x8x32xf32, #tpu.memory_space<vmem>>, vector<1x8x32xf32>,
    %cst_182 = arith.constant dense<0.000000e+00> : vector<8x128xf32>
    %437 = tpu.matmul %433, %7, %cst_182 {dimension_numbers = #tpu.dot_dimension_numbers<[1], [0], [0], [1], [0, 0, 1, 1], [], []>} : vector<8x32xf32>, vector<32x128xf32>, vector<8x128xf32> -> vector<8x128xf32>
    %438 = vector.broadcast %8 : vector<1x128xf32> to vector<8x128xf32>
    %439 = arith.addf %437, %438 : vector<8x128xf32>
    %440 = arith.index_cast %c3_i32 : i32 to index
    %c0_183 = arith.constant 0 : index
    %c0_184 = arith.constant 0 : index
    %441 = vector.load %arg17[%440, %c0_183, %c0_184] : memref<8x8x128xf32, #tpu.memory_space<vmem>>, vector<1x8x128xf32>
    %442 = vector.shape_cast %441 : vector<1x8x128xf32> to vector<8x128xf32>
    %443 = vector.shape_cast %439 : vector<8x128xf32> to vector<1x8x128xf32>
    tpu.vector_store %arg17[%440, %c0_183, %c0_184], %443 {strides = array<i32>} : memref<8x8x128xf32, #tpu.memory_space<vmem>>, vector<1x8x128xf32>,
    %c4_i32 = arith.constant 4 : i32
    %444 = arith.index_cast %c4_i32 : i32 to index
    %c0_185 = arith.constant 0 : index
    %c0_186 = arith.constant 0 : index
    %445 = vector.load %arg1[%444, %c0_185, %c0_186] : memref<8x8x32xf32, #tpu.memory_space<vmem>>, vector<1x8x32xf32>
    %446 = vector.shape_cast %445 : vector<1x8x32xf32> to vector<8x32xf32>
    %c1_187 = arith.constant 1 : index
    %c0_188 = arith.constant 0 : index
    %c0_189 = arith.constant 0 : index
    %447 = vector.load %arg19[%c1_187, %c0_188, %c0_189] : memref<2x8x32xf32, #tpu.memory_space<vmem>>, vector<1x8x32xf32>
    %448 = vector.shape_cast %447 : vector<1x8x32xf32> to vector<8x32xf32>
    %cst_190 = arith.constant dense<0.000000e+00> : vector<8x32xf32>
    %449 = tpu.matmul %448, %5, %cst_190 {dimension_numbers = #tpu.dot_dimension_numbers<[1], [0], [0], [1], [0, 0, 1, 1], [], []>} : vector<8x32xf32>, vector<32x32xf32>, vector<8x32xf32> -> vector<8x32xf32>
    %450 = vector.shape_cast %449 : vector<8x32xf32> to vector<8x1x32xf32>
    %451 = vector.broadcast %450 : vector<8x1x32xf32> to vector<8x16x32xf32>
    %452 = arith.addf %451, %4 : vector<8x16x32xf32>
    %453 = math.tanh %452 : vector<8x16x32xf32>
    %454 = vector.shape_cast %6 : vector<1x32xf32> to vector<1x1x32xf32>
    %455 = vector.broadcast %454 : vector<1x1x32xf32> to vector<8x16x32xf32>
    %456 = arith.mulf %453, %455 : vector<8x16x32xf32>
    %cst_191 = arith.constant dense<0.000000e+00> : vector<8x16xf32>
    %457 = vector.multi_reduction <add>, %456, %cst_191 [2] : vector<8x16x32xf32> to vector<8x16xf32>
    %cst_192 = arith.constant -1.000000e+06 : f32
    %458 = vector.broadcast %cst_192 : f32 to vector<8x16xf32>
    %459 = arith.select %12, %457, %458 : vector<8x16xi1>, vector<8x16xf32>
    %cst_193 = arith.constant dense<0xFF800000> : vector<8xf32>
    %460 = vector.multi_reduction <maximumf>, %459, %cst_193 [1] : vector<8x16xf32> to vector<8xf32>
    %461 = vector.shape_cast %460 : vector<8xf32> to vector<8x1xf32>
    %462 = vector.broadcast %461 : vector<8x1xf32> to vector<8x16xf32>
    %463 = arith.subf %459, %462 : vector<8x16xf32>
    %464 = math.exp %463 : vector<8x16xf32>
    %cst_194 = arith.constant dense<0.000000e+00> : vector<8xf32>
    %465 = vector.multi_reduction <add>, %464, %cst_194 [1] : vector<8x16xf32> to vector<8xf32>
    %466 = vector.shape_cast %465 : vector<8xf32> to vector<8x1xf32>
    %467 = tpu.reciprocal %466 {approx = true} : vector<8x1xf32> -> vector<8x1xf32>
    %468 = vector.broadcast %467 : vector<8x1xf32> to vector<8x16xf32>
    %469 = arith.mulf %464, %468 : vector<8x16xf32>
    %470 = arith.index_cast %c4_i32 : i32 to index
    %c0_195 = arith.constant 0 : index
    %c0_196 = arith.constant 0 : index
    %471 = vector.load %arg18[%470, %c0_195, %c0_196] : memref<8x8x16xf32, #tpu.memory_space<vmem>>, vector<1x8x16xf32>
    %472 = vector.shape_cast %471 : vector<1x8x16xf32> to vector<8x16xf32>
    %473 = vector.shape_cast %469 : vector<8x16xf32> to vector<1x8x16xf32>
    tpu.vector_store %arg18[%470, %c0_195, %c0_196], %473 {strides = array<i32>} : memref<8x8x16xf32, #tpu.memory_space<vmem>>, vector<1x8x16xf32>,
    %474 = vector.shape_cast %469 : vector<8x16xf32> to vector<8x1x16xf32>
    "tpu.trace_start"() <{level = 10 : i32, message = "bqs,bsh->bqh"}> : () -> ()
    %cst_197 = arith.constant dense<0.000000e+00> : vector<8x1x32xf32>
    %475 = tpu.matmul %474, %3, %cst_197 {dimension_numbers = #tpu.dot_dimension_numbers<[2], [1], [1], [2], [0, 0, 0, 1, 1, 2], [0], [0]>} : vector<8x1x16xf32>, vector<8x16x32xf32>, vector<8x1x32xf32> -> vector<8x1x32xf32>
    "tpu.trace_stop"() : () -> ()
    %476 = vector.shape_cast %475 : vector<8x1x32xf32> to vector<8x32xf32>
    %c0_198 = arith.constant 0 : index
    %c0_199 = arith.constant 0 : index
    %c0_200 = arith.constant 0 : index
    %477 = vector.load %arg19[%c0_198, %c0_199, %c0_200] : memref<2x8x32xf32, #tpu.memory_space<vmem>>, vector<1x8x32xf32>
    %478 = vector.shape_cast %477 : vector<1x8x32xf32> to vector<8x32xf32>
    %cst_201 = arith.constant dense<0.000000e+00> : vector<8x128xf32>
    %479 = tpu.matmul %476, %13, %cst_201 {dimension_numbers = #tpu.dot_dimension_numbers<[1], [0], [0], [1], [0, 0, 1, 1], [], []>} : vector<8x32xf32>, vector<32x128xf32>, vector<8x128xf32> -> vector<8x128xf32>
    %cst_202 = arith.constant dense<0.000000e+00> : vector<8x128xf32>
    %480 = tpu.matmul %446, %14, %cst_202 {dimension_numbers = #tpu.dot_dimension_numbers<[1], [0], [0], [1], [0, 0, 1, 1], [], []>} : vector<8x32xf32>, vector<32x128xf32>, vector<8x128xf32> -> vector<8x128xf32>
    %481 = arith.addf %479, %480 : vector<8x128xf32>
    %cst_203 = arith.constant dense<0.000000e+00> : vector<8x128xf32>
    %482 = tpu.matmul %478, %15, %cst_203 {dimension_numbers = #tpu.dot_dimension_numbers<[1], [0], [0], [1], [0, 0, 1, 1], [], []>} : vector<8x32xf32>, vector<32x128xf32>, vector<8x128xf32> -> vector<8x128xf32>
    %483 = arith.addf %481, %482 : vector<8x128xf32>
    %484 = vector.broadcast %16 : vector<1x128xf32> to vector<8x128xf32>
    %485 = arith.addf %483, %484 : vector<8x128xf32>
    %486 = vector.extract_strided_slice %485 {offsets = [0, 0], sizes = [8, 32], strides = [1, 1]} : vector<8x128xf32> to vector<8x32xf32>
    %487 = arith.negf %486 : vector<8x32xf32>
    %488 = math.exp %487 : vector<8x32xf32>
    %cst_204 = arith.constant 1.000000e+00 : f32
    %489 = vector.broadcast %cst_204 : f32 to vector<8x32xf32>
    %490 = arith.addf %489, %488 : vector<8x32xf32>
    %491 = arith.divf %489, %490 : vector<8x32xf32>
    %492 = vector.extract_strided_slice %485 {offsets = [0, 32], sizes = [8, 32], strides = [1, 1]} : vector<8x128xf32> to vector<8x32xf32>
    %493 = arith.negf %492 : vector<8x32xf32>
    %494 = math.exp %493 : vector<8x32xf32>
    %cst_205 = arith.constant 1.000000e+00 : f32
    %495 = vector.broadcast %cst_205 : f32 to vector<8x32xf32>
    %496 = arith.addf %495, %494 : vector<8x32xf32>
    %497 = arith.divf %495, %496 : vector<8x32xf32>
    %498 = vector.extract_strided_slice %485 {offsets = [0, 64], sizes = [8, 32], strides = [1, 1]} : vector<8x128xf32> to vector<8x32xf32>
    %499 = vector.extract_strided_slice %485 {offsets = [0, 96], sizes = [8, 32], strides = [1, 1]} : vector<8x128xf32> to vector<8x32xf32>
    %500 = arith.mulf %491, %499 : vector<8x32xf32>
    %501 = arith.addf %498, %500 : vector<8x32xf32>
    %502 = math.tanh %501 : vector<8x32xf32>
    %cst_206 = arith.constant 1.000000e+00 : f32
    %503 = vector.broadcast %cst_206 : f32 to vector<8x32xf32>
    %504 = arith.subf %503, %497 : vector<8x32xf32>
    %505 = arith.mulf %504, %502 : vector<8x32xf32>
    %506 = arith.mulf %497, %478 : vector<8x32xf32>
    %507 = arith.addf %505, %506 : vector<8x32xf32>
    %c0_207 = arith.constant 0 : index
    %c0_208 = arith.constant 0 : index
    %c0_209 = arith.constant 0 : index
    %508 = vector.load %arg19[%c0_207, %c0_208, %c0_209] : memref<2x8x32xf32, #tpu.memory_space<vmem>>, vector<1x8x32xf32>
    %509 = vector.shape_cast %508 : vector<1x8x32xf32> to vector<8x32xf32>
    %510 = vector.shape_cast %507 : vector<8x32xf32> to vector<1x8x32xf32>
    tpu.vector_store %arg19[%c0_207, %c0_208, %c0_209], %510 {strides = array<i32>} : memref<2x8x32xf32, #tpu.memory_space<vmem>>, vector<1x8x32xf32>,
    %c1_210 = arith.constant 1 : index
    %c0_211 = arith.constant 0 : index
    %c0_212 = arith.constant 0 : index
    %511 = vector.load %arg19[%c1_210, %c0_211, %c0_212] : memref<2x8x32xf32, #tpu.memory_space<vmem>>, vector<1x8x32xf32>
    %512 = vector.shape_cast %511 : vector<1x8x32xf32> to vector<8x32xf32>
    %cst_213 = arith.constant dense<0.000000e+00> : vector<8x128xf32>
    %513 = tpu.matmul %507, %17, %cst_213 {dimension_numbers = #tpu.dot_dimension_numbers<[1], [0], [0], [1], [0, 0, 1, 1], [], []>} : vector<8x32xf32>, vector<32x128xf32>, vector<8x128xf32> -> vector<8x128xf32>
    %cst_214 = arith.constant dense<0.000000e+00> : vector<8x128xf32>
    %514 = tpu.matmul %512, %18, %cst_214 {dimension_numbers = #tpu.dot_dimension_numbers<[1], [0], [0], [1], [0, 0, 1, 1], [], []>} : vector<8x32xf32>, vector<32x128xf32>, vector<8x128xf32> -> vector<8x128xf32>
    %515 = arith.addf %513, %514 : vector<8x128xf32>
    %516 = vector.broadcast %19 : vector<1x128xf32> to vector<8x128xf32>
    %517 = arith.addf %515, %516 : vector<8x128xf32>
    %518 = vector.extract_strided_slice %517 {offsets = [0, 0], sizes = [8, 32], strides = [1, 1]} : vector<8x128xf32> to vector<8x32xf32>
    %519 = arith.negf %518 : vector<8x32xf32>
    %520 = math.exp %519 : vector<8x32xf32>
    %cst_215 = arith.constant 1.000000e+00 : f32
    %521 = vector.broadcast %cst_215 : f32 to vector<8x32xf32>
    %522 = arith.addf %521, %520 : vector<8x32xf32>
    %523 = arith.divf %521, %522 : vector<8x32xf32>
    %524 = vector.extract_strided_slice %517 {offsets = [0, 32], sizes = [8, 32], strides = [1, 1]} : vector<8x128xf32> to vector<8x32xf32>
    %525 = arith.negf %524 : vector<8x32xf32>
    %526 = math.exp %525 : vector<8x32xf32>
    %cst_216 = arith.constant 1.000000e+00 : f32
    %527 = vector.broadcast %cst_216 : f32 to vector<8x32xf32>
    %528 = arith.addf %527, %526 : vector<8x32xf32>
    %529 = arith.divf %527, %528 : vector<8x32xf32>
    %530 = vector.extract_strided_slice %517 {offsets = [0, 64], sizes = [8, 32], strides = [1, 1]} : vector<8x128xf32> to vector<8x32xf32>
    %531 = vector.extract_strided_slice %517 {offsets = [0, 96], sizes = [8, 32], strides = [1, 1]} : vector<8x128xf32> to vector<8x32xf32>
    %532 = arith.mulf %523, %531 : vector<8x32xf32>
    %533 = arith.addf %530, %532 : vector<8x32xf32>
    %534 = math.tanh %533 : vector<8x32xf32>
    %cst_217 = arith.constant 1.000000e+00 : f32
    %535 = vector.broadcast %cst_217 : f32 to vector<8x32xf32>
    %536 = arith.subf %535, %529 : vector<8x32xf32>
    %537 = arith.mulf %536, %534 : vector<8x32xf32>
    %538 = arith.mulf %529, %512 : vector<8x32xf32>
    %539 = arith.addf %537, %538 : vector<8x32xf32>
    %c1_218 = arith.constant 1 : index
    %c0_219 = arith.constant 0 : index
    %c0_220 = arith.constant 0 : index
    %540 = vector.load %arg19[%c1_218, %c0_219, %c0_220] : memref<2x8x32xf32, #tpu.memory_space<vmem>>, vector<1x8x32xf32>
    %541 = vector.shape_cast %540 : vector<1x8x32xf32> to vector<8x32xf32>
    %542 = vector.shape_cast %539 : vector<8x32xf32> to vector<1x8x32xf32>
    tpu.vector_store %arg19[%c1_218, %c0_219, %c0_220], %542 {strides = array<i32>} : memref<2x8x32xf32, #tpu.memory_space<vmem>>, vector<1x8x32xf32>,
    %cst_221 = arith.constant dense<0.000000e+00> : vector<8x128xf32>
    %543 = tpu.matmul %539, %7, %cst_221 {dimension_numbers = #tpu.dot_dimension_numbers<[1], [0], [0], [1], [0, 0, 1, 1], [], []>} : vector<8x32xf32>, vector<32x128xf32>, vector<8x128xf32> -> vector<8x128xf32>
    %544 = vector.broadcast %8 : vector<1x128xf32> to vector<8x128xf32>
    %545 = arith.addf %543, %544 : vector<8x128xf32>
    %546 = arith.index_cast %c4_i32 : i32 to index
    %c0_222 = arith.constant 0 : index
    %c0_223 = arith.constant 0 : index
    %547 = vector.load %arg17[%546, %c0_222, %c0_223] : memref<8x8x128xf32, #tpu.memory_space<vmem>>, vector<1x8x128xf32>
    %548 = vector.shape_cast %547 : vector<1x8x128xf32> to vector<8x128xf32>
    %549 = vector.shape_cast %545 : vector<8x128xf32> to vector<1x8x128xf32>
    tpu.vector_store %arg17[%546, %c0_222, %c0_223], %549 {strides = array<i32>} : memref<8x8x128xf32, #tpu.memory_space<vmem>>, vector<1x8x128xf32>,
    %c5_i32 = arith.constant 5 : i32
    %550 = arith.index_cast %c5_i32 : i32 to index
    %c0_224 = arith.constant 0 : index
    %c0_225 = arith.constant 0 : index
    %551 = vector.load %arg1[%550, %c0_224, %c0_225] : memref<8x8x32xf32, #tpu.memory_space<vmem>>, vector<1x8x32xf32>
    %552 = vector.shape_cast %551 : vector<1x8x32xf32> to vector<8x32xf32>
    %c1_226 = arith.constant 1 : index
    %c0_227 = arith.constant 0 : index
    %c0_228 = arith.constant 0 : index
    %553 = vector.load %arg19[%c1_226, %c0_227, %c0_228] : memref<2x8x32xf32, #tpu.memory_space<vmem>>, vector<1x8x32xf32>
    %554 = vector.shape_cast %553 : vector<1x8x32xf32> to vector<8x32xf32>
    %cst_229 = arith.constant dense<0.000000e+00> : vector<8x32xf32>
    %555 = tpu.matmul %554, %5, %cst_229 {dimension_numbers = #tpu.dot_dimension_numbers<[1], [0], [0], [1], [0, 0, 1, 1], [], []>} : vector<8x32xf32>, vector<32x32xf32>, vector<8x32xf32> -> vector<8x32xf32>
    %556 = vector.shape_cast %555 : vector<8x32xf32> to vector<8x1x32xf32>
    %557 = vector.broadcast %556 : vector<8x1x32xf32> to vector<8x16x32xf32>
    %558 = arith.addf %557, %4 : vector<8x16x32xf32>
    %559 = math.tanh %558 : vector<8x16x32xf32>
    %560 = vector.shape_cast %6 : vector<1x32xf32> to vector<1x1x32xf32>
    %561 = vector.broadcast %560 : vector<1x1x32xf32> to vector<8x16x32xf32>
    %562 = arith.mulf %559, %561 : vector<8x16x32xf32>
    %cst_230 = arith.constant dense<0.000000e+00> : vector<8x16xf32>
    %563 = vector.multi_reduction <add>, %562, %cst_230 [2] : vector<8x16x32xf32> to vector<8x16xf32>
    %cst_231 = arith.constant -1.000000e+06 : f32
    %564 = vector.broadcast %cst_231 : f32 to vector<8x16xf32>
    %565 = arith.select %12, %563, %564 : vector<8x16xi1>, vector<8x16xf32>
    %cst_232 = arith.constant dense<0xFF800000> : vector<8xf32>
    %566 = vector.multi_reduction <maximumf>, %565, %cst_232 [1] : vector<8x16xf32> to vector<8xf32>
    %567 = vector.shape_cast %566 : vector<8xf32> to vector<8x1xf32>
    %568 = vector.broadcast %567 : vector<8x1xf32> to vector<8x16xf32>
    %569 = arith.subf %565, %568 : vector<8x16xf32>
    %570 = math.exp %569 : vector<8x16xf32>
    %cst_233 = arith.constant dense<0.000000e+00> : vector<8xf32>
    %571 = vector.multi_reduction <add>, %570, %cst_233 [1] : vector<8x16xf32> to vector<8xf32>
    %572 = vector.shape_cast %571 : vector<8xf32> to vector<8x1xf32>
    %573 = tpu.reciprocal %572 {approx = true} : vector<8x1xf32> -> vector<8x1xf32>
    %574 = vector.broadcast %573 : vector<8x1xf32> to vector<8x16xf32>
    %575 = arith.mulf %570, %574 : vector<8x16xf32>
    %576 = arith.index_cast %c5_i32 : i32 to index
    %c0_234 = arith.constant 0 : index
    %c0_235 = arith.constant 0 : index
    %577 = vector.load %arg18[%576, %c0_234, %c0_235] : memref<8x8x16xf32, #tpu.memory_space<vmem>>, vector<1x8x16xf32>
    %578 = vector.shape_cast %577 : vector<1x8x16xf32> to vector<8x16xf32>
    %579 = vector.shape_cast %575 : vector<8x16xf32> to vector<1x8x16xf32>
    tpu.vector_store %arg18[%576, %c0_234, %c0_235], %579 {strides = array<i32>} : memref<8x8x16xf32, #tpu.memory_space<vmem>>, vector<1x8x16xf32>,
    %580 = vector.shape_cast %575 : vector<8x16xf32> to vector<8x1x16xf32>
    "tpu.trace_start"() <{level = 10 : i32, message = "bqs,bsh->bqh"}> : () -> ()
    %cst_236 = arith.constant dense<0.000000e+00> : vector<8x1x32xf32>
    %581 = tpu.matmul %580, %3, %cst_236 {dimension_numbers = #tpu.dot_dimension_numbers<[2], [1], [1], [2], [0, 0, 0, 1, 1, 2], [0], [0]>} : vector<8x1x16xf32>, vector<8x16x32xf32>, vector<8x1x32xf32> -> vector<8x1x32xf32>
    "tpu.trace_stop"() : () -> ()
    %582 = vector.shape_cast %581 : vector<8x1x32xf32> to vector<8x32xf32>
    %c0_237 = arith.constant 0 : index
    %c0_238 = arith.constant 0 : index
    %c0_239 = arith.constant 0 : index
    %583 = vector.load %arg19[%c0_237, %c0_238, %c0_239] : memref<2x8x32xf32, #tpu.memory_space<vmem>>, vector<1x8x32xf32>
    %584 = vector.shape_cast %583 : vector<1x8x32xf32> to vector<8x32xf32>
    %cst_240 = arith.constant dense<0.000000e+00> : vector<8x128xf32>
    %585 = tpu.matmul %582, %13, %cst_240 {dimension_numbers = #tpu.dot_dimension_numbers<[1], [0], [0], [1], [0, 0, 1, 1], [], []>} : vector<8x32xf32>, vector<32x128xf32>, vector<8x128xf32> -> vector<8x128xf32>
    %cst_241 = arith.constant dense<0.000000e+00> : vector<8x128xf32>
    %586 = tpu.matmul %552, %14, %cst_241 {dimension_numbers = #tpu.dot_dimension_numbers<[1], [0], [0], [1], [0, 0, 1, 1], [], []>} : vector<8x32xf32>, vector<32x128xf32>, vector<8x128xf32> -> vector<8x128xf32>
    %587 = arith.addf %585, %586 : vector<8x128xf32>
    %cst_242 = arith.constant dense<0.000000e+00> : vector<8x128xf32>
    %588 = tpu.matmul %584, %15, %cst_242 {dimension_numbers = #tpu.dot_dimension_numbers<[1], [0], [0], [1], [0, 0, 1, 1], [], []>} : vector<8x32xf32>, vector<32x128xf32>, vector<8x128xf32> -> vector<8x128xf32>
    %589 = arith.addf %587, %588 : vector<8x128xf32>
    %590 = vector.broadcast %16 : vector<1x128xf32> to vector<8x128xf32>
    %591 = arith.addf %589, %590 : vector<8x128xf32>
    %592 = vector.extract_strided_slice %591 {offsets = [0, 0], sizes = [8, 32], strides = [1, 1]} : vector<8x128xf32> to vector<8x32xf32>
    %593 = arith.negf %592 : vector<8x32xf32>
    %594 = math.exp %593 : vector<8x32xf32>
    %cst_243 = arith.constant 1.000000e+00 : f32
    %595 = vector.broadcast %cst_243 : f32 to vector<8x32xf32>
    %596 = arith.addf %595, %594 : vector<8x32xf32>
    %597 = arith.divf %595, %596 : vector<8x32xf32>
    %598 = vector.extract_strided_slice %591 {offsets = [0, 32], sizes = [8, 32], strides = [1, 1]} : vector<8x128xf32> to vector<8x32xf32>
    %599 = arith.negf %598 : vector<8x32xf32>
    %600 = math.exp %599 : vector<8x32xf32>
    %cst_244 = arith.constant 1.000000e+00 : f32
    %601 = vector.broadcast %cst_244 : f32 to vector<8x32xf32>
    %602 = arith.addf %601, %600 : vector<8x32xf32>
    %603 = arith.divf %601, %602 : vector<8x32xf32>
    %604 = vector.extract_strided_slice %591 {offsets = [0, 64], sizes = [8, 32], strides = [1, 1]} : vector<8x128xf32> to vector<8x32xf32>
    %605 = vector.extract_strided_slice %591 {offsets = [0, 96], sizes = [8, 32], strides = [1, 1]} : vector<8x128xf32> to vector<8x32xf32>
    %606 = arith.mulf %597, %605 : vector<8x32xf32>
    %607 = arith.addf %604, %606 : vector<8x32xf32>
    %608 = math.tanh %607 : vector<8x32xf32>
    %cst_245 = arith.constant 1.000000e+00 : f32
    %609 = vector.broadcast %cst_245 : f32 to vector<8x32xf32>
    %610 = arith.subf %609, %603 : vector<8x32xf32>
    %611 = arith.mulf %610, %608 : vector<8x32xf32>
    %612 = arith.mulf %603, %584 : vector<8x32xf32>
    %613 = arith.addf %611, %612 : vector<8x32xf32>
    %c0_246 = arith.constant 0 : index
    %c0_247 = arith.constant 0 : index
    %c0_248 = arith.constant 0 : index
    %614 = vector.load %arg19[%c0_246, %c0_247, %c0_248] : memref<2x8x32xf32, #tpu.memory_space<vmem>>, vector<1x8x32xf32>
    %615 = vector.shape_cast %614 : vector<1x8x32xf32> to vector<8x32xf32>
    %616 = vector.shape_cast %613 : vector<8x32xf32> to vector<1x8x32xf32>
    tpu.vector_store %arg19[%c0_246, %c0_247, %c0_248], %616 {strides = array<i32>} : memref<2x8x32xf32, #tpu.memory_space<vmem>>, vector<1x8x32xf32>,
    %c1_249 = arith.constant 1 : index
    %c0_250 = arith.constant 0 : index
    %c0_251 = arith.constant 0 : index
    %617 = vector.load %arg19[%c1_249, %c0_250, %c0_251] : memref<2x8x32xf32, #tpu.memory_space<vmem>>, vector<1x8x32xf32>
    %618 = vector.shape_cast %617 : vector<1x8x32xf32> to vector<8x32xf32>
    %cst_252 = arith.constant dense<0.000000e+00> : vector<8x128xf32>
    %619 = tpu.matmul %613, %17, %cst_252 {dimension_numbers = #tpu.dot_dimension_numbers<[1], [0], [0], [1], [0, 0, 1, 1], [], []>} : vector<8x32xf32>, vector<32x128xf32>, vector<8x128xf32> -> vector<8x128xf32>
    %cst_253 = arith.constant dense<0.000000e+00> : vector<8x128xf32>
    %620 = tpu.matmul %618, %18, %cst_253 {dimension_numbers = #tpu.dot_dimension_numbers<[1], [0], [0], [1], [0, 0, 1, 1], [], []>} : vector<8x32xf32>, vector<32x128xf32>, vector<8x128xf32> -> vector<8x128xf32>
    %621 = arith.addf %619, %620 : vector<8x128xf32>
    %622 = vector.broadcast %19 : vector<1x128xf32> to vector<8x128xf32>
    %623 = arith.addf %621, %622 : vector<8x128xf32>
    %624 = vector.extract_strided_slice %623 {offsets = [0, 0], sizes = [8, 32], strides = [1, 1]} : vector<8x128xf32> to vector<8x32xf32>
    %625 = arith.negf %624 : vector<8x32xf32>
    %626 = math.exp %625 : vector<8x32xf32>
    %cst_254 = arith.constant 1.000000e+00 : f32
    %627 = vector.broadcast %cst_254 : f32 to vector<8x32xf32>
    %628 = arith.addf %627, %626 : vector<8x32xf32>
    %629 = arith.divf %627, %628 : vector<8x32xf32>
    %630 = vector.extract_strided_slice %623 {offsets = [0, 32], sizes = [8, 32], strides = [1, 1]} : vector<8x128xf32> to vector<8x32xf32>
    %631 = arith.negf %630 : vector<8x32xf32>
    %632 = math.exp %631 : vector<8x32xf32>
    %cst_255 = arith.constant 1.000000e+00 : f32
    %633 = vector.broadcast %cst_255 : f32 to vector<8x32xf32>
    %634 = arith.addf %633, %632 : vector<8x32xf32>
    %635 = arith.divf %633, %634 : vector<8x32xf32>
    %636 = vector.extract_strided_slice %623 {offsets = [0, 64], sizes = [8, 32], strides = [1, 1]} : vector<8x128xf32> to vector<8x32xf32>
    %637 = vector.extract_strided_slice %623 {offsets = [0, 96], sizes = [8, 32], strides = [1, 1]} : vector<8x128xf32> to vector<8x32xf32>
    %638 = arith.mulf %629, %637 : vector<8x32xf32>
    %639 = arith.addf %636, %638 : vector<8x32xf32>
    %640 = math.tanh %639 : vector<8x32xf32>
    %cst_256 = arith.constant 1.000000e+00 : f32
    %641 = vector.broadcast %cst_256 : f32 to vector<8x32xf32>
    %642 = arith.subf %641, %635 : vector<8x32xf32>
    %643 = arith.mulf %642, %640 : vector<8x32xf32>
    %644 = arith.mulf %635, %618 : vector<8x32xf32>
    %645 = arith.addf %643, %644 : vector<8x32xf32>
    %c1_257 = arith.constant 1 : index
    %c0_258 = arith.constant 0 : index
    %c0_259 = arith.constant 0 : index
    %646 = vector.load %arg19[%c1_257, %c0_258, %c0_259] : memref<2x8x32xf32, #tpu.memory_space<vmem>>, vector<1x8x32xf32>
    %647 = vector.shape_cast %646 : vector<1x8x32xf32> to vector<8x32xf32>
    %648 = vector.shape_cast %645 : vector<8x32xf32> to vector<1x8x32xf32>
    tpu.vector_store %arg19[%c1_257, %c0_258, %c0_259], %648 {strides = array<i32>} : memref<2x8x32xf32, #tpu.memory_space<vmem>>, vector<1x8x32xf32>,
    %cst_260 = arith.constant dense<0.000000e+00> : vector<8x128xf32>
    %649 = tpu.matmul %645, %7, %cst_260 {dimension_numbers = #tpu.dot_dimension_numbers<[1], [0], [0], [1], [0, 0, 1, 1], [], []>} : vector<8x32xf32>, vector<32x128xf32>, vector<8x128xf32> -> vector<8x128xf32>
    %650 = vector.broadcast %8 : vector<1x128xf32> to vector<8x128xf32>
    %651 = arith.addf %649, %650 : vector<8x128xf32>
    %652 = arith.index_cast %c5_i32 : i32 to index
    %c0_261 = arith.constant 0 : index
    %c0_262 = arith.constant 0 : index
    %653 = vector.load %arg17[%652, %c0_261, %c0_262] : memref<8x8x128xf32, #tpu.memory_space<vmem>>, vector<1x8x128xf32>
    %654 = vector.shape_cast %653 : vector<1x8x128xf32> to vector<8x128xf32>
    %655 = vector.shape_cast %651 : vector<8x128xf32> to vector<1x8x128xf32>
    tpu.vector_store %arg17[%652, %c0_261, %c0_262], %655 {strides = array<i32>} : memref<8x8x128xf32, #tpu.memory_space<vmem>>, vector<1x8x128xf32>,
    %c6_i32 = arith.constant 6 : i32
    %656 = arith.index_cast %c6_i32 : i32 to index
    %c0_263 = arith.constant 0 : index
    %c0_264 = arith.constant 0 : index
    %657 = vector.load %arg1[%656, %c0_263, %c0_264] : memref<8x8x32xf32, #tpu.memory_space<vmem>>, vector<1x8x32xf32>
    %658 = vector.shape_cast %657 : vector<1x8x32xf32> to vector<8x32xf32>
    %c1_265 = arith.constant 1 : index
    %c0_266 = arith.constant 0 : index
    %c0_267 = arith.constant 0 : index
    %659 = vector.load %arg19[%c1_265, %c0_266, %c0_267] : memref<2x8x32xf32, #tpu.memory_space<vmem>>, vector<1x8x32xf32>
    %660 = vector.shape_cast %659 : vector<1x8x32xf32> to vector<8x32xf32>
    %cst_268 = arith.constant dense<0.000000e+00> : vector<8x32xf32>
    %661 = tpu.matmul %660, %5, %cst_268 {dimension_numbers = #tpu.dot_dimension_numbers<[1], [0], [0], [1], [0, 0, 1, 1], [], []>} : vector<8x32xf32>, vector<32x32xf32>, vector<8x32xf32> -> vector<8x32xf32>
    %662 = vector.shape_cast %661 : vector<8x32xf32> to vector<8x1x32xf32>
    %663 = vector.broadcast %662 : vector<8x1x32xf32> to vector<8x16x32xf32>
    %664 = arith.addf %663, %4 : vector<8x16x32xf32>
    %665 = math.tanh %664 : vector<8x16x32xf32>
    %666 = vector.shape_cast %6 : vector<1x32xf32> to vector<1x1x32xf32>
    %667 = vector.broadcast %666 : vector<1x1x32xf32> to vector<8x16x32xf32>
    %668 = arith.mulf %665, %667 : vector<8x16x32xf32>
    %cst_269 = arith.constant dense<0.000000e+00> : vector<8x16xf32>
    %669 = vector.multi_reduction <add>, %668, %cst_269 [2] : vector<8x16x32xf32> to vector<8x16xf32>
    %cst_270 = arith.constant -1.000000e+06 : f32
    %670 = vector.broadcast %cst_270 : f32 to vector<8x16xf32>
    %671 = arith.select %12, %669, %670 : vector<8x16xi1>, vector<8x16xf32>
    %cst_271 = arith.constant dense<0xFF800000> : vector<8xf32>
    %672 = vector.multi_reduction <maximumf>, %671, %cst_271 [1] : vector<8x16xf32> to vector<8xf32>
    %673 = vector.shape_cast %672 : vector<8xf32> to vector<8x1xf32>
    %674 = vector.broadcast %673 : vector<8x1xf32> to vector<8x16xf32>
    %675 = arith.subf %671, %674 : vector<8x16xf32>
    %676 = math.exp %675 : vector<8x16xf32>
    %cst_272 = arith.constant dense<0.000000e+00> : vector<8xf32>
    %677 = vector.multi_reduction <add>, %676, %cst_272 [1] : vector<8x16xf32> to vector<8xf32>
    %678 = vector.shape_cast %677 : vector<8xf32> to vector<8x1xf32>
    %679 = tpu.reciprocal %678 {approx = true} : vector<8x1xf32> -> vector<8x1xf32>
    %680 = vector.broadcast %679 : vector<8x1xf32> to vector<8x16xf32>
    %681 = arith.mulf %676, %680 : vector<8x16xf32>
    %682 = arith.index_cast %c6_i32 : i32 to index
    %c0_273 = arith.constant 0 : index
    %c0_274 = arith.constant 0 : index
    %683 = vector.load %arg18[%682, %c0_273, %c0_274] : memref<8x8x16xf32, #tpu.memory_space<vmem>>, vector<1x8x16xf32>
    %684 = vector.shape_cast %683 : vector<1x8x16xf32> to vector<8x16xf32>
    %685 = vector.shape_cast %681 : vector<8x16xf32> to vector<1x8x16xf32>
    tpu.vector_store %arg18[%682, %c0_273, %c0_274], %685 {strides = array<i32>} : memref<8x8x16xf32, #tpu.memory_space<vmem>>, vector<1x8x16xf32>,
    %686 = vector.shape_cast %681 : vector<8x16xf32> to vector<8x1x16xf32>
    "tpu.trace_start"() <{level = 10 : i32, message = "bqs,bsh->bqh"}> : () -> ()
    %cst_275 = arith.constant dense<0.000000e+00> : vector<8x1x32xf32>
    %687 = tpu.matmul %686, %3, %cst_275 {dimension_numbers = #tpu.dot_dimension_numbers<[2], [1], [1], [2], [0, 0, 0, 1, 1, 2], [0], [0]>} : vector<8x1x16xf32>, vector<8x16x32xf32>, vector<8x1x32xf32> -> vector<8x1x32xf32>
    "tpu.trace_stop"() : () -> ()
    %688 = vector.shape_cast %687 : vector<8x1x32xf32> to vector<8x32xf32>
    %c0_276 = arith.constant 0 : index
    %c0_277 = arith.constant 0 : index
    %c0_278 = arith.constant 0 : index
    %689 = vector.load %arg19[%c0_276, %c0_277, %c0_278] : memref<2x8x32xf32, #tpu.memory_space<vmem>>, vector<1x8x32xf32>
    %690 = vector.shape_cast %689 : vector<1x8x32xf32> to vector<8x32xf32>
    %cst_279 = arith.constant dense<0.000000e+00> : vector<8x128xf32>
    %691 = tpu.matmul %688, %13, %cst_279 {dimension_numbers = #tpu.dot_dimension_numbers<[1], [0], [0], [1], [0, 0, 1, 1], [], []>} : vector<8x32xf32>, vector<32x128xf32>, vector<8x128xf32> -> vector<8x128xf32>
    %cst_280 = arith.constant dense<0.000000e+00> : vector<8x128xf32>
    %692 = tpu.matmul %658, %14, %cst_280 {dimension_numbers = #tpu.dot_dimension_numbers<[1], [0], [0], [1], [0, 0, 1, 1], [], []>} : vector<8x32xf32>, vector<32x128xf32>, vector<8x128xf32> -> vector<8x128xf32>
    %693 = arith.addf %691, %692 : vector<8x128xf32>
    %cst_281 = arith.constant dense<0.000000e+00> : vector<8x128xf32>
    %694 = tpu.matmul %690, %15, %cst_281 {dimension_numbers = #tpu.dot_dimension_numbers<[1], [0], [0], [1], [0, 0, 1, 1], [], []>} : vector<8x32xf32>, vector<32x128xf32>, vector<8x128xf32> -> vector<8x128xf32>
    %695 = arith.addf %693, %694 : vector<8x128xf32>
    %696 = vector.broadcast %16 : vector<1x128xf32> to vector<8x128xf32>
    %697 = arith.addf %695, %696 : vector<8x128xf32>
    %698 = vector.extract_strided_slice %697 {offsets = [0, 0], sizes = [8, 32], strides = [1, 1]} : vector<8x128xf32> to vector<8x32xf32>
    %699 = arith.negf %698 : vector<8x32xf32>
    %700 = math.exp %699 : vector<8x32xf32>
    %cst_282 = arith.constant 1.000000e+00 : f32
    %701 = vector.broadcast %cst_282 : f32 to vector<8x32xf32>
    %702 = arith.addf %701, %700 : vector<8x32xf32>
    %703 = arith.divf %701, %702 : vector<8x32xf32>
    %704 = vector.extract_strided_slice %697 {offsets = [0, 32], sizes = [8, 32], strides = [1, 1]} : vector<8x128xf32> to vector<8x32xf32>
    %705 = arith.negf %704 : vector<8x32xf32>
    %706 = math.exp %705 : vector<8x32xf32>
    %cst_283 = arith.constant 1.000000e+00 : f32
    %707 = vector.broadcast %cst_283 : f32 to vector<8x32xf32>
    %708 = arith.addf %707, %706 : vector<8x32xf32>
    %709 = arith.divf %707, %708 : vector<8x32xf32>
    %710 = vector.extract_strided_slice %697 {offsets = [0, 64], sizes = [8, 32], strides = [1, 1]} : vector<8x128xf32> to vector<8x32xf32>
    %711 = vector.extract_strided_slice %697 {offsets = [0, 96], sizes = [8, 32], strides = [1, 1]} : vector<8x128xf32> to vector<8x32xf32>
    %712 = arith.mulf %703, %711 : vector<8x32xf32>
    %713 = arith.addf %710, %712 : vector<8x32xf32>
    %714 = math.tanh %713 : vector<8x32xf32>
    %cst_284 = arith.constant 1.000000e+00 : f32
    %715 = vector.broadcast %cst_284 : f32 to vector<8x32xf32>
    %716 = arith.subf %715, %709 : vector<8x32xf32>
    %717 = arith.mulf %716, %714 : vector<8x32xf32>
    %718 = arith.mulf %709, %690 : vector<8x32xf32>
    %719 = arith.addf %717, %718 : vector<8x32xf32>
    %c0_285 = arith.constant 0 : index
    %c0_286 = arith.constant 0 : index
    %c0_287 = arith.constant 0 : index
    %720 = vector.load %arg19[%c0_285, %c0_286, %c0_287] : memref<2x8x32xf32, #tpu.memory_space<vmem>>, vector<1x8x32xf32>
    %721 = vector.shape_cast %720 : vector<1x8x32xf32> to vector<8x32xf32>
    %722 = vector.shape_cast %719 : vector<8x32xf32> to vector<1x8x32xf32>
    tpu.vector_store %arg19[%c0_285, %c0_286, %c0_287], %722 {strides = array<i32>} : memref<2x8x32xf32, #tpu.memory_space<vmem>>, vector<1x8x32xf32>,
    %c1_288 = arith.constant 1 : index
    %c0_289 = arith.constant 0 : index
    %c0_290 = arith.constant 0 : index
    %723 = vector.load %arg19[%c1_288, %c0_289, %c0_290] : memref<2x8x32xf32, #tpu.memory_space<vmem>>, vector<1x8x32xf32>
    %724 = vector.shape_cast %723 : vector<1x8x32xf32> to vector<8x32xf32>
    %cst_291 = arith.constant dense<0.000000e+00> : vector<8x128xf32>
    %725 = tpu.matmul %719, %17, %cst_291 {dimension_numbers = #tpu.dot_dimension_numbers<[1], [0], [0], [1], [0, 0, 1, 1], [], []>} : vector<8x32xf32>, vector<32x128xf32>, vector<8x128xf32> -> vector<8x128xf32>
    %cst_292 = arith.constant dense<0.000000e+00> : vector<8x128xf32>
    %726 = tpu.matmul %724, %18, %cst_292 {dimension_numbers = #tpu.dot_dimension_numbers<[1], [0], [0], [1], [0, 0, 1, 1], [], []>} : vector<8x32xf32>, vector<32x128xf32>, vector<8x128xf32> -> vector<8x128xf32>
    %727 = arith.addf %725, %726 : vector<8x128xf32>
    %728 = vector.broadcast %19 : vector<1x128xf32> to vector<8x128xf32>
    %729 = arith.addf %727, %728 : vector<8x128xf32>
    %730 = vector.extract_strided_slice %729 {offsets = [0, 0], sizes = [8, 32], strides = [1, 1]} : vector<8x128xf32> to vector<8x32xf32>
    %731 = arith.negf %730 : vector<8x32xf32>
    %732 = math.exp %731 : vector<8x32xf32>
    %cst_293 = arith.constant 1.000000e+00 : f32
    %733 = vector.broadcast %cst_293 : f32 to vector<8x32xf32>
    %734 = arith.addf %733, %732 : vector<8x32xf32>
    %735 = arith.divf %733, %734 : vector<8x32xf32>
    %736 = vector.extract_strided_slice %729 {offsets = [0, 32], sizes = [8, 32], strides = [1, 1]} : vector<8x128xf32> to vector<8x32xf32>
    %737 = arith.negf %736 : vector<8x32xf32>
    %738 = math.exp %737 : vector<8x32xf32>
    %cst_294 = arith.constant 1.000000e+00 : f32
    %739 = vector.broadcast %cst_294 : f32 to vector<8x32xf32>
    %740 = arith.addf %739, %738 : vector<8x32xf32>
    %741 = arith.divf %739, %740 : vector<8x32xf32>
    %742 = vector.extract_strided_slice %729 {offsets = [0, 64], sizes = [8, 32], strides = [1, 1]} : vector<8x128xf32> to vector<8x32xf32>
    %743 = vector.extract_strided_slice %729 {offsets = [0, 96], sizes = [8, 32], strides = [1, 1]} : vector<8x128xf32> to vector<8x32xf32>
    %744 = arith.mulf %735, %743 : vector<8x32xf32>
    %745 = arith.addf %742, %744 : vector<8x32xf32>
    %746 = math.tanh %745 : vector<8x32xf32>
    %cst_295 = arith.constant 1.000000e+00 : f32
    %747 = vector.broadcast %cst_295 : f32 to vector<8x32xf32>
    %748 = arith.subf %747, %741 : vector<8x32xf32>
    %749 = arith.mulf %748, %746 : vector<8x32xf32>
    %750 = arith.mulf %741, %724 : vector<8x32xf32>
    %751 = arith.addf %749, %750 : vector<8x32xf32>
    %c1_296 = arith.constant 1 : index
    %c0_297 = arith.constant 0 : index
    %c0_298 = arith.constant 0 : index
    %752 = vector.load %arg19[%c1_296, %c0_297, %c0_298] : memref<2x8x32xf32, #tpu.memory_space<vmem>>, vector<1x8x32xf32>
    %753 = vector.shape_cast %752 : vector<1x8x32xf32> to vector<8x32xf32>
    %754 = vector.shape_cast %751 : vector<8x32xf32> to vector<1x8x32xf32>
    tpu.vector_store %arg19[%c1_296, %c0_297, %c0_298], %754 {strides = array<i32>} : memref<2x8x32xf32, #tpu.memory_space<vmem>>, vector<1x8x32xf32>,
    %cst_299 = arith.constant dense<0.000000e+00> : vector<8x128xf32>
    %755 = tpu.matmul %751, %7, %cst_299 {dimension_numbers = #tpu.dot_dimension_numbers<[1], [0], [0], [1], [0, 0, 1, 1], [], []>} : vector<8x32xf32>, vector<32x128xf32>, vector<8x128xf32> -> vector<8x128xf32>
    %756 = vector.broadcast %8 : vector<1x128xf32> to vector<8x128xf32>
    %757 = arith.addf %755, %756 : vector<8x128xf32>
    %758 = arith.index_cast %c6_i32 : i32 to index
    %c0_300 = arith.constant 0 : index
    %c0_301 = arith.constant 0 : index
    %759 = vector.load %arg17[%758, %c0_300, %c0_301] : memref<8x8x128xf32, #tpu.memory_space<vmem>>, vector<1x8x128xf32>
    %760 = vector.shape_cast %759 : vector<1x8x128xf32> to vector<8x128xf32>
    %761 = vector.shape_cast %757 : vector<8x128xf32> to vector<1x8x128xf32>
    tpu.vector_store %arg17[%758, %c0_300, %c0_301], %761 {strides = array<i32>} : memref<8x8x128xf32, #tpu.memory_space<vmem>>, vector<1x8x128xf32>,
    %c7_i32 = arith.constant 7 : i32
    %762 = arith.index_cast %c7_i32 : i32 to index
    %c0_302 = arith.constant 0 : index
    %c0_303 = arith.constant 0 : index
    %763 = vector.load %arg1[%762, %c0_302, %c0_303] : memref<8x8x32xf32, #tpu.memory_space<vmem>>, vector<1x8x32xf32>
    %764 = vector.shape_cast %763 : vector<1x8x32xf32> to vector<8x32xf32>
    %c1_304 = arith.constant 1 : index
    %c0_305 = arith.constant 0 : index
    %c0_306 = arith.constant 0 : index
    %765 = vector.load %arg19[%c1_304, %c0_305, %c0_306] : memref<2x8x32xf32, #tpu.memory_space<vmem>>, vector<1x8x32xf32>
    %766 = vector.shape_cast %765 : vector<1x8x32xf32> to vector<8x32xf32>
    %cst_307 = arith.constant dense<0.000000e+00> : vector<8x32xf32>
    %767 = tpu.matmul %766, %5, %cst_307 {dimension_numbers = #tpu.dot_dimension_numbers<[1], [0], [0], [1], [0, 0, 1, 1], [], []>} : vector<8x32xf32>, vector<32x32xf32>, vector<8x32xf32> -> vector<8x32xf32>
    %768 = vector.shape_cast %767 : vector<8x32xf32> to vector<8x1x32xf32>
    %769 = vector.broadcast %768 : vector<8x1x32xf32> to vector<8x16x32xf32>
    %770 = arith.addf %769, %4 : vector<8x16x32xf32>
    %771 = math.tanh %770 : vector<8x16x32xf32>
    %772 = vector.shape_cast %6 : vector<1x32xf32> to vector<1x1x32xf32>
    %773 = vector.broadcast %772 : vector<1x1x32xf32> to vector<8x16x32xf32>
    %774 = arith.mulf %771, %773 : vector<8x16x32xf32>
    %cst_308 = arith.constant dense<0.000000e+00> : vector<8x16xf32>
    %775 = vector.multi_reduction <add>, %774, %cst_308 [2] : vector<8x16x32xf32> to vector<8x16xf32>
    %cst_309 = arith.constant -1.000000e+06 : f32
    %776 = vector.broadcast %cst_309 : f32 to vector<8x16xf32>
    %777 = arith.select %12, %775, %776 : vector<8x16xi1>, vector<8x16xf32>
    %cst_310 = arith.constant dense<0xFF800000> : vector<8xf32>
    %778 = vector.multi_reduction <maximumf>, %777, %cst_310 [1] : vector<8x16xf32> to vector<8xf32>
    %779 = vector.shape_cast %778 : vector<8xf32> to vector<8x1xf32>
    %780 = vector.broadcast %779 : vector<8x1xf32> to vector<8x16xf32>
    %781 = arith.subf %777, %780 : vector<8x16xf32>
    %782 = math.exp %781 : vector<8x16xf32>
    %cst_311 = arith.constant dense<0.000000e+00> : vector<8xf32>
    %783 = vector.multi_reduction <add>, %782, %cst_311 [1] : vector<8x16xf32> to vector<8xf32>
    %784 = vector.shape_cast %783 : vector<8xf32> to vector<8x1xf32>
    %785 = tpu.reciprocal %784 {approx = true} : vector<8x1xf32> -> vector<8x1xf32>
    %786 = vector.broadcast %785 : vector<8x1xf32> to vector<8x16xf32>
    %787 = arith.mulf %782, %786 : vector<8x16xf32>
    %788 = arith.index_cast %c7_i32 : i32 to index
    %c0_312 = arith.constant 0 : index
    %c0_313 = arith.constant 0 : index
    %789 = vector.load %arg18[%788, %c0_312, %c0_313] : memref<8x8x16xf32, #tpu.memory_space<vmem>>, vector<1x8x16xf32>
    %790 = vector.shape_cast %789 : vector<1x8x16xf32> to vector<8x16xf32>
    %791 = vector.shape_cast %787 : vector<8x16xf32> to vector<1x8x16xf32>
    tpu.vector_store %arg18[%788, %c0_312, %c0_313], %791 {strides = array<i32>} : memref<8x8x16xf32, #tpu.memory_space<vmem>>, vector<1x8x16xf32>,
    %792 = vector.shape_cast %787 : vector<8x16xf32> to vector<8x1x16xf32>
    "tpu.trace_start"() <{level = 10 : i32, message = "bqs,bsh->bqh"}> : () -> ()
    %cst_314 = arith.constant dense<0.000000e+00> : vector<8x1x32xf32>
    %793 = tpu.matmul %792, %3, %cst_314 {dimension_numbers = #tpu.dot_dimension_numbers<[2], [1], [1], [2], [0, 0, 0, 1, 1, 2], [0], [0]>} : vector<8x1x16xf32>, vector<8x16x32xf32>, vector<8x1x32xf32> -> vector<8x1x32xf32>
    "tpu.trace_stop"() : () -> ()
    %794 = vector.shape_cast %793 : vector<8x1x32xf32> to vector<8x32xf32>
    %c0_315 = arith.constant 0 : index
    %c0_316 = arith.constant 0 : index
    %c0_317 = arith.constant 0 : index
    %795 = vector.load %arg19[%c0_315, %c0_316, %c0_317] : memref<2x8x32xf32, #tpu.memory_space<vmem>>, vector<1x8x32xf32>
    %796 = vector.shape_cast %795 : vector<1x8x32xf32> to vector<8x32xf32>
    %cst_318 = arith.constant dense<0.000000e+00> : vector<8x128xf32>
    %797 = tpu.matmul %794, %13, %cst_318 {dimension_numbers = #tpu.dot_dimension_numbers<[1], [0], [0], [1], [0, 0, 1, 1], [], []>} : vector<8x32xf32>, vector<32x128xf32>, vector<8x128xf32> -> vector<8x128xf32>
    %cst_319 = arith.constant dense<0.000000e+00> : vector<8x128xf32>
    %798 = tpu.matmul %764, %14, %cst_319 {dimension_numbers = #tpu.dot_dimension_numbers<[1], [0], [0], [1], [0, 0, 1, 1], [], []>} : vector<8x32xf32>, vector<32x128xf32>, vector<8x128xf32> -> vector<8x128xf32>
    %799 = arith.addf %797, %798 : vector<8x128xf32>
    %cst_320 = arith.constant dense<0.000000e+00> : vector<8x128xf32>
    %800 = tpu.matmul %796, %15, %cst_320 {dimension_numbers = #tpu.dot_dimension_numbers<[1], [0], [0], [1], [0, 0, 1, 1], [], []>} : vector<8x32xf32>, vector<32x128xf32>, vector<8x128xf32> -> vector<8x128xf32>
    %801 = arith.addf %799, %800 : vector<8x128xf32>
    %802 = vector.broadcast %16 : vector<1x128xf32> to vector<8x128xf32>
    %803 = arith.addf %801, %802 : vector<8x128xf32>
    %804 = vector.extract_strided_slice %803 {offsets = [0, 0], sizes = [8, 32], strides = [1, 1]} : vector<8x128xf32> to vector<8x32xf32>
    %805 = arith.negf %804 : vector<8x32xf32>
    %806 = math.exp %805 : vector<8x32xf32>
    %cst_321 = arith.constant 1.000000e+00 : f32
    %807 = vector.broadcast %cst_321 : f32 to vector<8x32xf32>
    %808 = arith.addf %807, %806 : vector<8x32xf32>
    %809 = arith.divf %807, %808 : vector<8x32xf32>
    %810 = vector.extract_strided_slice %803 {offsets = [0, 32], sizes = [8, 32], strides = [1, 1]} : vector<8x128xf32> to vector<8x32xf32>
    %811 = arith.negf %810 : vector<8x32xf32>
    %812 = math.exp %811 : vector<8x32xf32>
    %cst_322 = arith.constant 1.000000e+00 : f32
    %813 = vector.broadcast %cst_322 : f32 to vector<8x32xf32>
    %814 = arith.addf %813, %812 : vector<8x32xf32>
    %815 = arith.divf %813, %814 : vector<8x32xf32>
    %816 = vector.extract_strided_slice %803 {offsets = [0, 64], sizes = [8, 32], strides = [1, 1]} : vector<8x128xf32> to vector<8x32xf32>
    %817 = vector.extract_strided_slice %803 {offsets = [0, 96], sizes = [8, 32], strides = [1, 1]} : vector<8x128xf32> to vector<8x32xf32>
    %818 = arith.mulf %809, %817 : vector<8x32xf32>
    %819 = arith.addf %816, %818 : vector<8x32xf32>
    %820 = math.tanh %819 : vector<8x32xf32>
    %cst_323 = arith.constant 1.000000e+00 : f32
    %821 = vector.broadcast %cst_323 : f32 to vector<8x32xf32>
    %822 = arith.subf %821, %815 : vector<8x32xf32>
    %823 = arith.mulf %822, %820 : vector<8x32xf32>
    %824 = arith.mulf %815, %796 : vector<8x32xf32>
    %825 = arith.addf %823, %824 : vector<8x32xf32>
    %c0_324 = arith.constant 0 : index
    %c0_325 = arith.constant 0 : index
    %c0_326 = arith.constant 0 : index
    %826 = vector.load %arg19[%c0_324, %c0_325, %c0_326] : memref<2x8x32xf32, #tpu.memory_space<vmem>>, vector<1x8x32xf32>
    %827 = vector.shape_cast %826 : vector<1x8x32xf32> to vector<8x32xf32>
    %828 = vector.shape_cast %825 : vector<8x32xf32> to vector<1x8x32xf32>
    tpu.vector_store %arg19[%c0_324, %c0_325, %c0_326], %828 {strides = array<i32>} : memref<2x8x32xf32, #tpu.memory_space<vmem>>, vector<1x8x32xf32>,
    %c1_327 = arith.constant 1 : index
    %c0_328 = arith.constant 0 : index
    %c0_329 = arith.constant 0 : index
    %829 = vector.load %arg19[%c1_327, %c0_328, %c0_329] : memref<2x8x32xf32, #tpu.memory_space<vmem>>, vector<1x8x32xf32>
    %830 = vector.shape_cast %829 : vector<1x8x32xf32> to vector<8x32xf32>
    %cst_330 = arith.constant dense<0.000000e+00> : vector<8x128xf32>
    %831 = tpu.matmul %825, %17, %cst_330 {dimension_numbers = #tpu.dot_dimension_numbers<[1], [0], [0], [1], [0, 0, 1, 1], [], []>} : vector<8x32xf32>, vector<32x128xf32>, vector<8x128xf32> -> vector<8x128xf32>
    %cst_331 = arith.constant dense<0.000000e+00> : vector<8x128xf32>
    %832 = tpu.matmul %830, %18, %cst_331 {dimension_numbers = #tpu.dot_dimension_numbers<[1], [0], [0], [1], [0, 0, 1, 1], [], []>} : vector<8x32xf32>, vector<32x128xf32>, vector<8x128xf32> -> vector<8x128xf32>
    %833 = arith.addf %831, %832 : vector<8x128xf32>
    %834 = vector.broadcast %19 : vector<1x128xf32> to vector<8x128xf32>
    %835 = arith.addf %833, %834 : vector<8x128xf32>
    %836 = vector.extract_strided_slice %835 {offsets = [0, 0], sizes = [8, 32], strides = [1, 1]} : vector<8x128xf32> to vector<8x32xf32>
    %837 = arith.negf %836 : vector<8x32xf32>
    %838 = math.exp %837 : vector<8x32xf32>
    %cst_332 = arith.constant 1.000000e+00 : f32
    %839 = vector.broadcast %cst_332 : f32 to vector<8x32xf32>
    %840 = arith.addf %839, %838 : vector<8x32xf32>
    %841 = arith.divf %839, %840 : vector<8x32xf32>
    %842 = vector.extract_strided_slice %835 {offsets = [0, 32], sizes = [8, 32], strides = [1, 1]} : vector<8x128xf32> to vector<8x32xf32>
    %843 = arith.negf %842 : vector<8x32xf32>
    %844 = math.exp %843 : vector<8x32xf32>
    %cst_333 = arith.constant 1.000000e+00 : f32
    %845 = vector.broadcast %cst_333 : f32 to vector<8x32xf32>
    %846 = arith.addf %845, %844 : vector<8x32xf32>
    %847 = arith.divf %845, %846 : vector<8x32xf32>
    %848 = vector.extract_strided_slice %835 {offsets = [0, 64], sizes = [8, 32], strides = [1, 1]} : vector<8x128xf32> to vector<8x32xf32>
    %849 = vector.extract_strided_slice %835 {offsets = [0, 96], sizes = [8, 32], strides = [1, 1]} : vector<8x128xf32> to vector<8x32xf32>
    %850 = arith.mulf %841, %849 : vector<8x32xf32>
    %851 = arith.addf %848, %850 : vector<8x32xf32>
    %852 = math.tanh %851 : vector<8x32xf32>
    %cst_334 = arith.constant 1.000000e+00 : f32
    %853 = vector.broadcast %cst_334 : f32 to vector<8x32xf32>
    %854 = arith.subf %853, %847 : vector<8x32xf32>
    %855 = arith.mulf %854, %852 : vector<8x32xf32>
    %856 = arith.mulf %847, %830 : vector<8x32xf32>
    %857 = arith.addf %855, %856 : vector<8x32xf32>
    %c1_335 = arith.constant 1 : index
    %c0_336 = arith.constant 0 : index
    %c0_337 = arith.constant 0 : index
    %858 = vector.load %arg19[%c1_335, %c0_336, %c0_337] : memref<2x8x32xf32, #tpu.memory_space<vmem>>, vector<1x8x32xf32>
    %859 = vector.shape_cast %858 : vector<1x8x32xf32> to vector<8x32xf32>
    %860 = vector.shape_cast %857 : vector<8x32xf32> to vector<1x8x32xf32>
    tpu.vector_store %arg19[%c1_335, %c0_336, %c0_337], %860 {strides = array<i32>} : memref<2x8x32xf32, #tpu.memory_space<vmem>>, vector<1x8x32xf32>,
    %cst_338 = arith.constant dense<0.000000e+00> : vector<8x128xf32>
    %861 = tpu.matmul %857, %7, %cst_338 {dimension_numbers = #tpu.dot_dimension_numbers<[1], [0], [0], [1], [0, 0, 1, 1], [], []>} : vector<8x32xf32>, vector<32x128xf32>, vector<8x128xf32> -> vector<8x128xf32>
    %862 = vector.broadcast %8 : vector<1x128xf32> to vector<8x128xf32>
    %863 = arith.addf %861, %862 : vector<8x128xf32>
    %864 = arith.index_cast %c7_i32 : i32 to index
    %c0_339 = arith.constant 0 : index
    %c0_340 = arith.constant 0 : index
    %865 = vector.load %arg17[%864, %c0_339, %c0_340] : memref<8x8x128xf32, #tpu.memory_space<vmem>>, vector<1x8x128xf32>
    %866 = vector.shape_cast %865 : vector<1x8x128xf32> to vector<8x128xf32>
    %867 = vector.shape_cast %863 : vector<8x128xf32> to vector<1x8x128xf32>
    tpu.vector_store %arg17[%864, %c0_339, %c0_340], %867 {strides = array<i32>} : memref<8x8x128xf32, #tpu.memory_space<vmem>>, vector<1x8x128xf32>,
    %c8_i32 = arith.constant 8 : i32
    return
  }
  func.func @transform_0(%arg0: i32) -> (i32, i32, i32) {
    %c0_i32 = arith.constant 0 : i32
    %c0_i32_0 = arith.constant 0 : i32
    %c0_i32_1 = arith.constant 0 : i32
    return %arg0, %c0_i32, %c0_i32_0 : i32, i32, i32
  }
  func.func @transform_1(%arg0: i32) -> (i32, i32, i32) {
    %c0_i32 = arith.constant 0 : i32
    %c0_i32_0 = arith.constant 0 : i32
    %c0_i32_1 = arith.constant 0 : i32
    %c0_i32_2 = arith.constant 0 : i32
    return %c0_i32, %c0_i32_0, %c0_i32_1 : i32, i32, i32
  }
  func.func @transform_2(%arg0: i32) -> (i32, i32) {
    %c0_i32 = arith.constant 0 : i32
    %c0_i32_0 = arith.constant 0 : i32
    %c0_i32_1 = arith.constant 0 : i32
    return %c0_i32, %c0_i32_0 : i32, i32
  }
  func.func @transform_3(%arg0: i32) -> (i32, i32, i32) {
    %c0_i32 = arith.constant 0 : i32
    %c0_i32_0 = arith.constant 0 : i32
    %c0_i32_1 = arith.constant 0 : i32
    %c0_i32_2 = arith.constant 0 : i32
    return %c0_i32, %c0_i32_0, %c0_i32_1 : i32, i32, i32
  }
  func.func @transform_4(%arg0: i32) -> (i32, i32) {
    %c0_i32 = arith.constant 0 : i32
    %c0_i32_0 = arith.constant 0 : i32
    %c0_i32_1 = arith.constant 0 : i32
    return %c0_i32, %c0_i32_0 : i32, i32
  }
  func.func @transform_5(%arg0: i32) -> (i32, i32) {
    %c0_i32 = arith.constant 0 : i32
    %c0_i32_0 = arith.constant 0 : i32
    %c0_i32_1 = arith.constant 0 : i32
    return %c0_i32, %c0_i32_0 : i32, i32
  }
  func.func @transform_6(%arg0: i32) -> (i32, i32) {
    %c0_i32 = arith.constant 0 : i32
    %c0_i32_0 = arith.constant 0 : i32
    %c0_i32_1 = arith.constant 0 : i32
    return %c0_i32, %c0_i32_0 : i32, i32
  }
  func.func @transform_7(%arg0: i32) -> (i32, i32) {
    %c0_i32 = arith.constant 0 : i32
    %c0_i32_0 = arith.constant 0 : i32
    %c0_i32_1 = arith.constant 0 : i32
    return %c0_i32, %c0_i32_0 : i32, i32
  }
  func.func @transform_8(%arg0: i32) -> (i32, i32) {
    %c0_i32 = arith.constant 0 : i32
    %c0_i32_0 = arith.constant 0 : i32
    %c0_i32_1 = arith.constant 0 : i32
    return %c0_i32, %c0_i32_0 : i32, i32
  }
  func.func @transform_9(%arg0: i32) -> (i32, i32) {
    %c0_i32 = arith.constant 0 : i32
    %c0_i32_0 = arith.constant 0 : i32
    %c0_i32_1 = arith.constant 0 : i32
    return %c0_i32, %c0_i32_0 : i32, i32
  }
  func.func @transform_10(%arg0: i32) -> (i32, i32) {
    %c0_i32 = arith.constant 0 : i32
    %c0_i32_0 = arith.constant 0 : i32
    %c0_i32_1 = arith.constant 0 : i32
    return %c0_i32, %c0_i32_0 : i32, i32
  }
  func.func @transform_11(%arg0: i32) -> (i32, i32) {
    %c0_i32 = arith.constant 0 : i32
    %c0_i32_0 = arith.constant 0 : i32
    %c0_i32_1 = arith.constant 0 : i32
    return %c0_i32, %c0_i32_0 : i32, i32
  }
  func.func @transform_12(%arg0: i32) -> (i32, i32) {
    %c0_i32 = arith.constant 0 : i32
    %c0_i32_0 = arith.constant 0 : i32
    %c0_i32_1 = arith.constant 0 : i32
    return %c0_i32, %c0_i32_0 : i32, i32
  }
  func.func @transform_13(%arg0: i32) -> (i32, i32) {
    %c0_i32 = arith.constant 0 : i32
    %c0_i32_0 = arith.constant 0 : i32
    %c0_i32_1 = arith.constant 0 : i32
    return %c0_i32, %c0_i32_0 : i32, i32
  }
  func.func @transform_14(%arg0: i32) -> (i32, i32) {
    %c0_i32 = arith.constant 0 : i32
    %c0_i32_0 = arith.constant 0 : i32
    %c0_i32_1 = arith.constant 0 : i32
    return %c0_i32, %c0_i32_0 : i32, i32
  }
  func.func @transform_15(%arg0: i32) -> (i32, i32) {
    %c0_i32 = arith.constant 0 : i32
    %c0_i32_0 = arith.constant 0 : i32
    %c0_i32_1 = arith.constant 0 : i32
    return %c0_i32, %c0_i32_0 : i32, i32
  }
  func.func @transform_16(%arg0: i32) -> (i32, i32, i32) {
    %c0_i32 = arith.constant 0 : i32
    %c0_i32_0 = arith.constant 0 : i32
    %c0_i32_1 = arith.constant 0 : i32
    return %arg0, %c0_i32, %c0_i32_0 : i32, i32, i32
  }
  func.func @transform_17(%arg0: i32) -> (i32, i32, i32) {
    %c0_i32 = arith.constant 0 : i32
    %c0_i32_0 = arith.constant 0 : i32
    %c0_i32_1 = arith.constant 0 : i32
    return %arg0, %c0_i32, %c0_i32_0 : i32, i32, i32
  }
  func.func @transform_18(%arg0: i32) -> (i32, i32, i32) {
    %c0_i32 = arith.constant 0 : i32
    %c0_i32_0 = arith.constant 0 : i32
    %c0_i32_1 = arith.constant 0 : i32
    %c0_i32_2 = arith.constant 0 : i32
    return %c0_i32, %c0_i32_0, %c0_i32_1 : i32, i32, i32
  }
}

</mosaic_0001>

<bundles_post_ra>
// kernel: tpu_custom_call.1
= control target key start
LH: loop header
LB: loop body
LE: loop exit
PB: predicated region body
PF: predicated region fallthrough
CT: control target
= control target key end

     0   :  { %s18394_s0 = inlined_call_operand.hbm [shape: f32[8,8,32], index: 0, kind: input, shape index: {}]   ;;  %s18395_s1 = inlined_call_operand.hbm [shape: f32[8,16,32], index: 1, kind: input, shape index: {}]   ;;  %s18396_s2 = inlined_call_operand.vmem [shape: s32[8,1], index: 2, kind: input, shape index: {}]   ;;  %s18397_s3 = inlined_call_operand.hbm [shape: f32[2,8,32], index: 3, kind: input, shape index: {}]   ;;  %s18398_s4 = inlined_call_operand.hbm [shape: f32[32,32], index: 4, kind: input, shape index: {}]   ;;  %s18399_s5 = inlined_call_operand.hbm [shape: f32[32,32], index: 5, kind: input, shape index: {}]   ;;  %s18400_s6 = inlined_call_operand.vmem [shape: f32[1,32], index: 6, kind: input, shape index: {}]   ;;  %s18401_s7 = inlined_call_operand.vmem [shape: f32[32,128], index: 7, kind: input, shape index: {}]   ;;  %s18402_s8 = inlined_call_operand.hbm [shape: f32[32,128], index: 8, kind: input, shape index: {}]   ;;  %s18403_s9 = inlined_call_operand.hbm [shape: f32[32,128], index: 9, kind: input, shape index: {}]   ;;  %s18404_s10 = inlined_call_operand.vmem [shape: f32[1,128], index: 10, kind: input, shape index: {}]   ;;  %s18405_s11 = inlined_call_operand.hbm [shape: f32[32,128], index: 11, kind: input, shape index: {}]   ;;  %s18406_s12 = inlined_call_operand.hbm [shape: f32[32,128], index: 12, kind: input, shape index: {}]   ;;  %s18407_s13 = inlined_call_operand.vmem [shape: f32[1,128], index: 13, kind: input, shape index: {}]   ;;  %s18408_s14 = inlined_call_operand.hbm [shape: f32[32,128], index: 14, kind: input, shape index: {}]   ;;  %s18409_s15 = inlined_call_operand.vmem [shape: f32[1,128], index: 15, kind: input, shape index: {}]   ;;  %s18410_s16 = inlined_call_operand.hbm [shape: f32[8,8,128], index: 16, kind: output, shape index: {0}]   ;;  %s18411_s17 = inlined_call_operand.hbm [shape: f32[8,8,16], index: 17, kind: output, shape index: {1}]   ;;  %s18412_s18 = inlined_call_operand.hbm [shape: f32[2,8,32], index: 18, kind: output, shape index: {2}]  }
   0x1   :  { %18442 = sst [smem:[#allocation38_spill]] %s18394_s0 }
   0x2   :  { %18443 = sst [smem:[#allocation39_spill]] %s18395_s1 }
   0x3   :  { %18444 = sst [smem:[#allocation40_spill]] %s18396_s2 }
   0x4   :  { %18445 = sst [smem:[#allocation41_spill]] %s18410_s16 }
   0x5   :  { %24 = vsyncpa [#allocation4], 0 }
   0x6   :  { %25 = vsyncpa [#allocation7], 0 }
   0x7   :  { %26 = vsyncpa [#allocation10], 0 }
   0x8   :  { %27 = vsyncpa [#allocation13], 0 }
   0x9   :  { %28 = vsyncpa [#allocation16], 0 }
   0xa   :  { %29 = vsyncpa [#allocation19], 0 }
   0xb   :  { %30 = vsyncpa [#allocation5], 0 }
   0xc   :  { %31 = vsyncpa [#allocation22], 0  ;;  %s15864_s27 = smov [#allocation6]   ;;  %s15865_s29 = smov [#allocation9]  }
   0xd   :  { %s49_s28 = sshll.u32 %s15864_s27, 4  ;;  %s75_s30 = sshll.u32 %s15865_s29, 4  ;;  %s50_s28 = int_to_ptr.vmem [resolvable:$true] %s49_s28  ;;  %s15982_s30 = int_to_ptr.vmem [resolvable:$true] %s75_s30 }
   0xe   :  { %s18446_s1 = sld [smem:[#allocation39_spill]] }
  0x14   :  { %s15562_s20 = scalar_lea.hbm %s18446_s1, 2048 }
  0x15   :  { %p15563_p0 = scmp.ne.s32.totalorder %s18446_s1, %s15562_s20  ;;  %p15566_p1 = scmp.lt.u32.totalorder %s15562_s20, %s18446_s1 }
  0x17   :  { %p15568_p2 = pnand %p15566_p1, %p15563_p0 }
  0x19   :  { %15571 = shalt.err (!%p15568_p2)
}
  0x1a   :  { %s15572_s24 = scalar_lea.vmem %s50_s28, 2048  ;;  %p15577_p4 = scmp.lt.s32.totalorder %s50_s28, %s50_s28 }
  0x1b   :  { %p15573_p3 = scmp.ne.s32.totalorder %s50_s28, %s15572_s24  ;;  %p15578_p5 = scmp.lt.s32.totalorder %s15572_s24, %s15572_s24 }
  0x1d   :  { %p15579_p6 = por %p15578_p5, %p15577_p4 }
  0x1f   :  { %p15580_p7 = pnand %p15579_p6, %p15573_p3 }
  0x21   :  { %15583 = shalt.err (!%p15580_p7)
}
  0x22   :  { %s15866_s25 = smov 128   ;;  %s15867_s26 = smov 8  }
  0x23   :  { %55 = dma.hbm_to_vmem [thread:$0]  %s18446_s1, 2048, %s50_s28, [#allocation7], %s15866_s25, %s15866_s25, %s15867_s26  }
  0x24   :  { %s15584_s20 = scalar_lea.hbm %s18398_s4, 512 }
  0x25   :  { %p15585_p8 = scmp.ne.s32.totalorder %s18398_s4, %s15584_s20  ;;  %p15588_p9 = scmp.lt.u32.totalorder %s15584_s20, %s18398_s4 }
  0x27   :  { %p15590_p10 = pnand %p15588_p9, %p15585_p8 }
  0x29   :  { %15593 = shalt.err (!%p15590_p10)
}
  0x2a   :  { %s15594_s24 = scalar_lea.vmem %s15982_s30, 512  ;;  %p15599_p12 = scmp.lt.s32.totalorder %s15982_s30, %s15982_s30 }
  0x2b   :  { %p15595_p11 = scmp.ne.s32.totalorder %s15982_s30, %s15594_s24  ;;  %p15600_p13 = scmp.lt.s32.totalorder %s15594_s24, %s15594_s24 }
  0x2d   :  { %p15601_p0 = por %p15600_p13, %p15599_p12 }
  0x2f   :  { %p15602_p1 = pnand %p15601_p0, %p15595_p11 }
  0x31   :  { %15605 = shalt.err (!%p15602_p1)
}
  0x32   :  { %81 = dma.hbm_to_vmem [thread:$0]  %s18398_s4, 512, %s15982_s30, [#allocation10], %s15866_s25, %s15866_s25, %s15867_s26  }
  0x33   :  { %s15868_s27 = smov [#allocation12]   ;;  %s15869_s0 = smov [#allocation15]  }
  0x34   :  { %s103_s29 = sshll.u32 %s15868_s27, 4  ;;  %s129_s19 = sshll.u32 %s15869_s0, 4  ;;  %s104_s29 = int_to_ptr.vmem [resolvable:$true] %s103_s29  ;;  %s16019_s19 = int_to_ptr.vmem [resolvable:$true] %s129_s19 }
  0x35   :  { %s15606_s22 = scalar_lea.hbm %s18402_s8, 512 }
  0x36   :  { %p15607_p2 = scmp.ne.s32.totalorder %s18402_s8, %s15606_s22  ;;  %p15610_p3 = scmp.lt.u32.totalorder %s15606_s22, %s18402_s8 }
  0x38   :  { %p15612_p4 = pnand %p15610_p3, %p15607_p2 }
  0x3a   :  { %15615 = shalt.err (!%p15612_p4)
}
  0x3b   :  { %s15616_s4 = scalar_lea.vmem %s104_s29, 512  ;;  %p15621_p6 = scmp.lt.s32.totalorder %s104_s29, %s104_s29 }
  0x3c   :  { %p15617_p5 = scmp.ne.s32.totalorder %s104_s29, %s15616_s4  ;;  %p15622_p7 = scmp.lt.s32.totalorder %s15616_s4, %s15616_s4 }
  0x3e   :  { %p15623_p8 = por %p15622_p7, %p15621_p6 }
  0x40   :  { %p15624_p9 = pnand %p15623_p8, %p15617_p5 }
  0x42   :  { %15627 = shalt.err (!%p15624_p9)
}
  0x43   :  { %109 = dma.hbm_to_vmem [thread:$0]  %s18402_s8, 512, %s104_s29, [#allocation13], %s15866_s25, %s15866_s25, %s15867_s26  }
  0x44   :  { %s15628_s16 = scalar_lea.hbm %s18405_s11, 512 }
  0x45   :  { %p15629_p10 = scmp.ne.s32.totalorder %s18405_s11, %s15628_s16  ;;  %p15632_p11 = scmp.lt.u32.totalorder %s15628_s16, %s18405_s11 }
  0x47   :  { %p15634_p12 = pnand %p15632_p11, %p15629_p10 }
  0x49   :  { %15637 = shalt.err (!%p15634_p12)
}
  0x4a   :  { %s15638_s2 = scalar_lea.vmem %s16019_s19, 512  ;;  %p15643_p0 = scmp.lt.s32.totalorder %s16019_s19, %s16019_s19 }
  0x4b   :  { %p15639_p13 = scmp.ne.s32.totalorder %s16019_s19, %s15638_s2  ;;  %p15644_p1 = scmp.lt.s32.totalorder %s15638_s2, %s15638_s2 }
  0x4d   :  { %p15645_p2 = por %p15644_p1, %p15643_p0 }
  0x4f   :  { %p15646_p3 = pnand %p15645_p2, %p15639_p13 }
  0x51   :  { %15649 = shalt.err (!%p15646_p3)
}
  0x52   :  { %135 = dma.hbm_to_vmem [thread:$0]  %s18405_s11, 512, %s16019_s19, [#allocation16], %s15866_s25, %s15866_s25, %s15867_s26  }
  0x53   :  { %s15870_s23 = smov [#allocation3]   ;;  %s15871_s4 = smov [#allocation8]  }
  0x54   :  { %s37_s24 = sshll.u32 %s15870_s23, 4  ;;  %s63_s30 = sshll.u32 %s15871_s4, 4  ;;  %s38_s24 = int_to_ptr.vmem [resolvable:$true] %s37_s24  ;;  %s16056_s30 = int_to_ptr.vmem [resolvable:$true] %s63_s30 }
  0x55   :  { %s18447_s27 = sld [smem:[#allocation38_spill]] }
  0x5b   :  { %s15650_s16 = scalar_lea.hbm %s18447_s27, 1024 }
  0x5c   :  { %p15651_p4 = scmp.ne.s32.totalorder %s18447_s27, %s15650_s16  ;;  %p15654_p5 = scmp.lt.u32.totalorder %s15650_s16, %s18447_s27 }
  0x5e   :  { %p15656_p6 = pnand %p15654_p5, %p15651_p4 }
  0x60   :  { %15659 = shalt.err (!%p15656_p6)
}
  0x61   :  { %s15660_s11 = scalar_lea.vmem %s38_s24, 1024  ;;  %p15665_p8 = scmp.lt.s32.totalorder %s38_s24, %s38_s24 }
  0x62   :  { %p15661_p7 = scmp.ne.s32.totalorder %s38_s24, %s15660_s11  ;;  %p15666_p9 = scmp.lt.s32.totalorder %s15660_s11, %s15660_s11 }
  0x64   :  { %p15667_p10 = por %p15666_p9, %p15665_p8 }
  0x66   :  { %p15668_p11 = pnand %p15667_p10, %p15661_p7 }
  0x68   :  { %15671 = shalt.err (!%p15668_p11)
}
  0x69   :  { %43 = dma.hbm_to_vmem [thread:$0]  %s18447_s27, 1024, %s38_s24, [#allocation4], %s15866_s25, %s15866_s25, %s15867_s26  }
  0x6a   :  { %s15672_s23 = scalar_lea.hbm %s18397_s3, 256 }
  0x6b   :  { %p15673_p12 = scmp.ne.s32.totalorder %s18397_s3, %s15672_s23  ;;  %p15676_p13 = scmp.lt.u32.totalorder %s15672_s23, %s18397_s3 }
  0x6d   :  { %p15678_p0 = pnand %p15676_p13, %p15673_p12 }
  0x6f   :  { %15681 = shalt.err (!%p15678_p0)
}
  0x70   :  { %s15682_s0 = scalar_lea.vmem %s16056_s30, 256  ;;  %p15687_p2 = scmp.lt.s32.totalorder %s16056_s30, %s16056_s30 }
  0x71   :  { %p15683_p1 = scmp.ne.s32.totalorder %s16056_s30, %s15682_s0  ;;  %p15688_p3 = scmp.lt.s32.totalorder %s15682_s0, %s15682_s0 }
  0x73   :  { %p15689_p4 = por %p15688_p3, %p15687_p2 }
  0x75   :  { %p15690_p5 = pnand %p15689_p4, %p15683_p1 }
  0x77   :  { %15693 = shalt.err (!%p15690_p5)
}
  0x78   :  { %69 = dma.hbm_to_vmem [thread:$0]  %s18397_s3, 256, %s16056_s30, [#allocation7], %s15866_s25, %s15866_s25, %s15867_s26  }
  0x79   :  { %s15872_s20 = smov [#allocation11]   ;;  %s15873_s22 = smov [#allocation14]  }
  0x7a   :  { %s87_s21 = sshll.u32 %s15872_s20, 4  ;;  %s115_s11 = sshll.u32 %s15873_s22, 4  ;;  %s88_s21 = int_to_ptr.vmem [resolvable:$true] %s87_s21  ;;  %s16093_s11 = int_to_ptr.vmem [resolvable:$true] %s115_s11 }
  0x7b   :  { %s15694_s8 = scalar_lea.hbm %s18399_s5, 512 }
  0x7c   :  { %p15695_p6 = scmp.ne.s32.totalorder %s18399_s5, %s15694_s8  ;;  %p15698_p7 = scmp.lt.u32.totalorder %s15694_s8, %s18399_s5 }
  0x7e   :  { %p15700_p8 = pnand %p15698_p7, %p15695_p6 }
  0x80   :  { %15703 = shalt.err (!%p15700_p8)
}
  0x81   :  { %s15704_s3 = scalar_lea.vmem %s88_s21, 512  ;;  %p15709_p10 = scmp.lt.s32.totalorder %s88_s21, %s88_s21 }
  0x82   :  { %p15705_p9 = scmp.ne.s32.totalorder %s88_s21, %s15704_s3  ;;  %p15710_p11 = scmp.lt.s32.totalorder %s15704_s3, %s15704_s3 }
  0x84   :  { %p15711_p12 = por %p15710_p11, %p15709_p10 }
  0x86   :  { %p15712_p13 = pnand %p15711_p12, %p15705_p9 }
  0x88   :  { %15715 = shalt.err (!%p15712_p13)
}
  0x89   :  { %93 = dma.hbm_to_vmem [thread:$0]  %s18399_s5, 512, %s88_s21, [#allocation10], %s15866_s25, %s15866_s25, %s15867_s26  }
  0x8a   :  { %s15716_s24 = scalar_lea.hbm %s18403_s9, 512 }
  0x8b   :  { %p15717_p0 = scmp.ne.s32.totalorder %s18403_s9, %s15716_s24  ;;  %p15720_p1 = scmp.lt.u32.totalorder %s15716_s24, %s18403_s9 }
  0x8d   :  { %p15722_p2 = pnand %p15720_p1, %p15717_p0 }
  0x8f   :  { %15725 = shalt.err (!%p15722_p2)
}
  0x90   :  { %s15726_s2 = scalar_lea.vmem %s16093_s11, 512  ;;  %p15731_p4 = scmp.lt.s32.totalorder %s16093_s11, %s16093_s11 }
  0x91   :  { %p15727_p3 = scmp.ne.s32.totalorder %s16093_s11, %s15726_s2  ;;  %p15732_p5 = scmp.lt.s32.totalorder %s15726_s2, %s15726_s2 }
  0x93   :  { %p15733_p6 = por %p15732_p5, %p15731_p4 }
  0x95   :  { %p15734_p7 = pnand %p15733_p6, %p15727_p3 }
  0x97   :  { %15737 = shalt.err (!%p15734_p7)
}
  0x98   :  { %121 = dma.hbm_to_vmem [thread:$0]  %s18403_s9, 512, %s16093_s11, [#allocation13], %s15866_s25, %s15866_s25, %s15867_s26  }
  0x99   :  { %s15874_s8 = smov [#allocation17]   ;;  %s15875_s23 = smov [#allocation18]  }
  0x9a   :  { %s141_s29 = sshll.u32 %s15874_s8, 4  ;;  %s155_s4 = sshll.u32 %s15875_s23, 4  ;;  %s142_s29 = int_to_ptr.vmem [resolvable:$true] %s141_s29  ;;  %s16130_s4 = int_to_ptr.vmem [resolvable:$true] %s155_s4 }
  0x9b   :  { %s15738_s30 = scalar_lea.hbm %s18406_s12, 512 }
  0x9c   :  { %p15739_p8 = scmp.ne.s32.totalorder %s18406_s12, %s15738_s30  ;;  %p15742_p9 = scmp.lt.u32.totalorder %s15738_s30, %s18406_s12 }
  0x9e   :  { %p15744_p10 = pnand %p15742_p9, %p15739_p8 }
  0xa0   :  { %15747 = shalt.err (!%p15744_p10)
}
  0xa1   :  { %s15748_s9 = scalar_lea.vmem %s142_s29, 512  ;;  %p15753_p12 = scmp.lt.s32.totalorder %s142_s29, %s142_s29 }
  0xa2   :  { %p15749_p11 = scmp.ne.s32.totalorder %s142_s29, %s15748_s9  ;;  %p15754_p13 = scmp.lt.s32.totalorder %s15748_s9, %s15748_s9 }
  0xa4   :  { %p15755_p0 = por %p15754_p13, %p15753_p12 }
  0xa6   :  { %p15756_p1 = pnand %p15755_p0, %p15749_p11 }
  0xa8   :  { %15759 = shalt.err (!%p15756_p1)
}
  0xa9   :  { %147 = dma.hbm_to_vmem [thread:$0]  %s18406_s12, 512, %s142_s29, [#allocation16], %s15866_s25, %s15866_s25, %s15867_s26  }
  0xaa   :  { %s15760_s19 = scalar_lea.hbm %s18408_s14, 512 }
  0xab   :  { %p15761_p2 = scmp.ne.s32.totalorder %s18408_s14, %s15760_s19  ;;  %p15764_p3 = scmp.lt.u32.totalorder %s15760_s19, %s18408_s14 }
  0xad   :  { %p15766_p4 = pnand %p15764_p3, %p15761_p2 }
  0xaf   :  { %15769 = shalt.err (!%p15766_p4)
}
  0xb0   :  { %s15770_s23 = scalar_lea.vmem %s16130_s4, 512  ;;  %p15775_p6 = scmp.lt.s32.totalorder %s16130_s4, %s16130_s4 }
  0xb1   :  { %p15771_p5 = scmp.ne.s32.totalorder %s16130_s4, %s15770_s23  ;;  %p15776_p7 = scmp.lt.s32.totalorder %s15770_s23, %s15770_s23 }
  0xb3   :  { %p15777_p8 = por %p15776_p7, %p15775_p6 }
  0xb5   :  { %p15778_p9 = pnand %p15777_p8, %p15771_p5 }
  0xb7   :  { %15781 = shalt.err (!%p15778_p9)
}
  0xb8   :  { %161 = dma.hbm_to_vmem [thread:$0]  %s18408_s14, 512, %s16130_s4, [#allocation19], %s15866_s25, %s15866_s25, %s15867_s26  }
  0xb9   :  { %15848 = dma.done.wait [#allocation4], 1024  }
  0xba   :  { %15849 = vsyncadd [#allocation4], 4294966272 }
  0xbb   :  { %15850 = dma.done.wait [#allocation7], 2304  }
  0xbc   :  { %15851 = vsyncadd [#allocation7], 4294964992 }
  0xbd   :  { %15852 = dma.done.wait [#allocation10], 1024  }
  0xbe   :  { %15853 = vsyncadd [#allocation10], 4294966272 }
  0xbf   :  { %15854 = dma.done.wait [#allocation13], 1024  }
  0xc0   :  { %15855 = vsyncadd [#allocation13], 4294966272 }
  0xc1   :  { %15856 = dma.done.wait [#allocation16], 1024  }
  0xc2   :  { %15857 = vsyncadd [#allocation16], 4294966272 }
  0xc3   :  { %15858 = dma.done.wait [#allocation19], 512  }
  0xc4   :  { %15859 = vsyncadd [#allocation19], 4294966784  ;;  %v18418_v0 = vmov 0.0|0.0   ;;  %vm15877_vm0 = vmmov 0   ;;  %v18416_v1 = vmov 0.0   ;;  %v219_v2 = vld [vmem:[#allocation11] sm:$0xff]  ;;  %v474_v33 = vlaneseq }
  0xc5   :  { %14565 = vmatprep.subr.bf16.mxu1 %v18418_v0  ;;  %13501 = vmatprep.mubr.msk.f32.mxu1 %vm15877_vm0, %v18416_v1  ;;  %v220_v3 = vld [vmem:[#allocation11 + $0x8] sm:$0xff]  ;;  %v464_v4 = vld [vmem:[#allocation9] sm:$0xff]  ;;  %v221_v7 = vld [vmem:[#allocation11 + $0x10] sm:$0xff]  ;;  %vm200_vm1 = vcmask 261120   ;;  %v15879_v32 = vmov 0   ;;  %s18449_s30 = sld [smem:[#allocation40_spill]] }
  0xc6   :  { %v14557_v5 = vpack.c.bf16 %v220_v3, %v219_v2  ;;  %v465_v6 = vld [vmem:[#allocation9 + $0x8] sm:$0xff]  ;;  %v222_v8 = vld [vmem:[#allocation11 + $0x18] sm:$0xff]  ;;  %v16172_v11 = vld [vmem:[#allocation6] sm:$0xff]  ;;  %15116 = vset.pattern.permute.xlu0 %v15879_v32  ;;  %v15880_v34 = vmov 1966171168   ;;  %v16253_v37 = vshrl.u32 %v474_v33, 7 }
  0xc7   :  { %v16170_v9 = vpack.c.bf16 %v465_v6, %v464_v4  ;;  %v14561_v10 = vpack.c.bf16 %v222_v8, %v221_v7  ;;  %v466_v12 = vld [vmem:[#allocation9 + $0x10] sm:$0xff]  ;;  %v467_v13 = vld [vmem:[#allocation9 + $0x18] sm:$0xff]  ;;  %13469 = vmatprep.mubr.msk.f32.mxu0 %vm200_vm1, %v16172_v11  ;;  %v16184_v17 = vld [vmem:[#allocation6 + $0x10] sm:$0xff]  ;;  %v583_v35 = vunpack.c.l.s4 %v15880_v34  ;;  %vm797_vm2 = vcmask 130112   ;;  %s15881_s19 = smov 32   ;;  %s15882_s2 = smov 64  }
  0xc8   :  { %14558 = vmatprep.subr.bf16.mxu0 %v14557_v5  ;;  %v199_v14 = vld [vmem:[#allocation8 + $0x8] sm:$0xff]  ;;  %v16177_v15 = vpack.c.bf16 %v467_v13, %v466_v12  ;;  %v16196_v19 = vld [vmem:[#allocation6 + $0x18] sm:$0xff]  ;;  %v16198_v20 = vld [vmem:[#allocation6 + $0x20] sm:$0xff]  ;;  %v16262_v44 = vsub.s32 0, %v16253_v37  ;;  %vm862_vm3 = vcmask 1041409   ;;  %vm864_vm4 = vcmask 1042434  }
  0xc9   :  { %14560 = vmatpush3.bf16.msra.mxu0 %v14557_v5  ;;  %14567 = vmatpush3.bf16.msra.mxu1 %v16170_v9  ;;  %202 = vst.msk [vmem:[#allocation23 + $0x8] sm:$0xff] %vm200_vm1, %v199_v14  ;;  %v16182_v16 = vld [vmem:[#allocation6 + $0x8] sm:$0xff]  ;;  %v16208_v22 = vld [vmem:[#allocation6 + $0x30] sm:$0xff]  ;;  %v16214_v23 = vld [vmem:[#allocation6 + $0x38] sm:$0xff]  ;;  %v584_v36 = vunpack.c.0.s8 %v583_v35  ;;  %vm866_vm5 = vcmask 1043459   ;;  %vm868_vm6 = vcmask 1044484  }
  0xca   :  { %14562 = vmatprep.subr.bf16.mxu0 %v14561_v10  ;;  %14568 = vmatprep.subr.bf16.mxu1 %v18418_v0  ;;  %v16206_v21 = vld [vmem:[#allocation6 + $0x28] sm:$0xff]  ;;  %v16216_v24 = vld [vmem:[#allocation6 + $0x40] sm:$0xff]  ;;  %v16224_v26 = vld [vmem:[#allocation6 + $0x50] sm:$0xff]  ;;  %vm870_vm7 = vcmask 1045509   ;;  %vm872_vm8 = vcmask 1046534   ;;  %vm874_vm9 = vcmask 1047559  }
  0xcb   :  { %v16222_v25 = vld [vmem:[#allocation6 + $0x48] sm:$0xff]  ;;  %v16230_v27 = vld [vmem:[#allocation6 + $0x58] sm:$0xff]  ;;  %v16232_v28 = vld [vmem:[#allocation6 + $0x60] sm:$0xff]  ;;  %v16256_v38 = vsub.s32 %v584_v36, %v16253_v37  ;;  %vm878_vm10 = vcmask 130048   ;;  %s15883_s5 = smov 96  }
  0xcc   :  { %v16238_v29 = vld [vmem:[#allocation6 + $0x68] sm:$0xff]  ;;  %v16240_v30 = vld [vmem:[#allocation6 + $0x70] sm:$0xff]  ;;  %v16246_v31 = vld [vmem:[#allocation6 + $0x78] sm:$0xff] }
  0xcd   :  { %14564 = vmatpush3.bf16.msra.mxu0 %v14561_v10  ;;  %14570 = vmatpush3.bf16.msra.mxu1 %v16177_v15  ;;  %v16301_v36 = vld [vmem:[%s18400_s6] ss:$0 sm:$0xff] }
  0xce   :  { %14592 = vmatprep.subr.bf16.mxu0 %v18418_v0  ;;  %14571 = vmatprep.subr.bf16.mxu1 %v18418_v0 }
  0xd0   :  { %13470 = vmatmul.mubr.msk.f32.vlgmr.msra.gmra.mrb[0].mxu0 %vm200_vm1, %v16182_v16  ;;  %v16190_v18 = vld [vmem:[#allocation23 + $0x8] sm:$0xff] }
  0xd1   :  { %13502 = vmatmul.mubr.msk.f32.vlgmr.msra.gmra.mrb[0].mxu1 %vm200_vm1, %v16190_v18  ;;  %13472 = vmatprep.mubr.msk.f32.mxu0 %vm200_vm1, %v16184_v17 }
  0xd2   :  { %13508 = vmatprep.mubr.msk.f32.mxu1 %vm15877_vm0, %v18416_v1 }
  0xd4   :  { %13473 = vmatmul.mubr.msk.f32.gmra.mrb[2].mxu0 %vm200_vm1, %v16196_v19 }
  0xd5   :  { %13475 = vmatprep.mubr.msk.f32.mxu0 %vm200_vm1, %v16198_v20 }
  0xd8   :  { %13476 = vmatmul.mubr.msk.f32.gmra.mrb[4].mxu0 %vm200_vm1, %v16206_v21 }
  0xd9   :  { %13478 = vmatprep.mubr.msk.f32.mxu0 %vm200_vm1, %v16208_v22 }
  0xdc   :  { %13479 = vmatmul.mubr.msk.f32.gmra.mrb[6].mxu0 %vm200_vm1, %v16214_v23 }
  0xdd   :  { %13481 = vmatprep.mubr.msk.f32.mxu0 %vm200_vm1, %v16216_v24 }
  0xe0   :  { %13482 = vmatmul.mubr.msk.f32.gmra.mrb[8].mxu0 %vm200_vm1, %v16222_v25 }
  0xe1   :  { %13484 = vmatprep.mubr.msk.f32.mxu0 %vm200_vm1, %v16224_v26 }
  0xe4   :  { %13485 = vmatmul.mubr.msk.f32.gmra.mrb[10].mxu0 %vm200_vm1, %v16230_v27 }
  0xe5   :  { %13487 = vmatprep.mubr.msk.f32.mxu0 %vm200_vm1, %v16232_v28 }
  0xe8   :  { %13488 = vmatmul.mubr.msk.f32.gmra.mrb[12].mxu0 %vm200_vm1, %v16238_v29 }
  0xe9   :  { %13490 = vmatprep.mubr.msk.f32.mxu0 %vm200_vm1, %v16240_v30 }
  0xec   :  { %13491 = vmatmul.mubr.msk.f32.gmra.mrb[14].mxu0 %vm200_vm1, %v16246_v31 }
  0xed   :  { %13557 = vmatprep.mubr.msk.f32.mxu0 %vm15877_vm0, %v18416_v1 }
 0x1a3   :  { %v13471_v39 = vpop.f32.mrb[0].mxu0 }
 0x1a4   :  { %417 = vst.msk [vmem:[#allocation2 + $0x8] sm:$0xff] %vm200_vm1, %v13471_v39  ;;  %v337_v40 = vpop.f32.mrb[1].mxu0  ;;  %v576_v41 = vpop.f32.mrb[0].mxu1 }
 0x1a5   :  { %416 = vst.msk [vmem:[#allocation2] sm:$0xff] %vm200_vm1, %v337_v40  ;;  %v588_v42 = vrot.slane %v576_v41, %v16256_v38  ;;  %v13503_v43 = vpop.f32.mrb[1].mxu1  ;;  %v581_v57 = vcombine.high %v576_v41, %v576_v41 }
 0x1a7   :  { %v596_v45 = vcombine.high %v588_v42, %v588_v42  ;;  %v604_v46 = vrot.slane %v588_v42, %v16256_v38  ;;  %v13474_v47 = vpop.f32.mrb[2].mxu0  ;;  %v595_v4 = vrot.slane %v581_v57, %v16256_v38 }
 0x1a8   :  { %419 = vst.msk [vmem:[#allocation2 + $0x18] sm:$0xff] %vm200_vm1, %v13474_v47  ;;  %v347_v48 = vpop.f32.mrb[3].mxu0 }
 0x1a9   :  { %v618_v49 = vrot.slane %v596_v45, %v16256_v38  ;;  %418 = vst.msk [vmem:[#allocation2 + $0x10] sm:$0xff] %vm200_vm1, %v347_v48  ;;  %v633_v50 = vrot.slane %v604_v46, %v16262_v44  ;;  %v626_v58 = vcombine.high %v604_v46, %v604_v46  ;;  %v597_v32 = vcombine.high %v595_v4, %v595_v4 }
 0x1aa   :  { %v611_v34 = vrot.slane %v595_v4, %v16256_v38 }
 0x1ab   :  { %v16269_v51 = vld [vmem:[#allocation2 + $0x8] sm:$0xff]  ;;  %v13477_v52 = vpop.f32.mrb[4].mxu0  ;;  %v637_v54 = vrot.slane %v618_v49, %v16262_v44  ;;  %v628_v5 = vcombine.high %v618_v49, %v618_v49  ;;  %v641_v6 = vrot.slane %v626_v58, %v16262_v44  ;;  %v625_v49 = vrot.slane %v597_v32, %v16256_v38 }
 0x1ac   :  { %v16271_v53 = vld [vmem:[#allocation2] sm:$0xff]  ;;  %v671_v55 = vadd.f32 %v633_v50, %v16269_v51  ;;  %421 = vst.msk [vmem:[#allocation2 + $0x28] sm:$0xff] %vm200_vm1, %v13477_v52  ;;  %v357_v56 = vpop.f32.mrb[5].mxu0  ;;  %v627_v4 = vcombine.high %v611_v34, %v611_v34 }
 0x1ad   :  { %420 = vst.msk [vmem:[#allocation2 + $0x20] sm:$0xff] %vm200_vm1, %v357_v56  ;;  %v670_v59 = vadd.f32 %v633_v50, %v16271_v53  ;;  %v645_v35 = vrot.slane %v628_v5, %v16262_v44  ;;  %v649_v50 = vrot.slane %v611_v34, %v16262_v44  ;;  %v653_v5 = vrot.slane %v625_v49, %v16262_v44 }
 0x1ae   :  { %15117 = vtanh.f32 %v671_v55 }
 0x1af   :  { %v13480_v60 = vpop.f32.mrb[6].mxu0  ;;  %v16278_v61 = vld [vmem:[#allocation2 + $0x18] sm:$0xff]  ;;  %15119 = vtanh.f32 %v670_v59 }
 0x1b0   :  { %423 = vst.msk [vmem:[#allocation2 + $0x38] sm:$0xff] %vm200_vm1, %v13480_v60  ;;  %v367_v62 = vpop.f32.mrb[7].mxu0  ;;  %v673_v63 = vadd.f32 %v637_v54, %v16278_v61  ;;  %v16282_v2 = vld [vmem:[#allocation2 + $0x10] sm:$0xff] }
 0x1b1   :  { %422 = vst.msk [vmem:[#allocation2 + $0x30] sm:$0xff] %vm200_vm1, %v367_v62  ;;  %v672_v3 = vadd.f32 %v637_v54, %v16282_v2 }
 0x1b2   :  { %15121 = vtanh.f32 %v673_v63 }
 0x1b3   :  { %v13483_v7 = vpop.f32.mrb[8].mxu0  ;;  %15123 = vtanh.f32 %v672_v3  ;;  %v16288_v8 = vld [vmem:[#allocation2 + $0x28] sm:$0xff] }
 0x1b4   :  { %425 = vst.msk [vmem:[#allocation2 + $0x48] sm:$0xff] %vm200_vm1, %v13483_v7  ;;  %v377_v10 = vpop.f32.mrb[9].mxu0  ;;  %v16291_v12 = vld [vmem:[#allocation2 + $0x20] sm:$0xff]  ;;  %v675_v13 = vadd.f32 %v641_v6, %v16288_v8 }
 0x1b5   :  { %424 = vst.msk [vmem:[#allocation2 + $0x40] sm:$0xff] %vm200_vm1, %v377_v10  ;;  %v674_v14 = vadd.f32 %v641_v6, %v16291_v12 }
 0x1b6   :  { %15125 = vtanh.f32 %v675_v13 }
 0x1b7   :  { %v13486_v39 = vpop.f32.mrb[10].mxu0  ;;  %15127 = vtanh.f32 %v674_v14  ;;  %v16303_v40 = vld [vmem:[#allocation2 + $0x38] sm:$0xff] }
 0x1b8   :  { %v15118_v41 = vpop.eup %15117  ;;  %427 = vst.msk [vmem:[#allocation2 + $0x58] sm:$0xff] %vm200_vm1, %v13486_v39  ;;  %v387_v42 = vpop.f32.mrb[11].mxu0  ;;  %v16306_v43 = vld [vmem:[#allocation2 + $0x30] sm:$0xff]  ;;  %v677_v45 = vadd.f32 %v645_v35, %v16303_v40 }
 0x1b9   :  { %426 = vst.msk [vmem:[#allocation2 + $0x50] sm:$0xff] %vm200_vm1, %v387_v42  ;;  %v709_v46 = vmul.f32 %v15118_v41, %v16301_v36  ;;  %v676_v47 = vadd.f32 %v645_v35, %v16306_v43  ;;  %v15120_v48 = vpop.eup %15119 }
 0x1ba   :  { %15129 = vtanh.f32 %v677_v45  ;;  %v708_v55 = vmul.f32 %v15120_v48, %v16301_v36  ;;  %v629_v45 = vcombine.high %v625_v49, %v625_v49 }
 0x1bb   :  { %v13489_v52 = vpop.f32.mrb[12].mxu0  ;;  %v727_v54 = vsel %vm200_vm1, %v709_v46, 0.0  ;;  %15131 = vtanh.f32 %v676_v47  ;;  %v16316_v56 = vld [vmem:[#allocation2 + $0x48] sm:$0xff]  ;;  %v657_v46 = vrot.slane %v627_v4, %v16262_v44 }
 0x1bc   :  { %v15122_v57 = vpop.eup %15121  ;;  %429 = vst.msk [vmem:[#allocation2 + $0x68] sm:$0xff] %vm200_vm1, %v13489_v52  ;;  %v397_v58 = vpop.f32.mrb[13].mxu0  ;;  %728 = vadd.xlane.f32.xlu0 %v727_v54  ;;  %v16319_v59 = vld [vmem:[#allocation2 + $0x40] sm:$0xff]  ;;  %v679_v60 = vadd.f32 %v649_v50, %v16316_v56  ;;  %v724_v7 = vsel %vm200_vm1, %v708_v55, 0.0 }
 0x1bd   :  { %v15124_v62 = vpop.eup %15123  ;;  %428 = vst.msk [vmem:[#allocation2 + $0x60] sm:$0xff] %vm200_vm1, %v397_v58  ;;  %v711_v63 = vmul.f32 %v15122_v57, %v16301_v36  ;;  %v678_v3 = vadd.f32 %v649_v50, %v16319_v59 }
 0x1be   :  { %15133 = vtanh.f32 %v679_v60  ;;  %v710_v13 = vmul.f32 %v15124_v62, %v16301_v36  ;;  %v661_v62 = vrot.slane %v629_v45, %v16262_v44 }
 0x1bf   :  { %v13492_v6 = vpop.f32.mrb[14].mxu0  ;;  %v733_v10 = vsel %vm200_vm1, %v711_v63, 0.0  ;;  %15135 = vtanh.f32 %v678_v3  ;;  %v16329_v14 = vld [vmem:[#allocation2 + $0x58] sm:$0xff] }
 0x1c0   :  { %v15126_v32 = vpop.eup %15125  ;;  %431 = vst.msk [vmem:[#allocation2 + $0x78] sm:$0xff] %vm200_vm1, %v13492_v6  ;;  %v407_v35 = vpop.f32.mrb[15].mxu0  ;;  %725 = vadd.xlane.f32.xlu0 %v724_v7  ;;  %734 = vadd.xlane.f32.xlu1 %v733_v10  ;;  %v16332_v34 = vld [vmem:[#allocation2 + $0x50] sm:$0xff]  ;;  %v681_v39 = vadd.f32 %v653_v5, %v16329_v14  ;;  %v730_v48 = vsel %vm200_vm1, %v710_v13, 0.0 }
 0x1c1   :  { %v15128_v41 = vpop.eup %15127  ;;  %430 = vst.msk [vmem:[#allocation2 + $0x70] sm:$0xff] %vm200_vm1, %v407_v35  ;;  %v680_v42 = vadd.f32 %v653_v5, %v16332_v34  ;;  %v713_v50 = vmul.f32 %v15126_v32, %v16301_v36 }
 0x1c2   :  { %v712_v47 = vmul.f32 %v15128_v41, %v16301_v36  ;;  %15137 = vtanh.f32 %v681_v39 }
 0x1c3   :  { %15139 = vtanh.f32 %v680_v42  ;;  %v16341_v52 = vld [vmem:[#allocation2 + $0x68] sm:$0xff]  ;;  %v739_v3 = vsel %vm200_vm1, %v713_v50, 0.0 }
 0x1c4   :  { %v15130_v54 = vpop.eup %15129  ;;  %731 = vadd.xlane.f32.xlu1 %v730_v48  ;;  %v736_v55 = vsel %vm200_vm1, %v712_v47, 0.0  ;;  %v16344_v57 = vld [vmem:[#allocation2 + $0x60] sm:$0xff]  ;;  %v683_v49 = vadd.f32 %v657_v46, %v16341_v52 }
 0x1c5   :  { %v15132_v58 = vpop.eup %15131  ;;  %737 = vadd.xlane.f32.xlu0 %v736_v55  ;;  %v682_v60 = vadd.f32 %v657_v46, %v16344_v57  ;;  %v715_v4 = vmul.f32 %v15130_v54, %v16301_v36 }
 0x1c6   :  { %v714_v63 = vmul.f32 %v15132_v58, %v16301_v36  ;;  %15141 = vtanh.f32 %v683_v49 }
 0x1c7   :  { %15143 = vtanh.f32 %v682_v60  ;;  %v16352_v5 = vld [vmem:[#allocation2 + $0x78] sm:$0xff]  ;;  %v745_v41 = vsel %vm200_vm1, %v715_v4, 0.0 }
 0x1c8   :  { %18448 = vst [vmem:[#allocation32_spill] sm:$0xff] %v16352_v5  ;;  %v15134_v6 = vpop.eup %15133  ;;  %740 = vadd.xlane.f32.xlu1 %v739_v3  ;;  %v742_v7 = vsel %vm200_vm1, %v714_v63, 0.0  ;;  %v16355_v10 = vld [vmem:[#allocation2 + $0x70] sm:$0xff]  ;;  %v685_v13 = vadd.f32 %v661_v62, %v16352_v5 }
 0x1c9   :  { %v15136_v32 = vpop.eup %15135  ;;  %743 = vadd.xlane.f32.xlu0 %v742_v7  ;;  %v684_v35 = vadd.f32 %v661_v62, %v16355_v10  ;;  %v717_v42 = vmul.f32 %v15134_v6, %v16301_v36 }
 0x1ca   :  { %v716_v39 = vmul.f32 %v15136_v32, %v16301_v36  ;;  %15145 = vtanh.f32 %v685_v13 }
 0x1cb   :  { %15147 = vtanh.f32 %v684_v35  ;;  %v751_v50 = vsel %vm200_vm1, %v717_v42, 0.0 }
 0x1cc   :  { %v15138_v45 = vpop.eup %15137  ;;  %746 = vadd.xlane.f32.xlu1 %v745_v41  ;;  %v748_v46 = vsel %vm200_vm1, %v716_v39, 0.0  ;;  %v476_v41 = vld [vmem:[%s18449_s30] sm:$0xff] }
 0x1cd   :  { %v15140_v47 = vpop.eup %15139  ;;  %749 = vadd.xlane.f32.xlu0 %v748_v46  ;;  %v719_v54 = vmul.f32 %v15138_v45, %v16301_v36 }
 0x1ce   :  { %v718_v48 = vmul.f32 %v15140_v47, %v16301_v36 }
 0x1cf   :  { %v757_v62 = vsel %vm200_vm1, %v719_v54, 0.0 }
 0x1d0   :  { %v15142_v55 = vpop.eup %15141  ;;  %752 = vadd.xlane.f32.xlu1 %v751_v50  ;;  %v754_v49 = vsel %vm200_vm1, %v718_v48, 0.0 }
 0x1d1   :  { %v15144_v58 = vpop.eup %15143  ;;  %755 = vadd.xlane.f32.xlu0 %v754_v49  ;;  %v721_v63 = vmul.f32 %v15142_v55, %v16301_v36  ;;  %v475_v55 = vand.u32 127, %v474_v33 }
 0x1d2   :  { %v720_v60 = vmul.f32 %v15144_v58, %v16301_v36 }
 0x1d3   :  { %v763_v13 = vsel %vm200_vm1, %v721_v63, 0.0 }
 0x1d4   :  { %v15146_v3 = vpop.eup %15145  ;;  %758 = vadd.xlane.f32.xlu1 %v757_v62  ;;  %v760_v4 = vsel %vm200_vm1, %v720_v60, 0.0  ;;  %v792_v60 = vadd.s32 4294967288, %v475_v55 }
 0x1d5   :  { %v15148_v6 = vpop.eup %15147  ;;  %761 = vadd.xlane.f32.xlu0 %v760_v4  ;;  %v723_v32 = vmul.f32 %v15146_v3, %v16301_v36  ;;  %v16381_v3 = vsub.s32 %v475_v55, %v16253_v37 }
 0x1d6   :  { %v722_v7 = vmul.f32 %v15148_v6, %v16301_v36  ;;  %v16384_v4 = vsub.s32 %v792_v60, %v16253_v37 }
 0x1d7   :  { %v769_v39 = vsel %vm200_vm1, %v723_v32, 0.0 }
 0x1d8   :  { %764 = vadd.xlane.f32.xlu1 %v763_v13  ;;  %v766_v35 = vsel %vm200_vm1, %v722_v7, 0.0 }
 0x1d9   :  { %767 = vadd.xlane.f32.xlu0 %v766_v35 }
 0x1dc   :  { %770 = vadd.xlane.f32.xlu1 %v769_v39 }
 0x1ef   :  { %478 = vperm.xlu0 %15116, %v476_v41  }
 0x249   :  { %v729_v42 = vpop.xlane.xlu0 %728 }
 0x24a   :  { %v796_v1 = vrot.slane %v729_v42, %v16384_v4 }
 0x24d   :  { %v726_v45 = vpop.xlane.xlu0 %725  ;;  %v735_v46 = vpop.xlane.xlu1 %734 }
 0x24e   :  { %v791_v33 = vrot.slane %v726_v45, %v16381_v3  ;;  %v806_v35 = vrot.slane %v735_v46, %v16384_v4 }
 0x250   :  { %v798_v5 = vsel %vm797_vm2, %v796_v1, %v791_v33 }
 0x251   :  { %v732_v47 = vpop.xlane.xlu1 %731 }
 0x252   :  { %v738_v48 = vpop.xlane.xlu0 %737  ;;  %v802_v7 = vrot.slane %v732_v47, %v16381_v3 }
 0x253   :  { %v811_v41 = vrot.slane %v738_v48, %v16381_v3 }
 0x254   :  { %v807_v47 = vsel %vm797_vm2, %v806_v35, %v802_v7 }
 0x255   :  { %v741_v50 = vpop.xlane.xlu1 %740  ;;  %v863_v7 = vsel %vm862_vm3, %v807_v47, %v798_v5 }
 0x256   :  { %v744_v54 = vpop.xlane.xlu0 %743  ;;  %v815_v32 = vrot.slane %v741_v50, %v16384_v4 }
 0x257   :  { %v820_v50 = vrot.slane %v744_v54, %v16381_v3 }
 0x258   :  { %v816_v45 = vsel %vm797_vm2, %v815_v32, %v811_v41 }
 0x259   :  { %v747_v49 = vpop.xlane.xlu1 %746 }
 0x25a   :  { %v750_v58 = vpop.xlane.xlu0 %749  ;;  %v824_v39 = vrot.slane %v747_v49, %v16384_v4 }
 0x25b   :  { %v829_v46 = vrot.slane %v750_v58, %v16381_v3  ;;  %v865_v58 = vsel %vm864_vm4, %v816_v45, %v863_v7  ;;  %v18452_v7 = vmov 0.0|0.0  }
 0x25d   :  { %v753_v62 = vpop.xlane.xlu1 %752 }
 0x25e   :  { %v756_v63 = vpop.xlane.xlu0 %755  ;;  %v833_v37 = vrot.slane %v753_v62, %v16384_v4  ;;  %v825_v62 = vsel %vm797_vm2, %v824_v39, %v820_v50 }
 0x25f   :  { %v838_v42 = vrot.slane %v756_v63, %v16381_v3  ;;  %v867_v33 = vsel %vm866_vm5, %v825_v62, %v865_v58 }
 0x260   :  { %v834_v54 = vsel %vm797_vm2, %v833_v37, %v829_v46 }
 0x261   :  { %v759_v6 = vpop.xlane.xlu1 %758  ;;  %v869_v5 = vsel %vm868_vm6, %v834_v54, %v867_v33  ;;  %v16433_v54 = vpack.c.bf16 %v16246_v31, %v16240_v30  ;;  %v18453_v33 = vmov 0.0  }
 0x262   :  { %v762_v13 = vpop.xlane.xlu0 %761  ;;  %v842_v0 = vrot.slane %v759_v6, %v16384_v4 }
 0x263   :  { %v847_v6 = vrot.slane %v762_v13, %v16381_v3  ;;  %14594 = vmatpush3.bf16.msra.mxu0 %v16433_v54 }
 0x264   :  { %v843_v35 = vsel %vm797_vm2, %v842_v0, %v838_v42  ;;  %14601 = vmatprep.subr.bf16.mxu0 %v18452_v7 }
 0x265   :  { %v765_v60 = vpop.xlane.xlu1 %764  ;;  %v871_v13 = vsel %vm870_vm7, %v843_v35, %v869_v5  ;;  %v16441_v35 = vpack.c.bf16 %v16196_v19, %v16184_v17 }
 0x266   :  { %v851_v49 = vrot.slane %v765_v60, %v16384_v4  ;;  %v768_v48 = vpop.xlane.xlu0 %767 }
 0x267   :  { %v856_v41 = vrot.slane %v768_v48, %v16381_v3 }
 0x268   :  { %v852_v63 = vsel %vm797_vm2, %v851_v49, %v847_v6 }
 0x269   :  { %v771_v32 = vpop.xlane.xlu1 %770  ;;  %v873_v60 = vsel %vm872_vm8, %v852_v63, %v871_v13  ;;  %v16451_v63 = vpack.c.bf16 %v16206_v21, %v16198_v20  ;;  %v16474_v21 = vpack.c.bf16 %v16222_v25, %v16216_v24  ;;  %v16493_v24 = vpack.c.bf16 %v16238_v29, %v16232_v28  ;;  %v487_v29 = vld [vmem:[#allocation12 + $0x10] sm:$0xff] }
 0x26a   :  { %v860_v1 = vrot.slane %v771_v32, %v16384_v4 }
 0x26b   :  { %18454 = vst [vmem:[#allocation33_spill] sm:$0xff] %v16451_v63 }
 0x26c   :  { %v861_v39 = vsel %vm797_vm2, %v860_v1, %v856_v41 }
 0x26d   :  { %v875_v47 = vsel %vm874_vm9, %v861_v39, %v873_v60  ;;  %v16462_v39 = vpack.c.bf16 %v16214_v23, %v16208_v22  ;;  %v16483_v23 = vpack.c.bf16 %v16230_v27, %v16224_v26  ;;  %v485_v26 = vld [vmem:[#allocation12] sm:$0xff]  ;;  %v486_v27 = vld [vmem:[#allocation12 + $0x8] sm:$0xff] }
 0x26e   :  { %v479_v37 = vpop.permute.xlu0 %478  ;;  %v16504_v28 = vpack.c.bf16 %v486_v27, %v485_v26 }
 0x26f   :  { %vm16416_vm11 = vcmp.lt.s32.totalorder %v475_v55, %v479_v37  ;;  %v16427_v55 = vpack.c.bf16 %v16182_v16, %v16172_v11  ;;  %v488_v37 = vld [vmem:[#allocation12 + $0x18] sm:$0xff] }
 0x270   :  { %v877_v50 = vsel %vm16416_vm11, %v875_v47, -1000000.0  ;;  %v16508_v60 = vpack.c.bf16 %v488_v37, %v487_v29  ;;  %v481_v47 = vld [vmem:[%s18401_s7] sm:$0xff] }
 0x271   :  { %v879_v45 = vsel %vm878_vm10, %v877_v50, -inf  ;;  %14573 = vmatpush3.bf16.msra.mxu1 %v16427_v55 }
 0x272   :  { %880 = vmax.xlane.f32.xlu1 %v879_v45  ;;  %14574 = vmatprep.subr.bf16.mxu1 %v18452_v7 }
 0x2ff   :  { %v881_v46 = vpop.xlane.xlu1 %880 }
 0x300   :  { %v882_v49 = vsub.f32 %v877_v50, %v881_v46  ;;  %v482_v50 = vld [vmem:[%s18401_s7 + $0x8] sm:$0xff]  ;;  %v489_v46 = vld [vmem:[#allocation14] sm:$0xff] }
 0x301   :  { %v16517_v45 = vpack.c.bf16 %v482_v50, %v481_v47 }
 0x302   :  { %v883_v48 = vmul.f32 1.442695, %v882_v49  ;;  %v490_v49 = vld [vmem:[#allocation14 + $0x8] sm:$0xff] }
 0x304   :  { %15149 = vpow2.f32 %v883_v48  ;;  %v16520_v48 = vpack.c.bf16 %v490_v49, %v489_v46 }
 0x30e   :  { %v15150_v62 = vpop.eup %15149 }
 0x30f   :  { %v885_v42 = vsel %vm878_vm10, %v15150_v62, 0.0 }
 0x310   :  { %886 = vadd.xlane.f32.xlu1 %v885_v42  ;;  %v503_v42 = vld [vmem:[#allocation3] sm:$0xff] }
 0x39d   :  { %v887_v6 = vpop.xlane.xlu1 %886 }
 0x39e   :  { %15151 = vrcp.f32 %v887_v6  ;;  %v483_v6 = vld [vmem:[%s18401_s7 + $0x10] sm:$0xff] }
 0x3a8   :  { %v15152_v32 = vpop.eup %15151 }
 0x3a9   :  { %v889_v58 = vmul.f32 %v15152_v32, %v15150_v62  ;;  %v198_v62 = vld [vmem:[#allocation8] sm:$0xff]  ;;  %v484_v32 = vld [vmem:[%s18401_s7 + $0x18] sm:$0xff] }
 0x3aa   :  { %201 = vst.msk [vmem:[#allocation23] sm:$0xff] %vm200_vm1, %v198_v62 }
 0x3ab   :  { %890 = vst.msk [vmem:[#allocation21] sm:$0xff] %vm878_vm10, %v889_v58  ;;  %v892_v11 = vcombine.high %v889_v58, %v889_v58  ;;  %v899_v16 = vrot.slane %v889_v58, %v16256_v38  ;;  %v16533_v58 = vpack.c.bf16 %v484_v32, %v483_v6 }
 0x3ad   :  { %v906_v30 = vrot.slane %v892_v11, %v16256_v38  ;;  %v915_v31 = vrot.slane %v899_v16, %v16256_v38  ;;  %v907_v41 = vcombine.high %v899_v16, %v899_v16  ;;  %v491_v11 = vld [vmem:[#allocation14 + $0x10] sm:$0xff]  ;;  %v492_v16 = vld [vmem:[#allocation14 + $0x18] sm:$0xff] }
 0x3af   :  { %v908_v1 = vcombine.high %v906_v30, %v906_v30  ;;  %13509 = vmatmul.mubr.msk.f32.vlgmr.msra.gmra.mrb[2].mxu1 %vm878_vm10, %v915_v31  ;;  %v929_v17 = vrot.slane %v907_v41, %v16256_v38  ;;  %v937_v20 = vcombine.high %v915_v31, %v915_v31  ;;  %v922_v13 = vrot.slane %v906_v30, %v16256_v38 }
 0x3b0   :  { %14576 = vmatpush3.bf16.msra.mxu1 %v16441_v35  ;;  %13515 = vmatprep.mubr.msk.f32.mxu1 %vm15877_vm0, %v18453_v33  ;;  %v16538_v30 = vpack.c.bf16 %v492_v16, %v491_v11 }
 0x3b1   :  { %14577 = vmatprep.subr.bf16.mxu1 %v18452_v7  ;;  %v936_v19 = vrot.slane %v908_v1, %v16256_v38  ;;  %v939_v22 = vcombine.high %v929_v17, %v929_v17  ;;  %v938_v25 = vcombine.high %v922_v13, %v922_v13  ;;  %v16543_v31 = vld [vmem:[#allocation23] sm:$0xff] }
 0x3b3   :  { %13516 = vmatmul.mubr.msk.f32.vlgmr.msra.gmra.mrb[4].mxu1 %vm878_vm10, %v929_v17  ;;  %v940_v5 = vcombine.high %v936_v19, %v936_v19 }
 0x3b4   :  { %14579 = vmatpush3.bf16.msra.mxu1 %v16451_v63  ;;  %13522 = vmatprep.mubr.msk.f32.mxu1 %vm15877_vm0, %v18453_v33 }
 0x3b5   :  { %13558 = vmatmul.mubr.msk.f32.vlgmr.msra.gmra.mrb[16].mxu0 %vm878_vm10, %v940_v5  ;;  %14580 = vmatprep.subr.bf16.mxu1 %v18452_v7 }
 0x3b6   :  { %13579 = vmatprep.mubr.msk.f32.mxu0 %vm15877_vm0, %v18453_v33  ;;  %14603 = vmatpush3.bf16.msra.mxu0 %v16517_v45 }
 0x3b7   :  { %13523 = vmatmul.mubr.msk.f32.vlgmr.msra.gmra.mrb[6].mxu1 %vm878_vm10, %v937_v20  ;;  %14604 = vmatprep.subr.bf16.mxu0 %v18452_v7 }
 0x3b8   :  { %14582 = vmatpush3.bf16.msra.mxu1 %v16462_v39  ;;  %13529 = vmatprep.mubr.msk.f32.mxu1 %vm15877_vm0, %v18453_v33 }
 0x3b9   :  { %14583 = vmatprep.subr.bf16.mxu1 %v18452_v7 }
 0x3ba   :  { %14606 = vmatpush3.bf16.msra.mxu0 %v16533_v58 }
 0x3bb   :  { %13530 = vmatmul.mubr.msk.f32.vlgmr.msra.gmra.mrb[8].mxu1 %vm878_vm10, %v939_v22  ;;  %14613 = vmatprep.subr.bf16.mxu0 %v18452_v7 }
 0x3bc   :  { %14585 = vmatpush3.bf16.msra.mxu1 %v16474_v21  ;;  %13536 = vmatprep.mubr.msk.f32.mxu1 %vm15877_vm0, %v18453_v33 }
 0x3bd   :  { %14586 = vmatprep.subr.bf16.mxu1 %v18452_v7 }
 0x3bf   :  { %13537 = vmatmul.mubr.msk.f32.vlgmr.msra.gmra.mrb[10].mxu1 %vm878_vm10, %v922_v13 }
 0x3c0   :  { %14588 = vmatpush3.bf16.msra.mxu1 %v16483_v23  ;;  %13543 = vmatprep.mubr.msk.f32.mxu1 %vm15877_vm0, %v18453_v33 }
 0x3c1   :  { %14589 = vmatprep.subr.bf16.mxu1 %v18452_v7 }
 0x3c3   :  { %13544 = vmatmul.mubr.msk.f32.vlgmr.msra.gmra.mrb[12].mxu1 %vm878_vm10, %v936_v19 }
 0x3c4   :  { %14591 = vmatpush3.bf16.msra.mxu1 %v16493_v24  ;;  %13550 = vmatprep.mubr.msk.f32.mxu1 %vm15877_vm0, %v18453_v33 }
 0x3c5   :  { %14595 = vmatprep.subr.bf16.mxu1 %v18452_v7 }
 0x3c7   :  { %13551 = vmatmul.mubr.msk.f32.vlgmr.msra.gmra.mrb[14].mxu1 %vm878_vm10, %v938_v25 }
 0x3c8   :  { %13568 = vmatprep.mubr.msk.f32.mxu1 %vm15877_vm0, %v18453_v33  ;;  %14597 = vmatpush3.bf16.msra.mxu1 %v16504_v28 }
 0x3c9   :  { %14598 = vmatprep.subr.bf16.mxu1 %v18452_v7 }
 0x3cc   :  { %14600 = vmatpush3.bf16.msra.mxu1 %v16508_v60 }
 0x3cd   :  { %14607 = vmatprep.subr.bf16.mxu1 %v18452_v7 }
 0x3cf   :  { %13569 = vmatmul.mubr.msk.f32.vlgmr.msra.gmra.mrb[16].mxu1 %vm200_vm1, %v503_v42 }
 0x3d0   :  { %14609 = vmatpush3.bf16.msra.mxu1 %v16520_v48  ;;  %13590 = vmatprep.mubr.msk.f32.mxu1 %vm15877_vm0, %v18453_v33 }
 0x3d1   :  { %14610 = vmatprep.subr.bf16.mxu1 %v18452_v7 }
 0x3d4   :  { %14612 = vmatpush3.bf16.msra.mxu1 %v16538_v30 }
 0x3d5   :  { %14619 = vmatprep.subr.bf16.mxu1 %v18452_v7 }
 0x3d7   :  { %13591 = vmatmul.mubr.msk.f32.vlgmr.msra.gmra.mrb[18].mxu1 %vm200_vm1, %v16543_v31 }
 0x3d8   :  { %13612 = vmatprep.mubr.msk.f32.mxu1 %vm15877_vm0, %v18453_v33 }
 0x482   :  { %v1009_v41 = vpop.f32.mrb[2].mxu1 }
 0x483   :  { %v13510_v1 = vpop.f32.mrb[3].mxu1 }
 0x486   :  { %v1081_v17 = vpop.f32.mrb[4].mxu1 }
 0x487   :  { %v1599_v19 = vrot.slane %v1081_v17, 7  ;;  %v13517_v5 = vpop.f32.mrb[5].mxu1 }
 0x488   :  { %v1513_v20 = vpop.f32.mrb[16].mxu0 }
 0x489   :  { %v1600_v22 = vsel %vm862_vm3, %v1599_v19, %v1009_v41  ;;  %v13559_v13 = vpop.f32.mrb[17].mxu0  ;;  %v1611_v5 = vrot.slane %v1513_v20, 1  ;;  %v16563_v20 = vld [vmem:[%s18404_s10] ss:$0 sm:$0xff] }
 0x48a   :  { %v1153_v25 = vpop.f32.mrb[6].mxu1 }
 0x48b   :  { %v1601_v26 = vrot.slane %v1153_v25, 6  ;;  %v13524_v27 = vpop.f32.mrb[7].mxu1 }
 0x48d   :  { %v1602_v29 = vsel %vm864_vm4, %v1601_v26, %v1600_v22 }
 0x48e   :  { %v1225_v37 = vpop.f32.mrb[8].mxu1 }
 0x48f   :  { %v1603_v47 = vrot.slane %v1225_v37, 5  ;;  %v13531_v50 = vpop.f32.mrb[9].mxu1 }
 0x491   :  { %v1604_v46 = vsel %vm866_vm5, %v1603_v47, %v1602_v29 }
 0x492   :  { %v1297_v49 = vpop.f32.mrb[10].mxu1 }
 0x493   :  { %v1605_v62 = vrot.slane %v1297_v49, 4  ;;  %v13538_v42 = vpop.f32.mrb[11].mxu1 }
 0x495   :  { %v1606_v6 = vsel %vm868_vm6, %v1605_v62, %v1604_v46 }
 0x496   :  { %v1369_v32 = vpop.f32.mrb[12].mxu1 }
 0x497   :  { %v1607_v11 = vrot.slane %v1369_v32, 3  ;;  %v13545_v16 = vpop.f32.mrb[13].mxu1 }
 0x499   :  { %v1608_v41 = vsel %vm870_vm7, %v1607_v11, %v1606_v6 }
 0x49a   :  { %v1441_v1 = vpop.f32.mrb[14].mxu1 }
 0x49b   :  { %v1609_v17 = vrot.slane %v1441_v1, 2  ;;  %v13552_v19 = vpop.f32.mrb[15].mxu1 }
 0x49c   :  { %v499_v19 = vld [vmem:[#allocation17 + $0x8] sm:$0xff] }
 0x49d   :  { %v1610_v22 = vsel %vm872_vm8, %v1609_v17, %v1608_v41  ;;  %v498_v17 = vld [vmem:[#allocation17] sm:$0xff] }
 0x49e   :  { %v1612_v13 = vsel %vm874_vm9, %v1611_v5, %v1610_v22  ;;  %v494_v5 = vld [vmem:[#allocation15] sm:$0xff]  ;;  %v16568_v22 = vpack.c.bf16 %v499_v19, %v498_v17 }
 0x49f   :  { %13580 = vmatmul.mubr.msk.f32.vlgmr.msra.gmra.mrb[18].mxu0 %vm200_vm1, %v1612_v13  ;;  %v495_v13 = vld [vmem:[#allocation15 + $0x8] sm:$0xff] }
 0x4a0   :  { %13601 = vmatprep.mubr.msk.f32.mxu0 %vm15877_vm0, %v18453_v33  ;;  %14615 = vmatpush3.bf16.msra.mxu0 %v16568_v22 }
 0x4a1   :  { %14616 = vmatprep.subr.bf16.mxu0 %v18452_v7 }
 0x4a2   :  { %v1587_v25 = vpop.f32.mrb[16].mxu1 }
 0x4a3   :  { %v13570_v26 = vpop.f32.mrb[17].mxu1 }
 0x4a4   :  { %v501_v26 = vld [vmem:[#allocation17 + $0x18] sm:$0xff] }
 0x4aa   :  { %v1754_v27 = vpop.f32.mrb[18].mxu1 }
 0x4ab   :  { %v13592_v29 = vpop.f32.mrb[19].mxu1 }
 0x4ac   :  { %v496_v29 = vld [vmem:[#allocation15 + $0x10] sm:$0xff] }
 0x572   :  { %v1681_v37 = vpop.f32.mrb[18].mxu0 }
 0x573   :  { %v1682_v47 = vadd.f32 %v1681_v37, %v1587_v25  ;;  %v13581_v50 = vpop.f32.mrb[19].mxu0  ;;  %v500_v25 = vld [vmem:[#allocation17 + $0x10] sm:$0xff]  ;;  %v497_v37 = vld [vmem:[#allocation15 + $0x18] sm:$0xff] }
 0x575   :  { %v1758_v46 = vadd.f32 %v1754_v27, %v1682_v47  ;;  %v16570_v27 = vpack.c.bf16 %v495_v13, %v494_v5  ;;  %v16573_v47 = vpack.c.bf16 %v501_v26, %v500_v25 }
 0x577   :  { %v1765_v49 = vadd.f32 %v16563_v20, %v1758_v46  ;;  %14621 = vmatpush3.bf16.msra.mxu1 %v16570_v27  ;;  %v16577_v46 = vpack.c.bf16 %v497_v37, %v496_v29  ;;  %14618 = vmatpush3.bf16.msra.mxu0 %v16573_v47 }
 0x578   :  { %14622 = vmatprep.subr.bf16.mxu1 %v18452_v7  ;;  %14625 = vmatprep.subr.bf16.mxu0 %v18452_v7 }
 0x579   :  { %1773 = vrot.lane.b32.xlu1 %v1765_v49, %s15881_s19  ;;  %v12843_v62 = vmul.f32 -1.442695, %v1765_v49 }
 0x57a   :  { %13602 = vmatmul.mubr.msk.f32.vlgmr.msra.gmra.mrb[20].mxu0 %vm200_vm1, %v16190_v18 }
 0x57b   :  { %15153 = vpow2.f32 %v12843_v62  ;;  %14624 = vmatpush3.bf16.msra.mxu1 %v16577_v46  ;;  %13623 = vmatprep.mubr.msk.f32.mxu0 %vm15877_vm0, %v18453_v33 }
 0x57c   :  { %14631 = vmatprep.subr.bf16.mxu1 %v18452_v7 }
 0x585   :  { %v15154_v42 = vpop.eup %15153 }
 0x586   :  { %v1769_v6 = vadd.f32 1.0, %v15154_v42 }
 0x588   :  { %15155 = vrcp.f32 %v1769_v6 }
 0x592   :  { %v15156_v32 = vpop.eup %15155 }
 0x593   :  { %v1783_v62 = vsub.f32 1.0, %v15156_v32 }
 0x5eb   :  { %v1774_v11 = vpop.permute.xlu1 %1773 }
 0x5ec   :  { %v1776_v16 = vmul.f32 %v15156_v32, %v1774_v11 }
 0x5ee   :  { %1778 = vrot.lane.b32.xlu1 %v1776_v16, %s15882_s2 }
 0x660   :  { %v1779_v41 = vpop.permute.xlu1 %1778 }
 0x661   :  { %v1781_v1 = vadd.f32 %v1779_v41, %v1765_v49  ;;  %v1869_v41 = vpop.f32.mrb[20].mxu0 }
 0x663   :  { %15157 = vtanh.f32 %v1781_v1  ;;  %v13603_v1 = vpop.f32.mrb[21].mxu0 }
 0x664   :  { %v472_v1 = vld [vmem:[#allocation18 + $0x18] sm:$0xff] }
 0x66d   :  { %v15158_v50 = vpop.eup %15157 }
 0x66e   :  { %1785 = vrot.lane.b32.xlu1 %v15158_v50, %s15883_s5 }
 0x672   :  { %1789 = vrot.lane.b32.xlu1 %v16543_v31, %s15881_s19  ;;  %v16603_v31 = vld [vmem:[%s18407_s13] ss:$0 sm:$0xff] }
 0x6e0   :  { %v1786_v49 = vpop.permute.xlu1 %1785 }
 0x6e1   :  { %v1788_v6 = vmul.f32 %v1786_v49, %v1783_v62 }
 0x6e4   :  { %v1790_v42 = vpop.permute.xlu1 %1789 }
 0x6e5   :  { %v1792_v11 = vmul.f32 %v15156_v32, %v1790_v42 }
 0x6e7   :  { %v1793_v16 = vadd.f32 %v1792_v11, %v1788_v6  ;;  %v469_v6 = vld [vmem:[#allocation18] sm:$0xff]  ;;  %v470_v11 = vld [vmem:[#allocation18 + $0x8] sm:$0xff] }
 0x6e9   :  { %1795 = vrot.lane.b32.xlu1 %v1793_v16, %s15883_s5  ;;  %v471_v16 = vld [vmem:[#allocation18 + $0x10] sm:$0xff] }
 0x75b   :  { %v1796_v17 = vpop.permute.xlu1 %1795 }
 0x75c   :  { %1798 = vst.msk [vmem:[#allocation23] sm:$0xff] %vm200_vm1, %v1796_v17  ;;  %13613 = vmatmul.mubr.msk.f32.vlgmr.msra.gmra.mrb[20].mxu1 %vm200_vm1, %v1796_v17  ;;  %v16613_v17 = vpack.c.bf16 %v472_v1, %v471_v16 }
 0x75d   :  { %14633 = vmatpush3.bf16.msra.mxu1 %v16170_v9  ;;  %13634 = vmatprep.mubr.msk.f32.mxu1 %vm15877_vm0, %v18453_v33 }
 0x75e   :  { %14634 = vmatprep.subr.bf16.mxu1 %v18452_v7 }
 0x761   :  { %14636 = vmatpush3.bf16.msra.mxu1 %v16177_v15 }
 0x762   :  { %14643 = vmatprep.subr.bf16.mxu1 %v18452_v7 }
 0x82f   :  { %v1941_v32 = vpop.f32.mrb[20].mxu1 }
 0x830   :  { %v1942_v19 = vadd.f32 %v1941_v32, %v1869_v41  ;;  %v13614_v5 = vpop.f32.mrb[21].mxu1  ;;  %v16610_v41 = vpack.c.bf16 %v470_v11, %v469_v6 }
 0x832   :  { %v1951_v13 = vadd.f32 %v16603_v31, %v1942_v19  ;;  %14627 = vmatpush3.bf16.msra.mxu0 %v16610_v41 }
 0x833   :  { %14628 = vmatprep.subr.bf16.mxu0 %v18452_v7 }
 0x834   :  { %1959 = vrot.lane.b32.xlu1 %v1951_v13, %s15881_s19  ;;  %v12847_v25 = vmul.f32 -1.442695, %v1951_v13 }
 0x836   :  { %15159 = vpow2.f32 %v12847_v25  ;;  %14630 = vmatpush3.bf16.msra.mxu0 %v16613_v17 }
 0x837   :  { %14637 = vmatprep.subr.bf16.mxu0 %v18452_v7 }
 0x840   :  { %v15160_v26 = vpop.eup %15159 }
 0x841   :  { %v1955_v29 = vadd.f32 1.0, %v15160_v26 }
 0x843   :  { %15161 = vrcp.f32 %v1955_v29 }
 0x84d   :  { %v15162_v37 = vpop.eup %15161 }
 0x84e   :  { %v1969_v19 = vsub.f32 1.0, %v15162_v37 }
 0x8a6   :  { %v1960_v50 = vpop.permute.xlu1 %1959 }
 0x8a7   :  { %v1962_v49 = vmul.f32 %v15162_v37, %v1960_v50 }
 0x8a9   :  { %1964 = vrot.lane.b32.xlu0 %v1962_v49, %s15882_s2 }
 0x8ad   :  { %1975 = vrot.lane.b32.xlu0 %v16190_v18, %s15881_s19 }
 0x91b   :  { %v1965_v62 = vpop.permute.xlu0 %1964 }
 0x91c   :  { %v1967_v42 = vadd.f32 %v1965_v62, %v1951_v13 }
 0x91e   :  { %15163 = vtanh.f32 %v1967_v42 }
 0x91f   :  { %v1976_v18 = vpop.permute.xlu0 %1975 }
 0x920   :  { %v1978_v13 = vmul.f32 %v15162_v37, %v1976_v18  ;;  %v16637_v37 = vld [vmem:[%s18409_s15] ss:$0 sm:$0xff] }
 0x921   :  { %18455 = vst [vmem:[#allocation34_spill] sm:$0xff] %v16637_v37 }
 0x928   :  { %v15164_v32 = vpop.eup %15163 }
 0x929   :  { %1971 = vrot.lane.b32.xlu1 %v15164_v32, %s15883_s5 }
 0x99b   :  { %v1972_v5 = vpop.permute.xlu1 %1971 }
 0x99c   :  { %v1974_v25 = vmul.f32 %v1972_v5, %v1969_v19 }
 0x99e   :  { %v1979_v26 = vadd.f32 %v1978_v13, %v1974_v25 }
 0x9a0   :  { %1981 = vrot.lane.b32.xlu1 %v1979_v26, %s15883_s5 }
 0xa12   :  { %v1982_v29 = vpop.permute.xlu1 %1981 }
 0xa13   :  { %1984 = vst.msk [vmem:[#allocation23 + $0x8] sm:$0xff] %vm200_vm1, %v1982_v29  ;;  %13624 = vmatmul.mubr.msk.f32.vlgmr.msra.gmra.mrb[22].mxu0 %vm200_vm1, %v1982_v29 }
 0xa14   :  { %14639 = vmatpush3.bf16.msra.mxu0 %v16427_v55  ;;  %13641 = vmatprep.mubr.msk.f32.mxu0 %vm15877_vm0, %v18453_v33 }
 0xa15   :  { %14640 = vmatprep.subr.bf16.mxu0 %v18452_v7 }
 0xa1a   :  { %v16626_v50 = vld [vmem:[#allocation23 + $0x8] sm:$0xff] }
 0xa1b   :  { %13635 = vmatmul.mubr.msk.f32.vlgmr.msra.gmra.mrb[22].mxu1 %vm200_vm1, %v16626_v50 }
 0xa1c   :  { %14645 = vmatpush3.bf16.msra.mxu1 %v16451_v63  ;;  %13655 = vmatprep.mubr.msk.f32.mxu1 %vm15877_vm0, %v18453_v33 }
 0xa1d   :  { %14649 = vmatprep.subr.bf16.mxu1 %v18452_v7 }
 0xae6   :  { %v2059_v49 = vpop.f32.mrb[22].mxu0 }
 0xae7   :  { %v2060_v62 = vadd.f32 %v16637_v37, %v2059_v49  ;;  %v13625_v42 = vpop.f32.mrb[23].mxu0 }
 0xae9   :  { %2063 = vst [vmem:[#allocation20] sm:$0xff] %v2060_v62 }
 0xaee   :  { %v2136_v6 = vpop.f32.mrb[22].mxu1 }
 0xaef   :  { %v2141_v11 = vcombine.high %v2136_v6, %v2136_v6  ;;  %v2148_v16 = vrot.slane %v2136_v6, %v16256_v38  ;;  %v13636_v1 = vpop.f32.mrb[23].mxu1 }
 0xaf1   :  { %v2156_v32 = vcombine.high %v2148_v16, %v2148_v16  ;;  %v2164_v18 = vrot.slane %v2148_v16, %v16256_v38  ;;  %v2155_v19 = vrot.slane %v2141_v11, %v16256_v38 }
 0xaf3   :  { %v2178_v5 = vrot.slane %v2156_v32, %v16256_v38  ;;  %v2186_v13 = vcombine.high %v2164_v18, %v2164_v18  ;;  %v2193_v25 = vrot.slane %v2164_v18, %v16262_v44  ;;  %v2171_v29 = vrot.slane %v2155_v19, %v16256_v38 }
 0xaf4   :  { %v2157_v42 = vcombine.high %v2155_v19, %v2155_v19 }
 0xaf5   :  { %v2197_v26 = vrot.slane %v2178_v5, %v16262_v44  ;;  %v2201_v49 = vrot.slane %v2186_v13, %v16262_v44  ;;  %v2230_v62 = vadd.f32 %v2193_v25, %v16271_v53  ;;  %v2188_v6 = vcombine.high %v2178_v5, %v2178_v5 }
 0xaf6   :  { %v2231_v1 = vadd.f32 %v2193_v25, %v16269_v51  ;;  %v2209_v32 = vrot.slane %v2171_v29, %v16262_v44  ;;  %v2185_v37 = vrot.slane %v2157_v42, %v16256_v38 }
 0xaf7   :  { %v2232_v16 = vadd.f32 %v2197_v26, %v16282_v2  ;;  %v2233_v11 = vadd.f32 %v2197_v26, %v16278_v61  ;;  %v2234_v18 = vadd.f32 %v2201_v49, %v16291_v12  ;;  %15165 = vtanh.f32 %v2230_v62 }
 0xaf8   :  { %v2205_v63 = vrot.slane %v2188_v6, %v16262_v44  ;;  %15167 = vtanh.f32 %v2231_v1  ;;  %v2235_v53 = vadd.f32 %v2201_v49, %v16288_v8  ;;  %v2238_v51 = vadd.f32 %v2209_v32, %v16319_v59 }
 0xaf9   :  { %15169 = vtanh.f32 %v2232_v16  ;;  %v2187_v2 = vcombine.high %v2171_v29, %v2171_v29  ;;  %v2213_v61 = vrot.slane %v2185_v37, %v16262_v44  ;;  %v2189_v12 = vcombine.high %v2185_v37, %v2185_v37 }
 0xafa   :  { %15171 = vtanh.f32 %v2233_v11  ;;  %v2236_v19 = vadd.f32 %v2205_v63, %v16306_v43  ;;  %v2239_v5 = vadd.f32 %v2209_v32, %v16316_v56  ;;  %v2237_v62 = vadd.f32 %v2205_v63, %v16303_v40 }
 0xafb   :  { %15173 = vtanh.f32 %v2234_v18  ;;  %v2217_v13 = vrot.slane %v2187_v2, %v16262_v44  ;;  %v2240_v25 = vadd.f32 %v2213_v61, %v16332_v34  ;;  %v2221_v29 = vrot.slane %v2189_v12, %v16262_v44 }
 0xafc   :  { %15175 = vtanh.f32 %v2235_v53  ;;  %v2241_v40 = vadd.f32 %v2213_v61, %v16329_v14 }
 0xafd   :  { %15177 = vtanh.f32 %v2238_v51  ;;  %v2242_v56 = vadd.f32 %v2217_v13, %v16344_v57  ;;  %v2244_v11 = vadd.f32 %v2221_v29, %v16355_v10  ;;  %v16683_v10 = vld [vmem:[%s18400_s6] ss:$0 sm:$0xff] }
 0xafe   :  { %15179 = vtanh.f32 %v2236_v19  ;;  %v2243_v19 = vadd.f32 %v2217_v13, %v16341_v52  ;;  %v18456_v52 = vld [vmem:[#allocation32_spill] sm:$0xff] }
 0xaff   :  { %15181 = vtanh.f32 %v2239_v5  ;;  %v2245_v13 = vadd.f32 %v2221_v29, %v18456_v52 }
 0xb00   :  { %15183 = vtanh.f32 %v2240_v25 }
 0xb01   :  { %v15166_v8 = vpop.eup %15165  ;;  %15185 = vtanh.f32 %v2237_v62 }
 0xb02   :  { %v15168_v26 = vpop.eup %15167  ;;  %v2262_v59 = vmul.f32 %v15166_v8, %v16301_v36  ;;  %15187 = vtanh.f32 %v2242_v56 }
 0xb03   :  { %v15170_v49 = vpop.eup %15169  ;;  %v2263_v43 = vmul.f32 %v15168_v26, %v16301_v36  ;;  %15189 = vtanh.f32 %v2241_v40 }
 0xb04   :  { %v15172_v37 = vpop.eup %15171  ;;  %v2278_v42 = vsel %vm200_vm1, %v2262_v59, 0.0  ;;  %v2264_v34 = vmul.f32 %v15170_v49, %v16301_v36  ;;  %15191 = vtanh.f32 %v2244_v11 }
 0xb05   :  { %v15174_v6 = vpop.eup %15173  ;;  %v2281_v1 = vsel %vm200_vm1, %v2263_v43, 0.0  ;;  %2279 = vadd.xlane.f32.xlu0 %v2278_v42  ;;  %v2265_v32 = vmul.f32 %v15172_v37, %v16301_v36  ;;  %15193 = vtanh.f32 %v2243_v19 }
 0xb06   :  { %2282 = vadd.xlane.f32.xlu1 %v2281_v1  ;;  %v2266_v16 = vmul.f32 %v15174_v6, %v16301_v36  ;;  %v15176_v63 = vpop.eup %15175  ;;  %v2284_v57 = vsel %vm200_vm1, %v2264_v34, 0.0  ;;  %15195 = vtanh.f32 %v2245_v13 }
 0xb07   :  { %v15178_v18 = vpop.eup %15177  ;;  %v2287_v14 = vsel %vm200_vm1, %v2265_v32, 0.0  ;;  %v2267_v61 = vmul.f32 %v16683_v10, %v15176_v63 }
 0xb08   :  { %v2290_v53 = vsel %vm200_vm1, %v2266_v16, 0.0  ;;  %v15180_v51 = vpop.eup %15179  ;;  %v2270_v2 = vmul.f32 %v15178_v18, %v16301_v36 }
 0xb09   :  { %2285 = vadd.xlane.f32.xlu0 %v2284_v57  ;;  %v15182_v12 = vpop.eup %15181  ;;  %v2268_v25 = vmul.f32 %v16683_v10, %v15180_v51  ;;  %v2293_v8 = vsel %vm200_vm1, %v2267_v61, 0.0 }
 0xb0a   :  { %2291 = vadd.xlane.f32.xlu1 %v2290_v53  ;;  %v2302_v5 = vsel %vm200_vm1, %v2270_v2, 0.0  ;;  %v15184_v36 = vpop.eup %15183  ;;  %v2271_v26 = vmul.f32 %v16683_v10, %v15182_v12 }
 0xb0b   :  { %v15186_v59 = vpop.eup %15185  ;;  %v2296_v49 = vsel %vm200_vm1, %v2268_v25, 0.0  ;;  %v2272_v62 = vmul.f32 %v16683_v10, %v15184_v36 }
 0xb0c   :  { %v15188_v43 = vpop.eup %15187  ;;  %v2305_v37 = vsel %vm200_vm1, %v2271_v26, 0.0  ;;  %v2269_v56 = vmul.f32 %v16683_v10, %v15186_v59 }
 0xb0d   :  { %2288 = vadd.xlane.f32.xlu0 %v2287_v14  ;;  %v15190_v42 = vpop.eup %15189  ;;  %v2308_v29 = vsel %vm200_vm1, %v2272_v62, 0.0  ;;  %v2274_v34 = vmul.f32 %v16683_v10, %v15188_v43 }
 0xb0e   :  { %2303 = vadd.xlane.f32.xlu1 %v2302_v5  ;;  %v15192_v6 = vpop.eup %15191  ;;  %v2299_v1 = vsel %vm200_vm1, %v2269_v56, 0.0  ;;  %v2273_v16 = vmul.f32 %v16683_v10, %v15190_v42 }
 0xb0f   :  { %v15194_v40 = vpop.eup %15193  ;;  %v2314_v63 = vsel %vm200_vm1, %v2274_v34, 0.0  ;;  %v2276_v11 = vmul.f32 %v16683_v10, %v15192_v6 }
 0xb10   :  { %v2311_v57 = vsel %vm200_vm1, %v2273_v16, 0.0  ;;  %v2275_v32 = vmul.f32 %v16683_v10, %v15194_v40  ;;  %v15196_v18 = vpop.eup %15195 }
 0xb11   :  { %2294 = vadd.xlane.f32.xlu0 %v2293_v8  ;;  %v2320_v53 = vsel %vm200_vm1, %v2276_v11, 0.0  ;;  %v2277_v2 = vmul.f32 %v16683_v10, %v15196_v18 }
 0xb12   :  { %2297 = vadd.xlane.f32.xlu1 %v2296_v49  ;;  %v2317_v51 = vsel %vm200_vm1, %v2275_v32, 0.0 }
 0xb13   :  { %v2323_v19 = vsel %vm200_vm1, %v2277_v2, 0.0 }
 0xb15   :  { %2306 = vadd.xlane.f32.xlu0 %v2305_v37 }
 0xb16   :  { %2309 = vadd.xlane.f32.xlu1 %v2308_v29 }
 0xb19   :  { %2300 = vadd.xlane.f32.xlu0 %v2299_v1 }
 0xb1a   :  { %2315 = vadd.xlane.f32.xlu1 %v2314_v63 }
 0xb1d   :  { %2312 = vadd.xlane.f32.xlu0 %v2311_v57 }
 0xb1e   :  { %2321 = vadd.xlane.f32.xlu1 %v2320_v53 }
 0xb21   :  { %2318 = vadd.xlane.f32.xlu0 %v2317_v51 }
 0xb25   :  { %2324 = vadd.xlane.f32.xlu0 %v2323_v19 }
 0xb92   :  { %v2280_v14 = vpop.xlane.xlu0 %2279 }
 0xb93   :  { %v2283_v61 = vpop.xlane.xlu1 %2282  ;;  %v2345_v37 = vrot.slane %v2280_v14, %v16381_v3 }
 0xb94   :  { %v2349_v43 = vrot.slane %v2283_v61, %v16384_v4 }
 0xb96   :  { %v2286_v12 = vpop.xlane.xlu0 %2285  ;;  %v2350_v63 = vsel %vm797_vm2, %v2349_v43, %v2345_v37 }
 0xb97   :  { %v2292_v5 = vpop.xlane.xlu1 %2291  ;;  %v2354_v56 = vrot.slane %v2286_v12, %v16381_v3 }
 0xb98   :  { %v2363_v29 = vrot.slane %v2292_v5, %v16381_v3 }
 0xb9a   :  { %v2289_v25 = vpop.xlane.xlu0 %2288 }
 0xb9b   :  { %v2304_v36 = vpop.xlane.xlu1 %2303  ;;  %v2358_v49 = vrot.slane %v2289_v25, %v16384_v4 }
 0xb9c   :  { %v2381_v14 = vrot.slane %v2304_v36, %v16381_v3 }
 0xb9d   :  { %v2359_v1 = vsel %vm797_vm2, %v2358_v49, %v2354_v56 }
 0xb9e   :  { %v2295_v52 = vpop.xlane.xlu0 %2294  ;;  %v2414_v32 = vsel %vm862_vm3, %v2359_v1, %v2350_v63 }
 0xb9f   :  { %v2298_v13 = vpop.xlane.xlu1 %2297  ;;  %v2367_v62 = vrot.slane %v2295_v52, %v16384_v4 }
 0xba0   :  { %v2372_v16 = vrot.slane %v2298_v13, %v16381_v3 }
 0xba1   :  { %v2368_v40 = vsel %vm797_vm2, %v2367_v62, %v2363_v29 }
 0xba2   :  { %v2307_v8 = vpop.xlane.xlu0 %2306  ;;  %v2415_v51 = vsel %vm864_vm4, %v2368_v40, %v2414_v32 }
 0xba3   :  { %v2310_v26 = vpop.xlane.xlu1 %2309  ;;  %v2385_v18 = vrot.slane %v2307_v8, %v16384_v4 }
 0xba4   :  { %v2390_v2 = vrot.slane %v2310_v26, %v16381_v3 }
 0xba5   :  { %v2386_v52 = vsel %vm797_vm2, %v2385_v18, %v2381_v14 }
 0xba6   :  { %v2301_v59 = vpop.xlane.xlu0 %2300 }
 0xba7   :  { %v2376_v42 = vrot.slane %v2301_v59, %v16384_v4  ;;  %v2316_v34 = vpop.xlane.xlu1 %2315 }
 0xba8   :  { %v2399_v12 = vrot.slane %v2316_v34, %v16381_v3 }
 0xba9   :  { %v2377_v11 = vsel %vm797_vm2, %v2376_v42, %v2372_v16 }
 0xbaa   :  { %v2313_v6 = vpop.xlane.xlu0 %2312  ;;  %v2416_v61 = vsel %vm866_vm5, %v2377_v11, %v2415_v51 }
 0xbab   :  { %v2394_v57 = vrot.slane %v2313_v6, %v16384_v4  ;;  %v2322_v5 = vpop.xlane.xlu1 %2321  ;;  %v2417_v49 = vsel %vm868_vm6, %v2386_v52, %v2416_v61 }
 0xbac   :  { %v2408_v59 = vrot.slane %v2322_v5, %v16381_v3 }
 0xbad   :  { %v2395_v25 = vsel %vm797_vm2, %v2394_v57, %v2390_v2 }
 0xbae   :  { %v2319_v53 = vpop.xlane.xlu0 %2318  ;;  %v2418_v36 = vsel %vm870_vm7, %v2395_v25, %v2417_v49 }
 0xbaf   :  { %v2403_v19 = vrot.slane %v2319_v53, %v16384_v4 }
 0xbb1   :  { %v2404_v13 = vsel %vm797_vm2, %v2403_v19, %v2399_v12 }
 0xbb2   :  { %v2325_v8 = vpop.xlane.xlu0 %2324  ;;  %v2419_v43 = vsel %vm872_vm8, %v2404_v13, %v2418_v36  ;;  %v2065_v13 = vld [vmem:[#allocation3 + $0x8] sm:$0xff] }
 0xbb3   :  { %v2412_v26 = vrot.slane %v2325_v8, %v16384_v4  ;;  %v16800_v8 = vld [vmem:[#allocation23] sm:$0xff] }
 0xbb5   :  { %v2413_v62 = vsel %vm797_vm2, %v2412_v26, %v2408_v59 }
 0xbb6   :  { %v2420_v37 = vsel %vm874_vm9, %v2413_v62, %v2419_v43 }
 0xbb7   :  { %v2422_v56 = vsel %vm16416_vm11, %v2420_v37, -1000000.0 }
 0xbb8   :  { %v2423_v42 = vsel %vm878_vm10, %v2422_v56, -inf }
 0xbb9   :  { %2424 = vmax.xlane.f32.xlu1 %v2423_v42 }
 0xc46   :  { %v2425_v29 = vpop.xlane.xlu1 %2424 }
 0xc47   :  { %v2426_v34 = vsub.f32 %v2422_v56, %v2425_v29 }
 0xc49   :  { %v2427_v6 = vmul.f32 1.442695, %v2426_v34 }
 0xc4b   :  { %15197 = vpow2.f32 %v2427_v6 }
 0xc55   :  { %v15198_v1 = vpop.eup %15197 }
 0xc56   :  { %v2429_v16 = vsel %vm878_vm10, %v15198_v1, 0.0 }
 0xc57   :  { %2430 = vadd.xlane.f32.xlu0 %v2429_v16 }
 0xce4   :  { %v2431_v40 = vpop.xlane.xlu0 %2430 }
 0xce5   :  { %15199 = vrcp.f32 %v2431_v40 }
 0xcef   :  { %v15200_v63 = vpop.eup %15199 }
 0xcf0   :  { %v2433_v11 = vmul.f32 %v15200_v63, %v15198_v1 }
 0xcf2   :  { %2435 = vst.msk [vmem:[#allocation21 + $0x8] sm:$0xff] %vm878_vm10, %v2433_v11  ;;  %v2444_v57 = vrot.slane %v2433_v11, %v16256_v38  ;;  %v2437_v32 = vcombine.high %v2433_v11, %v2433_v11 }
 0xcf4   :  { %v2460_v18 = vrot.slane %v2444_v57, %v16256_v38  ;;  %v2452_v53 = vcombine.high %v2444_v57, %v2444_v57  ;;  %v2451_v2 = vrot.slane %v2437_v32, %v16256_v38 }
 0xcf6   :  { %13642 = vmatmul.mubr.msk.f32.vlgmr.msra.gmra.mrb[24].mxu0 %vm878_vm10, %v2460_v18  ;;  %v2482_v51 = vcombine.high %v2460_v18, %v2460_v18  ;;  %v2474_v19 = vrot.slane %v2452_v53, %v16256_v38  ;;  %v2467_v14 = vrot.slane %v2451_v2, %v16256_v38  ;;  %v2453_v12 = vcombine.high %v2451_v2, %v2451_v2 }
 0xcf7   :  { %14642 = vmatpush3.bf16.msra.mxu0 %v16441_v35  ;;  %13648 = vmatprep.mubr.msk.f32.mxu0 %vm15877_vm0, %v18453_v33 }
 0xcf8   :  { %13656 = vmatmul.mubr.msk.f32.vlgmr.msra.gmra.mrb[24].mxu1 %vm878_vm10, %v2482_v51  ;;  %14646 = vmatprep.subr.bf16.mxu0 %v18452_v7  ;;  %v2484_v61 = vcombine.high %v2474_v19, %v2474_v19  ;;  %v2483_v5 = vcombine.high %v2467_v14, %v2467_v14  ;;  %v2481_v25 = vrot.slane %v2453_v12, %v16256_v38 }
 0xcf9   :  { %14651 = vmatpush3.bf16.msra.mxu1 %v16474_v21  ;;  %13669 = vmatprep.mubr.msk.f32.mxu1 %vm15877_vm0, %v18453_v33 }
 0xcfa   :  { %13649 = vmatmul.mubr.msk.f32.vlgmr.msra.gmra.mrb[26].mxu0 %vm878_vm10, %v2474_v19  ;;  %14655 = vmatprep.subr.bf16.mxu1 %v18452_v7  ;;  %v2485_v52 = vcombine.high %v2481_v25, %v2481_v25 }
 0xcfb   :  { %14648 = vmatpush3.bf16.msra.mxu0 %v16462_v39  ;;  %13662 = vmatprep.mubr.msk.f32.mxu0 %vm15877_vm0, %v18453_v33 }
 0xcfc   :  { %13670 = vmatmul.mubr.msk.f32.vlgmr.msra.gmra.mrb[26].mxu1 %vm878_vm10, %v2467_v14  ;;  %14652 = vmatprep.subr.bf16.mxu0 %v18452_v7 }
 0xcfd   :  { %14657 = vmatpush3.bf16.msra.mxu1 %v16493_v24  ;;  %13683 = vmatprep.mubr.msk.f32.mxu1 %vm15877_vm0, %v18453_v33 }
 0xcfe   :  { %13663 = vmatmul.mubr.msk.f32.vlgmr.msra.gmra.mrb[28].mxu0 %vm878_vm10, %v2484_v61  ;;  %14661 = vmatprep.subr.bf16.mxu1 %v18452_v7 }
 0xcff   :  { %14654 = vmatpush3.bf16.msra.mxu0 %v16483_v23  ;;  %13676 = vmatprep.mubr.msk.f32.mxu0 %vm15877_vm0, %v18453_v33 }
 0xd00   :  { %13684 = vmatmul.mubr.msk.f32.vlgmr.msra.gmra.mrb[28].mxu1 %vm878_vm10, %v2483_v5  ;;  %14658 = vmatprep.subr.bf16.mxu0 %v18452_v7 }
 0xd01   :  { %14663 = vmatpush3.bf16.msra.mxu1 %v16504_v28  ;;  %13701 = vmatprep.mubr.msk.f32.mxu1 %vm15877_vm0, %v18453_v33 }
 0xd02   :  { %13677 = vmatmul.mubr.msk.f32.vlgmr.msra.gmra.mrb[30].mxu0 %vm878_vm10, %v2481_v25  ;;  %14664 = vmatprep.subr.bf16.mxu1 %v18452_v7 }
 0xd03   :  { %14660 = vmatpush3.bf16.msra.mxu0 %v16433_v54  ;;  %13690 = vmatprep.mubr.msk.f32.mxu0 %vm15877_vm0, %v18453_v33 }
 0xd04   :  { %14667 = vmatprep.subr.bf16.mxu0 %v18452_v7 }
 0xd05   :  { %14666 = vmatpush3.bf16.msra.mxu1 %v16508_v60 }
 0xd06   :  { %13691 = vmatmul.mubr.msk.f32.vlgmr.msra.gmra.mrb[32].mxu0 %vm878_vm10, %v2485_v52  ;;  %14673 = vmatprep.subr.bf16.mxu1 %v18452_v7 }
 0xd07   :  { %14669 = vmatpush3.bf16.msra.mxu0 %v16517_v45  ;;  %13712 = vmatprep.mubr.msk.f32.mxu0 %vm15877_vm0, %v18453_v33 }
 0xd08   :  { %13702 = vmatmul.mubr.msk.f32.vlgmr.msra.gmra.mrb[30].mxu1 %vm200_vm1, %v2065_v13  ;;  %14670 = vmatprep.subr.bf16.mxu0 %v18452_v7 }
 0xd09   :  { %14675 = vmatpush3.bf16.msra.mxu1 %v16520_v48  ;;  %13723 = vmatprep.mubr.msk.f32.mxu1 %vm15877_vm0, %v18453_v33 }
 0xd0a   :  { %14676 = vmatprep.subr.bf16.mxu1 %v18452_v7 }
 0xd0b   :  { %14672 = vmatpush3.bf16.msra.mxu0 %v16533_v58 }
 0xd0c   :  { %14679 = vmatprep.subr.bf16.mxu0 %v18452_v7 }
 0xd0d   :  { %14678 = vmatpush3.bf16.msra.mxu1 %v16538_v30 }
 0xd0e   :  { %14685 = vmatprep.subr.bf16.mxu1 %v18452_v7 }
 0xd10   :  { %13724 = vmatmul.mubr.msk.f32.vlgmr.msra.gmra.mrb[32].mxu1 %vm200_vm1, %v16800_v8 }
 0xd11   :  { %14687 = vmatpush3.bf16.msra.mxu1 %v16570_v27  ;;  %13745 = vmatprep.mubr.msk.f32.mxu1 %vm15877_vm0, %v18453_v33 }
 0xd12   :  { %14688 = vmatprep.subr.bf16.mxu1 %v18452_v7 }
 0xd15   :  { %14690 = vmatpush3.bf16.msra.mxu1 %v16577_v46 }
 0xd16   :  { %14697 = vmatprep.subr.bf16.mxu1 %v18452_v7 }
 0xdc9   :  { %v2554_v59 = vpop.f32.mrb[24].mxu0 }
 0xdca   :  { %v13643_v26 = vpop.f32.mrb[25].mxu0 }
 0xdcb   :  { %v2698_v49 = vpop.f32.mrb[24].mxu1 }
 0xdcc   :  { %v13657_v36 = vpop.f32.mrb[25].mxu1  ;;  %v3146_v56 = vrot.slane %v2698_v49, 6 }
 0xdcd   :  { %v2626_v62 = vpop.f32.mrb[26].mxu0 }
 0xdce   :  { %v3144_v43 = vrot.slane %v2626_v62, 7  ;;  %v13650_v37 = vpop.f32.mrb[27].mxu0 }
 0xdcf   :  { %v2842_v42 = vpop.f32.mrb[26].mxu1 }
 0xdd0   :  { %v3145_v29 = vsel %vm862_vm3, %v3144_v43, %v2554_v59  ;;  %v13671_v34 = vpop.f32.mrb[27].mxu1  ;;  %v3150_v63 = vrot.slane %v2842_v42, 4 }
 0xdd1   :  { %v2770_v6 = vpop.f32.mrb[28].mxu0  ;;  %v3147_v1 = vsel %vm864_vm4, %v3146_v56, %v3145_v29 }
 0xdd2   :  { %v3148_v16 = vrot.slane %v2770_v6, 5  ;;  %v13664_v40 = vpop.f32.mrb[29].mxu0 }
 0xdd3   :  { %v2986_v11 = vpop.f32.mrb[28].mxu1 }
 0xdd4   :  { %v3149_v57 = vsel %vm866_vm5, %v3148_v16, %v3147_v1  ;;  %v13685_v32 = vpop.f32.mrb[29].mxu1  ;;  %v3154_v19 = vrot.slane %v2986_v11, 2 }
 0xdd5   :  { %v2914_v18 = vpop.f32.mrb[30].mxu0  ;;  %v3151_v53 = vsel %vm868_vm6, %v3150_v63, %v3149_v57 }
 0xdd6   :  { %v3152_v51 = vrot.slane %v2914_v18, 3  ;;  %v13678_v2 = vpop.f32.mrb[31].mxu0 }
 0xdd8   :  { %v3153_v14 = vsel %vm870_vm7, %v3152_v51, %v3151_v53 }
 0xdd9   :  { %v3058_v61 = vpop.f32.mrb[32].mxu0  ;;  %v3155_v12 = vsel %vm872_vm8, %v3154_v19, %v3153_v14 }
 0xdda   :  { %v3156_v5 = vrot.slane %v3058_v61, 1  ;;  %v13692_v25 = vpop.f32.mrb[33].mxu0 }
 0xddb   :  { %v3132_v52 = vpop.f32.mrb[30].mxu1 }
 0xddc   :  { %v3157_v13 = vsel %vm874_vm9, %v3156_v5, %v3155_v12  ;;  %v13703_v59 = vpop.f32.mrb[31].mxu1 }
 0xddd   :  { %13713 = vmatmul.mubr.msk.f32.vlgmr.msra.gmra.mrb[34].mxu0 %vm200_vm1, %v3157_v13 }
 0xdde   :  { %14681 = vmatpush3.bf16.msra.mxu0 %v16568_v22  ;;  %13734 = vmatprep.mubr.msk.f32.mxu0 %vm15877_vm0, %v18453_v33 }
 0xddf   :  { %14682 = vmatprep.subr.bf16.mxu0 %v18452_v7 }
 0xde2   :  { %14684 = vmatpush3.bf16.msra.mxu0 %v16573_v47 }
 0xde3   :  { %v3299_v26 = vpop.f32.mrb[32].mxu1  ;;  %14691 = vmatprep.subr.bf16.mxu0 %v18452_v7 }
 0xde4   :  { %v13725_v49 = vpop.f32.mrb[33].mxu1 }
 0xde5   :  { %13735 = vmatmul.mubr.msk.f32.vlgmr.msra.gmra.mrb[36].mxu0 %vm200_vm1, %v16626_v50 }
 0xde6   :  { %14693 = vmatpush3.bf16.msra.mxu0 %v16610_v41  ;;  %13756 = vmatprep.mubr.msk.f32.mxu0 %vm15877_vm0, %v18453_v33 }
 0xde7   :  { %14694 = vmatprep.subr.bf16.mxu0 %v18452_v7 }
 0xdea   :  { %14696 = vmatpush3.bf16.msra.mxu0 %v16613_v17 }
 0xdeb   :  { %14703 = vmatprep.subr.bf16.mxu0 %v18452_v7 }
 0xeb0   :  { %v3226_v36 = vpop.f32.mrb[34].mxu0 }
 0xeb1   :  { %v3227_v62 = vadd.f32 %v3226_v36, %v3132_v52  ;;  %v13714_v43 = vpop.f32.mrb[35].mxu0 }
 0xeb3   :  { %v3303_v37 = vadd.f32 %v3299_v26, %v3227_v62 }
 0xeb5   :  { %v3304_v56 = vadd.f32 %v16563_v20, %v3303_v37 }
 0xeb7   :  { %3312 = vrot.lane.b32.xlu1 %v3304_v56, %s15881_s19  ;;  %v12862_v34 = vmul.f32 -1.442695, %v3304_v56 }
 0xeb8   :  { %v3408_v42 = vpop.f32.mrb[36].mxu0 }
 0xeb9   :  { %v13736_v29 = vpop.f32.mrb[37].mxu0  ;;  %15201 = vpow2.f32 %v12862_v34 }
 0xec3   :  { %v15202_v6 = vpop.eup %15201 }
 0xec4   :  { %v3308_v1 = vadd.f32 1.0, %v15202_v6 }
 0xec6   :  { %15203 = vrcp.f32 %v3308_v1  ;;  %v18457_v1 = vld [vmem:[#allocation33_spill] sm:$0xff] }
 0xed0   :  { %v15204_v16 = vpop.eup %15203 }
 0xed1   :  { %v3322_v18 = vsub.f32 1.0, %v15204_v16 }
 0xf29   :  { %v3313_v40 = vpop.permute.xlu1 %3312 }
 0xf2a   :  { %v3315_v63 = vmul.f32 %v15204_v16, %v3313_v40  ;;  %v18458_v40 = vld [vmem:[#allocation34_spill] sm:$0xff] }
 0xf2c   :  { %3317 = vrot.lane.b32.xlu0 %v3315_v63, %s15882_s2 }
 0xf9e   :  { %v3318_v11 = vpop.permute.xlu0 %3317 }
 0xf9f   :  { %v3320_v57 = vadd.f32 %v3318_v11, %v3304_v56 }
 0xfa1   :  { %15205 = vtanh.f32 %v3320_v57 }
 0xfab   :  { %v15206_v32 = vpop.eup %15205 }
 0xfac   :  { %3324 = vrot.lane.b32.xlu1 %v15206_v32, %s15883_s5 }
 0xfb0   :  { %3328 = vrot.lane.b32.xlu1 %v16800_v8, %s15881_s19 }
0x101e   :  { %v3325_v20 = vpop.permute.xlu1 %3324 }
0x101f   :  { %v3327_v51 = vmul.f32 %v3325_v20, %v3322_v18 }
0x1022   :  { %v3329_v53 = vpop.permute.xlu1 %3328 }
0x1023   :  { %v3331_v2 = vmul.f32 %v15204_v16, %v3329_v53 }
0x1025   :  { %v3332_v19 = vadd.f32 %v3331_v2, %v3327_v51 }
0x1027   :  { %3334 = vrot.lane.b32.xlu0 %v3332_v19, %s15883_s5 }
0x1099   :  { %v3335_v14 = vpop.permute.xlu0 %3334 }
0x109a   :  { %3337 = vst.msk [vmem:[#allocation23] sm:$0xff] %vm200_vm1, %v3335_v14  ;;  %13746 = vmatmul.mubr.msk.f32.vlgmr.msra.gmra.mrb[34].mxu1 %vm200_vm1, %v3335_v14 }
0x109b   :  { %14699 = vmatpush3.bf16.msra.mxu1 %v16170_v9  ;;  %13767 = vmatprep.mubr.msk.f32.mxu1 %vm15877_vm0, %v18453_v33 }
0x109c   :  { %14700 = vmatprep.subr.bf16.mxu1 %v18452_v7 }
0x109f   :  { %14702 = vmatpush3.bf16.msra.mxu1 %v16177_v15 }
0x10a0   :  { %14709 = vmatprep.subr.bf16.mxu1 %v18452_v7 }
0x116d   :  { %v3480_v8 = vpop.f32.mrb[34].mxu1 }
0x116e   :  { %v3481_v61 = vadd.f32 %v3480_v8, %v3408_v42  ;;  %v13747_v12 = vpop.f32.mrb[35].mxu1 }
0x1170   :  { %v3484_v5 = vadd.f32 %v16603_v31, %v3481_v61 }
0x1172   :  { %3492 = vrot.lane.b32.xlu1 %v3484_v5, %s15881_s19  ;;  %v12865_v25 = vmul.f32 -1.442695, %v3484_v5 }
0x1174   :  { %15207 = vpow2.f32 %v12865_v25  ;;  %v16877_v25 = vld [vmem:[#allocation2] sm:$0xff] }
0x117e   :  { %v15208_v52 = vpop.eup %15207 }
0x117f   :  { %v3488_v13 = vadd.f32 1.0, %v15208_v52 }
0x1181   :  { %15209 = vrcp.f32 %v3488_v13 }
0x118b   :  { %v15210_v59 = vpop.eup %15209 }
0x118c   :  { %v3502_v37 = vsub.f32 1.0, %v15210_v59 }
0x11e4   :  { %v3493_v26 = vpop.permute.xlu1 %3492 }
0x11e5   :  { %v3495_v49 = vmul.f32 %v15210_v59, %v3493_v26  ;;  %v16880_v26 = vld [vmem:[#allocation2 + $0x8] sm:$0xff] }
0x11e7   :  { %3497 = vrot.lane.b32.xlu0 %v3495_v49, %s15882_s2 }
0x11eb   :  { %3508 = vrot.lane.b32.xlu0 %v16626_v50, %s15881_s19 }
0x1259   :  { %v3498_v36 = vpop.permute.xlu0 %3497 }
0x125a   :  { %v3500_v62 = vadd.f32 %v3498_v36, %v3484_v5  ;;  %v16883_v36 = vld [vmem:[#allocation2 + $0x10] sm:$0xff] }
0x125c   :  { %15211 = vtanh.f32 %v3500_v62 }
0x125d   :  { %v3509_v31 = vpop.permute.xlu0 %3508 }
0x125e   :  { %v3511_v42 = vmul.f32 %v15210_v59, %v3509_v31 }
0x1266   :  { %v15212_v43 = vpop.eup %15211 }
0x1267   :  { %3504 = vrot.lane.b32.xlu1 %v15212_v43, %s15883_s5  ;;  %v16886_v43 = vld [vmem:[#allocation2 + $0x18] sm:$0xff] }
0x12d9   :  { %v3505_v56 = vpop.permute.xlu1 %3504 }
0x12da   :  { %v3507_v29 = vmul.f32 %v3505_v56, %v3502_v37  ;;  %v16890_v56 = vld [vmem:[#allocation2 + $0x20] sm:$0xff] }
0x12dc   :  { %v3512_v34 = vadd.f32 %v3511_v42, %v3507_v29 }
0x12de   :  { %3514 = vrot.lane.b32.xlu1 %v3512_v34, %s15883_s5 }
0x1350   :  { %v3515_v6 = vpop.permute.xlu1 %3514 }
0x1351   :  { %3517 = vst.msk [vmem:[#allocation23 + $0x8] sm:$0xff] %vm200_vm1, %v3515_v6  ;;  %13757 = vmatmul.mubr.msk.f32.vlgmr.msra.gmra.mrb[38].mxu0 %vm200_vm1, %v3515_v6  ;;  %v16895_v6 = vld [vmem:[#allocation2 + $0x28] sm:$0xff] }
0x1352   :  { %14705 = vmatpush3.bf16.msra.mxu0 %v16427_v55  ;;  %13774 = vmatprep.mubr.msk.f32.mxu0 %vm15877_vm0, %v18453_v33 }
0x1353   :  { %14706 = vmatprep.subr.bf16.mxu0 %v18452_v7 }
0x1358   :  { %v16860_v50 = vld [vmem:[#allocation23 + $0x8] sm:$0xff] }
0x1359   :  { %13768 = vmatmul.mubr.msk.f32.vlgmr.msra.gmra.mrb[36].mxu1 %vm200_vm1, %v16860_v50 }
0x135a   :  { %14711 = vmatpush3.bf16.msra.mxu1 %v18457_v1  ;;  %13788 = vmatprep.mubr.msk.f32.mxu1 %vm15877_vm0, %v18453_v33 }
0x135b   :  { %14715 = vmatprep.subr.bf16.mxu1 %v18452_v7 }
0x1424   :  { %v3586_v16 = vpop.f32.mrb[38].mxu0 }
0x1425   :  { %v3587_v63 = vadd.f32 %v18458_v40, %v3586_v16  ;;  %v13758_v11 = vpop.f32.mrb[39].mxu0  ;;  %v16898_v40 = vld [vmem:[#allocation2 + $0x40] sm:$0xff] }
0x1427   :  { %3591 = vst [vmem:[#allocation20 + $0x8] sm:$0xff] %v3587_v63 }
0x142c   :  { %v3664_v57 = vpop.f32.mrb[36].mxu1 }
0x142d   :  { %v3669_v32 = vcombine.high %v3664_v57, %v3664_v57  ;;  %v3676_v20 = vrot.slane %v3664_v57, %v16256_v38  ;;  %v13769_v18 = vpop.f32.mrb[37].mxu1 }
0x142f   :  { %v3684_v53 = vcombine.high %v3676_v20, %v3676_v20  ;;  %v3692_v51 = vrot.slane %v3676_v20, %v16256_v38  ;;  %v3683_v2 = vrot.slane %v3669_v32, %v16256_v38  ;;  %v16902_v32 = vld [vmem:[#allocation2 + $0x30] sm:$0xff] }
0x1431   :  { %v3706_v19 = vrot.slane %v3684_v53, %v16256_v38  ;;  %v3714_v14 = vcombine.high %v3692_v51, %v3692_v51  ;;  %v3721_v8 = vrot.slane %v3692_v51, %v16262_v44  ;;  %v3699_v12 = vrot.slane %v3683_v2, %v16256_v38  ;;  %v16905_v53 = vld [vmem:[#allocation2 + $0x48] sm:$0xff] }
0x1432   :  { %v3685_v13 = vcombine.high %v3683_v2, %v3683_v2 }
0x1433   :  { %v3725_v61 = vrot.slane %v3706_v19, %v16262_v44  ;;  %v3729_v5 = vrot.slane %v3714_v14, %v16262_v44  ;;  %v3758_v52 = vadd.f32 %v16877_v25, %v3721_v8  ;;  %v3716_v59 = vcombine.high %v3706_v19, %v3706_v19  ;;  %v16909_v19 = vld [vmem:[#allocation2 + $0x50] sm:$0xff] }
0x1434   :  { %v3759_v49 = vadd.f32 %v16880_v26, %v3721_v8  ;;  %v3737_v37 = vrot.slane %v3699_v12, %v16262_v44  ;;  %v3713_v29 = vrot.slane %v3685_v13, %v16256_v38  ;;  %v3715_v11 = vcombine.high %v3699_v12, %v3699_v12  ;;  %v16914_v13 = vld [vmem:[#allocation2 + $0x38] sm:$0xff] }
0x1435   :  { %v3760_v62 = vadd.f32 %v16883_v36, %v3725_v61  ;;  %v3761_v31 = vadd.f32 %v16886_v43, %v3725_v61  ;;  %v3762_v42 = vadd.f32 %v16890_v56, %v3729_v5  ;;  %15213 = vtanh.f32 %v3758_v52  ;;  %18459 = vst [vmem:[#allocation32_spill] sm:$0xff] %v16914_v13 }
0x1436   :  { %v3733_v34 = vrot.slane %v3716_v59, %v16262_v44  ;;  %15215 = vtanh.f32 %v3759_v49  ;;  %v3763_v16 = vadd.f32 %v16895_v6, %v3729_v5  ;;  %v3766_v63 = vadd.f32 %v16898_v40, %v3737_v37 }
0x1437   :  { %15217 = vtanh.f32 %v3760_v62  ;;  %v3741_v57 = vrot.slane %v3713_v29, %v16262_v44  ;;  %v3717_v18 = vcombine.high %v3713_v29, %v3713_v29  ;;  %v3767_v51 = vadd.f32 %v16905_v53, %v3737_v37 }
0x1438   :  { %15219 = vtanh.f32 %v3761_v31  ;;  %v3764_v20 = vadd.f32 %v16902_v32, %v3733_v34  ;;  %v3745_v2 = vrot.slane %v3715_v11, %v16262_v44  ;;  %v3765_v59 = vadd.f32 %v16914_v13, %v3733_v34  ;;  %v16918_v31 = vld [vmem:[#allocation2 + $0x60] sm:$0xff]  ;;  %v16925_v11 = vld [vmem:[#allocation2 + $0x58] sm:$0xff] }
0x1439   :  { %15221 = vtanh.f32 %v3762_v42  ;;  %v3768_v14 = vadd.f32 %v16909_v19, %v3741_v57  ;;  %v3749_v52 = vrot.slane %v3717_v18, %v16262_v44  ;;  %18460 = vst [vmem:[#allocation33_spill] sm:$0xff] %v16918_v31  ;;  %18461 = vst [vmem:[#allocation34_spill] sm:$0xff] %v16925_v11 }
0x143a   :  { %15223 = vtanh.f32 %v3763_v16  ;;  %v3770_v37 = vadd.f32 %v16918_v31, %v3745_v2 }
0x143b   :  { %15225 = vtanh.f32 %v3766_v63 }
0x143c   :  { %15227 = vtanh.f32 %v3764_v20  ;;  %v3769_v20 = vadd.f32 %v16925_v11, %v3741_v57  ;;  %v16935_v57 = vld [vmem:[#allocation2 + $0x68] sm:$0xff] }
0x143d   :  { %15229 = vtanh.f32 %v3767_v51  ;;  %v16928_v51 = vld [vmem:[#allocation2 + $0x70] sm:$0xff]  ;;  %18463 = vst [vmem:[#allocation36_spill] sm:$0xff] %v16935_v57 }
0x143e   :  { %15231 = vtanh.f32 %v3768_v14  ;;  %18462 = vst [vmem:[#allocation35_spill] sm:$0xff] %v16928_v51  ;;  %v3772_v14 = vadd.f32 %v16928_v51, %v3749_v52 }
0x143f   :  { %v15214_v8 = vpop.eup %15213  ;;  %15233 = vtanh.f32 %v3765_v59  ;;  %v3771_v59 = vadd.f32 %v16935_v57, %v3745_v2 }
0x1440   :  { %v15216_v61 = vpop.eup %15215  ;;  %v3790_v12 = vmul.f32 %v16683_v10, %v15214_v8  ;;  %15235 = vtanh.f32 %v3770_v37 }
0x1441   :  { %v15218_v5 = vpop.eup %15217  ;;  %v3791_v49 = vmul.f32 %v16683_v10, %v15216_v61  ;;  %15237 = vtanh.f32 %v3769_v20 }
0x1442   :  { %v15220_v62 = vpop.eup %15219  ;;  %v3806_v42 = vsel %vm200_vm1, %v3790_v12, 0.0  ;;  %v3792_v29 = vmul.f32 %v16683_v10, %v15218_v5  ;;  %15239 = vtanh.f32 %v3772_v14 }
0x1443   :  { %v15222_v16 = vpop.eup %15221  ;;  %v3809_v63 = vsel %vm200_vm1, %v3791_v49, 0.0  ;;  %3807 = vadd.xlane.f32.xlu0 %v3806_v42  ;;  %v3793_v61 = vmul.f32 %v16683_v10, %v15220_v62  ;;  %15241 = vtanh.f32 %v3771_v59 }
0x1444   :  { %3810 = vadd.xlane.f32.xlu1 %v3809_v63  ;;  %v3794_v34 = vmul.f32 %v16683_v10, %v15222_v16  ;;  %v15224_v18 = vpop.eup %15223  ;;  %v3812_v8 = vsel %vm200_vm1, %v3792_v29, 0.0 }
0x1445   :  { %v15226_v12 = vpop.eup %15225  ;;  %v3815_v16 = vsel %vm200_vm1, %v3793_v61, 0.0  ;;  %v3795_v37 = vmul.f32 %v16683_v10, %v15224_v18 }
0x1446   :  { %v3818_v5 = vsel %vm200_vm1, %v3794_v34, 0.0  ;;  %v15228_v49 = vpop.eup %15227  ;;  %v3798_v42 = vmul.f32 %v16683_v10, %v15226_v12 }
0x1447   :  { %3813 = vadd.xlane.f32.xlu0 %v3812_v8  ;;  %v15230_v29 = vpop.eup %15229  ;;  %v3796_v63 = vmul.f32 %v16683_v10, %v15228_v49  ;;  %v16942_v8 = vld [vmem:[#allocation2 + $0x78] sm:$0xff]  ;;  %v3821_v2 = vsel %vm200_vm1, %v3795_v37, 0.0 }
0x1448   :  { %3819 = vadd.xlane.f32.xlu1 %v3818_v5  ;;  %v3830_v62 = vsel %vm200_vm1, %v3798_v42, 0.0  ;;  %v15232_v34 = vpop.eup %15231  ;;  %18464 = vst [vmem:[#allocation37_spill] sm:$0xff] %v16942_v8  ;;  %v3773_v12 = vadd.f32 %v16942_v8, %v3749_v52  ;;  %v3799_v20 = vmul.f32 %v16683_v10, %v15230_v29 }
0x1449   :  { %v15234_v61 = vpop.eup %15233  ;;  %v3824_v18 = vsel %vm200_vm1, %v3796_v63, 0.0  ;;  %v3800_v14 = vmul.f32 %v16683_v10, %v15232_v34 }
0x144a   :  { %v15236_v5 = vpop.eup %15235  ;;  %15243 = vtanh.f32 %v3773_v12  ;;  %v3833_v49 = vsel %vm200_vm1, %v3799_v20, 0.0  ;;  %v3797_v42 = vmul.f32 %v16683_v10, %v15234_v61 }
0x144b   :  { %3816 = vadd.xlane.f32.xlu0 %v3815_v16  ;;  %v15238_v16 = vpop.eup %15237  ;;  %v3836_v52 = vsel %vm200_vm1, %v3800_v14, 0.0  ;;  %v3802_v59 = vmul.f32 %v16683_v10, %v15236_v5 }
0x144c   :  { %3831 = vadd.xlane.f32.xlu1 %v3830_v62  ;;  %v15240_v37 = vpop.eup %15239  ;;  %v3827_v29 = vsel %vm200_vm1, %v3797_v42, 0.0  ;;  %v3801_v62 = vmul.f32 %v16683_v10, %v15238_v16 }
0x144d   :  { %v15242_v63 = vpop.eup %15241  ;;  %v3842_v34 = vsel %vm200_vm1, %v3802_v59, 0.0  ;;  %v3804_v12 = vmul.f32 %v16683_v10, %v15240_v37 }
0x144e   :  { %v3803_v20 = vmul.f32 %v16683_v10, %v15242_v63 }
0x144f   :  { %3822 = vadd.xlane.f32.xlu0 %v3821_v2  ;;  %v3839_v2 = vsel %vm200_vm1, %v3801_v62, 0.0 }
0x1450   :  { %3825 = vadd.xlane.f32.xlu1 %v3824_v18  ;;  %v3848_v18 = vsel %vm200_vm1, %v3804_v12, 0.0  ;;  %v3845_v14 = vsel %vm200_vm1, %v3803_v20, 0.0 }
0x1453   :  { %3834 = vadd.xlane.f32.xlu0 %v3833_v49 }
0x1454   :  { %3837 = vadd.xlane.f32.xlu1 %v3836_v52  ;;  %v15244_v61 = vpop.eup %15243 }
0x1455   :  { %v3805_v5 = vmul.f32 %v16683_v10, %v15244_v61 }
0x1457   :  { %3828 = vadd.xlane.f32.xlu0 %v3827_v29  ;;  %v3851_v49 = vsel %vm200_vm1, %v3805_v5, 0.0 }
0x1458   :  { %3843 = vadd.xlane.f32.xlu1 %v3842_v34 }
0x145b   :  { %3840 = vadd.xlane.f32.xlu0 %v3839_v2 }
0x145c   :  { %3849 = vadd.xlane.f32.xlu1 %v3848_v18 }
0x145f   :  { %3846 = vadd.xlane.f32.xlu0 %v3845_v14 }
0x1463   :  { %3852 = vadd.xlane.f32.xlu0 %v3851_v49 }
0x14d0   :  { %v3808_v42 = vpop.xlane.xlu0 %3807 }
0x14d1   :  { %v3811_v16 = vpop.xlane.xlu1 %3810  ;;  %v3873_v61 = vrot.slane %v3808_v42, %v16381_v3 }
0x14d2   :  { %v3877_v10 = vrot.slane %v3811_v16, %v16384_v4 }
0x14d4   :  { %v3814_v52 = vpop.xlane.xlu0 %3813 }
0x14d5   :  { %v3820_v59 = vpop.xlane.xlu1 %3819  ;;  %v3882_v14 = vrot.slane %v3814_v52, %v16381_v3 }
0x14d6   :  { %v3891_v49 = vrot.slane %v3820_v59, %v16381_v3 }
0x14d8   :  { %v3817_v37 = vpop.xlane.xlu0 %3816 }
0x14d9   :  { %v3832_v29 = vpop.xlane.xlu1 %3831  ;;  %v3886_v18 = vrot.slane %v3817_v37, %v16384_v4 }
0x14db   :  { %v3887_v51 = vsel %vm797_vm2, %v3886_v18, %v3882_v14 }
0x14dc   :  { %v3823_v62 = vpop.xlane.xlu0 %3822 }
0x14dd   :  { %v3826_v63 = vpop.xlane.xlu1 %3825  ;;  %v3895_v20 = vrot.slane %v3823_v62, %v16384_v4  ;;  %v3878_v62 = vsel %vm797_vm2, %v3877_v10, %v3873_v61 }
0x14de   :  { %v3900_v11 = vrot.slane %v3826_v63, %v16381_v3  ;;  %v3942_v52 = vsel %vm862_vm3, %v3887_v51, %v3878_v62  ;;  %v3909_v63 = vrot.slane %v3832_v29, %v16381_v3 }
0x14df   :  { %v3896_v37 = vsel %vm797_vm2, %v3895_v20, %v3891_v49 }
0x14e0   :  { %v3835_v34 = vpop.xlane.xlu0 %3834  ;;  %v3943_v59 = vsel %vm864_vm4, %v3896_v37, %v3942_v52 }
0x14e1   :  { %v3838_v2 = vpop.xlane.xlu1 %3837 }
0x14e2   :  { %v3918_v13 = vrot.slane %v3838_v2, %v16381_v3 }
0x14e4   :  { %v3829_v12 = vpop.xlane.xlu0 %3828 }
0x14e5   :  { %v3904_v5 = vrot.slane %v3829_v12, %v16384_v4  ;;  %v3844_v8 = vpop.xlane.xlu1 %3843  ;;  %v3913_v12 = vrot.slane %v3835_v34, %v16384_v4 }
0x14e6   :  { %v3927_v10 = vrot.slane %v3844_v8, %v16381_v3 }
0x14e7   :  { %v3905_v16 = vsel %vm797_vm2, %v3904_v5, %v3900_v11  ;;  %v3914_v51 = vsel %vm797_vm2, %v3913_v12, %v3909_v63 }
0x14e8   :  { %v3841_v57 = vpop.xlane.xlu0 %3840  ;;  %v3944_v20 = vsel %vm866_vm5, %v3905_v16, %v3943_v59 }
0x14e9   :  { %v3922_v42 = vrot.slane %v3841_v57, %v16384_v4  ;;  %v3850_v11 = vpop.xlane.xlu1 %3849 }
0x14ea   :  { %v3936_v14 = vrot.slane %v3850_v11, %v16381_v3 }
0x14eb   :  { %v3923_v57 = vsel %vm797_vm2, %v3922_v42, %v3918_v13 }
0x14ec   :  { %v3847_v31 = vpop.xlane.xlu0 %3846 }
0x14ed   :  { %v3931_v18 = vrot.slane %v3847_v31, %v16384_v4  ;;  %v3945_v31 = vsel %vm868_vm6, %v3914_v51, %v3944_v20 }
0x14ee   :  { %v3946_v29 = vsel %vm870_vm7, %v3923_v57, %v3945_v31 }
0x14ef   :  { %v3932_v34 = vsel %vm797_vm2, %v3931_v18, %v3927_v10 }
0x14f0   :  { %v3853_v61 = vpop.xlane.xlu0 %3852  ;;  %v3947_v8 = vsel %vm872_vm8, %v3932_v34, %v3946_v29 }
0x14f1   :  { %v3940_v2 = vrot.slane %v3853_v61, %v16384_v4 }
0x14f3   :  { %v3941_v5 = vsel %vm797_vm2, %v3940_v2, %v3936_v14 }
0x14f4   :  { %v3948_v49 = vsel %vm874_vm9, %v3941_v5, %v3947_v8 }
0x14f5   :  { %v3950_v13 = vsel %vm16416_vm11, %v3948_v49, -1000000.0  ;;  %v3593_v49 = vld [vmem:[#allocation3 + $0x10] sm:$0xff] }
0x14f6   :  { %v3951_v37 = vsel %vm878_vm10, %v3950_v13, -inf }
0x14f7   :  { %3952 = vmax.xlane.f32.xlu1 %v3951_v37 }
0x1584   :  { %v3953_v62 = vpop.xlane.xlu1 %3952 }
0x1585   :  { %v3954_v16 = vsub.f32 %v3950_v13, %v3953_v62  ;;  %v17056_v13 = vld [vmem:[#allocation23] sm:$0xff] }
0x1587   :  { %v3955_v42 = vmul.f32 1.442695, %v3954_v16 }
0x1589   :  { %15245 = vpow2.f32 %v3955_v42 }
0x1593   :  { %v15246_v52 = vpop.eup %15245 }
0x1594   :  { %v3957_v12 = vsel %vm878_vm10, %v15246_v52, 0.0 }
0x1595   :  { %3958 = vadd.xlane.f32.xlu0 %v3957_v12 }
0x1622   :  { %v3959_v59 = vpop.xlane.xlu0 %3958 }
0x1623   :  { %15247 = vrcp.f32 %v3959_v59 }
0x162d   :  { %v15248_v18 = vpop.eup %15247 }
0x162e   :  { %v3961_v63 = vmul.f32 %v15248_v18, %v15246_v52 }
0x1630   :  { %3963 = vst.msk [vmem:[#allocation21 + $0x10] sm:$0xff] %vm878_vm10, %v3961_v63  ;;  %v3972_v20 = vrot.slane %v3961_v63, %v16256_v38  ;;  %v3965_v10 = vcombine.high %v3961_v63, %v3961_v63 }
0x1632   :  { %v3988_v11 = vrot.slane %v3972_v20, %v16256_v38  ;;  %v3980_v57 = vcombine.high %v3972_v20, %v3972_v20  ;;  %v3979_v34 = vrot.slane %v3965_v10, %v16256_v38 }
0x1634   :  { %13775 = vmatmul.mubr.msk.f32.vlgmr.msra.gmra.mrb[40].mxu0 %vm878_vm10, %v3988_v11  ;;  %v4010_v51 = vcombine.high %v3988_v11, %v3988_v11  ;;  %v4002_v61 = vrot.slane %v3980_v57, %v16256_v38  ;;  %v3995_v14 = vrot.slane %v3979_v34, %v16256_v38  ;;  %v3981_v31 = vcombine.high %v3979_v34, %v3979_v34 }
0x1635   :  { %14708 = vmatpush3.bf16.msra.mxu0 %v16441_v35  ;;  %13781 = vmatprep.mubr.msk.f32.mxu0 %vm15877_vm0, %v18453_v33 }
0x1636   :  { %13789 = vmatmul.mubr.msk.f32.vlgmr.msra.gmra.mrb[38].mxu1 %vm878_vm10, %v4010_v51  ;;  %14712 = vmatprep.subr.bf16.mxu0 %v18452_v7  ;;  %v4012_v2 = vcombine.high %v4002_v61, %v4002_v61  ;;  %v4011_v29 = vcombine.high %v3995_v14, %v3995_v14  ;;  %v4009_v5 = vrot.slane %v3981_v31, %v16256_v38 }
0x1637   :  { %14717 = vmatpush3.bf16.msra.mxu1 %v16474_v21  ;;  %13802 = vmatprep.mubr.msk.f32.mxu1 %vm15877_vm0, %v18453_v33 }
0x1638   :  { %13782 = vmatmul.mubr.msk.f32.vlgmr.msra.gmra.mrb[42].mxu0 %vm878_vm10, %v4002_v61  ;;  %14721 = vmatprep.subr.bf16.mxu1 %v18452_v7  ;;  %v4013_v8 = vcombine.high %v4009_v5, %v4009_v5 }
0x1639   :  { %14714 = vmatpush3.bf16.msra.mxu0 %v16462_v39  ;;  %13795 = vmatprep.mubr.msk.f32.mxu0 %vm15877_vm0, %v18453_v33 }
0x163a   :  { %13803 = vmatmul.mubr.msk.f32.vlgmr.msra.gmra.mrb[40].mxu1 %vm878_vm10, %v3995_v14  ;;  %14718 = vmatprep.subr.bf16.mxu0 %v18452_v7 }
0x163b   :  { %14723 = vmatpush3.bf16.msra.mxu1 %v16493_v24  ;;  %13816 = vmatprep.mubr.msk.f32.mxu1 %vm15877_vm0, %v18453_v33 }
0x163c   :  { %13796 = vmatmul.mubr.msk.f32.vlgmr.msra.gmra.mrb[44].mxu0 %vm878_vm10, %v4012_v2  ;;  %14727 = vmatprep.subr.bf16.mxu1 %v18452_v7 }
0x163d   :  { %14720 = vmatpush3.bf16.msra.mxu0 %v16483_v23  ;;  %13809 = vmatprep.mubr.msk.f32.mxu0 %vm15877_vm0, %v18453_v33 }
0x163e   :  { %13817 = vmatmul.mubr.msk.f32.vlgmr.msra.gmra.mrb[42].mxu1 %vm878_vm10, %v4011_v29  ;;  %14724 = vmatprep.subr.bf16.mxu0 %v18452_v7 }
0x163f   :  { %14729 = vmatpush3.bf16.msra.mxu1 %v16504_v28  ;;  %13834 = vmatprep.mubr.msk.f32.mxu1 %vm15877_vm0, %v18453_v33 }
0x1640   :  { %13810 = vmatmul.mubr.msk.f32.vlgmr.msra.gmra.mrb[46].mxu0 %vm878_vm10, %v4009_v5  ;;  %14730 = vmatprep.subr.bf16.mxu1 %v18452_v7 }
0x1641   :  { %14726 = vmatpush3.bf16.msra.mxu0 %v16433_v54  ;;  %13823 = vmatprep.mubr.msk.f32.mxu0 %vm15877_vm0, %v18453_v33 }
0x1642   :  { %14733 = vmatprep.subr.bf16.mxu0 %v18452_v7 }
0x1643   :  { %14732 = vmatpush3.bf16.msra.mxu1 %v16508_v60 }
0x1644   :  { %13824 = vmatmul.mubr.msk.f32.vlgmr.msra.gmra.mrb[48].mxu0 %vm878_vm10, %v4013_v8  ;;  %14739 = vmatprep.subr.bf16.mxu1 %v18452_v7 }
0x1645   :  { %14735 = vmatpush3.bf16.msra.mxu0 %v16517_v45  ;;  %13845 = vmatprep.mubr.msk.f32.mxu0 %vm15877_vm0, %v18453_v33 }
0x1646   :  { %13835 = vmatmul.mubr.msk.f32.vlgmr.msra.gmra.mrb[44].mxu1 %vm200_vm1, %v3593_v49  ;;  %14736 = vmatprep.subr.bf16.mxu0 %v18452_v7 }
0x1647   :  { %14741 = vmatpush3.bf16.msra.mxu1 %v16520_v48  ;;  %13856 = vmatprep.mubr.msk.f32.mxu1 %vm15877_vm0, %v18453_v33 }
0x1648   :  { %14742 = vmatprep.subr.bf16.mxu1 %v18452_v7 }
0x1649   :  { %14738 = vmatpush3.bf16.msra.mxu0 %v16533_v58 }
0x164a   :  { %14745 = vmatprep.subr.bf16.mxu0 %v18452_v7 }
0x164b   :  { %14744 = vmatpush3.bf16.msra.mxu1 %v16538_v30 }
0x164c   :  { %14751 = vmatprep.subr.bf16.mxu1 %v18452_v7 }
0x164e   :  { %13857 = vmatmul.mubr.msk.f32.vlgmr.msra.gmra.mrb[46].mxu1 %vm200_vm1, %v17056_v13 }
0x164f   :  { %14753 = vmatpush3.bf16.msra.mxu1 %v16570_v27  ;;  %13878 = vmatprep.mubr.msk.f32.mxu1 %vm15877_vm0, %v18453_v33 }
0x1650   :  { %14754 = vmatprep.subr.bf16.mxu1 %v18452_v7 }
0x1653   :  { %14756 = vmatpush3.bf16.msra.mxu1 %v16577_v46 }
0x1654   :  { %14763 = vmatprep.subr.bf16.mxu1 %v18452_v7 }
0x1707   :  { %v4082_v37 = vpop.f32.mrb[40].mxu0 }
0x1708   :  { %v13776_v62 = vpop.f32.mrb[41].mxu0 }
0x1709   :  { %v4226_v16 = vpop.f32.mrb[38].mxu1 }
0x170a   :  { %v13790_v42 = vpop.f32.mrb[39].mxu1  ;;  %v4674_v18 = vrot.slane %v4226_v16, 6 }
0x170b   :  { %v4154_v52 = vpop.f32.mrb[42].mxu0 }
0x170c   :  { %v4672_v12 = vrot.slane %v4154_v52, 7  ;;  %v13783_v59 = vpop.f32.mrb[43].mxu0 }
0x170d   :  { %v4370_v63 = vpop.f32.mrb[40].mxu1 }
0x170e   :  { %v4673_v20 = vsel %vm862_vm3, %v4672_v12, %v4082_v37  ;;  %v13804_v10 = vpop.f32.mrb[41].mxu1  ;;  %v4678_v61 = vrot.slane %v4370_v63, 4 }
0x170f   :  { %v4298_v11 = vpop.f32.mrb[44].mxu0  ;;  %v4675_v57 = vsel %vm864_vm4, %v4674_v18, %v4673_v20 }
0x1710   :  { %v4676_v51 = vrot.slane %v4298_v11, 5  ;;  %v13797_v34 = vpop.f32.mrb[45].mxu0 }
0x1711   :  { %v4514_v14 = vpop.f32.mrb[42].mxu1 }
0x1712   :  { %v4677_v2 = vsel %vm866_vm5, %v4676_v51, %v4675_v57  ;;  %v13818_v31 = vpop.f32.mrb[43].mxu1  ;;  %v4682_v62 = vrot.slane %v4514_v14, 2 }
0x1713   :  { %v4442_v29 = vpop.f32.mrb[46].mxu0  ;;  %v4679_v5 = vsel %vm868_vm6, %v4678_v61, %v4677_v2  ;;  %v17091_v61 = vld [vmem:[%s18404_s10] ss:$0 sm:$0xff] }
0x1714   :  { %v4680_v8 = vrot.slane %v4442_v29, 3  ;;  %v13811_v49 = vpop.f32.mrb[47].mxu0 }
0x1716   :  { %v4681_v16 = vsel %vm870_vm7, %v4680_v8, %v4679_v5 }
0x1717   :  { %v4586_v37 = vpop.f32.mrb[48].mxu0  ;;  %v4683_v42 = vsel %vm872_vm8, %v4682_v62, %v4681_v16 }
0x1718   :  { %v4684_v52 = vrot.slane %v4586_v37, 1  ;;  %v13825_v12 = vpop.f32.mrb[49].mxu0 }
0x1719   :  { %v4660_v59 = vpop.f32.mrb[44].mxu1 }
0x171a   :  { %v4685_v18 = vsel %vm874_vm9, %v4684_v52, %v4683_v42  ;;  %v13836_v63 = vpop.f32.mrb[45].mxu1 }
0x171b   :  { %13846 = vmatmul.mubr.msk.f32.vlgmr.msra.gmra.mrb[50].mxu0 %vm200_vm1, %v4685_v18 }
0x171c   :  { %14747 = vmatpush3.bf16.msra.mxu0 %v16568_v22  ;;  %13867 = vmatprep.mubr.msk.f32.mxu0 %vm15877_vm0, %v18453_v33 }
0x171d   :  { %14748 = vmatprep.subr.bf16.mxu0 %v18452_v7 }
0x1720   :  { %14750 = vmatpush3.bf16.msra.mxu0 %v16573_v47 }
0x1721   :  { %v4827_v20 = vpop.f32.mrb[46].mxu1  ;;  %14757 = vmatprep.subr.bf16.mxu0 %v18452_v7 }
0x1722   :  { %v13858_v10 = vpop.f32.mrb[47].mxu1 }
0x1723   :  { %13868 = vmatmul.mubr.msk.f32.vlgmr.msra.gmra.mrb[52].mxu0 %vm200_vm1, %v16860_v50 }
0x1724   :  { %14759 = vmatpush3.bf16.msra.mxu0 %v16610_v41  ;;  %13889 = vmatprep.mubr.msk.f32.mxu0 %vm15877_vm0, %v18453_v33 }
0x1725   :  { %14760 = vmatprep.subr.bf16.mxu0 %v18452_v7 }
0x1728   :  { %14762 = vmatpush3.bf16.msra.mxu0 %v16613_v17 }
0x1729   :  { %14769 = vmatprep.subr.bf16.mxu0 %v18452_v7 }
0x17ee   :  { %v4754_v11 = vpop.f32.mrb[50].mxu0 }
0x17ef   :  { %v4755_v57 = vadd.f32 %v4754_v11, %v4660_v59  ;;  %v13847_v51 = vpop.f32.mrb[51].mxu0 }
0x17f1   :  { %v4831_v34 = vadd.f32 %v4827_v20, %v4755_v57 }
0x17f3   :  { %v4832_v14 = vadd.f32 %v17091_v61, %v4831_v34  ;;  %v17111_v34 = vld [vmem:[%s18407_s13] ss:$0 sm:$0xff] }
0x17f5   :  { %4840 = vrot.lane.b32.xlu1 %v4832_v14, %s15881_s19  ;;  %v12879_v29 = vmul.f32 -1.442695, %v4832_v14 }
0x17f6   :  { %v4936_v2 = vpop.f32.mrb[52].mxu0 }
0x17f7   :  { %v13869_v31 = vpop.f32.mrb[53].mxu0  ;;  %15249 = vpow2.f32 %v12879_v29 }
0x1801   :  { %v15250_v5 = vpop.eup %15249 }
0x1802   :  { %v4836_v8 = vadd.f32 1.0, %v15250_v5 }
0x1804   :  { %15251 = vrcp.f32 %v4836_v8 }
0x180e   :  { %v15252_v49 = vpop.eup %15251 }
0x180f   :  { %v4850_v59 = vsub.f32 1.0, %v15252_v49 }
0x1867   :  { %v4841_v62 = vpop.permute.xlu1 %4840 }
0x1868   :  { %v4843_v16 = vmul.f32 %v15252_v49, %v4841_v62 }
0x186a   :  { %4845 = vrot.lane.b32.xlu0 %v4843_v16, %s15882_s2 }
0x18dc   :  { %v4846_v37 = vpop.permute.xlu0 %4845 }
0x18dd   :  { %v4848_v42 = vadd.f32 %v4846_v37, %v4832_v14 }
0x18df   :  { %15253 = vtanh.f32 %v4848_v42 }
0x18e9   :  { %v15254_v52 = vpop.eup %15253 }
0x18ea   :  { %4852 = vrot.lane.b32.xlu1 %v15254_v52, %s15883_s5 }
0x18ee   :  { %4856 = vrot.lane.b32.xlu1 %v17056_v13, %s15881_s19 }
0x195c   :  { %v4853_v12 = vpop.permute.xlu1 %4852 }
0x195d   :  { %v4855_v63 = vmul.f32 %v4853_v12, %v4850_v59 }
0x1960   :  { %v4857_v18 = vpop.permute.xlu1 %4856 }
0x1961   :  { %v4859_v20 = vmul.f32 %v15252_v49, %v4857_v18 }
0x1963   :  { %v4860_v10 = vadd.f32 %v4859_v20, %v4855_v63 }
0x1965   :  { %4862 = vrot.lane.b32.xlu0 %v4860_v10, %s15883_s5 }
0x19d7   :  { %v4863_v11 = vpop.permute.xlu0 %4862 }
0x19d8   :  { %4865 = vst.msk [vmem:[#allocation23] sm:$0xff] %vm200_vm1, %v4863_v11  ;;  %13879 = vmatmul.mubr.msk.f32.vlgmr.msra.gmra.mrb[48].mxu1 %vm200_vm1, %v4863_v11  ;;  %v17137_v11 = vld [vmem:[%s18409_s15] ss:$0 sm:$0xff] }
0x19d9   :  { %14765 = vmatpush3.bf16.msra.mxu1 %v16170_v9  ;;  %13900 = vmatprep.mubr.msk.f32.mxu1 %vm15877_vm0, %v18453_v33 }
0x19da   :  { %14766 = vmatprep.subr.bf16.mxu1 %v18452_v7 }
0x19dd   :  { %14768 = vmatpush3.bf16.msra.mxu1 %v16177_v15 }
0x19de   :  { %14775 = vmatprep.subr.bf16.mxu1 %v18452_v7 }
0x1aab   :  { %v5008_v13 = vpop.f32.mrb[48].mxu1 }
0x1aac   :  { %v5009_v57 = vadd.f32 %v5008_v13, %v4936_v2  ;;  %v13880_v51 = vpop.f32.mrb[49].mxu1 }
0x1aae   :  { %v5012_v14 = vadd.f32 %v17111_v34, %v5009_v57 }
0x1ab0   :  { %5020 = vrot.lane.b32.xlu1 %v5012_v14, %s15881_s19  ;;  %v12882_v31 = vmul.f32 -1.442695, %v5012_v14 }
0x1ab2   :  { %15255 = vpow2.f32 %v12882_v31 }
0x1abc   :  { %v15256_v29 = vpop.eup %15255 }
0x1abd   :  { %v5016_v5 = vadd.f32 1.0, %v15256_v29 }
0x1abf   :  { %15257 = vrcp.f32 %v5016_v5 }
0x1ac9   :  { %v15258_v8 = vpop.eup %15257 }
0x1aca   :  { %v5030_v52 = vsub.f32 1.0, %v15258_v8 }
0x1b22   :  { %v5021_v49 = vpop.permute.xlu1 %5020 }
0x1b23   :  { %v5023_v62 = vmul.f32 %v15258_v8, %v5021_v49 }
0x1b25   :  { %5025 = vrot.lane.b32.xlu0 %v5023_v62, %s15882_s2 }
0x1b29   :  { %5036 = vrot.lane.b32.xlu0 %v16860_v50, %s15881_s19 }
0x1b97   :  { %v5026_v2 = vpop.permute.xlu0 %5025 }
0x1b98   :  { %v5028_v16 = vadd.f32 %v5026_v2, %v5012_v14 }
0x1b9a   :  { %15259 = vtanh.f32 %v5028_v16 }
0x1b9b   :  { %v5037_v42 = vpop.permute.xlu0 %5036 }
0x1b9c   :  { %v5039_v59 = vmul.f32 %v15258_v8, %v5037_v42 }
0x1ba4   :  { %v15260_v37 = vpop.eup %15259 }
0x1ba5   :  { %5032 = vrot.lane.b32.xlu1 %v15260_v37, %s15883_s5 }
0x1c17   :  { %v5033_v12 = vpop.permute.xlu1 %5032 }
0x1c18   :  { %v5035_v18 = vmul.f32 %v5033_v12, %v5030_v52 }
0x1c1a   :  { %v5040_v63 = vadd.f32 %v5039_v59, %v5035_v18 }
0x1c1c   :  { %5042 = vrot.lane.b32.xlu1 %v5040_v63, %s15883_s5 }
0x1c8e   :  { %v5043_v20 = vpop.permute.xlu1 %5042 }
0x1c8f   :  { %5045 = vst.msk [vmem:[#allocation23 + $0x8] sm:$0xff] %vm200_vm1, %v5043_v20  ;;  %13890 = vmatmul.mubr.msk.f32.vlgmr.msra.gmra.mrb[54].mxu0 %vm200_vm1, %v5043_v20 }
0x1c90   :  { %14771 = vmatpush3.bf16.msra.mxu0 %v16427_v55  ;;  %13907 = vmatprep.mubr.msk.f32.mxu0 %vm15877_vm0, %v18453_v33 }
0x1c91   :  { %14772 = vmatprep.subr.bf16.mxu0 %v18452_v7 }
0x1c96   :  { %v17126_v50 = vld [vmem:[#allocation23 + $0x8] sm:$0xff] }
0x1c97   :  { %13901 = vmatmul.mubr.msk.f32.vlgmr.msra.gmra.mrb[50].mxu1 %vm200_vm1, %v17126_v50 }
0x1c98   :  { %14777 = vmatpush3.bf16.msra.mxu1 %v18457_v1  ;;  %13921 = vmatprep.mubr.msk.f32.mxu1 %vm15877_vm0, %v18453_v33 }
0x1c99   :  { %14781 = vmatprep.subr.bf16.mxu1 %v18452_v7 }
0x1d62   :  { %v5114_v10 = vpop.f32.mrb[54].mxu0 }
0x1d63   :  { %v5115_v13 = vadd.f32 %v17137_v11, %v5114_v10  ;;  %v13891_v57 = vpop.f32.mrb[55].mxu0 }
0x1d65   :  { %5119 = vst [vmem:[#allocation20 + $0x10] sm:$0xff] %v5115_v13 }
0x1d6a   :  { %v5192_v51 = vpop.f32.mrb[50].mxu1 }
0x1d6b   :  { %v5197_v14 = vcombine.high %v5192_v51, %v5192_v51  ;;  %v5204_v31 = vrot.slane %v5192_v51, %v16256_v38  ;;  %v13902_v29 = vpop.f32.mrb[51].mxu1 }
0x1d6d   :  { %v5212_v5 = vcombine.high %v5204_v31, %v5204_v31  ;;  %v5220_v8 = vrot.slane %v5204_v31, %v16256_v38  ;;  %v5211_v49 = vrot.slane %v5197_v14, %v16256_v38 }
0x1d6f   :  { %v5234_v62 = vrot.slane %v5212_v5, %v16256_v38  ;;  %v5242_v2 = vcombine.high %v5220_v8, %v5220_v8  ;;  %v5249_v16 = vrot.slane %v5220_v8, %v16262_v44  ;;  %v5227_v42 = vrot.slane %v5211_v49, %v16256_v38 }
0x1d70   :  { %v5213_v59 = vcombine.high %v5211_v49, %v5211_v49 }
0x1d71   :  { %v5253_v37 = vrot.slane %v5234_v62, %v16262_v44  ;;  %v5257_v52 = vrot.slane %v5242_v2, %v16262_v44  ;;  %v5286_v12 = vadd.f32 %v16877_v25, %v5249_v16  ;;  %v5244_v18 = vcombine.high %v5234_v62, %v5234_v62 }
0x1d72   :  { %v5287_v63 = vadd.f32 %v16880_v26, %v5249_v16  ;;  %v5265_v13 = vrot.slane %v5227_v42, %v16262_v44  ;;  %v5241_v51 = vrot.slane %v5213_v59, %v16256_v38  ;;  %v18465_v16 = vld [vmem:[#allocation32_spill] sm:$0xff] }
0x1d73   :  { %v5288_v20 = vadd.f32 %v16883_v36, %v5253_v37  ;;  %v5289_v10 = vadd.f32 %v16886_v43, %v5253_v37  ;;  %v5290_v57 = vadd.f32 %v16890_v56, %v5257_v52  ;;  %15261 = vtanh.f32 %v5286_v12 }
0x1d74   :  { %v5261_v14 = vrot.slane %v5244_v18, %v16262_v44  ;;  %15263 = vtanh.f32 %v5287_v63  ;;  %v5291_v25 = vadd.f32 %v16895_v6, %v5257_v52  ;;  %v5294_v26 = vadd.f32 %v16898_v40, %v5265_v13  ;;  %v17166_v40 = vld [vmem:[%s18400_s6] ss:$0 sm:$0xff] }
0x1d75   :  { %15265 = vtanh.f32 %v5288_v20  ;;  %v5243_v36 = vcombine.high %v5227_v42, %v5227_v42  ;;  %v5269_v43 = vrot.slane %v5241_v51, %v16262_v44  ;;  %v5245_v56 = vcombine.high %v5241_v51, %v5241_v51  ;;  %v18468_v51 = vld [vmem:[#allocation35_spill] sm:$0xff] }
0x1d76   :  { %15267 = vtanh.f32 %v5289_v10  ;;  %v5292_v31 = vadd.f32 %v16902_v32, %v5261_v14  ;;  %v5295_v29 = vadd.f32 %v16905_v53, %v5265_v13  ;;  %v5293_v53 = vadd.f32 %v18465_v16, %v5261_v14  ;;  %v18467_v10 = vld [vmem:[#allocation34_spill] sm:$0xff] }
0x1d77   :  { %15269 = vtanh.f32 %v5290_v57  ;;  %v5273_v5 = vrot.slane %v5243_v36, %v16262_v44  ;;  %v5296_v8 = vadd.f32 %v16909_v19, %v5269_v43  ;;  %v5277_v2 = vrot.slane %v5245_v56, %v16262_v44  ;;  %v18466_v19 = vld [vmem:[#allocation33_spill] sm:$0xff] }
0x1d78   :  { %15271 = vtanh.f32 %v5291_v25  ;;  %v5297_v13 = vadd.f32 %v18467_v10, %v5269_v43 }
0x1d79   :  { %15273 = vtanh.f32 %v5294_v26  ;;  %v5298_v52 = vadd.f32 %v18466_v19, %v5273_v5  ;;  %v5300_v14 = vadd.f32 %v18468_v51, %v5277_v2 }
0x1d7a   :  { %15275 = vtanh.f32 %v5292_v31 }
0x1d7b   :  { %15277 = vtanh.f32 %v5295_v29 }
0x1d7c   :  { %15279 = vtanh.f32 %v5296_v8  ;;  %v18469_v8 = vld [vmem:[#allocation36_spill] sm:$0xff] }
0x1d7d   :  { %v15262_v6 = vpop.eup %15261  ;;  %15281 = vtanh.f32 %v5293_v53 }
0x1d7e   :  { %v15264_v49 = vpop.eup %15263  ;;  %v5318_v62 = vmul.f32 %v17166_v40, %v15262_v6  ;;  %15283 = vtanh.f32 %v5298_v52  ;;  %v5299_v6 = vadd.f32 %v18469_v8, %v5273_v5 }
0x1d7f   :  { %v15266_v32 = vpop.eup %15265  ;;  %v5319_v37 = vmul.f32 %v17166_v40, %v15264_v49  ;;  %15285 = vtanh.f32 %v5297_v13 }
0x1d80   :  { %v15268_v42 = vpop.eup %15267  ;;  %v5334_v12 = vsel %vm200_vm1, %v5318_v62, 0.0  ;;  %v5320_v59 = vmul.f32 %v17166_v40, %v15266_v32  ;;  %15287 = vtanh.f32 %v5300_v14 }
0x1d81   :  { %v15270_v18 = vpop.eup %15269  ;;  %v5337_v63 = vsel %vm200_vm1, %v5319_v37, 0.0  ;;  %5335 = vadd.xlane.f32.xlu0 %v5334_v12  ;;  %v5321_v26 = vmul.f32 %v17166_v40, %v15268_v42  ;;  %v18470_v37 = vld [vmem:[#allocation37_spill] sm:$0xff]  ;;  %15289 = vtanh.f32 %v5299_v6 }
0x1d82   :  { %5338 = vadd.xlane.f32.xlu1 %v5337_v63  ;;  %v5322_v20 = vmul.f32 %v17166_v40, %v15270_v18  ;;  %v15272_v57 = vpop.eup %15271  ;;  %v5340_v25 = vsel %vm200_vm1, %v5320_v59, 0.0  ;;  %v5301_v42 = vadd.f32 %v18470_v37, %v5277_v2 }
0x1d83   :  { %v15274_v36 = vpop.eup %15273  ;;  %v5343_v43 = vsel %vm200_vm1, %v5321_v26, 0.0  ;;  %v5323_v49 = vmul.f32 %v17166_v40, %v15272_v57 }
0x1d84   :  { %v5346_v31 = vsel %vm200_vm1, %v5322_v20, 0.0  ;;  %v15276_v56 = vpop.eup %15275  ;;  %v5326_v29 = vmul.f32 %v17166_v40, %v15274_v36  ;;  %15291 = vtanh.f32 %v5301_v42 }
0x1d85   :  { %5341 = vadd.xlane.f32.xlu0 %v5340_v25  ;;  %v15278_v62 = vpop.eup %15277  ;;  %v5324_v16 = vmul.f32 %v17166_v40, %v15276_v56  ;;  %v5349_v19 = vsel %vm200_vm1, %v5323_v49, 0.0 }
0x1d86   :  { %5347 = vadd.xlane.f32.xlu1 %v5346_v31  ;;  %v5358_v32 = vsel %vm200_vm1, %v5326_v29, 0.0  ;;  %v15280_v53 = vpop.eup %15279  ;;  %v5327_v5 = vmul.f32 %v17166_v40, %v15278_v62 }
0x1d87   :  { %v15282_v52 = vpop.eup %15281  ;;  %v5352_v12 = vsel %vm200_vm1, %v5324_v16, 0.0  ;;  %v5328_v59 = vmul.f32 %v17166_v40, %v15280_v53 }
0x1d88   :  { %v15284_v18 = vpop.eup %15283  ;;  %v5361_v63 = vsel %vm200_vm1, %v5327_v5, 0.0  ;;  %v5325_v20 = vmul.f32 %v17166_v40, %v15282_v52 }
0x1d89   :  { %5344 = vadd.xlane.f32.xlu0 %v5343_v43  ;;  %v15286_v10 = vpop.eup %15285  ;;  %v5364_v2 = vsel %vm200_vm1, %v5328_v59, 0.0  ;;  %v5330_v13 = vmul.f32 %v17166_v40, %v15284_v18 }
0x1d8a   :  { %5359 = vadd.xlane.f32.xlu1 %v5358_v32  ;;  %v15288_v57 = vpop.eup %15287  ;;  %v5355_v51 = vsel %vm200_vm1, %v5325_v20, 0.0  ;;  %v5329_v14 = vmul.f32 %v17166_v40, %v15286_v10 }
0x1d8b   :  { %v15290_v25 = vpop.eup %15289  ;;  %v5370_v26 = vsel %vm200_vm1, %v5330_v13, 0.0  ;;  %v5332_v36 = vmul.f32 %v17166_v40, %v15288_v57 }
0x1d8c   :  { %v5367_v31 = vsel %vm200_vm1, %v5329_v14, 0.0  ;;  %v5331_v56 = vmul.f32 %v17166_v40, %v15290_v25 }
0x1d8d   :  { %5350 = vadd.xlane.f32.xlu0 %v5349_v19  ;;  %v5376_v8 = vsel %vm200_vm1, %v5332_v36, 0.0 }
0x1d8e   :  { %5353 = vadd.xlane.f32.xlu1 %v5352_v12  ;;  %v15292_v29 = vpop.eup %15291  ;;  %v5373_v6 = vsel %vm200_vm1, %v5331_v56, 0.0 }
0x1d8f   :  { %v5333_v43 = vmul.f32 %v17166_v40, %v15292_v29 }
0x1d91   :  { %5362 = vadd.xlane.f32.xlu0 %v5361_v63  ;;  %v5379_v49 = vsel %vm200_vm1, %v5333_v43, 0.0 }
0x1d92   :  { %5365 = vadd.xlane.f32.xlu1 %v5364_v2 }
0x1d95   :  { %5356 = vadd.xlane.f32.xlu0 %v5355_v51 }
0x1d96   :  { %5371 = vadd.xlane.f32.xlu1 %v5370_v26 }
0x1d99   :  { %5368 = vadd.xlane.f32.xlu0 %v5367_v31 }
0x1d9a   :  { %5377 = vadd.xlane.f32.xlu1 %v5376_v8 }
0x1d9d   :  { %5374 = vadd.xlane.f32.xlu0 %v5373_v6 }
0x1da1   :  { %5380 = vadd.xlane.f32.xlu0 %v5379_v49 }
0x1e0e   :  { %v5336_v62 = vpop.xlane.xlu0 %5335 }
0x1e0f   :  { %v5339_v32 = vpop.xlane.xlu1 %5338  ;;  %v5401_v10 = vrot.slane %v5336_v62, %v16381_v3 }
0x1e10   :  { %v5405_v20 = vrot.slane %v5339_v32, %v16384_v4 }
0x1e12   :  { %v5342_v16 = vpop.xlane.xlu0 %5341  ;;  %v5406_v31 = vsel %vm797_vm2, %v5405_v20, %v5401_v10 }
0x1e13   :  { %v5348_v53 = vpop.xlane.xlu1 %5347  ;;  %v5410_v2 = vrot.slane %v5342_v16, %v16381_v3 }
0x1e14   :  { %v5419_v57 = vrot.slane %v5348_v53, %v16381_v3 }
0x1e16   :  { %v5345_v37 = vpop.xlane.xlu0 %5344 }
0x1e17   :  { %v5360_v42 = vpop.xlane.xlu1 %5359  ;;  %v5414_v18 = vrot.slane %v5345_v37, %v16384_v4 }
0x1e18   :  { %v5437_v16 = vrot.slane %v5360_v42, %v16381_v3 }
0x1e19   :  { %v5415_v25 = vsel %vm797_vm2, %v5414_v18, %v5410_v2 }
0x1e1a   :  { %v5351_v19 = vpop.xlane.xlu0 %5350  ;;  %v5470_v8 = vsel %vm862_vm3, %v5415_v25, %v5406_v31 }
0x1e1b   :  { %v5354_v5 = vpop.xlane.xlu1 %5353  ;;  %v5423_v63 = vrot.slane %v5351_v19, %v16384_v4 }
0x1e1c   :  { %v5428_v26 = vrot.slane %v5354_v5, %v16381_v3 }
0x1e1d   :  { %v5424_v36 = vsel %vm797_vm2, %v5423_v63, %v5419_v57 }
0x1e1e   :  { %v5363_v52 = vpop.xlane.xlu0 %5362  ;;  %v5471_v49 = vsel %vm864_vm4, %v5424_v36, %v5470_v8 }
0x1e1f   :  { %v5366_v12 = vpop.xlane.xlu1 %5365  ;;  %v5441_v6 = vrot.slane %v5363_v52, %v16384_v4 }
0x1e20   :  { %v5446_v62 = vrot.slane %v5366_v12, %v16381_v3 }
0x1e22   :  { %v5357_v59 = vpop.xlane.xlu0 %5356 }
0x1e23   :  { %v5432_v13 = vrot.slane %v5357_v59, %v16384_v4  ;;  %v5372_v51 = vpop.xlane.xlu1 %5371  ;;  %v5442_v59 = vsel %vm797_vm2, %v5441_v6, %v5437_v16 }
0x1e24   :  { %v5455_v37 = vrot.slane %v5372_v51, %v16381_v3 }
0x1e25   :  { %v5433_v56 = vsel %vm797_vm2, %v5432_v13, %v5428_v26 }
0x1e26   :  { %v5369_v14 = vpop.xlane.xlu0 %5368  ;;  %v5472_v53 = vsel %vm866_vm5, %v5433_v56, %v5471_v49 }
0x1e27   :  { %v5450_v29 = vrot.slane %v5369_v14, %v16384_v4  ;;  %v5378_v19 = vpop.xlane.xlu1 %5377  ;;  %v5473_v20 = vsel %vm868_vm6, %v5442_v59, %v5472_v53 }
0x1e28   :  { %v5464_v63 = vrot.slane %v5378_v19, %v16381_v3 }
0x1e29   :  { %v5451_v5 = vsel %vm797_vm2, %v5450_v29, %v5446_v62 }
0x1e2a   :  { %v5375_v43 = vpop.xlane.xlu0 %5374  ;;  %v5474_v42 = vsel %vm870_vm7, %v5451_v5, %v5473_v20 }
0x1e2b   :  { %v5459_v32 = vrot.slane %v5375_v43, %v16384_v4 }
0x1e2d   :  { %v5460_v52 = vsel %vm797_vm2, %v5459_v32, %v5455_v37 }
0x1e2e   :  { %v5381_v18 = vpop.xlane.xlu0 %5380  ;;  %v5475_v2 = vsel %vm872_vm8, %v5460_v52, %v5474_v42 }
0x1e2f   :  { %v5468_v12 = vrot.slane %v5381_v18, %v16384_v4 }
0x1e31   :  { %v5469_v10 = vsel %vm797_vm2, %v5468_v12, %v5464_v63  ;;  %v5121_v63 = vld [vmem:[#allocation3 + $0x18] sm:$0xff]  ;;  %v17300_v12 = vld [vmem:[#allocation23] sm:$0xff] }
0x1e32   :  { %v5476_v13 = vsel %vm874_vm9, %v5469_v10, %v5475_v2 }
0x1e33   :  { %v5478_v57 = vsel %vm16416_vm11, %v5476_v13, -1000000.0 }
0x1e34   :  { %v5479_v51 = vsel %vm878_vm10, %v5478_v57, -inf }
0x1e35   :  { %5480 = vmax.xlane.f32.xlu1 %v5479_v51 }
0x1ec2   :  { %v5481_v14 = vpop.xlane.xlu1 %5480 }
0x1ec3   :  { %v5482_v25 = vsub.f32 %v5478_v57, %v5481_v14 }
0x1ec5   :  { %v5483_v26 = vmul.f32 1.442695, %v5482_v25 }
0x1ec7   :  { %15293 = vpow2.f32 %v5483_v26 }
0x1ed1   :  { %v15294_v36 = vpop.eup %15293 }
0x1ed2   :  { %v5485_v31 = vsel %vm878_vm10, %v15294_v36, 0.0 }
0x1ed3   :  { %5486 = vadd.xlane.f32.xlu0 %v5485_v31 }
0x1f60   :  { %v5487_v56 = vpop.xlane.xlu0 %5486 }
0x1f61   :  { %15295 = vrcp.f32 %v5487_v56 }
0x1f6b   :  { %v15296_v29 = vpop.eup %15295 }
0x1f6c   :  { %v5489_v8 = vmul.f32 %v15296_v29, %v15294_v36 }
0x1f6e   :  { %5491 = vst.msk [vmem:[#allocation21 + $0x18] sm:$0xff] %vm878_vm10, %v5489_v8  ;;  %v5500_v6 = vrot.slane %v5489_v8, %v16256_v38  ;;  %v5493_v43 = vcombine.high %v5489_v8, %v5489_v8 }
0x1f70   :  { %v5516_v49 = vrot.slane %v5500_v6, %v16256_v38  ;;  %v5508_v62 = vcombine.high %v5500_v6, %v5500_v6  ;;  %v5507_v16 = vrot.slane %v5493_v43, %v16256_v38 }
0x1f72   :  { %13908 = vmatmul.mubr.msk.f32.vlgmr.msra.gmra.mrb[56].mxu0 %vm878_vm10, %v5516_v49  ;;  %v5538_v32 = vcombine.high %v5516_v49, %v5516_v49  ;;  %v5530_v53 = vrot.slane %v5508_v62, %v16256_v38  ;;  %v5523_v37 = vrot.slane %v5507_v16, %v16256_v38  ;;  %v5509_v5 = vcombine.high %v5507_v16, %v5507_v16 }
0x1f73   :  { %14774 = vmatpush3.bf16.msra.mxu0 %v16441_v35  ;;  %13914 = vmatprep.mubr.msk.f32.mxu0 %vm15877_vm0, %v18453_v33 }
0x1f74   :  { %13922 = vmatmul.mubr.msk.f32.vlgmr.msra.gmra.mrb[52].mxu1 %vm878_vm10, %v5538_v32  ;;  %14778 = vmatprep.subr.bf16.mxu0 %v18452_v7  ;;  %v5540_v19 = vcombine.high %v5530_v53, %v5530_v53  ;;  %v5539_v59 = vcombine.high %v5523_v37, %v5523_v37  ;;  %v5537_v52 = vrot.slane %v5509_v5, %v16256_v38 }
0x1f75   :  { %14783 = vmatpush3.bf16.msra.mxu1 %v16474_v21  ;;  %13935 = vmatprep.mubr.msk.f32.mxu1 %vm15877_vm0, %v18453_v33 }
0x1f76   :  { %13915 = vmatmul.mubr.msk.f32.vlgmr.msra.gmra.mrb[58].mxu0 %vm878_vm10, %v5530_v53  ;;  %14787 = vmatprep.subr.bf16.mxu1 %v18452_v7  ;;  %v5541_v18 = vcombine.high %v5537_v52, %v5537_v52 }
0x1f77   :  { %14780 = vmatpush3.bf16.msra.mxu0 %v16462_v39  ;;  %13928 = vmatprep.mubr.msk.f32.mxu0 %vm15877_vm0, %v18453_v33 }
0x1f78   :  { %13936 = vmatmul.mubr.msk.f32.vlgmr.msra.gmra.mrb[54].mxu1 %vm878_vm10, %v5523_v37  ;;  %14784 = vmatprep.subr.bf16.mxu0 %v18452_v7 }
0x1f79   :  { %14789 = vmatpush3.bf16.msra.mxu1 %v16493_v24  ;;  %13949 = vmatprep.mubr.msk.f32.mxu1 %vm15877_vm0, %v18453_v33 }
0x1f7a   :  { %13929 = vmatmul.mubr.msk.f32.vlgmr.msra.gmra.mrb[60].mxu0 %vm878_vm10, %v5540_v19  ;;  %14793 = vmatprep.subr.bf16.mxu1 %v18452_v7 }
0x1f7b   :  { %14786 = vmatpush3.bf16.msra.mxu0 %v16483_v23  ;;  %13942 = vmatprep.mubr.msk.f32.mxu0 %vm15877_vm0, %v18453_v33 }
0x1f7c   :  { %13950 = vmatmul.mubr.msk.f32.vlgmr.msra.gmra.mrb[56].mxu1 %vm878_vm10, %v5539_v59  ;;  %14790 = vmatprep.subr.bf16.mxu0 %v18452_v7 }
0x1f7d   :  { %14795 = vmatpush3.bf16.msra.mxu1 %v16504_v28  ;;  %13967 = vmatprep.mubr.msk.f32.mxu1 %vm15877_vm0, %v18453_v33 }
0x1f7e   :  { %13943 = vmatmul.mubr.msk.f32.vlgmr.msra.gmra.mrb[62].mxu0 %vm878_vm10, %v5537_v52  ;;  %14796 = vmatprep.subr.bf16.mxu1 %v18452_v7 }
0x1f7f   :  { %14792 = vmatpush3.bf16.msra.mxu0 %v16433_v54  ;;  %13956 = vmatprep.mubr.msk.f32.mxu0 %vm15877_vm0, %v18453_v33 }
0x1f80   :  { %14799 = vmatprep.subr.bf16.mxu0 %v18452_v7 }
0x1f81   :  { %14798 = vmatpush3.bf16.msra.mxu1 %v16508_v60 }
0x1f82   :  { %13957 = vmatmul.mubr.msk.f32.vlgmr.msra.gmra.mrb[64].mxu0 %vm878_vm10, %v5541_v18  ;;  %14805 = vmatprep.subr.bf16.mxu1 %v18452_v7 }
0x1f83   :  { %14801 = vmatpush3.bf16.msra.mxu0 %v16517_v45  ;;  %13978 = vmatprep.mubr.msk.f32.mxu0 %vm15877_vm0, %v18453_v33 }
0x1f84   :  { %13968 = vmatmul.mubr.msk.f32.vlgmr.msra.gmra.mrb[58].mxu1 %vm200_vm1, %v5121_v63  ;;  %14802 = vmatprep.subr.bf16.mxu0 %v18452_v7 }
0x1f85   :  { %14807 = vmatpush3.bf16.msra.mxu1 %v16520_v48  ;;  %13989 = vmatprep.mubr.msk.f32.mxu1 %vm15877_vm0, %v18453_v33 }
0x1f86   :  { %14808 = vmatprep.subr.bf16.mxu1 %v18452_v7 }
0x1f87   :  { %14804 = vmatpush3.bf16.msra.mxu0 %v16533_v58 }
0x1f88   :  { %14811 = vmatprep.subr.bf16.mxu0 %v18452_v7 }
0x1f89   :  { %14810 = vmatpush3.bf16.msra.mxu1 %v16538_v30 }
0x1f8a   :  { %14817 = vmatprep.subr.bf16.mxu1 %v18452_v7 }
0x1f8c   :  { %13990 = vmatmul.mubr.msk.f32.vlgmr.msra.gmra.mrb[60].mxu1 %vm200_vm1, %v17300_v12 }
0x1f8d   :  { %14819 = vmatpush3.bf16.msra.mxu1 %v16570_v27  ;;  %14011 = vmatprep.mubr.msk.f32.mxu1 %vm15877_vm0, %v18453_v33 }
0x1f8e   :  { %14820 = vmatprep.subr.bf16.mxu1 %v18452_v7 }
0x1f91   :  { %14822 = vmatpush3.bf16.msra.mxu1 %v16577_v46 }
0x1f92   :  { %14829 = vmatprep.subr.bf16.mxu1 %v18452_v7 }
0x2045   :  { %v5610_v20 = vpop.f32.mrb[56].mxu0 }
0x2046   :  { %v13909_v42 = vpop.f32.mrb[57].mxu0 }
0x2047   :  { %v5754_v10 = vpop.f32.mrb[52].mxu1 }
0x2048   :  { %v13923_v2 = vpop.f32.mrb[53].mxu1  ;;  %v6202_v14 = vrot.slane %v5754_v10, 6 }
0x2049   :  { %v5682_v13 = vpop.f32.mrb[58].mxu0 }
0x204a   :  { %v6200_v57 = vrot.slane %v5682_v13, 7  ;;  %v13916_v51 = vpop.f32.mrb[59].mxu0 }
0x204b   :  { %v5898_v25 = vpop.f32.mrb[54].mxu1 }
0x204c   :  { %v6201_v26 = vsel %vm862_vm3, %v6200_v57, %v5610_v20  ;;  %v13937_v36 = vpop.f32.mrb[55].mxu1  ;;  %v6206_v6 = vrot.slane %v5898_v25, 4 }
0x204d   :  { %v5826_v31 = vpop.f32.mrb[60].mxu0  ;;  %v6203_v56 = vsel %vm864_vm4, %v6202_v14, %v6201_v26 }
0x204e   :  { %v6204_v29 = vrot.slane %v5826_v31, 5  ;;  %v13930_v8 = vpop.f32.mrb[61].mxu0 }
0x204f   :  { %v6042_v43 = vpop.f32.mrb[56].mxu1 }
0x2050   :  { %v6205_v49 = vsel %vm866_vm5, %v6204_v29, %v6203_v56  ;;  %v13951_v62 = vpop.f32.mrb[57].mxu1  ;;  %v6210_v19 = vrot.slane %v6042_v43, 2 }
0x2051   :  { %v5970_v32 = vpop.f32.mrb[62].mxu0  ;;  %v6207_v16 = vsel %vm868_vm6, %v6206_v6, %v6205_v49 }
0x2052   :  { %v6208_v53 = vrot.slane %v5970_v32, 3  ;;  %v13944_v37 = vpop.f32.mrb[63].mxu0 }
0x2054   :  { %v6209_v5 = vsel %vm870_vm7, %v6208_v53, %v6207_v16 }
0x2055   :  { %v6114_v59 = vpop.f32.mrb[64].mxu0  ;;  %v6211_v52 = vsel %vm872_vm8, %v6210_v19, %v6209_v5 }
0x2056   :  { %v6212_v18 = vrot.slane %v6114_v59, 1  ;;  %v13958_v63 = vpop.f32.mrb[65].mxu0 }
0x2057   :  { %v6188_v20 = vpop.f32.mrb[58].mxu1 }
0x2058   :  { %v6213_v42 = vsel %vm874_vm9, %v6212_v18, %v6211_v52  ;;  %v13969_v10 = vpop.f32.mrb[59].mxu1 }
0x2059   :  { %13979 = vmatmul.mubr.msk.f32.vlgmr.msra.gmra.mrb[66].mxu0 %vm200_vm1, %v6213_v42 }
0x205a   :  { %14813 = vmatpush3.bf16.msra.mxu0 %v16568_v22  ;;  %14000 = vmatprep.mubr.msk.f32.mxu0 %vm15877_vm0, %v18453_v33 }
0x205b   :  { %14814 = vmatprep.subr.bf16.mxu0 %v18452_v7 }
0x205e   :  { %14816 = vmatpush3.bf16.msra.mxu0 %v16573_v47 }
0x205f   :  { %v6355_v2 = vpop.f32.mrb[60].mxu1  ;;  %14823 = vmatprep.subr.bf16.mxu0 %v18452_v7 }
0x2060   :  { %v13991_v13 = vpop.f32.mrb[61].mxu1 }
0x2061   :  { %14001 = vmatmul.mubr.msk.f32.vlgmr.msra.gmra.mrb[68].mxu0 %vm200_vm1, %v17126_v50 }
0x2062   :  { %14825 = vmatpush3.bf16.msra.mxu0 %v16610_v41  ;;  %14022 = vmatprep.mubr.msk.f32.mxu0 %vm15877_vm0, %v18453_v33 }
0x2063   :  { %14826 = vmatprep.subr.bf16.mxu0 %v18452_v7 }
0x2066   :  { %14828 = vmatpush3.bf16.msra.mxu0 %v16613_v17 }
0x2067   :  { %14835 = vmatprep.subr.bf16.mxu0 %v18452_v7 }
0x212c   :  { %v6282_v57 = vpop.f32.mrb[66].mxu0 }
0x212d   :  { %v6283_v51 = vadd.f32 %v6282_v57, %v6188_v20  ;;  %v13980_v14 = vpop.f32.mrb[67].mxu0 }
0x212f   :  { %v6359_v25 = vadd.f32 %v6355_v2, %v6283_v51 }
0x2131   :  { %v6360_v26 = vadd.f32 %v17091_v61, %v6359_v25 }
0x2133   :  { %6368 = vrot.lane.b32.xlu1 %v6360_v26, %s15881_s19  ;;  %v12896_v56 = vmul.f32 -1.442695, %v6360_v26 }
0x2134   :  { %v6464_v36 = vpop.f32.mrb[68].mxu0 }
0x2135   :  { %v14002_v31 = vpop.f32.mrb[69].mxu0  ;;  %15297 = vpow2.f32 %v12896_v56 }
0x213f   :  { %v15298_v29 = vpop.eup %15297 }
0x2140   :  { %v6364_v8 = vadd.f32 1.0, %v15298_v29 }
0x2142   :  { %15299 = vrcp.f32 %v6364_v8 }
0x214c   :  { %v15300_v6 = vpop.eup %15299 }
0x214d   :  { %v6378_v53 = vsub.f32 1.0, %v15300_v6 }
0x21a5   :  { %v6369_v43 = vpop.permute.xlu1 %6368 }
0x21a6   :  { %v6371_v49 = vmul.f32 %v15300_v6, %v6369_v43 }
0x21a8   :  { %6373 = vrot.lane.b32.xlu0 %v6371_v49, %s15882_s2 }
0x221a   :  { %v6374_v62 = vpop.permute.xlu0 %6373 }
0x221b   :  { %v6376_v32 = vadd.f32 %v6374_v62, %v6360_v26 }
0x221d   :  { %15301 = vtanh.f32 %v6376_v32 }
0x2227   :  { %v15302_v16 = vpop.eup %15301 }
0x2228   :  { %6380 = vrot.lane.b32.xlu1 %v15302_v16, %s15883_s5 }
0x222c   :  { %6384 = vrot.lane.b32.xlu1 %v17300_v12, %s15881_s19 }
0x229a   :  { %v6381_v61 = vpop.permute.xlu1 %6380 }
0x229b   :  { %v6383_v19 = vmul.f32 %v6381_v61, %v6378_v53 }
0x229e   :  { %v6385_v37 = vpop.permute.xlu1 %6384 }
0x229f   :  { %v6387_v5 = vmul.f32 %v15300_v6, %v6385_v37 }
0x22a1   :  { %v6388_v59 = vadd.f32 %v6387_v5, %v6383_v19 }
0x22a3   :  { %6390 = vrot.lane.b32.xlu0 %v6388_v59, %s15883_s5 }
0x2315   :  { %v6391_v52 = vpop.permute.xlu0 %6390 }
0x2316   :  { %6393 = vst.msk [vmem:[#allocation23] sm:$0xff] %vm200_vm1, %v6391_v52  ;;  %14012 = vmatmul.mubr.msk.f32.vlgmr.msra.gmra.mrb[62].mxu1 %vm200_vm1, %v6391_v52 }
0x2317   :  { %14831 = vmatpush3.bf16.msra.mxu1 %v16170_v9  ;;  %14033 = vmatprep.mubr.msk.f32.mxu1 %vm15877_vm0, %v18453_v33 }
0x2318   :  { %14832 = vmatprep.subr.bf16.mxu1 %v18452_v7 }
0x231b   :  { %14834 = vmatpush3.bf16.msra.mxu1 %v16177_v15 }
0x231c   :  { %14841 = vmatprep.subr.bf16.mxu1 %v18452_v7 }
0x23e9   :  { %v6536_v12 = vpop.f32.mrb[62].mxu1 }
0x23ea   :  { %v6537_v18 = vadd.f32 %v6536_v12, %v6464_v36  ;;  %v14013_v63 = vpop.f32.mrb[63].mxu1 }
0x23ec   :  { %v6540_v20 = vadd.f32 %v17111_v34, %v6537_v18 }
0x23ee   :  { %6548 = vrot.lane.b32.xlu1 %v6540_v20, %s15881_s19  ;;  %v12899_v42 = vmul.f32 -1.442695, %v6540_v20 }
0x23f0   :  { %15303 = vpow2.f32 %v12899_v42 }
0x23fa   :  { %v15304_v10 = vpop.eup %15303 }
0x23fb   :  { %v6544_v2 = vadd.f32 1.0, %v15304_v10 }
0x23fd   :  { %15305 = vrcp.f32 %v6544_v2 }
0x2407   :  { %v15306_v13 = vpop.eup %15305 }
0x2408   :  { %v6558_v36 = vsub.f32 1.0, %v15306_v13 }
0x2460   :  { %v6549_v57 = vpop.permute.xlu1 %6548 }
0x2461   :  { %v6551_v51 = vmul.f32 %v15306_v13, %v6549_v57 }
0x2463   :  { %6553 = vrot.lane.b32.xlu0 %v6551_v51, %s15882_s2  ;;  %v17383_v51 = vld [vmem:[#allocation2 + $0x10] sm:$0xff] }
0x2467   :  { %6564 = vrot.lane.b32.xlu0 %v17126_v50, %s15881_s19 }
0x24d5   :  { %v6554_v14 = vpop.permute.xlu0 %6553 }
0x24d6   :  { %v6556_v25 = vadd.f32 %v6554_v14, %v6540_v20  ;;  %v17377_v20 = vld [vmem:[#allocation2] sm:$0xff] }
0x24d8   :  { %15307 = vtanh.f32 %v6556_v25  ;;  %v17386_v25 = vld [vmem:[#allocation2 + $0x18] sm:$0xff] }
0x24d9   :  { %v6565_v34 = vpop.permute.xlu0 %6564 }
0x24da   :  { %v6567_v56 = vmul.f32 %v15306_v13, %v6565_v34  ;;  %v17380_v13 = vld [vmem:[#allocation2 + $0x8] sm:$0xff] }
0x24e2   :  { %v15308_v26 = vpop.eup %15307 }
0x24e3   :  { %6560 = vrot.lane.b32.xlu1 %v15308_v26, %s15883_s5 }
0x2555   :  { %v6561_v31 = vpop.permute.xlu1 %6560 }
0x2556   :  { %v6563_v29 = vmul.f32 %v6561_v31, %v6558_v36  ;;  %v17390_v36 = vld [vmem:[#allocation2 + $0x20] sm:$0xff] }
0x2558   :  { %v6568_v8 = vadd.f32 %v6567_v56, %v6563_v29 }
0x255a   :  { %6570 = vrot.lane.b32.xlu1 %v6568_v8, %s15883_s5  ;;  %v17395_v8 = vld [vmem:[#allocation2 + $0x28] sm:$0xff] }
0x25cc   :  { %v6571_v6 = vpop.permute.xlu1 %6570 }
0x25cd   :  { %6573 = vst.msk [vmem:[#allocation23 + $0x8] sm:$0xff] %vm200_vm1, %v6571_v6  ;;  %14023 = vmatmul.mubr.msk.f32.vlgmr.msra.gmra.mrb[70].mxu0 %vm200_vm1, %v6571_v6 }
0x25ce   :  { %14837 = vmatpush3.bf16.msra.mxu0 %v16427_v55  ;;  %14040 = vmatprep.mubr.msk.f32.mxu0 %vm15877_vm0, %v18453_v33 }
0x25cf   :  { %14838 = vmatprep.subr.bf16.mxu0 %v18452_v7 }
0x25d4   :  { %v17360_v50 = vld [vmem:[#allocation23 + $0x8] sm:$0xff] }
0x25d5   :  { %14034 = vmatmul.mubr.msk.f32.vlgmr.msra.gmra.mrb[64].mxu1 %vm200_vm1, %v17360_v50 }
0x25d6   :  { %14843 = vmatpush3.bf16.msra.mxu1 %v18457_v1  ;;  %14054 = vmatprep.mubr.msk.f32.mxu1 %vm15877_vm0, %v18453_v33 }
0x25d7   :  { %14847 = vmatprep.subr.bf16.mxu1 %v18452_v7 }
0x26a0   :  { %v6642_v43 = vpop.f32.mrb[70].mxu0 }
0x26a1   :  { %v6643_v49 = vadd.f32 %v17137_v11, %v6642_v43  ;;  %v14024_v62 = vpop.f32.mrb[71].mxu0  ;;  %v17398_v43 = vld [vmem:[#allocation2 + $0x40] sm:$0xff] }
0x26a3   :  { %6647 = vst [vmem:[#allocation20 + $0x18] sm:$0xff] %v6643_v49 }
0x26a8   :  { %v6720_v32 = vpop.f32.mrb[64].mxu1 }
0x26a9   :  { %v6725_v16 = vcombine.high %v6720_v32, %v6720_v32  ;;  %v6732_v61 = vrot.slane %v6720_v32, %v16256_v38  ;;  %v14035_v53 = vpop.f32.mrb[65].mxu1 }
0x26ab   :  { %v6740_v37 = vcombine.high %v6732_v61, %v6732_v61  ;;  %v6748_v19 = vrot.slane %v6732_v61, %v16256_v38  ;;  %v6739_v5 = vrot.slane %v6725_v16, %v16256_v38  ;;  %v17402_v16 = vld [vmem:[#allocation2 + $0x30] sm:$0xff] }
0x26ad   :  { %v6762_v59 = vrot.slane %v6740_v37, %v16256_v38  ;;  %v6770_v52 = vcombine.high %v6748_v19, %v6748_v19  ;;  %v6777_v12 = vrot.slane %v6748_v19, %v16262_v44  ;;  %v6755_v11 = vrot.slane %v6739_v5, %v16256_v38  ;;  %v17405_v37 = vld [vmem:[#allocation2 + $0x48] sm:$0xff] }
0x26ae   :  { %v6741_v10 = vcombine.high %v6739_v5, %v6739_v5 }
0x26af   :  { %v6781_v18 = vrot.slane %v6762_v59, %v16262_v44  ;;  %v6785_v63 = vrot.slane %v6770_v52, %v16262_v44  ;;  %v6814_v42 = vadd.f32 %v17377_v20, %v6777_v12  ;;  %v6772_v2 = vcombine.high %v6762_v59, %v6762_v59  ;;  %v17409_v59 = vld [vmem:[#allocation2 + $0x50] sm:$0xff] }
0x26b0   :  { %v6815_v57 = vadd.f32 %v17380_v13, %v6777_v12  ;;  %v6793_v34 = vrot.slane %v6755_v11, %v16262_v44  ;;  %v6769_v56 = vrot.slane %v6741_v10, %v16256_v38  ;;  %v6771_v62 = vcombine.high %v6755_v11, %v6755_v11  ;;  %v17414_v10 = vld [vmem:[#allocation2 + $0x38] sm:$0xff] }
0x26b1   :  { %v6816_v14 = vadd.f32 %v17383_v51, %v6781_v18  ;;  %v6817_v26 = vadd.f32 %v17386_v25, %v6781_v18  ;;  %v6818_v31 = vadd.f32 %v17390_v36, %v6785_v63  ;;  %15309 = vtanh.f32 %v6814_v42  ;;  %18471 = vst [vmem:[#allocation32_spill] sm:$0xff] %v17414_v10 }
0x26b2   :  { %v6789_v29 = vrot.slane %v6772_v2, %v16262_v44  ;;  %15311 = vtanh.f32 %v6815_v57  ;;  %v6819_v6 = vadd.f32 %v17395_v8, %v6785_v63  ;;  %v6822_v49 = vadd.f32 %v17398_v43, %v6793_v34 }
0x26b3   :  { %15313 = vtanh.f32 %v6816_v14  ;;  %v6797_v32 = vrot.slane %v6769_v56, %v16262_v44  ;;  %v6773_v53 = vcombine.high %v6769_v56, %v6769_v56  ;;  %v6823_v19 = vadd.f32 %v17405_v37, %v6793_v34 }
0x26b4   :  { %15315 = vtanh.f32 %v6817_v26  ;;  %v6820_v61 = vadd.f32 %v17402_v16, %v6789_v29  ;;  %v6801_v5 = vrot.slane %v6771_v62, %v16262_v44  ;;  %v6821_v2 = vadd.f32 %v17414_v10, %v6789_v29  ;;  %v17418_v26 = vld [vmem:[#allocation2 + $0x60] sm:$0xff]  ;;  %v17425_v62 = vld [vmem:[#allocation2 + $0x58] sm:$0xff] }
0x26b5   :  { %15317 = vtanh.f32 %v6818_v31  ;;  %v6824_v52 = vadd.f32 %v17409_v59, %v6797_v32  ;;  %v6805_v42 = vrot.slane %v6773_v53, %v16262_v44  ;;  %18472 = vst [vmem:[#allocation33_spill] sm:$0xff] %v17418_v26  ;;  %18473 = vst [vmem:[#allocation34_spill] sm:$0xff] %v17425_v62 }
0x26b6   :  { %15319 = vtanh.f32 %v6819_v6  ;;  %v6826_v34 = vadd.f32 %v17418_v26, %v6801_v5 }
0x26b7   :  { %15321 = vtanh.f32 %v6822_v49 }
0x26b8   :  { %15323 = vtanh.f32 %v6820_v61  ;;  %v6825_v61 = vadd.f32 %v17425_v62, %v6797_v32  ;;  %v17435_v32 = vld [vmem:[#allocation2 + $0x68] sm:$0xff] }
0x26b9   :  { %15325 = vtanh.f32 %v6823_v19  ;;  %v17428_v19 = vld [vmem:[#allocation2 + $0x70] sm:$0xff]  ;;  %18475 = vst [vmem:[#allocation36_spill] sm:$0xff] %v17435_v32 }
0x26ba   :  { %15327 = vtanh.f32 %v6824_v52  ;;  %18474 = vst [vmem:[#allocation35_spill] sm:$0xff] %v17428_v19  ;;  %v6828_v52 = vadd.f32 %v17428_v19, %v6805_v42 }
0x26bb   :  { %v15310_v12 = vpop.eup %15309  ;;  %15329 = vtanh.f32 %v6821_v2  ;;  %v6827_v2 = vadd.f32 %v17435_v32, %v6801_v5 }
0x26bc   :  { %v15312_v18 = vpop.eup %15311  ;;  %v6846_v11 = vmul.f32 %v17166_v40, %v15310_v12  ;;  %15331 = vtanh.f32 %v6826_v34 }
0x26bd   :  { %v15314_v63 = vpop.eup %15313  ;;  %v6847_v57 = vmul.f32 %v17166_v40, %v15312_v18  ;;  %15333 = vtanh.f32 %v6825_v61 }
0x26be   :  { %v15316_v14 = vpop.eup %15315  ;;  %v6862_v31 = vsel %vm200_vm1, %v6846_v11, 0.0  ;;  %v6848_v56 = vmul.f32 %v17166_v40, %v15314_v63  ;;  %15335 = vtanh.f32 %v6828_v52 }
0x26bf   :  { %v15318_v6 = vpop.eup %15317  ;;  %v6865_v49 = vsel %vm200_vm1, %v6847_v57, 0.0  ;;  %6863 = vadd.xlane.f32.xlu0 %v6862_v31  ;;  %v6849_v18 = vmul.f32 %v17166_v40, %v15316_v14  ;;  %15337 = vtanh.f32 %v6827_v2 }
0x26c0   :  { %6866 = vadd.xlane.f32.xlu1 %v6865_v49  ;;  %v6850_v29 = vmul.f32 %v17166_v40, %v15318_v6  ;;  %v15320_v53 = vpop.eup %15319  ;;  %v6868_v12 = vsel %vm200_vm1, %v6848_v56, 0.0 }
0x26c1   :  { %v15322_v11 = vpop.eup %15321  ;;  %v6871_v34 = vsel %vm200_vm1, %v6849_v18, 0.0  ;;  %v6851_v56 = vmul.f32 %v17166_v40, %v15320_v53 }
0x26c2   :  { %v6874_v63 = vsel %vm200_vm1, %v6850_v29, 0.0  ;;  %v15324_v57 = vpop.eup %15323  ;;  %v6854_v31 = vmul.f32 %v17166_v40, %v15322_v11 }
0x26c3   :  { %6869 = vadd.xlane.f32.xlu0 %v6868_v12  ;;  %v15326_v6 = vpop.eup %15325  ;;  %v6852_v49 = vmul.f32 %v17166_v40, %v15324_v57  ;;  %v17442_v12 = vld [vmem:[#allocation2 + $0x78] sm:$0xff]  ;;  %v6877_v5 = vsel %vm200_vm1, %v6851_v56, 0.0 }
0x26c4   :  { %6875 = vadd.xlane.f32.xlu1 %v6874_v63  ;;  %v6886_v14 = vsel %vm200_vm1, %v6854_v31, 0.0  ;;  %v15328_v29 = vpop.eup %15327  ;;  %18476 = vst [vmem:[#allocation37_spill] sm:$0xff] %v17442_v12  ;;  %v6829_v11 = vadd.f32 %v17442_v12, %v6805_v42  ;;  %v6855_v61 = vmul.f32 %v17166_v40, %v15326_v6 }
0x26c5   :  { %v15330_v52 = vpop.eup %15329  ;;  %v6880_v53 = vsel %vm200_vm1, %v6852_v49, 0.0  ;;  %v6856_v18 = vmul.f32 %v17166_v40, %v15328_v29 }
0x26c6   :  { %v15332_v63 = vpop.eup %15331  ;;  %15339 = vtanh.f32 %v6829_v11  ;;  %v6889_v57 = vsel %vm200_vm1, %v6855_v61, 0.0  ;;  %v6853_v31 = vmul.f32 %v17166_v40, %v15330_v52 }
0x26c7   :  { %6872 = vadd.xlane.f32.xlu0 %v6871_v34  ;;  %v15334_v34 = vpop.eup %15333  ;;  %v6892_v42 = vsel %vm200_vm1, %v6856_v18, 0.0  ;;  %v6858_v2 = vmul.f32 %v17166_v40, %v15332_v63 }
0x26c8   :  { %6887 = vadd.xlane.f32.xlu1 %v6886_v14  ;;  %v15336_v56 = vpop.eup %15335  ;;  %v6883_v6 = vsel %vm200_vm1, %v6853_v31, 0.0  ;;  %v6857_v14 = vmul.f32 %v17166_v40, %v15334_v34 }
0x26c9   :  { %v15338_v49 = vpop.eup %15337  ;;  %v6898_v29 = vsel %vm200_vm1, %v6858_v2, 0.0  ;;  %v6860_v11 = vmul.f32 %v17166_v40, %v15336_v56 }
0x26ca   :  { %v6859_v61 = vmul.f32 %v17166_v40, %v15338_v49 }
0x26cb   :  { %6878 = vadd.xlane.f32.xlu0 %v6877_v5  ;;  %v6895_v5 = vsel %vm200_vm1, %v6857_v14, 0.0 }
0x26cc   :  { %6881 = vadd.xlane.f32.xlu1 %v6880_v53  ;;  %v6904_v53 = vsel %vm200_vm1, %v6860_v11, 0.0  ;;  %v6901_v18 = vsel %vm200_vm1, %v6859_v61, 0.0 }
0x26cf   :  { %6890 = vadd.xlane.f32.xlu0 %v6889_v57 }
0x26d0   :  { %6893 = vadd.xlane.f32.xlu1 %v6892_v42  ;;  %v15340_v52 = vpop.eup %15339 }
0x26d1   :  { %v6861_v63 = vmul.f32 %v17166_v40, %v15340_v52 }
0x26d3   :  { %6884 = vadd.xlane.f32.xlu0 %v6883_v6  ;;  %v6907_v57 = vsel %vm200_vm1, %v6861_v63, 0.0 }
0x26d4   :  { %6899 = vadd.xlane.f32.xlu1 %v6898_v29 }
0x26d7   :  { %6896 = vadd.xlane.f32.xlu0 %v6895_v5 }
0x26d8   :  { %6905 = vadd.xlane.f32.xlu1 %v6904_v53 }
0x26db   :  { %6902 = vadd.xlane.f32.xlu0 %v6901_v18 }
0x26df   :  { %6908 = vadd.xlane.f32.xlu0 %v6907_v57 }
0x274c   :  { %v6864_v31 = vpop.xlane.xlu0 %6863 }
0x274d   :  { %v6867_v34 = vpop.xlane.xlu1 %6866  ;;  %v6929_v52 = vrot.slane %v6864_v31, %v16381_v3 }
0x274e   :  { %v6933_v40 = vrot.slane %v6867_v34, %v16384_v4 }
0x2750   :  { %v6870_v42 = vpop.xlane.xlu0 %6869 }
0x2751   :  { %v6876_v2 = vpop.xlane.xlu1 %6875  ;;  %v6938_v18 = vrot.slane %v6870_v42, %v16381_v3 }
0x2752   :  { %v6947_v57 = vrot.slane %v6876_v2, %v16381_v3 }
0x2754   :  { %v6873_v56 = vpop.xlane.xlu0 %6872 }
0x2755   :  { %v6888_v6 = vpop.xlane.xlu1 %6887  ;;  %v6942_v53 = vrot.slane %v6873_v56, %v16384_v4 }
0x2757   :  { %v6943_v19 = vsel %vm797_vm2, %v6942_v53, %v6938_v18 }
0x2758   :  { %v6879_v14 = vpop.xlane.xlu0 %6878 }
0x2759   :  { %v6882_v49 = vpop.xlane.xlu1 %6881  ;;  %v6951_v61 = vrot.slane %v6879_v14, %v16384_v4  ;;  %v6934_v14 = vsel %vm797_vm2, %v6933_v40, %v6929_v52 }
0x275a   :  { %v6956_v62 = vrot.slane %v6882_v49, %v16381_v3  ;;  %v6998_v42 = vsel %vm862_vm3, %v6943_v19, %v6934_v14  ;;  %v6965_v49 = vrot.slane %v6888_v6, %v16381_v3 }
0x275b   :  { %v6952_v56 = vsel %vm797_vm2, %v6951_v61, %v6947_v57 }
0x275c   :  { %v6891_v29 = vpop.xlane.xlu0 %6890  ;;  %v6999_v2 = vsel %vm864_vm4, %v6952_v56, %v6998_v42 }
0x275d   :  { %v6894_v5 = vpop.xlane.xlu1 %6893 }
0x275e   :  { %v6974_v10 = vrot.slane %v6894_v5, %v16381_v3 }
0x2760   :  { %v6885_v11 = vpop.xlane.xlu0 %6884 }
0x2761   :  { %v6960_v63 = vrot.slane %v6885_v11, %v16384_v4  ;;  %v6900_v12 = vpop.xlane.xlu1 %6899  ;;  %v6969_v11 = vrot.slane %v6891_v29, %v16384_v4 }
0x2762   :  { %v6983_v40 = vrot.slane %v6900_v12, %v16381_v3 }
0x2763   :  { %v6961_v34 = vsel %vm797_vm2, %v6960_v63, %v6956_v62  ;;  %v6970_v19 = vsel %vm797_vm2, %v6969_v11, %v6965_v49 }
0x2764   :  { %v6897_v32 = vpop.xlane.xlu0 %6896  ;;  %v7000_v61 = vsel %vm866_vm5, %v6961_v34, %v6999_v2 }
0x2765   :  { %v6978_v31 = vrot.slane %v6897_v32, %v16384_v4  ;;  %v6906_v62 = vpop.xlane.xlu1 %6905 }
0x2766   :  { %v6992_v18 = vrot.slane %v6906_v62, %v16381_v3 }
0x2767   :  { %v6979_v32 = vsel %vm797_vm2, %v6978_v31, %v6974_v10 }
0x2768   :  { %v6903_v26 = vpop.xlane.xlu0 %6902 }
0x2769   :  { %v6987_v53 = vrot.slane %v6903_v26, %v16384_v4  ;;  %v7001_v26 = vsel %vm868_vm6, %v6970_v19, %v7000_v61 }
0x276a   :  { %v7002_v6 = vsel %vm870_vm7, %v6979_v32, %v7001_v26 }
0x276b   :  { %v6988_v29 = vsel %vm797_vm2, %v6987_v53, %v6983_v40 }
0x276c   :  { %v6909_v52 = vpop.xlane.xlu0 %6908  ;;  %v7003_v12 = vsel %vm872_vm8, %v6988_v29, %v7002_v6 }
0x276d   :  { %v6996_v5 = vrot.slane %v6909_v52, %v16384_v4 }
0x276f   :  { %v6997_v63 = vsel %vm797_vm2, %v6996_v5, %v6992_v18 }
0x2770   :  { %v7004_v57 = vsel %vm874_vm9, %v6997_v63, %v7003_v12 }
0x2771   :  { %v7006_v10 = vsel %vm16416_vm11, %v7004_v57, -1000000.0  ;;  %v6649_v57 = vld [vmem:[#allocation3 + $0x20] sm:$0xff] }
0x2772   :  { %v7007_v56 = vsel %vm878_vm10, %v7006_v10, -inf }
0x2773   :  { %7008 = vmax.xlane.f32.xlu1 %v7007_v56 }
0x2800   :  { %v7009_v14 = vpop.xlane.xlu1 %7008 }
0x2801   :  { %v7010_v34 = vsub.f32 %v7006_v10, %v7009_v14  ;;  %v17556_v10 = vld [vmem:[#allocation23] sm:$0xff] }
0x2803   :  { %v7011_v31 = vmul.f32 1.442695, %v7010_v34 }
0x2805   :  { %15341 = vpow2.f32 %v7011_v31 }
0x280f   :  { %v15342_v42 = vpop.eup %15341 }
0x2810   :  { %v7013_v11 = vsel %vm878_vm10, %v15342_v42, 0.0 }
0x2811   :  { %7014 = vadd.xlane.f32.xlu0 %v7013_v11 }
0x289e   :  { %v7015_v2 = vpop.xlane.xlu0 %7014 }
0x289f   :  { %15343 = vrcp.f32 %v7015_v2 }
0x28a9   :  { %v15344_v53 = vpop.eup %15343 }
0x28aa   :  { %v7017_v49 = vmul.f32 %v15344_v53, %v15342_v42 }
0x28ac   :  { %7019 = vst.msk [vmem:[#allocation21 + $0x20] sm:$0xff] %vm878_vm10, %v7017_v49  ;;  %v7028_v61 = vrot.slane %v7017_v49, %v16256_v38  ;;  %v7021_v40 = vcombine.high %v7017_v49, %v7017_v49 }
0x28ae   :  { %v7044_v62 = vrot.slane %v7028_v61, %v16256_v38  ;;  %v7036_v32 = vcombine.high %v7028_v61, %v7028_v61  ;;  %v7035_v29 = vrot.slane %v7021_v40, %v16256_v38 }
0x28b0   :  { %14041 = vmatmul.mubr.msk.f32.vlgmr.msra.gmra.mrb[72].mxu0 %vm878_vm10, %v7044_v62  ;;  %v7066_v19 = vcombine.high %v7044_v62, %v7044_v62  ;;  %v7058_v52 = vrot.slane %v7036_v32, %v16256_v38  ;;  %v7051_v18 = vrot.slane %v7035_v29, %v16256_v38  ;;  %v7037_v26 = vcombine.high %v7035_v29, %v7035_v29 }
0x28b1   :  { %14840 = vmatpush3.bf16.msra.mxu0 %v16441_v35  ;;  %14047 = vmatprep.mubr.msk.f32.mxu0 %vm15877_vm0, %v18453_v33 }
0x28b2   :  { %14055 = vmatmul.mubr.msk.f32.vlgmr.msra.gmra.mrb[66].mxu1 %vm878_vm10, %v7066_v19  ;;  %14844 = vmatprep.subr.bf16.mxu0 %v18452_v7  ;;  %v7068_v5 = vcombine.high %v7058_v52, %v7058_v52  ;;  %v7067_v6 = vcombine.high %v7051_v18, %v7051_v18  ;;  %v7065_v63 = vrot.slane %v7037_v26, %v16256_v38 }
0x28b3   :  { %14849 = vmatpush3.bf16.msra.mxu1 %v16474_v21  ;;  %14068 = vmatprep.mubr.msk.f32.mxu1 %vm15877_vm0, %v18453_v33 }
0x28b4   :  { %14048 = vmatmul.mubr.msk.f32.vlgmr.msra.gmra.mrb[74].mxu0 %vm878_vm10, %v7058_v52  ;;  %14853 = vmatprep.subr.bf16.mxu1 %v18452_v7  ;;  %v7069_v12 = vcombine.high %v7065_v63, %v7065_v63 }
0x28b5   :  { %14846 = vmatpush3.bf16.msra.mxu0 %v16462_v39  ;;  %14061 = vmatprep.mubr.msk.f32.mxu0 %vm15877_vm0, %v18453_v33 }
0x28b6   :  { %14069 = vmatmul.mubr.msk.f32.vlgmr.msra.gmra.mrb[68].mxu1 %vm878_vm10, %v7051_v18  ;;  %14850 = vmatprep.subr.bf16.mxu0 %v18452_v7 }
0x28b7   :  { %14855 = vmatpush3.bf16.msra.mxu1 %v16493_v24  ;;  %14082 = vmatprep.mubr.msk.f32.mxu1 %vm15877_vm0, %v18453_v33 }
0x28b8   :  { %14062 = vmatmul.mubr.msk.f32.vlgmr.msra.gmra.mrb[76].mxu0 %vm878_vm10, %v7068_v5  ;;  %14859 = vmatprep.subr.bf16.mxu1 %v18452_v7 }
0x28b9   :  { %14852 = vmatpush3.bf16.msra.mxu0 %v16483_v23  ;;  %14075 = vmatprep.mubr.msk.f32.mxu0 %vm15877_vm0, %v18453_v33 }
0x28ba   :  { %14083 = vmatmul.mubr.msk.f32.vlgmr.msra.gmra.mrb[70].mxu1 %vm878_vm10, %v7067_v6  ;;  %14856 = vmatprep.subr.bf16.mxu0 %v18452_v7 }
0x28bb   :  { %14861 = vmatpush3.bf16.msra.mxu1 %v16504_v28  ;;  %14100 = vmatprep.mubr.msk.f32.mxu1 %vm15877_vm0, %v18453_v33 }
0x28bc   :  { %14076 = vmatmul.mubr.msk.f32.vlgmr.msra.gmra.mrb[78].mxu0 %vm878_vm10, %v7065_v63  ;;  %14862 = vmatprep.subr.bf16.mxu1 %v18452_v7 }
0x28bd   :  { %14858 = vmatpush3.bf16.msra.mxu0 %v16433_v54  ;;  %14089 = vmatprep.mubr.msk.f32.mxu0 %vm15877_vm0, %v18453_v33 }
0x28be   :  { %14865 = vmatprep.subr.bf16.mxu0 %v18452_v7 }
0x28bf   :  { %14864 = vmatpush3.bf16.msra.mxu1 %v16508_v60 }
0x28c0   :  { %14090 = vmatmul.mubr.msk.f32.vlgmr.msra.gmra.mrb[80].mxu0 %vm878_vm10, %v7069_v12  ;;  %14871 = vmatprep.subr.bf16.mxu1 %v18452_v7 }
0x28c1   :  { %14867 = vmatpush3.bf16.msra.mxu0 %v16517_v45  ;;  %14111 = vmatprep.mubr.msk.f32.mxu0 %vm15877_vm0, %v18453_v33 }
0x28c2   :  { %14101 = vmatmul.mubr.msk.f32.vlgmr.msra.gmra.mrb[72].mxu1 %vm200_vm1, %v6649_v57  ;;  %14868 = vmatprep.subr.bf16.mxu0 %v18452_v7 }
0x28c3   :  { %14873 = vmatpush3.bf16.msra.mxu1 %v16520_v48  ;;  %14122 = vmatprep.mubr.msk.f32.mxu1 %vm15877_vm0, %v18453_v33 }
0x28c4   :  { %14874 = vmatprep.subr.bf16.mxu1 %v18452_v7 }
0x28c5   :  { %14870 = vmatpush3.bf16.msra.mxu0 %v16533_v58 }
0x28c6   :  { %14877 = vmatprep.subr.bf16.mxu0 %v18452_v7 }
0x28c7   :  { %14876 = vmatpush3.bf16.msra.mxu1 %v16538_v30 }
0x28c8   :  { %14883 = vmatprep.subr.bf16.mxu1 %v18452_v7 }
0x28ca   :  { %14123 = vmatmul.mubr.msk.f32.vlgmr.msra.gmra.mrb[74].mxu1 %vm200_vm1, %v17556_v10 }
0x28cb   :  { %14885 = vmatpush3.bf16.msra.mxu1 %v16570_v27  ;;  %14144 = vmatprep.mubr.msk.f32.mxu1 %vm15877_vm0, %v18453_v33 }
0x28cc   :  { %14886 = vmatprep.subr.bf16.mxu1 %v18452_v7 }
0x28cf   :  { %14888 = vmatpush3.bf16.msra.mxu1 %v16577_v46 }
0x28d0   :  { %14895 = vmatprep.subr.bf16.mxu1 %v18452_v7 }
0x2983   :  { %v7138_v56 = vpop.f32.mrb[72].mxu0 }
0x2984   :  { %v14042_v14 = vpop.f32.mrb[73].mxu0 }
0x2985   :  { %v7282_v34 = vpop.f32.mrb[66].mxu1 }
0x2986   :  { %v14056_v31 = vpop.f32.mrb[67].mxu1  ;;  %v7730_v53 = vrot.slane %v7282_v34, 6 }
0x2987   :  { %v7210_v42 = vpop.f32.mrb[74].mxu0 }
0x2988   :  { %v7728_v11 = vrot.slane %v7210_v42, 7  ;;  %v14049_v2 = vpop.f32.mrb[75].mxu0 }
0x2989   :  { %v7426_v49 = vpop.f32.mrb[68].mxu1 }
0x298a   :  { %v7729_v61 = vsel %vm862_vm3, %v7728_v11, %v7138_v56  ;;  %v14070_v40 = vpop.f32.mrb[69].mxu1  ;;  %v7734_v52 = vrot.slane %v7426_v49, 4 }
0x298b   :  { %v7354_v62 = vpop.f32.mrb[76].mxu0  ;;  %v7731_v32 = vsel %vm864_vm4, %v7730_v53, %v7729_v61 }
0x298c   :  { %v7732_v19 = vrot.slane %v7354_v62, 5  ;;  %v14063_v29 = vpop.f32.mrb[77].mxu0 }
0x298d   :  { %v7570_v18 = vpop.f32.mrb[70].mxu1 }
0x298e   :  { %v7733_v5 = vsel %vm866_vm5, %v7732_v19, %v7731_v32  ;;  %v14084_v26 = vpop.f32.mrb[71].mxu1  ;;  %v7738_v14 = vrot.slane %v7570_v18, 2 }
0x298f   :  { %v7498_v6 = vpop.f32.mrb[78].mxu0  ;;  %v7735_v63 = vsel %vm868_vm6, %v7734_v52, %v7733_v5  ;;  %v17591_v52 = vld [vmem:[%s18404_s10] ss:$0 sm:$0xff] }
0x2990   :  { %v7736_v12 = vrot.slane %v7498_v6, 3  ;;  %v14077_v57 = vpop.f32.mrb[79].mxu0 }
0x2992   :  { %v7737_v34 = vsel %vm870_vm7, %v7736_v12, %v7735_v63 }
0x2993   :  { %v7642_v56 = vpop.f32.mrb[80].mxu0  ;;  %v7739_v31 = vsel %vm872_vm8, %v7738_v14, %v7737_v34 }
0x2994   :  { %v7740_v42 = vrot.slane %v7642_v56, 1  ;;  %v14091_v11 = vpop.f32.mrb[81].mxu0 }
0x2995   :  { %v7716_v2 = vpop.f32.mrb[72].mxu1 }
0x2996   :  { %v7741_v53 = vsel %vm874_vm9, %v7740_v42, %v7739_v31  ;;  %v14102_v49 = vpop.f32.mrb[73].mxu1 }
0x2997   :  { %14112 = vmatmul.mubr.msk.f32.vlgmr.msra.gmra.mrb[82].mxu0 %vm200_vm1, %v7741_v53 }
0x2998   :  { %14879 = vmatpush3.bf16.msra.mxu0 %v16568_v22  ;;  %14133 = vmatprep.mubr.msk.f32.mxu0 %vm15877_vm0, %v18453_v33 }
0x2999   :  { %14880 = vmatprep.subr.bf16.mxu0 %v18452_v7 }
0x299c   :  { %14882 = vmatpush3.bf16.msra.mxu0 %v16573_v47 }
0x299d   :  { %v7883_v61 = vpop.f32.mrb[74].mxu1  ;;  %14889 = vmatprep.subr.bf16.mxu0 %v18452_v7 }
0x299e   :  { %v14124_v40 = vpop.f32.mrb[75].mxu1 }
0x299f   :  { %14134 = vmatmul.mubr.msk.f32.vlgmr.msra.gmra.mrb[84].mxu0 %vm200_vm1, %v17360_v50 }
0x29a0   :  { %14891 = vmatpush3.bf16.msra.mxu0 %v16610_v41  ;;  %14155 = vmatprep.mubr.msk.f32.mxu0 %vm15877_vm0, %v18453_v33 }
0x29a1   :  { %14892 = vmatprep.subr.bf16.mxu0 %v18452_v7 }
0x29a4   :  { %14894 = vmatpush3.bf16.msra.mxu0 %v16613_v17 }
0x29a5   :  { %14901 = vmatprep.subr.bf16.mxu0 %v18452_v7 }
0x2a6a   :  { %v7810_v62 = vpop.f32.mrb[82].mxu0 }
0x2a6b   :  { %v7811_v32 = vadd.f32 %v7810_v62, %v7716_v2  ;;  %v14113_v19 = vpop.f32.mrb[83].mxu0 }
0x2a6d   :  { %v7887_v29 = vadd.f32 %v7883_v61, %v7811_v32 }
0x2a6f   :  { %v7888_v18 = vadd.f32 %v17591_v52, %v7887_v29  ;;  %v17611_v29 = vld [vmem:[%s18407_s13] ss:$0 sm:$0xff] }
0x2a71   :  { %7896 = vrot.lane.b32.xlu1 %v7888_v18, %s15881_s19  ;;  %v12913_v6 = vmul.f32 -1.442695, %v7888_v18 }
0x2a72   :  { %v7992_v5 = vpop.f32.mrb[84].mxu0 }
0x2a73   :  { %v14135_v26 = vpop.f32.mrb[85].mxu0  ;;  %15345 = vpow2.f32 %v12913_v6 }
0x2a7d   :  { %v15346_v63 = vpop.eup %15345 }
0x2a7e   :  { %v7892_v12 = vadd.f32 1.0, %v15346_v63 }
0x2a80   :  { %15347 = vrcp.f32 %v7892_v12 }
0x2a8a   :  { %v15348_v57 = vpop.eup %15347 }
0x2a8b   :  { %v7906_v2 = vsub.f32 1.0, %v15348_v57 }
0x2ae3   :  { %v7897_v14 = vpop.permute.xlu1 %7896 }
0x2ae4   :  { %v7899_v34 = vmul.f32 %v15348_v57, %v7897_v14 }
0x2ae6   :  { %7901 = vrot.lane.b32.xlu0 %v7899_v34, %s15882_s2 }
0x2b58   :  { %v7902_v56 = vpop.permute.xlu0 %7901 }
0x2b59   :  { %v7904_v31 = vadd.f32 %v7902_v56, %v7888_v18 }
0x2b5b   :  { %15349 = vtanh.f32 %v7904_v31 }
0x2b65   :  { %v15350_v42 = vpop.eup %15349 }
0x2b66   :  { %7908 = vrot.lane.b32.xlu1 %v15350_v42, %s15883_s5 }
0x2b6a   :  { %7912 = vrot.lane.b32.xlu1 %v17556_v10, %s15881_s19 }
0x2bd8   :  { %v7909_v11 = vpop.permute.xlu1 %7908 }
0x2bd9   :  { %v7911_v49 = vmul.f32 %v7909_v11, %v7906_v2 }
0x2bdc   :  { %v7913_v53 = vpop.permute.xlu1 %7912 }
0x2bdd   :  { %v7915_v61 = vmul.f32 %v15348_v57, %v7913_v53 }
0x2bdf   :  { %v7916_v40 = vadd.f32 %v7915_v61, %v7911_v49 }
0x2be1   :  { %7918 = vrot.lane.b32.xlu0 %v7916_v40, %s15883_s5 }
0x2c53   :  { %v7919_v62 = vpop.permute.xlu0 %7918 }
0x2c54   :  { %7921 = vst.msk [vmem:[#allocation23] sm:$0xff] %vm200_vm1, %v7919_v62  ;;  %14145 = vmatmul.mubr.msk.f32.vlgmr.msra.gmra.mrb[76].mxu1 %vm200_vm1, %v7919_v62  ;;  %v17637_v62 = vld [vmem:[%s18409_s15] ss:$0 sm:$0xff] }
0x2c55   :  { %14897 = vmatpush3.bf16.msra.mxu1 %v16170_v9  ;;  %14166 = vmatprep.mubr.msk.f32.mxu1 %vm15877_vm0, %v18453_v33 }
0x2c56   :  { %14898 = vmatprep.subr.bf16.mxu1 %v18452_v7 }
0x2c59   :  { %14900 = vmatpush3.bf16.msra.mxu1 %v16177_v15 }
0x2c5a   :  { %14907 = vmatprep.subr.bf16.mxu1 %v18452_v7 }
0x2d27   :  { %v8064_v10 = vpop.f32.mrb[76].mxu1 }
0x2d28   :  { %v8065_v32 = vadd.f32 %v8064_v10, %v7992_v5  ;;  %v14146_v19 = vpop.f32.mrb[77].mxu1 }
0x2d2a   :  { %v8068_v18 = vadd.f32 %v17611_v29, %v8065_v32 }
0x2d2c   :  { %8076 = vrot.lane.b32.xlu1 %v8068_v18, %s15881_s19  ;;  %v12916_v26 = vmul.f32 -1.442695, %v8068_v18 }
0x2d2e   :  { %15351 = vpow2.f32 %v12916_v26 }
0x2d38   :  { %v15352_v6 = vpop.eup %15351 }
0x2d39   :  { %v8072_v63 = vadd.f32 1.0, %v15352_v6 }
0x2d3b   :  { %15353 = vrcp.f32 %v8072_v63 }
0x2d45   :  { %v15354_v12 = vpop.eup %15353 }
0x2d46   :  { %v8086_v42 = vsub.f32 1.0, %v15354_v12 }
0x2d9e   :  { %v8077_v57 = vpop.permute.xlu1 %8076 }
0x2d9f   :  { %v8079_v14 = vmul.f32 %v15354_v12, %v8077_v57 }
0x2da1   :  { %8081 = vrot.lane.b32.xlu0 %v8079_v14, %s15882_s2 }
0x2da5   :  { %8092 = vrot.lane.b32.xlu0 %v17360_v50, %s15881_s19 }
0x2e13   :  { %v8082_v5 = vpop.permute.xlu0 %8081 }
0x2e14   :  { %v8084_v34 = vadd.f32 %v8082_v5, %v8068_v18 }
0x2e16   :  { %15355 = vtanh.f32 %v8084_v34 }
0x2e17   :  { %v8093_v31 = vpop.permute.xlu0 %8092 }
0x2e18   :  { %v8095_v2 = vmul.f32 %v15354_v12, %v8093_v31 }
0x2e20   :  { %v15356_v56 = vpop.eup %15355 }
0x2e21   :  { %8088 = vrot.lane.b32.xlu1 %v15356_v56, %s15883_s5 }
0x2e93   :  { %v8089_v11 = vpop.permute.xlu1 %8088 }
0x2e94   :  { %v8091_v53 = vmul.f32 %v8089_v11, %v8086_v42 }
0x2e96   :  { %v8096_v49 = vadd.f32 %v8095_v2, %v8091_v53 }
0x2e98   :  { %8098 = vrot.lane.b32.xlu1 %v8096_v49, %s15883_s5 }
0x2f0a   :  { %v8099_v61 = vpop.permute.xlu1 %8098 }
0x2f0b   :  { %8101 = vst.msk [vmem:[#allocation23 + $0x8] sm:$0xff] %vm200_vm1, %v8099_v61  ;;  %14156 = vmatmul.mubr.msk.f32.vlgmr.msra.gmra.mrb[86].mxu0 %vm200_vm1, %v8099_v61 }
0x2f0c   :  { %14903 = vmatpush3.bf16.msra.mxu0 %v16427_v55  ;;  %14173 = vmatprep.mubr.msk.f32.mxu0 %vm15877_vm0, %v18453_v33 }
0x2f0d   :  { %14904 = vmatprep.subr.bf16.mxu0 %v18452_v7 }
0x2f12   :  { %v17626_v50 = vld [vmem:[#allocation23 + $0x8] sm:$0xff] }
0x2f13   :  { %14167 = vmatmul.mubr.msk.f32.vlgmr.msra.gmra.mrb[78].mxu1 %vm200_vm1, %v17626_v50 }
0x2f14   :  { %14909 = vmatpush3.bf16.msra.mxu1 %v18457_v1  ;;  %14187 = vmatprep.mubr.msk.f32.mxu1 %vm15877_vm0, %v18453_v33 }
0x2f15   :  { %14913 = vmatprep.subr.bf16.mxu1 %v18452_v7 }
0x2fde   :  { %v8170_v40 = vpop.f32.mrb[86].mxu0 }
0x2fdf   :  { %v8171_v10 = vadd.f32 %v17637_v62, %v8170_v40  ;;  %v14157_v32 = vpop.f32.mrb[87].mxu0 }
0x2fe1   :  { %8175 = vst [vmem:[#allocation20 + $0x20] sm:$0xff] %v8171_v10 }
0x2fe6   :  { %v8248_v19 = vpop.f32.mrb[78].mxu1 }
0x2fe7   :  { %v8253_v18 = vcombine.high %v8248_v19, %v8248_v19  ;;  %v8260_v26 = vrot.slane %v8248_v19, %v16256_v38  ;;  %v14168_v6 = vpop.f32.mrb[79].mxu1 }
0x2fe9   :  { %v8268_v63 = vcombine.high %v8260_v26, %v8260_v26  ;;  %v8276_v12 = vrot.slane %v8260_v26, %v16256_v38  ;;  %v8267_v57 = vrot.slane %v8253_v18, %v16256_v38 }
0x2feb   :  { %v8290_v14 = vrot.slane %v8268_v63, %v16256_v38  ;;  %v8298_v5 = vcombine.high %v8276_v12, %v8276_v12  ;;  %v8305_v34 = vrot.slane %v8276_v12, %v16262_v44  ;;  %v8283_v31 = vrot.slane %v8267_v57, %v16256_v38 }
0x2fec   :  { %v8269_v2 = vcombine.high %v8267_v57, %v8267_v57 }
0x2fed   :  { %v8309_v56 = vrot.slane %v8290_v14, %v16262_v44  ;;  %v8313_v42 = vrot.slane %v8298_v5, %v16262_v44  ;;  %v8342_v11 = vadd.f32 %v17377_v20, %v8305_v34  ;;  %v8300_v53 = vcombine.high %v8290_v14, %v8290_v14 }
0x2fee   :  { %v8343_v49 = vadd.f32 %v17380_v13, %v8305_v34  ;;  %v8321_v10 = vrot.slane %v8283_v31, %v16262_v44  ;;  %v8297_v19 = vrot.slane %v8269_v2, %v16256_v38  ;;  %v18477_v34 = vld [vmem:[#allocation32_spill] sm:$0xff] }
0x2fef   :  { %v8344_v61 = vadd.f32 %v17383_v51, %v8309_v56  ;;  %v8345_v40 = vadd.f32 %v17386_v25, %v8309_v56  ;;  %v8346_v32 = vadd.f32 %v17390_v36, %v8313_v42  ;;  %15357 = vtanh.f32 %v8342_v11 }
0x2ff0   :  { %v8317_v18 = vrot.slane %v8300_v53, %v16262_v44  ;;  %15359 = vtanh.f32 %v8343_v49  ;;  %v8347_v20 = vadd.f32 %v17395_v8, %v8313_v42  ;;  %v8350_v13 = vadd.f32 %v17398_v43, %v8321_v10  ;;  %v17666_v43 = vld [vmem:[%s18400_s6] ss:$0 sm:$0xff] }
0x2ff1   :  { %15361 = vtanh.f32 %v8344_v61  ;;  %v8299_v51 = vcombine.high %v8283_v31, %v8283_v31  ;;  %v8325_v25 = vrot.slane %v8297_v19, %v16262_v44  ;;  %v8301_v36 = vcombine.high %v8297_v19, %v8297_v19  ;;  %v18480_v19 = vld [vmem:[#allocation35_spill] sm:$0xff] }
0x2ff2   :  { %15363 = vtanh.f32 %v8345_v40  ;;  %v8348_v26 = vadd.f32 %v17402_v16, %v8317_v18  ;;  %v8351_v6 = vadd.f32 %v17405_v37, %v8321_v10  ;;  %v8349_v37 = vadd.f32 %v18477_v34, %v8317_v18  ;;  %v18479_v40 = vld [vmem:[#allocation34_spill] sm:$0xff] }
0x2ff3   :  { %15365 = vtanh.f32 %v8346_v32  ;;  %v8329_v63 = vrot.slane %v8299_v51, %v16262_v44  ;;  %v8352_v12 = vadd.f32 %v17409_v59, %v8325_v25  ;;  %v8333_v5 = vrot.slane %v8301_v36, %v16262_v44  ;;  %v18478_v59 = vld [vmem:[#allocation33_spill] sm:$0xff] }
0x2ff4   :  { %15367 = vtanh.f32 %v8347_v20  ;;  %v8353_v10 = vadd.f32 %v18479_v40, %v8325_v25 }
0x2ff5   :  { %15369 = vtanh.f32 %v8350_v13  ;;  %v8354_v42 = vadd.f32 %v18478_v59, %v8329_v63  ;;  %v8356_v18 = vadd.f32 %v18480_v19, %v8333_v5 }
0x2ff6   :  { %15371 = vtanh.f32 %v8348_v26 }
0x2ff7   :  { %15373 = vtanh.f32 %v8351_v6 }
0x2ff8   :  { %15375 = vtanh.f32 %v8352_v12  ;;  %v18481_v12 = vld [vmem:[#allocation36_spill] sm:$0xff] }
0x2ff9   :  { %v15358_v8 = vpop.eup %15357  ;;  %15377 = vtanh.f32 %v8349_v37 }
0x2ffa   :  { %v15360_v57 = vpop.eup %15359  ;;  %v8374_v14 = vmul.f32 %v17666_v43, %v15358_v8  ;;  %15379 = vtanh.f32 %v8354_v42  ;;  %v8355_v8 = vadd.f32 %v18481_v12, %v8329_v63 }
0x2ffb   :  { %v15362_v16 = vpop.eup %15361  ;;  %v8375_v56 = vmul.f32 %v17666_v43, %v15360_v57  ;;  %15381 = vtanh.f32 %v8353_v10 }
0x2ffc   :  { %v15364_v31 = vpop.eup %15363  ;;  %v8390_v11 = vsel %vm200_vm1, %v8374_v14, 0.0  ;;  %v8376_v2 = vmul.f32 %v17666_v43, %v15362_v16  ;;  %15383 = vtanh.f32 %v8356_v18 }
0x2ffd   :  { %v15366_v53 = vpop.eup %15365  ;;  %v8393_v49 = vsel %vm200_vm1, %v8375_v56, 0.0  ;;  %8391 = vadd.xlane.f32.xlu0 %v8390_v11  ;;  %v8377_v13 = vmul.f32 %v17666_v43, %v15364_v31  ;;  %v18482_v56 = vld [vmem:[#allocation37_spill] sm:$0xff]  ;;  %15385 = vtanh.f32 %v8355_v8 }
0x2ffe   :  { %8394 = vadd.xlane.f32.xlu1 %v8393_v49  ;;  %v8378_v61 = vmul.f32 %v17666_v43, %v15366_v53  ;;  %v15368_v32 = vpop.eup %15367  ;;  %v8396_v20 = vsel %vm200_vm1, %v8376_v2, 0.0  ;;  %v8357_v31 = vadd.f32 %v18482_v56, %v8333_v5 }
0x2fff   :  { %v15370_v51 = vpop.eup %15369  ;;  %v8399_v25 = vsel %vm200_vm1, %v8377_v13, 0.0  ;;  %v8379_v57 = vmul.f32 %v17666_v43, %v15368_v32 }
0x3000   :  { %v8402_v26 = vsel %vm200_vm1, %v8378_v61, 0.0  ;;  %v15372_v36 = vpop.eup %15371  ;;  %v8382_v6 = vmul.f32 %v17666_v43, %v15370_v51  ;;  %15387 = vtanh.f32 %v8357_v31 }
0x3001   :  { %8397 = vadd.xlane.f32.xlu0 %v8396_v20  ;;  %v15374_v14 = vpop.eup %15373  ;;  %v8380_v34 = vmul.f32 %v17666_v43, %v15372_v36  ;;  %v8405_v59 = vsel %vm200_vm1, %v8379_v57, 0.0 }
0x3002   :  { %8403 = vadd.xlane.f32.xlu1 %v8402_v26  ;;  %v8414_v16 = vsel %vm200_vm1, %v8382_v6, 0.0  ;;  %v15376_v37 = vpop.eup %15375  ;;  %v8383_v63 = vmul.f32 %v17666_v43, %v15374_v14 }
0x3003   :  { %v15378_v42 = vpop.eup %15377  ;;  %v8408_v11 = vsel %vm200_vm1, %v8380_v34, 0.0  ;;  %v8384_v2 = vmul.f32 %v17666_v43, %v15376_v37 }
0x3004   :  { %v15380_v53 = vpop.eup %15379  ;;  %v8417_v49 = vsel %vm200_vm1, %v8383_v63, 0.0  ;;  %v8381_v61 = vmul.f32 %v17666_v43, %v15378_v42 }
0x3005   :  { %8400 = vadd.xlane.f32.xlu0 %v8399_v25  ;;  %v15382_v40 = vpop.eup %15381  ;;  %v8420_v5 = vsel %vm200_vm1, %v8384_v2, 0.0  ;;  %v8386_v10 = vmul.f32 %v17666_v43, %v15380_v53 }
0x3006   :  { %8415 = vadd.xlane.f32.xlu1 %v8414_v16  ;;  %v15384_v32 = vpop.eup %15383  ;;  %v8411_v19 = vsel %vm200_vm1, %v8381_v61, 0.0  ;;  %v8385_v18 = vmul.f32 %v17666_v43, %v15382_v40 }
0x3007   :  { %v15386_v20 = vpop.eup %15385  ;;  %v8426_v13 = vsel %vm200_vm1, %v8386_v10, 0.0  ;;  %v8388_v51 = vmul.f32 %v17666_v43, %v15384_v32 }
0x3008   :  { %v8423_v26 = vsel %vm200_vm1, %v8385_v18, 0.0  ;;  %v8387_v36 = vmul.f32 %v17666_v43, %v15386_v20 }
0x3009   :  { %8406 = vadd.xlane.f32.xlu0 %v8405_v59  ;;  %v8432_v12 = vsel %vm200_vm1, %v8388_v51, 0.0 }
0x300a   :  { %8409 = vadd.xlane.f32.xlu1 %v8408_v11  ;;  %v15388_v6 = vpop.eup %15387  ;;  %v8429_v8 = vsel %vm200_vm1, %v8387_v36, 0.0 }
0x300b   :  { %v8389_v25 = vmul.f32 %v17666_v43, %v15388_v6 }
0x300d   :  { %8418 = vadd.xlane.f32.xlu0 %v8417_v49  ;;  %v8435_v57 = vsel %vm200_vm1, %v8389_v25, 0.0 }
0x300e   :  { %8421 = vadd.xlane.f32.xlu1 %v8420_v5 }
0x3011   :  { %8412 = vadd.xlane.f32.xlu0 %v8411_v19 }
0x3012   :  { %8427 = vadd.xlane.f32.xlu1 %v8426_v13 }
0x3015   :  { %8424 = vadd.xlane.f32.xlu0 %v8423_v26 }
0x3016   :  { %8433 = vadd.xlane.f32.xlu1 %v8432_v12 }
0x3019   :  { %8430 = vadd.xlane.f32.xlu0 %v8429_v8 }
0x301d   :  { %8436 = vadd.xlane.f32.xlu0 %v8435_v57 }
0x308a   :  { %v8392_v14 = vpop.xlane.xlu0 %8391 }
0x308b   :  { %v8395_v16 = vpop.xlane.xlu1 %8394  ;;  %v8457_v40 = vrot.slane %v8392_v14, %v16381_v3 }
0x308c   :  { %v8461_v61 = vrot.slane %v8395_v16, %v16384_v4 }
0x308e   :  { %v8398_v34 = vpop.xlane.xlu0 %8397  ;;  %v8462_v26 = vsel %vm797_vm2, %v8461_v61, %v8457_v40 }
0x308f   :  { %v8404_v37 = vpop.xlane.xlu1 %8403  ;;  %v8466_v5 = vrot.slane %v8398_v34, %v16381_v3 }
0x3090   :  { %v8475_v32 = vrot.slane %v8404_v37, %v16381_v3 }
0x3092   :  { %v8401_v56 = vpop.xlane.xlu0 %8400 }
0x3093   :  { %v8416_v31 = vpop.xlane.xlu1 %8415  ;;  %v8470_v53 = vrot.slane %v8401_v56, %v16384_v4 }
0x3094   :  { %v8493_v34 = vrot.slane %v8416_v31, %v16381_v3 }
0x3095   :  { %v8471_v20 = vsel %vm797_vm2, %v8470_v53, %v8466_v5 }
0x3096   :  { %v8407_v59 = vpop.xlane.xlu0 %8406  ;;  %v8526_v12 = vsel %vm862_vm3, %v8471_v20, %v8462_v26 }
0x3097   :  { %v8410_v63 = vpop.xlane.xlu1 %8409  ;;  %v8479_v49 = vrot.slane %v8407_v59, %v16384_v4 }
0x3098   :  { %v8484_v13 = vrot.slane %v8410_v63, %v16381_v3 }
0x3099   :  { %v8480_v51 = vsel %vm797_vm2, %v8479_v49, %v8475_v32 }
0x309a   :  { %v8419_v42 = vpop.xlane.xlu0 %8418  ;;  %v8527_v57 = vsel %vm864_vm4, %v8480_v51, %v8526_v12 }
0x309b   :  { %v8422_v11 = vpop.xlane.xlu1 %8421  ;;  %v8497_v8 = vrot.slane %v8419_v42, %v16384_v4 }
0x309c   :  { %v8502_v14 = vrot.slane %v8422_v11, %v16381_v3 }
0x309e   :  { %v8413_v2 = vpop.xlane.xlu0 %8412 }
0x309f   :  { %v8488_v10 = vrot.slane %v8413_v2, %v16384_v4  ;;  %v8428_v19 = vpop.xlane.xlu1 %8427  ;;  %v8498_v2 = vsel %vm797_vm2, %v8497_v8, %v8493_v34 }
0x30a0   :  { %v8511_v56 = vrot.slane %v8428_v19, %v16381_v3 }
0x30a1   :  { %v8489_v36 = vsel %vm797_vm2, %v8488_v10, %v8484_v13 }
0x30a2   :  { %v8425_v18 = vpop.xlane.xlu0 %8424  ;;  %v8528_v37 = vsel %vm866_vm5, %v8489_v36, %v8527_v57 }
0x30a3   :  { %v8506_v6 = vrot.slane %v8425_v18, %v16384_v4  ;;  %v8434_v59 = vpop.xlane.xlu1 %8433  ;;  %v8529_v49 = vsel %vm868_vm6, %v8498_v2, %v8528_v37 }
0x30a4   :  { %v8520_v11 = vrot.slane %v8434_v59, %v16381_v3 }
0x30a5   :  { %v8507_v63 = vsel %vm797_vm2, %v8506_v6, %v8502_v14 }
0x30a6   :  { %v8431_v25 = vpop.xlane.xlu0 %8430  ;;  %v8530_v31 = vsel %vm870_vm7, %v8507_v63, %v8529_v49  ;;  %v8177_v49 = vld [vmem:[#allocation3 + $0x28] sm:$0xff] }
0x30a7   :  { %v8515_v16 = vrot.slane %v8431_v25, %v16384_v4 }
0x30a9   :  { %v8516_v42 = vsel %vm797_vm2, %v8515_v16, %v8511_v56 }
0x30aa   :  { %v8437_v53 = vpop.xlane.xlu0 %8436  ;;  %v8531_v5 = vsel %vm872_vm8, %v8516_v42, %v8530_v31 }
0x30ab   :  { %v8524_v61 = vrot.slane %v8437_v53, %v16384_v4 }
0x30ad   :  { %v8525_v40 = vsel %vm797_vm2, %v8524_v61, %v8520_v11  ;;  %v17800_v11 = vld [vmem:[#allocation23] sm:$0xff] }
0x30ae   :  { %v8532_v10 = vsel %vm874_vm9, %v8525_v40, %v8531_v5 }
0x30af   :  { %v8534_v32 = vsel %vm16416_vm11, %v8532_v10, -1000000.0 }
0x30b0   :  { %v8535_v19 = vsel %vm878_vm10, %v8534_v32, -inf }
0x30b1   :  { %8536 = vmax.xlane.f32.xlu1 %v8535_v19 }
0x313e   :  { %v8537_v18 = vpop.xlane.xlu1 %8536 }
0x313f   :  { %v8538_v20 = vsub.f32 %v8534_v32, %v8537_v18 }
0x3141   :  { %v8539_v13 = vmul.f32 1.442695, %v8538_v20 }
0x3143   :  { %15389 = vpow2.f32 %v8539_v13 }
0x314d   :  { %v15390_v51 = vpop.eup %15389 }
0x314e   :  { %v8541_v26 = vsel %vm878_vm10, %v15390_v51, 0.0 }
0x314f   :  { %8542 = vadd.xlane.f32.xlu0 %v8541_v26 }
0x31dc   :  { %v8543_v36 = vpop.xlane.xlu0 %8542 }
0x31dd   :  { %15391 = vrcp.f32 %v8543_v36 }
0x31e7   :  { %v15392_v6 = vpop.eup %15391 }
0x31e8   :  { %v8545_v12 = vmul.f32 %v15392_v6, %v15390_v51 }
0x31ea   :  { %8547 = vst.msk [vmem:[#allocation21 + $0x28] sm:$0xff] %vm878_vm10, %v8545_v12  ;;  %v8556_v8 = vrot.slane %v8545_v12, %v16256_v38  ;;  %v8549_v25 = vcombine.high %v8545_v12, %v8545_v12 }
0x31ec   :  { %v8572_v57 = vrot.slane %v8556_v8, %v16256_v38  ;;  %v8564_v14 = vcombine.high %v8556_v8, %v8556_v8  ;;  %v8563_v34 = vrot.slane %v8549_v25, %v16256_v38 }
0x31ee   :  { %14174 = vmatmul.mubr.msk.f32.vlgmr.msra.gmra.mrb[88].mxu0 %vm878_vm10, %v8572_v57  ;;  %v8594_v16 = vcombine.high %v8572_v57, %v8572_v57  ;;  %v8586_v37 = vrot.slane %v8564_v14, %v16256_v38  ;;  %v8579_v56 = vrot.slane %v8563_v34, %v16256_v38  ;;  %v8565_v63 = vcombine.high %v8563_v34, %v8563_v34 }
0x31ef   :  { %14906 = vmatpush3.bf16.msra.mxu0 %v16441_v35  ;;  %14180 = vmatprep.mubr.msk.f32.mxu0 %vm15877_vm0, %v18453_v33 }
0x31f0   :  { %14188 = vmatmul.mubr.msk.f32.vlgmr.msra.gmra.mrb[80].mxu1 %vm878_vm10, %v8594_v16  ;;  %14910 = vmatprep.subr.bf16.mxu0 %v18452_v7  ;;  %v8596_v59 = vcombine.high %v8586_v37, %v8586_v37  ;;  %v8595_v2 = vcombine.high %v8579_v56, %v8579_v56  ;;  %v8593_v42 = vrot.slane %v8565_v63, %v16256_v38 }
0x31f1   :  { %14915 = vmatpush3.bf16.msra.mxu1 %v16474_v21  ;;  %14201 = vmatprep.mubr.msk.f32.mxu1 %vm15877_vm0, %v18453_v33 }
0x31f2   :  { %14181 = vmatmul.mubr.msk.f32.vlgmr.msra.gmra.mrb[90].mxu0 %vm878_vm10, %v8586_v37  ;;  %14919 = vmatprep.subr.bf16.mxu1 %v18452_v7  ;;  %v8597_v53 = vcombine.high %v8593_v42, %v8593_v42 }
0x31f3   :  { %14912 = vmatpush3.bf16.msra.mxu0 %v16462_v39  ;;  %14194 = vmatprep.mubr.msk.f32.mxu0 %vm15877_vm0, %v18453_v33 }
0x31f4   :  { %14202 = vmatmul.mubr.msk.f32.vlgmr.msra.gmra.mrb[82].mxu1 %vm878_vm10, %v8579_v56  ;;  %14916 = vmatprep.subr.bf16.mxu0 %v18452_v7 }
0x31f5   :  { %14921 = vmatpush3.bf16.msra.mxu1 %v16493_v24  ;;  %14215 = vmatprep.mubr.msk.f32.mxu1 %vm15877_vm0, %v18453_v33 }
0x31f6   :  { %14195 = vmatmul.mubr.msk.f32.vlgmr.msra.gmra.mrb[92].mxu0 %vm878_vm10, %v8596_v59  ;;  %14925 = vmatprep.subr.bf16.mxu1 %v18452_v7 }
0x31f7   :  { %14918 = vmatpush3.bf16.msra.mxu0 %v16483_v23  ;;  %14208 = vmatprep.mubr.msk.f32.mxu0 %vm15877_vm0, %v18453_v33 }
0x31f8   :  { %14216 = vmatmul.mubr.msk.f32.vlgmr.msra.gmra.mrb[84].mxu1 %vm878_vm10, %v8595_v2  ;;  %14922 = vmatprep.subr.bf16.mxu0 %v18452_v7 }
0x31f9   :  { %14927 = vmatpush3.bf16.msra.mxu1 %v16504_v28  ;;  %14233 = vmatprep.mubr.msk.f32.mxu1 %vm15877_vm0, %v18453_v33 }
0x31fa   :  { %14209 = vmatmul.mubr.msk.f32.vlgmr.msra.gmra.mrb[94].mxu0 %vm878_vm10, %v8593_v42  ;;  %14928 = vmatprep.subr.bf16.mxu1 %v18452_v7 }
0x31fb   :  { %14924 = vmatpush3.bf16.msra.mxu0 %v16433_v54  ;;  %14222 = vmatprep.mubr.msk.f32.mxu0 %vm15877_vm0, %v18453_v33 }
0x31fc   :  { %14931 = vmatprep.subr.bf16.mxu0 %v18452_v7 }
0x31fd   :  { %14930 = vmatpush3.bf16.msra.mxu1 %v16508_v60 }
0x31fe   :  { %14223 = vmatmul.mubr.msk.f32.vlgmr.msra.gmra.mrb[96].mxu0 %vm878_vm10, %v8597_v53  ;;  %14937 = vmatprep.subr.bf16.mxu1 %v18452_v7 }
0x31ff   :  { %14933 = vmatpush3.bf16.msra.mxu0 %v16517_v45  ;;  %14244 = vmatprep.mubr.msk.f32.mxu0 %vm15877_vm0, %v18453_v33 }
0x3200   :  { %14234 = vmatmul.mubr.msk.f32.vlgmr.msra.gmra.mrb[86].mxu1 %vm200_vm1, %v8177_v49  ;;  %14934 = vmatprep.subr.bf16.mxu0 %v18452_v7 }
0x3201   :  { %14939 = vmatpush3.bf16.msra.mxu1 %v16520_v48  ;;  %14255 = vmatprep.mubr.msk.f32.mxu1 %vm15877_vm0, %v18453_v33 }
0x3202   :  { %14940 = vmatprep.subr.bf16.mxu1 %v18452_v7 }
0x3203   :  { %14936 = vmatpush3.bf16.msra.mxu0 %v16533_v58 }
0x3204   :  { %14943 = vmatprep.subr.bf16.mxu0 %v18452_v7 }
0x3205   :  { %14942 = vmatpush3.bf16.msra.mxu1 %v16538_v30 }
0x3206   :  { %14949 = vmatprep.subr.bf16.mxu1 %v18452_v7 }
0x3208   :  { %14256 = vmatmul.mubr.msk.f32.vlgmr.msra.gmra.mrb[88].mxu1 %vm200_vm1, %v17800_v11 }
0x3209   :  { %14951 = vmatpush3.bf16.msra.mxu1 %v16570_v27  ;;  %14277 = vmatprep.mubr.msk.f32.mxu1 %vm15877_vm0, %v18453_v33 }
0x320a   :  { %14952 = vmatprep.subr.bf16.mxu1 %v18452_v7 }
0x320d   :  { %14954 = vmatpush3.bf16.msra.mxu1 %v16577_v46 }
0x320e   :  { %14961 = vmatprep.subr.bf16.mxu1 %v18452_v7 }
0x32c1   :  { %v8666_v61 = vpop.f32.mrb[88].mxu0 }
0x32c2   :  { %v14175_v31 = vpop.f32.mrb[89].mxu0 }
0x32c3   :  { %v8810_v40 = vpop.f32.mrb[80].mxu1 }
0x32c4   :  { %v14189_v5 = vpop.f32.mrb[81].mxu1  ;;  %v9258_v18 = vrot.slane %v8810_v40, 6 }
0x32c5   :  { %v8738_v10 = vpop.f32.mrb[90].mxu0 }
0x32c6   :  { %v9256_v32 = vrot.slane %v8738_v10, 7  ;;  %v14182_v19 = vpop.f32.mrb[91].mxu0 }
0x32c7   :  { %v8954_v20 = vpop.f32.mrb[82].mxu1 }
0x32c8   :  { %v9257_v13 = vsel %vm862_vm3, %v9256_v32, %v8666_v61  ;;  %v14203_v51 = vpop.f32.mrb[83].mxu1  ;;  %v9262_v8 = vrot.slane %v8954_v20, 4 }
0x32c9   :  { %v8882_v26 = vpop.f32.mrb[92].mxu0  ;;  %v9259_v36 = vsel %vm864_vm4, %v9258_v18, %v9257_v13 }
0x32ca   :  { %v9260_v6 = vrot.slane %v8882_v26, 5  ;;  %v14196_v12 = vpop.f32.mrb[93].mxu0 }
0x32cb   :  { %v9098_v25 = vpop.f32.mrb[84].mxu1 }
0x32cc   :  { %v9261_v57 = vsel %vm866_vm5, %v9260_v6, %v9259_v36  ;;  %v14217_v14 = vpop.f32.mrb[85].mxu1  ;;  %v9266_v59 = vrot.slane %v9098_v25, 2 }
0x32cd   :  { %v9026_v16 = vpop.f32.mrb[94].mxu0  ;;  %v9263_v34 = vsel %vm868_vm6, %v9262_v8, %v9261_v57 }
0x32ce   :  { %v9264_v37 = vrot.slane %v9026_v16, 3  ;;  %v14210_v56 = vpop.f32.mrb[95].mxu0 }
0x32d0   :  { %v9265_v63 = vsel %vm870_vm7, %v9264_v37, %v9263_v34 }
0x32d1   :  { %v9170_v2 = vpop.f32.mrb[96].mxu0  ;;  %v9267_v42 = vsel %vm872_vm8, %v9266_v59, %v9265_v63 }
0x32d2   :  { %v9268_v53 = vrot.slane %v9170_v2, 1  ;;  %v14224_v49 = vpop.f32.mrb[97].mxu0 }
0x32d3   :  { %v9244_v61 = vpop.f32.mrb[86].mxu1 }
0x32d4   :  { %v9269_v31 = vsel %vm874_vm9, %v9268_v53, %v9267_v42  ;;  %v14235_v40 = vpop.f32.mrb[87].mxu1 }
0x32d5   :  { %14245 = vmatmul.mubr.msk.f32.vlgmr.msra.gmra.mrb[98].mxu0 %vm200_vm1, %v9269_v31 }
0x32d6   :  { %14945 = vmatpush3.bf16.msra.mxu0 %v16568_v22  ;;  %14266 = vmatprep.mubr.msk.f32.mxu0 %vm15877_vm0, %v18453_v33 }
0x32d7   :  { %14946 = vmatprep.subr.bf16.mxu0 %v18452_v7 }
0x32da   :  { %14948 = vmatpush3.bf16.msra.mxu0 %v16573_v47 }
0x32db   :  { %v9411_v5 = vpop.f32.mrb[88].mxu1  ;;  %14955 = vmatprep.subr.bf16.mxu0 %v18452_v7 }
0x32dc   :  { %v14257_v10 = vpop.f32.mrb[89].mxu1 }
0x32dd   :  { %14267 = vmatmul.mubr.msk.f32.vlgmr.msra.gmra.mrb[100].mxu0 %vm200_vm1, %v17626_v50 }
0x32de   :  { %14957 = vmatpush3.bf16.msra.mxu0 %v16610_v41  ;;  %14288 = vmatprep.mubr.msk.f32.mxu0 %vm15877_vm0, %v18453_v33 }
0x32df   :  { %14958 = vmatprep.subr.bf16.mxu0 %v18452_v7 }
0x32e2   :  { %14960 = vmatpush3.bf16.msra.mxu0 %v16613_v17 }
0x32e3   :  { %14967 = vmatprep.subr.bf16.mxu0 %v18452_v7 }
0x33a8   :  { %v9338_v32 = vpop.f32.mrb[98].mxu0 }
0x33a9   :  { %v9339_v19 = vadd.f32 %v9338_v32, %v9244_v61  ;;  %v14246_v18 = vpop.f32.mrb[99].mxu0 }
0x33ab   :  { %v9415_v20 = vadd.f32 %v9411_v5, %v9339_v19 }
0x33ad   :  { %v9416_v13 = vadd.f32 %v17591_v52, %v9415_v20 }
0x33af   :  { %9424 = vrot.lane.b32.xlu1 %v9416_v13, %s15881_s19  ;;  %v12930_v36 = vmul.f32 -1.442695, %v9416_v13 }
0x33b0   :  { %v9520_v51 = vpop.f32.mrb[100].mxu0 }
0x33b1   :  { %v14268_v26 = vpop.f32.mrb[101].mxu0  ;;  %15393 = vpow2.f32 %v12930_v36 }
0x33bb   :  { %v15394_v6 = vpop.eup %15393 }
0x33bc   :  { %v9420_v12 = vadd.f32 1.0, %v15394_v6 }
0x33be   :  { %15395 = vrcp.f32 %v9420_v12 }
0x33c8   :  { %v15396_v8 = vpop.eup %15395 }
0x33c9   :  { %v9434_v37 = vsub.f32 1.0, %v15396_v8 }
0x3421   :  { %v9425_v25 = vpop.permute.xlu1 %9424 }
0x3422   :  { %v9427_v57 = vmul.f32 %v15396_v8, %v9425_v25 }
0x3424   :  { %9429 = vrot.lane.b32.xlu0 %v9427_v57, %s15882_s2 }
0x3496   :  { %v9430_v14 = vpop.permute.xlu0 %9429 }
0x3497   :  { %v9432_v16 = vadd.f32 %v9430_v14, %v9416_v13 }
0x3499   :  { %15397 = vtanh.f32 %v9432_v16 }
0x34a3   :  { %v15398_v34 = vpop.eup %15397 }
0x34a4   :  { %9436 = vrot.lane.b32.xlu1 %v15398_v34, %s15883_s5 }
0x34a8   :  { %9440 = vrot.lane.b32.xlu1 %v17800_v11, %s15881_s19 }
0x3516   :  { %v9437_v52 = vpop.permute.xlu1 %9436 }
0x3517   :  { %v9439_v59 = vmul.f32 %v9437_v52, %v9434_v37 }
0x351a   :  { %v9441_v56 = vpop.permute.xlu1 %9440 }
0x351b   :  { %v9443_v63 = vmul.f32 %v15396_v8, %v9441_v56 }
0x351d   :  { %v9444_v2 = vadd.f32 %v9443_v63, %v9439_v59 }
0x351f   :  { %9446 = vrot.lane.b32.xlu0 %v9444_v2, %s15883_s5 }
0x3591   :  { %v9447_v42 = vpop.permute.xlu0 %9446 }
0x3592   :  { %9449 = vst.msk [vmem:[#allocation23] sm:$0xff] %vm200_vm1, %v9447_v42  ;;  %14278 = vmatmul.mubr.msk.f32.vlgmr.msra.gmra.mrb[90].mxu1 %vm200_vm1, %v9447_v42 }
0x3593   :  { %14963 = vmatpush3.bf16.msra.mxu1 %v16170_v9  ;;  %14299 = vmatprep.mubr.msk.f32.mxu1 %vm15877_vm0, %v18453_v33 }
0x3594   :  { %14964 = vmatprep.subr.bf16.mxu1 %v18452_v7 }
0x3597   :  { %14966 = vmatpush3.bf16.msra.mxu1 %v16177_v15 }
0x3598   :  { %14973 = vmatprep.subr.bf16.mxu1 %v18452_v7 }
0x3665   :  { %v9592_v11 = vpop.f32.mrb[90].mxu1 }
0x3666   :  { %v9593_v53 = vadd.f32 %v9592_v11, %v9520_v51  ;;  %v14279_v49 = vpop.f32.mrb[91].mxu1 }
0x3668   :  { %v9596_v61 = vadd.f32 %v17611_v29, %v9593_v53 }
0x366a   :  { %9604 = vrot.lane.b32.xlu1 %v9596_v61, %s15881_s19  ;;  %v12933_v31 = vmul.f32 -1.442695, %v9596_v61 }
0x366c   :  { %15399 = vpow2.f32 %v12933_v31 }
0x3676   :  { %v15400_v40 = vpop.eup %15399 }
0x3677   :  { %v9600_v5 = vadd.f32 1.0, %v15400_v40 }
0x3679   :  { %15401 = vrcp.f32 %v9600_v5 }
0x3683   :  { %v15402_v10 = vpop.eup %15401 }
0x3684   :  { %v9614_v51 = vsub.f32 1.0, %v15402_v10 }
0x36dc   :  { %v9605_v32 = vpop.permute.xlu1 %9604 }
0x36dd   :  { %v9607_v19 = vmul.f32 %v15402_v10, %v9605_v32 }
0x36df   :  { %9609 = vrot.lane.b32.xlu0 %v9607_v19, %s15882_s2  ;;  %v17883_v19 = vld [vmem:[#allocation2 + $0x10] sm:$0xff] }
0x36e3   :  { %9620 = vrot.lane.b32.xlu0 %v17626_v50, %s15881_s19 }
0x3751   :  { %v9610_v18 = vpop.permute.xlu0 %9609 }
0x3752   :  { %v9612_v20 = vadd.f32 %v9610_v18, %v9596_v61  ;;  %v17877_v61 = vld [vmem:[#allocation2] sm:$0xff] }
0x3754   :  { %15403 = vtanh.f32 %v9612_v20  ;;  %v17886_v20 = vld [vmem:[#allocation2 + $0x18] sm:$0xff] }
0x3755   :  { %v9621_v29 = vpop.permute.xlu0 %9620 }
0x3756   :  { %v9623_v36 = vmul.f32 %v15402_v10, %v9621_v29  ;;  %v17880_v10 = vld [vmem:[#allocation2 + $0x8] sm:$0xff] }
0x375e   :  { %v15404_v13 = vpop.eup %15403 }
0x375f   :  { %9616 = vrot.lane.b32.xlu1 %v15404_v13, %s15883_s5 }
0x37d1   :  { %v9617_v26 = vpop.permute.xlu1 %9616 }
0x37d2   :  { %v9619_v6 = vmul.f32 %v9617_v26, %v9614_v51  ;;  %v17890_v51 = vld [vmem:[#allocation2 + $0x20] sm:$0xff] }
0x37d4   :  { %v9624_v12 = vadd.f32 %v9623_v36, %v9619_v6 }
0x37d6   :  { %9626 = vrot.lane.b32.xlu1 %v9624_v12, %s15883_s5  ;;  %v17895_v12 = vld [vmem:[#allocation2 + $0x28] sm:$0xff] }
0x3848   :  { %v9627_v8 = vpop.permute.xlu1 %9626 }
0x3849   :  { %9629 = vst.msk [vmem:[#allocation23 + $0x8] sm:$0xff] %vm200_vm1, %v9627_v8  ;;  %14289 = vmatmul.mubr.msk.f32.vlgmr.msra.gmra.mrb[102].mxu0 %vm200_vm1, %v9627_v8 }
0x384a   :  { %14969 = vmatpush3.bf16.msra.mxu0 %v16427_v55  ;;  %14306 = vmatprep.mubr.msk.f32.mxu0 %vm15877_vm0, %v18453_v33 }
0x384b   :  { %14970 = vmatprep.subr.bf16.mxu0 %v18452_v7 }
0x3850   :  { %v17860_v50 = vld [vmem:[#allocation23 + $0x8] sm:$0xff] }
0x3851   :  { %14300 = vmatmul.mubr.msk.f32.vlgmr.msra.gmra.mrb[92].mxu1 %vm200_vm1, %v17860_v50 }
0x3852   :  { %14975 = vmatpush3.bf16.msra.mxu1 %v18457_v1  ;;  %14320 = vmatprep.mubr.msk.f32.mxu1 %vm15877_vm0, %v18453_v33 }
0x3853   :  { %14979 = vmatprep.subr.bf16.mxu1 %v18452_v7 }
0x391c   :  { %v9698_v25 = vpop.f32.mrb[102].mxu0 }
0x391d   :  { %v9699_v57 = vadd.f32 %v17637_v62, %v9698_v25  ;;  %v14290_v14 = vpop.f32.mrb[103].mxu0  ;;  %v17898_v25 = vld [vmem:[#allocation2 + $0x40] sm:$0xff] }
0x391f   :  { %9703 = vst [vmem:[#allocation20 + $0x28] sm:$0xff] %v9699_v57 }
0x3924   :  { %v9776_v16 = vpop.f32.mrb[92].mxu1 }
0x3925   :  { %v9781_v34 = vcombine.high %v9776_v16, %v9776_v16  ;;  %v9788_v52 = vrot.slane %v9776_v16, %v16256_v38  ;;  %v14301_v37 = vpop.f32.mrb[93].mxu1 }
0x3927   :  { %v9796_v56 = vcombine.high %v9788_v52, %v9788_v52  ;;  %v9804_v59 = vrot.slane %v9788_v52, %v16256_v38  ;;  %v9795_v63 = vrot.slane %v9781_v34, %v16256_v38  ;;  %v17902_v34 = vld [vmem:[#allocation2 + $0x30] sm:$0xff] }
0x3929   :  { %v9818_v2 = vrot.slane %v9796_v56, %v16256_v38  ;;  %v9826_v42 = vcombine.high %v9804_v59, %v9804_v59  ;;  %v9833_v11 = vrot.slane %v9804_v59, %v16262_v44  ;;  %v9811_v62 = vrot.slane %v9795_v63, %v16256_v38  ;;  %v17905_v56 = vld [vmem:[#allocation2 + $0x48] sm:$0xff] }
0x392a   :  { %v9797_v40 = vcombine.high %v9795_v63, %v9795_v63 }
0x392b   :  { %v9837_v53 = vrot.slane %v9818_v2, %v16262_v44  ;;  %v9841_v49 = vrot.slane %v9826_v42, %v16262_v44  ;;  %v9870_v31 = vadd.f32 %v17877_v61, %v9833_v11  ;;  %v9828_v5 = vcombine.high %v9818_v2, %v9818_v2  ;;  %v17909_v2 = vld [vmem:[#allocation2 + $0x50] sm:$0xff] }
0x392c   :  { %v9871_v32 = vadd.f32 %v17880_v10, %v9833_v11  ;;  %v9849_v29 = vrot.slane %v9811_v62, %v16262_v44  ;;  %v9825_v36 = vrot.slane %v9797_v40, %v16256_v38  ;;  %v9827_v14 = vcombine.high %v9811_v62, %v9811_v62  ;;  %v17914_v40 = vld [vmem:[#allocation2 + $0x38] sm:$0xff] }
0x392d   :  { %v9872_v18 = vadd.f32 %v17883_v19, %v9837_v53  ;;  %v9873_v13 = vadd.f32 %v17886_v20, %v9837_v53  ;;  %v9874_v26 = vadd.f32 %v17890_v51, %v9841_v49  ;;  %15405 = vtanh.f32 %v9870_v31  ;;  %18483 = vst [vmem:[#allocation32_spill] sm:$0xff] %v17914_v40 }
0x392e   :  { %v9845_v6 = vrot.slane %v9828_v5, %v16262_v44  ;;  %15407 = vtanh.f32 %v9871_v32  ;;  %v9875_v8 = vadd.f32 %v17895_v12, %v9841_v49  ;;  %v9878_v57 = vadd.f32 %v17898_v25, %v9849_v29 }
0x392f   :  { %15409 = vtanh.f32 %v9872_v18  ;;  %v9853_v16 = vrot.slane %v9825_v36, %v16262_v44  ;;  %v9829_v37 = vcombine.high %v9825_v36, %v9825_v36  ;;  %v9879_v59 = vadd.f32 %v17905_v56, %v9849_v29 }
0x3930   :  { %15411 = vtanh.f32 %v9873_v13  ;;  %v9876_v52 = vadd.f32 %v17902_v34, %v9845_v6  ;;  %v9857_v63 = vrot.slane %v9827_v14, %v16262_v44  ;;  %v9877_v5 = vadd.f32 %v17914_v40, %v9845_v6  ;;  %v17918_v13 = vld [vmem:[#allocation2 + $0x60] sm:$0xff]  ;;  %v17925_v14 = vld [vmem:[#allocation2 + $0x58] sm:$0xff] }
0x3931   :  { %15413 = vtanh.f32 %v9874_v26  ;;  %v9880_v42 = vadd.f32 %v17909_v2, %v9853_v16  ;;  %v9861_v31 = vrot.slane %v9829_v37, %v16262_v44  ;;  %18484 = vst [vmem:[#allocation33_spill] sm:$0xff] %v17918_v13  ;;  %18485 = vst [vmem:[#allocation34_spill] sm:$0xff] %v17925_v14 }
0x3932   :  { %15415 = vtanh.f32 %v9875_v8  ;;  %v9882_v29 = vadd.f32 %v17918_v13, %v9857_v63 }
0x3933   :  { %15417 = vtanh.f32 %v9878_v57 }
0x3934   :  { %15419 = vtanh.f32 %v9876_v52  ;;  %v9881_v52 = vadd.f32 %v17925_v14, %v9853_v16  ;;  %v17935_v16 = vld [vmem:[#allocation2 + $0x68] sm:$0xff] }
0x3935   :  { %15421 = vtanh.f32 %v9879_v59  ;;  %v17928_v59 = vld [vmem:[#allocation2 + $0x70] sm:$0xff]  ;;  %18487 = vst [vmem:[#allocation36_spill] sm:$0xff] %v17935_v16 }
0x3936   :  { %15423 = vtanh.f32 %v9880_v42  ;;  %18486 = vst [vmem:[#allocation35_spill] sm:$0xff] %v17928_v59  ;;  %v9884_v42 = vadd.f32 %v17928_v59, %v9861_v31 }
0x3937   :  { %v15406_v11 = vpop.eup %15405  ;;  %15425 = vtanh.f32 %v9877_v5  ;;  %v9883_v5 = vadd.f32 %v17935_v16, %v9857_v63 }
0x3938   :  { %v15408_v53 = vpop.eup %15407  ;;  %v9902_v62 = vmul.f32 %v17666_v43, %v15406_v11  ;;  %15427 = vtanh.f32 %v9882_v29 }
0x3939   :  { %v15410_v49 = vpop.eup %15409  ;;  %v9903_v32 = vmul.f32 %v17666_v43, %v15408_v53  ;;  %15429 = vtanh.f32 %v9881_v52 }
0x393a   :  { %v15412_v18 = vpop.eup %15411  ;;  %v9918_v26 = vsel %vm200_vm1, %v9902_v62, 0.0  ;;  %v9904_v36 = vmul.f32 %v17666_v43, %v15410_v49  ;;  %15431 = vtanh.f32 %v9884_v42 }
0x393b   :  { %v15414_v8 = vpop.eup %15413  ;;  %v9921_v57 = vsel %vm200_vm1, %v9903_v32, 0.0  ;;  %9919 = vadd.xlane.f32.xlu0 %v9918_v26  ;;  %v9905_v53 = vmul.f32 %v17666_v43, %v15412_v18  ;;  %15433 = vtanh.f32 %v9883_v5 }
0x393c   :  { %9922 = vadd.xlane.f32.xlu1 %v9921_v57  ;;  %v9906_v6 = vmul.f32 %v17666_v43, %v15414_v8  ;;  %v15416_v37 = vpop.eup %15415  ;;  %v9924_v11 = vsel %vm200_vm1, %v9904_v36, 0.0 }
0x393d   :  { %v15418_v62 = vpop.eup %15417  ;;  %v9927_v29 = vsel %vm200_vm1, %v9905_v53, 0.0  ;;  %v9907_v36 = vmul.f32 %v17666_v43, %v15416_v37 }
0x393e   :  { %v9930_v49 = vsel %vm200_vm1, %v9906_v6, 0.0  ;;  %v15420_v32 = vpop.eup %15419  ;;  %v9910_v26 = vmul.f32 %v17666_v43, %v15418_v62 }
0x393f   :  { %9925 = vadd.xlane.f32.xlu0 %v9924_v11  ;;  %v15422_v8 = vpop.eup %15421  ;;  %v9908_v57 = vmul.f32 %v17666_v43, %v15420_v32  ;;  %v17942_v11 = vld [vmem:[#allocation2 + $0x78] sm:$0xff]  ;;  %v9933_v63 = vsel %vm200_vm1, %v9907_v36, 0.0 }
0x3940   :  { %9931 = vadd.xlane.f32.xlu1 %v9930_v49  ;;  %v9942_v18 = vsel %vm200_vm1, %v9910_v26, 0.0  ;;  %v15424_v6 = vpop.eup %15423  ;;  %18488 = vst [vmem:[#allocation37_spill] sm:$0xff] %v17942_v11  ;;  %v9885_v62 = vadd.f32 %v17942_v11, %v9861_v31  ;;  %v9911_v52 = vmul.f32 %v17666_v43, %v15422_v8 }
0x3941   :  { %v15426_v42 = vpop.eup %15425  ;;  %v9936_v37 = vsel %vm200_vm1, %v9908_v57, 0.0  ;;  %v9912_v53 = vmul.f32 %v17666_v43, %v15424_v6 }
0x3942   :  { %v15428_v49 = vpop.eup %15427  ;;  %15435 = vtanh.f32 %v9885_v62  ;;  %v9945_v32 = vsel %vm200_vm1, %v9911_v52, 0.0  ;;  %v9909_v26 = vmul.f32 %v17666_v43, %v15426_v42 }
0x3943   :  { %9928 = vadd.xlane.f32.xlu0 %v9927_v29  ;;  %v15430_v29 = vpop.eup %15429  ;;  %v9948_v31 = vsel %vm200_vm1, %v9912_v53, 0.0  ;;  %v9914_v5 = vmul.f32 %v17666_v43, %v15428_v49 }
0x3944   :  { %9943 = vadd.xlane.f32.xlu1 %v9942_v18  ;;  %v15432_v36 = vpop.eup %15431  ;;  %v9939_v8 = vsel %vm200_vm1, %v9909_v26, 0.0  ;;  %v9913_v18 = vmul.f32 %v17666_v43, %v15430_v29 }
0x3945   :  { %v15434_v57 = vpop.eup %15433  ;;  %v9954_v6 = vsel %vm200_vm1, %v9914_v5, 0.0  ;;  %v9916_v62 = vmul.f32 %v17666_v43, %v15432_v36 }
0x3946   :  { %v9915_v52 = vmul.f32 %v17666_v43, %v15434_v57 }
0x3947   :  { %9934 = vadd.xlane.f32.xlu0 %v9933_v63  ;;  %v9951_v63 = vsel %vm200_vm1, %v9913_v18, 0.0 }
0x3948   :  { %9937 = vadd.xlane.f32.xlu1 %v9936_v37  ;;  %v9960_v37 = vsel %vm200_vm1, %v9916_v62, 0.0  ;;  %v9957_v53 = vsel %vm200_vm1, %v9915_v52, 0.0 }
0x394b   :  { %9946 = vadd.xlane.f32.xlu0 %v9945_v32 }
0x394c   :  { %9949 = vadd.xlane.f32.xlu1 %v9948_v31  ;;  %v15436_v42 = vpop.eup %15435 }
0x394d   :  { %v9917_v49 = vmul.f32 %v17666_v43, %v15436_v42 }
0x394f   :  { %9940 = vadd.xlane.f32.xlu0 %v9939_v8  ;;  %v9963_v32 = vsel %vm200_vm1, %v9917_v49, 0.0 }
0x3950   :  { %9955 = vadd.xlane.f32.xlu1 %v9954_v6 }
0x3953   :  { %9952 = vadd.xlane.f32.xlu0 %v9951_v63 }
0x3954   :  { %9961 = vadd.xlane.f32.xlu1 %v9960_v37 }
0x3957   :  { %9958 = vadd.xlane.f32.xlu0 %v9957_v53 }
0x395b   :  { %9964 = vadd.xlane.f32.xlu0 %v9963_v32 }
0x39c8   :  { %v9920_v26 = vpop.xlane.xlu0 %9919 }
0x39c9   :  { %v9923_v29 = vpop.xlane.xlu1 %9922  ;;  %v9985_v42 = vrot.slane %v9920_v26, %v16381_v3 }
0x39ca   :  { %v9989_v43 = vrot.slane %v9923_v29, %v16384_v4 }
0x39cc   :  { %v9926_v31 = vpop.xlane.xlu0 %9925 }
0x39cd   :  { %v9932_v5 = vpop.xlane.xlu1 %9931  ;;  %v9994_v53 = vrot.slane %v9926_v31, %v16381_v3 }
0x39ce   :  { %v10003_v32 = vrot.slane %v9932_v5, %v16381_v3 }
0x39d0   :  { %v9929_v36 = vpop.xlane.xlu0 %9928 }
0x39d1   :  { %v9944_v8 = vpop.xlane.xlu1 %9943  ;;  %v9998_v37 = vrot.slane %v9929_v36, %v16384_v4 }
0x39d3   :  { %v9999_v59 = vsel %vm797_vm2, %v9998_v37, %v9994_v53 }
0x39d4   :  { %v9935_v18 = vpop.xlane.xlu0 %9934 }
0x39d5   :  { %v9938_v57 = vpop.xlane.xlu1 %9937  ;;  %v10007_v52 = vrot.slane %v9935_v18, %v16384_v4  ;;  %v9990_v18 = vsel %vm797_vm2, %v9989_v43, %v9985_v42 }
0x39d6   :  { %v10012_v14 = vrot.slane %v9938_v57, %v16381_v3  ;;  %v10054_v31 = vsel %vm862_vm3, %v9999_v59, %v9990_v18  ;;  %v10021_v57 = vrot.slane %v9944_v8, %v16381_v3 }
0x39d7   :  { %v10008_v36 = vsel %vm797_vm2, %v10007_v52, %v10003_v32 }
0x39d8   :  { %v9947_v6 = vpop.xlane.xlu0 %9946  ;;  %v10055_v5 = vsel %vm864_vm4, %v10008_v36, %v10054_v31 }
0x39d9   :  { %v9950_v63 = vpop.xlane.xlu1 %9949 }
0x39da   :  { %v10030_v40 = vrot.slane %v9950_v63, %v16381_v3 }
0x39dc   :  { %v9941_v62 = vpop.xlane.xlu0 %9940 }
0x39dd   :  { %v10016_v49 = vrot.slane %v9941_v62, %v16384_v4  ;;  %v9956_v11 = vpop.xlane.xlu1 %9955  ;;  %v10025_v62 = vrot.slane %v9947_v6, %v16384_v4 }
0x39de   :  { %v10039_v43 = vrot.slane %v9956_v11, %v16381_v3 }
0x39df   :  { %v10017_v29 = vsel %vm797_vm2, %v10016_v49, %v10012_v14  ;;  %v10026_v59 = vsel %vm797_vm2, %v10025_v62, %v10021_v57 }
0x39e0   :  { %v9953_v16 = vpop.xlane.xlu0 %9952  ;;  %v10056_v52 = vsel %vm866_vm5, %v10017_v29, %v10055_v5 }
0x39e1   :  { %v10034_v26 = vrot.slane %v9953_v16, %v16384_v4  ;;  %v9962_v14 = vpop.xlane.xlu1 %9961  ;;  %v10057_v53 = vsel %vm868_vm6, %v10026_v59, %v10056_v52 }
0x39e2   :  { %v10048_v63 = vrot.slane %v9962_v14, %v16381_v3 }
0x39e3   :  { %v10035_v16 = vsel %vm797_vm2, %v10034_v26, %v10030_v40 }
0x39e4   :  { %v9959_v13 = vpop.xlane.xlu0 %9958  ;;  %v10058_v8 = vsel %vm870_vm7, %v10035_v16, %v10057_v53 }
0x39e5   :  { %v10043_v37 = vrot.slane %v9959_v13, %v16384_v4 }
0x39e7   :  { %v10044_v6 = vsel %vm797_vm2, %v10043_v37, %v10039_v43 }
0x39e8   :  { %v9965_v42 = vpop.xlane.xlu0 %9964  ;;  %v10059_v11 = vsel %vm872_vm8, %v10044_v6, %v10058_v8 }
0x39e9   :  { %v10052_v13 = vrot.slane %v9965_v42, %v16384_v4 }
0x39eb   :  { %v10053_v49 = vsel %vm797_vm2, %v10052_v13, %v10048_v63 }
0x39ec   :  { %v10060_v32 = vsel %vm874_vm9, %v10053_v49, %v10059_v11 }
0x39ed   :  { %v10062_v40 = vsel %vm16416_vm11, %v10060_v32, -1000000.0  ;;  %v9705_v32 = vld [vmem:[#allocation3 + $0x30] sm:$0xff] }
0x39ee   :  { %v10063_v36 = vsel %vm878_vm10, %v10062_v40, -inf }
0x39ef   :  { %10064 = vmax.xlane.f32.xlu1 %v10063_v36 }
0x3a7c   :  { %v10065_v18 = vpop.xlane.xlu1 %10064 }
0x3a7d   :  { %v10066_v29 = vsub.f32 %v10062_v40, %v10065_v18  ;;  %v18056_v40 = vld [vmem:[#allocation23] sm:$0xff] }
0x3a7f   :  { %v10067_v26 = vmul.f32 1.442695, %v10066_v29 }
0x3a81   :  { %15437 = vpow2.f32 %v10067_v26 }
0x3a8b   :  { %v15438_v31 = vpop.eup %15437 }
0x3a8c   :  { %v10069_v62 = vsel %vm878_vm10, %v15438_v31, 0.0 }
0x3a8d   :  { %10070 = vadd.xlane.f32.xlu0 %v10069_v62 }
0x3b1a   :  { %v10071_v5 = vpop.xlane.xlu0 %10070 }
0x3b1b   :  { %15439 = vrcp.f32 %v10071_v5 }
0x3b25   :  { %v15440_v37 = vpop.eup %15439 }
0x3b26   :  { %v10073_v57 = vmul.f32 %v15440_v37, %v15438_v31 }
0x3b28   :  { %10075 = vst.msk [vmem:[#allocation21 + $0x30] sm:$0xff] %vm878_vm10, %v10073_v57  ;;  %v10084_v52 = vrot.slane %v10073_v57, %v16256_v38  ;;  %v10077_v43 = vcombine.high %v10073_v57, %v10073_v57 }
0x3b2a   :  { %v10100_v14 = vrot.slane %v10084_v52, %v16256_v38  ;;  %v10092_v16 = vcombine.high %v10084_v52, %v10084_v52  ;;  %v10091_v6 = vrot.slane %v10077_v43, %v16256_v38 }
0x3b2c   :  { %14307 = vmatmul.mubr.msk.f32.vlgmr.msra.gmra.mrb[104].mxu0 %vm878_vm10, %v10100_v14  ;;  %v10122_v59 = vcombine.high %v10100_v14, %v10100_v14  ;;  %v10114_v42 = vrot.slane %v10092_v16, %v16256_v38  ;;  %v10107_v53 = vrot.slane %v10091_v6, %v16256_v38  ;;  %v10093_v13 = vcombine.high %v10091_v6, %v10091_v6 }
0x3b2d   :  { %14972 = vmatpush3.bf16.msra.mxu0 %v16441_v35  ;;  %14313 = vmatprep.mubr.msk.f32.mxu0 %vm15877_vm0, %v18453_v33 }
0x3b2e   :  { %14321 = vmatmul.mubr.msk.f32.vlgmr.msra.gmra.mrb[94].mxu1 %vm878_vm10, %v10122_v59  ;;  %14976 = vmatprep.subr.bf16.mxu0 %v18452_v7  ;;  %v10124_v63 = vcombine.high %v10114_v42, %v10114_v42  ;;  %v10123_v8 = vcombine.high %v10107_v53, %v10107_v53  ;;  %v10121_v49 = vrot.slane %v10093_v13, %v16256_v38 }
0x3b2f   :  { %14981 = vmatpush3.bf16.msra.mxu1 %v16474_v21  ;;  %14334 = vmatprep.mubr.msk.f32.mxu1 %vm15877_vm0, %v18453_v33 }
0x3b30   :  { %14314 = vmatmul.mubr.msk.f32.vlgmr.msra.gmra.mrb[106].mxu0 %vm878_vm10, %v10114_v42  ;;  %14985 = vmatprep.subr.bf16.mxu1 %v18452_v7  ;;  %v10125_v11 = vcombine.high %v10121_v49, %v10121_v49 }
0x3b31   :  { %14978 = vmatpush3.bf16.msra.mxu0 %v16462_v39  ;;  %14327 = vmatprep.mubr.msk.f32.mxu0 %vm15877_vm0, %v18453_v33 }
0x3b32   :  { %14335 = vmatmul.mubr.msk.f32.vlgmr.msra.gmra.mrb[96].mxu1 %vm878_vm10, %v10107_v53  ;;  %14982 = vmatprep.subr.bf16.mxu0 %v18452_v7 }
0x3b33   :  { %14987 = vmatpush3.bf16.msra.mxu1 %v16493_v24  ;;  %14348 = vmatprep.mubr.msk.f32.mxu1 %vm15877_vm0, %v18453_v33 }
0x3b34   :  { %14328 = vmatmul.mubr.msk.f32.vlgmr.msra.gmra.mrb[108].mxu0 %vm878_vm10, %v10124_v63  ;;  %14991 = vmatprep.subr.bf16.mxu1 %v18452_v7 }
0x3b35   :  { %14984 = vmatpush3.bf16.msra.mxu0 %v16483_v23  ;;  %14341 = vmatprep.mubr.msk.f32.mxu0 %vm15877_vm0, %v18453_v33 }
0x3b36   :  { %14349 = vmatmul.mubr.msk.f32.vlgmr.msra.gmra.mrb[98].mxu1 %vm878_vm10, %v10123_v8  ;;  %14988 = vmatprep.subr.bf16.mxu0 %v18452_v7 }
0x3b37   :  { %14993 = vmatpush3.bf16.msra.mxu1 %v16504_v28  ;;  %14366 = vmatprep.mubr.msk.f32.mxu1 %vm15877_vm0, %v18453_v33 }
0x3b38   :  { %14342 = vmatmul.mubr.msk.f32.vlgmr.msra.gmra.mrb[110].mxu0 %vm878_vm10, %v10121_v49  ;;  %14994 = vmatprep.subr.bf16.mxu1 %v18452_v7 }
0x3b39   :  { %14990 = vmatpush3.bf16.msra.mxu0 %v16433_v54  ;;  %14355 = vmatprep.mubr.msk.f32.mxu0 %vm15877_vm0, %v18453_v33 }
0x3b3a   :  { %14997 = vmatprep.subr.bf16.mxu0 %v18452_v7 }
0x3b3b   :  { %14996 = vmatpush3.bf16.msra.mxu1 %v16508_v60 }
0x3b3c   :  { %14356 = vmatmul.mubr.msk.f32.vlgmr.msra.gmra.mrb[112].mxu0 %vm878_vm10, %v10125_v11  ;;  %15003 = vmatprep.subr.bf16.mxu1 %v18452_v7 }
0x3b3d   :  { %14999 = vmatpush3.bf16.msra.mxu0 %v16517_v45  ;;  %14377 = vmatprep.mubr.msk.f32.mxu0 %vm15877_vm0, %v18453_v33 }
0x3b3e   :  { %14367 = vmatmul.mubr.msk.f32.vlgmr.msra.gmra.mrb[100].mxu1 %vm200_vm1, %v9705_v32  ;;  %15000 = vmatprep.subr.bf16.mxu0 %v18452_v7 }
0x3b3f   :  { %15005 = vmatpush3.bf16.msra.mxu1 %v16520_v48  ;;  %14388 = vmatprep.mubr.msk.f32.mxu1 %vm15877_vm0, %v18453_v33 }
0x3b40   :  { %15006 = vmatprep.subr.bf16.mxu1 %v18452_v7 }
0x3b41   :  { %15002 = vmatpush3.bf16.msra.mxu0 %v16533_v58 }
0x3b42   :  { %15009 = vmatprep.subr.bf16.mxu0 %v18452_v7 }
0x3b43   :  { %15008 = vmatpush3.bf16.msra.mxu1 %v16538_v30 }
0x3b44   :  { %15015 = vmatprep.subr.bf16.mxu1 %v18452_v7 }
0x3b46   :  { %14389 = vmatmul.mubr.msk.f32.vlgmr.msra.gmra.mrb[102].mxu1 %vm200_vm1, %v18056_v40 }
0x3b47   :  { %15017 = vmatpush3.bf16.msra.mxu1 %v16570_v27  ;;  %14410 = vmatprep.mubr.msk.f32.mxu1 %vm15877_vm0, %v18453_v33 }
0x3b48   :  { %15018 = vmatprep.subr.bf16.mxu1 %v18452_v7 }
0x3b4b   :  { %15020 = vmatpush3.bf16.msra.mxu1 %v16577_v46 }
0x3b4c   :  { %15027 = vmatprep.subr.bf16.mxu1 %v18452_v7 }
0x3bff   :  { %v10194_v36 = vpop.f32.mrb[104].mxu0 }
0x3c00   :  { %v14308_v18 = vpop.f32.mrb[105].mxu0 }
0x3c01   :  { %v10338_v29 = vpop.f32.mrb[94].mxu1 }
0x3c02   :  { %v14322_v26 = vpop.f32.mrb[95].mxu1  ;;  %v10786_v37 = vrot.slane %v10338_v29, 6 }
0x3c03   :  { %v10266_v31 = vpop.f32.mrb[106].mxu0 }
0x3c04   :  { %v10784_v62 = vrot.slane %v10266_v31, 7  ;;  %v14315_v5 = vpop.f32.mrb[107].mxu0 }
0x3c05   :  { %v10482_v57 = vpop.f32.mrb[96].mxu1 }
0x3c06   :  { %v10785_v52 = vsel %vm862_vm3, %v10784_v62, %v10194_v36  ;;  %v14336_v43 = vpop.f32.mrb[97].mxu1  ;;  %v10790_v42 = vrot.slane %v10482_v57, 4 }
0x3c07   :  { %v10410_v14 = vpop.f32.mrb[108].mxu0  ;;  %v10787_v16 = vsel %vm864_vm4, %v10786_v37, %v10785_v52 }
0x3c08   :  { %v10788_v59 = vrot.slane %v10410_v14, 5  ;;  %v14329_v6 = vpop.f32.mrb[109].mxu0 }
0x3c09   :  { %v10626_v53 = vpop.f32.mrb[98].mxu1 }
0x3c0a   :  { %v10789_v63 = vsel %vm866_vm5, %v10788_v59, %v10787_v16  ;;  %v14350_v13 = vpop.f32.mrb[99].mxu1  ;;  %v10794_v18 = vrot.slane %v10626_v53, 2 }
0x3c0b   :  { %v10554_v8 = vpop.f32.mrb[110].mxu0  ;;  %v10791_v49 = vsel %vm868_vm6, %v10790_v42, %v10789_v63  ;;  %v18091_v42 = vld [vmem:[%s18404_s10] ss:$0 sm:$0xff] }
0x3c0c   :  { %v10792_v11 = vrot.slane %v10554_v8, 3  ;;  %v14343_v32 = vpop.f32.mrb[111].mxu0 }
0x3c0e   :  { %v10793_v29 = vsel %vm870_vm7, %v10792_v11, %v10791_v49 }
0x3c0f   :  { %v10698_v36 = vpop.f32.mrb[112].mxu0  ;;  %v10795_v26 = vsel %vm872_vm8, %v10794_v18, %v10793_v29 }
0x3c10   :  { %v10796_v31 = vrot.slane %v10698_v36, 1  ;;  %v14357_v62 = vpop.f32.mrb[113].mxu0 }
0x3c11   :  { %v10772_v5 = vpop.f32.mrb[100].mxu1 }
0x3c12   :  { %v10797_v37 = vsel %vm874_vm9, %v10796_v31, %v10795_v26  ;;  %v14368_v57 = vpop.f32.mrb[101].mxu1 }
0x3c13   :  { %14378 = vmatmul.mubr.msk.f32.vlgmr.msra.gmra.mrb[114].mxu0 %vm200_vm1, %v10797_v37 }
0x3c14   :  { %15011 = vmatpush3.bf16.msra.mxu0 %v16568_v22  ;;  %14399 = vmatprep.mubr.msk.f32.mxu0 %vm15877_vm0, %v18453_v33 }
0x3c15   :  { %15012 = vmatprep.subr.bf16.mxu0 %v18452_v7 }
0x3c18   :  { %15014 = vmatpush3.bf16.msra.mxu0 %v16573_v47 }
0x3c19   :  { %v10939_v52 = vpop.f32.mrb[102].mxu1  ;;  %15021 = vmatprep.subr.bf16.mxu0 %v18452_v7 }
0x3c1a   :  { %v14390_v43 = vpop.f32.mrb[103].mxu1 }
0x3c1b   :  { %14400 = vmatmul.mubr.msk.f32.vlgmr.msra.gmra.mrb[116].mxu0 %vm200_vm1, %v17860_v50 }
0x3c1c   :  { %15023 = vmatpush3.bf16.msra.mxu0 %v16610_v41  ;;  %14421 = vmatprep.mubr.msk.f32.mxu0 %vm15877_vm0, %v18453_v33 }
0x3c1d   :  { %15024 = vmatprep.subr.bf16.mxu0 %v18452_v7 }
0x3c20   :  { %15026 = vmatpush3.bf16.msra.mxu0 %v16613_v17 }
0x3c21   :  { %15033 = vmatprep.subr.bf16.mxu0 %v18452_v7 }
0x3ce6   :  { %v10866_v14 = vpop.f32.mrb[114].mxu0 }
0x3ce7   :  { %v10867_v16 = vadd.f32 %v10866_v14, %v10772_v5  ;;  %v14379_v59 = vpop.f32.mrb[115].mxu0 }
0x3ce9   :  { %v10943_v6 = vadd.f32 %v10939_v52, %v10867_v16 }
0x3ceb   :  { %v10944_v53 = vadd.f32 %v18091_v42, %v10943_v6  ;;  %v18111_v6 = vld [vmem:[%s18407_s13] ss:$0 sm:$0xff] }
0x3ced   :  { %10952 = vrot.lane.b32.xlu1 %v10944_v53, %s15881_s19  ;;  %v12947_v8 = vmul.f32 -1.442695, %v10944_v53 }
0x3cee   :  { %v11048_v63 = vpop.f32.mrb[116].mxu0 }
0x3cef   :  { %v14401_v13 = vpop.f32.mrb[117].mxu0  ;;  %15441 = vpow2.f32 %v12947_v8 }
0x3cf9   :  { %v15442_v49 = vpop.eup %15441 }
0x3cfa   :  { %v10948_v11 = vadd.f32 1.0, %v15442_v49 }
0x3cfc   :  { %15443 = vrcp.f32 %v10948_v11 }
0x3d06   :  { %v15444_v32 = vpop.eup %15443 }
0x3d07   :  { %v10962_v5 = vsub.f32 1.0, %v15444_v32 }
0x3d5f   :  { %v10953_v18 = vpop.permute.xlu1 %10952 }
0x3d60   :  { %v10955_v29 = vmul.f32 %v15444_v32, %v10953_v18 }
0x3d62   :  { %10957 = vrot.lane.b32.xlu0 %v10955_v29, %s15882_s2 }
0x3dd4   :  { %v10958_v36 = vpop.permute.xlu0 %10957 }
0x3dd5   :  { %v10960_v26 = vadd.f32 %v10958_v36, %v10944_v53 }
0x3dd7   :  { %15445 = vtanh.f32 %v10960_v26 }
0x3de1   :  { %v15446_v31 = vpop.eup %15445 }
0x3de2   :  { %10964 = vrot.lane.b32.xlu1 %v15446_v31, %s15883_s5 }
0x3de6   :  { %10968 = vrot.lane.b32.xlu1 %v18056_v40, %s15881_s19 }
0x3e54   :  { %v10965_v62 = vpop.permute.xlu1 %10964 }
0x3e55   :  { %v10967_v57 = vmul.f32 %v10965_v62, %v10962_v5 }
0x3e58   :  { %v10969_v37 = vpop.permute.xlu1 %10968 }
0x3e59   :  { %v10971_v52 = vmul.f32 %v15444_v32, %v10969_v37 }
0x3e5b   :  { %v10972_v43 = vadd.f32 %v10971_v52, %v10967_v57 }
0x3e5d   :  { %10974 = vrot.lane.b32.xlu0 %v10972_v43, %s15883_s5 }
0x3ecf   :  { %v10975_v14 = vpop.permute.xlu0 %10974 }
0x3ed0   :  { %10977 = vst.msk [vmem:[#allocation23] sm:$0xff] %vm200_vm1, %v10975_v14  ;;  %14411 = vmatmul.mubr.msk.f32.vlgmr.msra.gmra.mrb[104].mxu1 %vm200_vm1, %v10975_v14 }
0x3ed1   :  { %15029 = vmatpush3.bf16.msra.mxu1 %v16170_v9  ;;  %14432 = vmatprep.mubr.msk.f32.mxu1 %vm15877_vm0, %v18453_v33 }
0x3ed2   :  { %15030 = vmatprep.subr.bf16.mxu1 %v18452_v7 }
0x3ed5   :  { %15032 = vmatpush3.bf16.msra.mxu1 %v16177_v15 }
0x3ed6   :  { %15039 = vmatprep.subr.bf16.mxu1 %v18452_v7 }
0x3fa3   :  { %v11120_v40 = vpop.f32.mrb[104].mxu1 }
0x3fa4   :  { %v11121_v16 = vadd.f32 %v11120_v40, %v11048_v63  ;;  %v14412_v59 = vpop.f32.mrb[105].mxu1 }
0x3fa6   :  { %v11124_v53 = vadd.f32 %v18111_v6, %v11121_v16 }
0x3fa8   :  { %11132 = vrot.lane.b32.xlu1 %v11124_v53, %s15881_s19  ;;  %v12950_v9 = vmul.f32 -1.442695, %v11124_v53 }
0x3faa   :  { %15447 = vpow2.f32 %v12950_v9 }
0x3fb4   :  { %v15448_v13 = vpop.eup %15447 }
0x3fb5   :  { %v11128_v8 = vadd.f32 1.0, %v15448_v13 }
0x3fb7   :  { %15449 = vrcp.f32 %v11128_v8 }
0x3fc1   :  { %v15450_v15 = vpop.eup %15449 }
0x3fc2   :  { %v11142_v36 = vsub.f32 1.0, %v15450_v15 }
0x401a   :  { %v11133_v49 = vpop.permute.xlu1 %11132 }
0x401b   :  { %v11135_v11 = vmul.f32 %v15450_v15, %v11133_v49 }
0x401d   :  { %11137 = vrot.lane.b32.xlu0 %v11135_v11, %s15882_s2 }
0x4021   :  { %11148 = vrot.lane.b32.xlu0 %v17860_v50, %s15881_s19 }
0x408f   :  { %v11138_v63 = vpop.permute.xlu0 %11137 }
0x4090   :  { %v11140_v32 = vadd.f32 %v11138_v63, %v11124_v53 }
0x4092   :  { %15451 = vtanh.f32 %v11140_v32 }
0x4093   :  { %v11149_v29 = vpop.permute.xlu0 %11148 }
0x4094   :  { %v11151_v31 = vmul.f32 %v15450_v15, %v11149_v29 }
0x409c   :  { %v15452_v18 = vpop.eup %15451 }
0x409d   :  { %11144 = vrot.lane.b32.xlu1 %v15452_v18, %s15883_s5 }
0x410f   :  { %v11145_v26 = vpop.permute.xlu1 %11144 }
0x4110   :  { %v11147_v62 = vmul.f32 %v11145_v26, %v11142_v36 }
0x4112   :  { %v11152_v5 = vadd.f32 %v11151_v31, %v11147_v62 }
0x4114   :  { %11154 = vrot.lane.b32.xlu1 %v11152_v5, %s15883_s5 }
0x4186   :  { %v11155_v37 = vpop.permute.xlu1 %11154 }
0x4187   :  { %11157 = vst.msk [vmem:[#allocation23 + $0x8] sm:$0xff] %vm200_vm1, %v11155_v37  ;;  %14422 = vmatmul.mubr.msk.f32.vlgmr.msra.gmra.mrb[118].mxu0 %vm200_vm1, %v11155_v37 }
0x4188   :  { %15035 = vmatpush3.bf16.msra.mxu0 %v16427_v55  ;;  %14439 = vmatprep.mubr.msk.f32.mxu0 %vm15877_vm0, %v18453_v33  ;;  %v18137_v55 = vld [vmem:[%s18409_s15] ss:$0 sm:$0xff] }
0x4189   :  { %15036 = vmatprep.subr.bf16.mxu0 %v18452_v7 }
0x418e   :  { %v18126_v50 = vld [vmem:[#allocation23 + $0x8] sm:$0xff] }
0x418f   :  { %14433 = vmatmul.mubr.msk.f32.vlgmr.msra.gmra.mrb[106].mxu1 %vm200_vm1, %v18126_v50 }
0x4190   :  { %15041 = vmatpush3.bf16.msra.mxu1 %v18457_v1  ;;  %14453 = vmatprep.mubr.msk.f32.mxu1 %vm15877_vm0, %v18453_v33 }
0x4191   :  { %15045 = vmatprep.subr.bf16.mxu1 %v18452_v7 }
0x425a   :  { %v11226_v57 = vpop.f32.mrb[118].mxu0 }
0x425b   :  { %v11227_v52 = vadd.f32 %v18137_v55, %v11226_v57  ;;  %v14423_v43 = vpop.f32.mrb[119].mxu0 }
0x425d   :  { %11231 = vst [vmem:[#allocation20 + $0x30] sm:$0xff] %v11227_v52 }
0x4262   :  { %v11304_v14 = vpop.f32.mrb[106].mxu1 }
0x4263   :  { %v11309_v40 = vcombine.high %v11304_v14, %v11304_v14  ;;  %v11316_v16 = vrot.slane %v11304_v14, %v16256_v38  ;;  %v14434_v1 = vpop.f32.mrb[107].mxu1 }
0x4265   :  { %v11324_v59 = vcombine.high %v11316_v16, %v11316_v16  ;;  %v11332_v53 = vrot.slane %v11316_v16, %v16256_v38  ;;  %v11323_v9 = vrot.slane %v11309_v40, %v16256_v38 }
0x4267   :  { %v11346_v13 = vrot.slane %v11324_v59, %v16256_v38  ;;  %v11354_v8 = vcombine.high %v11332_v53, %v11332_v53  ;;  %v11361_v15 = vrot.slane %v11332_v53, %v16262_v44  ;;  %v11339_v11 = vrot.slane %v11323_v9, %v16256_v38  ;;  %v18489_v53 = vld [vmem:[#allocation32_spill] sm:$0xff] }
0x4268   :  { %v11325_v18 = vcombine.high %v11323_v9, %v11323_v9 }
0x4269   :  { %v11365_v49 = vrot.slane %v11346_v13, %v16262_v44  ;;  %v11369_v63 = vrot.slane %v11354_v8, %v16262_v44  ;;  %v11398_v32 = vadd.f32 %v17877_v61, %v11361_v15  ;;  %v11356_v29 = vcombine.high %v11346_v13, %v11346_v13 }
0x426a   :  { %v11399_v36 = vadd.f32 %v17880_v10, %v11361_v15  ;;  %v11377_v62 = vrot.slane %v11339_v11, %v16262_v44  ;;  %v11353_v37 = vrot.slane %v11325_v18, %v16256_v38 }
0x426b   :  { %v11400_v26 = vadd.f32 %v17883_v19, %v11365_v49  ;;  %v11401_v31 = vadd.f32 %v17886_v20, %v11365_v49  ;;  %v11402_v5 = vadd.f32 %v17890_v51, %v11369_v63  ;;  %15453 = vtanh.f32 %v11398_v32  ;;  %v18491_v32 = vld [vmem:[#allocation34_spill] sm:$0xff] }
0x426c   :  { %v11373_v57 = vrot.slane %v11356_v29, %v16262_v44  ;;  %15455 = vtanh.f32 %v11399_v36  ;;  %v11403_v61 = vadd.f32 %v17895_v12, %v11369_v63  ;;  %v11406_v10 = vadd.f32 %v17898_v25, %v11377_v62  ;;  %v18166_v25 = vld [vmem:[%s18400_s6] ss:$0 sm:$0xff]  ;;  %v18492_v36 = vld [vmem:[#allocation35_spill] sm:$0xff]  ;;  %s15884_s6 = smov [#allocation21]  }
0x426d   :  { %15457 = vtanh.f32 %v11400_v26  ;;  %v11355_v19 = vcombine.high %v11339_v11, %v11339_v11  ;;  %v11381_v20 = vrot.slane %v11353_v37, %v16262_v44  ;;  %v11357_v51 = vcombine.high %v11353_v37, %v11353_v37 }
0x426e   :  { %15459 = vtanh.f32 %v11401_v31  ;;  %v11404_v52 = vadd.f32 %v17902_v34, %v11373_v57  ;;  %v11407_v43 = vadd.f32 %v17905_v56, %v11377_v62  ;;  %v11405_v56 = vadd.f32 %v18489_v53, %v11373_v57 }
0x426f   :  { %15461 = vtanh.f32 %v11402_v5  ;;  %v11385_v14 = vrot.slane %v11355_v19, %v16262_v44  ;;  %v11408_v40 = vadd.f32 %v17909_v2, %v11381_v20  ;;  %v11389_v59 = vrot.slane %v11357_v51, %v16262_v44  ;;  %v18490_v2 = vld [vmem:[#allocation33_spill] sm:$0xff] }
0x4270   :  { %15463 = vtanh.f32 %v11403_v61  ;;  %v11409_v18 = vadd.f32 %v18491_v32, %v11381_v20 }
0x4271   :  { %15465 = vtanh.f32 %v11406_v10  ;;  %v11410_v8 = vadd.f32 %v18490_v2, %v11385_v14  ;;  %v11412_v26 = vadd.f32 %v18492_v36, %v11389_v59  ;;  %v18493_v10 = vld [vmem:[#allocation36_spill] sm:$0xff] }
0x4272   :  { %15467 = vtanh.f32 %v11404_v52  ;;  %v11411_v19 = vadd.f32 %v18493_v10, %v11385_v14 }
0x4273   :  { %15469 = vtanh.f32 %v11407_v43 }
0x4274   :  { %15471 = vtanh.f32 %v11408_v40 }
0x4275   :  { %v15454_v12 = vpop.eup %15453  ;;  %15473 = vtanh.f32 %v11405_v56 }
0x4276   :  { %v15456_v16 = vpop.eup %15455  ;;  %v11430_v1 = vmul.f32 %v18166_v25, %v15454_v12  ;;  %15475 = vtanh.f32 %v11410_v8 }
0x4277   :  { %v15458_v34 = vpop.eup %15457  ;;  %v11431_v9 = vmul.f32 %v18166_v25, %v15456_v16  ;;  %15477 = vtanh.f32 %v11409_v18  ;;  %v18494_v16 = vld [vmem:[#allocation37_spill] sm:$0xff] }
0x4278   :  { %v15460_v13 = vpop.eup %15459  ;;  %v11446_v15 = vsel %vm200_vm1, %v11430_v1, 0.0  ;;  %v11432_v49 = vmul.f32 %v18166_v25, %v15458_v34  ;;  %15479 = vtanh.f32 %v11412_v26  ;;  %v11413_v1 = vadd.f32 %v18494_v16, %v11389_v59 }
0x4279   :  { %v15462_v11 = vpop.eup %15461  ;;  %v11449_v63 = vsel %vm200_vm1, %v11431_v9, 0.0  ;;  %11447 = vadd.xlane.f32.xlu0 %v11446_v15  ;;  %v11433_v62 = vmul.f32 %v18166_v25, %v15460_v13  ;;  %15481 = vtanh.f32 %v11411_v19 }
0x427a   :  { %11450 = vadd.xlane.f32.xlu1 %v11449_v63  ;;  %v11434_v44 = vmul.f32 %v18166_v25, %v15462_v11  ;;  %v15464_v29 = vpop.eup %15463  ;;  %v11452_v31 = vsel %vm200_vm1, %v11432_v49, 0.0  ;;  %15483 = vtanh.f32 %v11413_v1 }
0x427b   :  { %v15466_v5 = vpop.eup %15465  ;;  %v11455_v20 = vsel %vm200_vm1, %v11433_v62, 0.0  ;;  %v11435_v52 = vmul.f32 %v18166_v25, %v15464_v29 }
0x427c   :  { %v11458_v37 = vsel %vm200_vm1, %v11434_v44, 0.0  ;;  %v15468_v57 = vpop.eup %15467  ;;  %v11438_v61 = vmul.f32 %v18166_v25, %v15466_v5 }
0x427d   :  { %11453 = vadd.xlane.f32.xlu0 %v11452_v31  ;;  %v15470_v51 = vpop.eup %15469  ;;  %v11436_v40 = vmul.f32 %v18166_v25, %v15468_v57  ;;  %v11461_v34 = vsel %vm200_vm1, %v11435_v52, 0.0 }
0x427e   :  { %11459 = vadd.xlane.f32.xlu1 %v11458_v37  ;;  %v11470_v43 = vsel %vm200_vm1, %v11438_v61, 0.0  ;;  %v15472_v12 = vpop.eup %15471  ;;  %v11439_v14 = vmul.f32 %v18166_v25, %v15470_v51 }
0x427f   :  { %v15474_v53 = vpop.eup %15473  ;;  %v11464_v56 = vsel %vm200_vm1, %v11436_v40, 0.0  ;;  %v11440_v9 = vmul.f32 %v18166_v25, %v15472_v12 }
0x4280   :  { %v15476_v13 = vpop.eup %15475  ;;  %v11473_v2 = vsel %vm200_vm1, %v11439_v14, 0.0  ;;  %v11437_v8 = vmul.f32 %v18166_v25, %v15474_v53 }
0x4281   :  { %11456 = vadd.xlane.f32.xlu0 %v11455_v20  ;;  %v15478_v15 = vpop.eup %15477  ;;  %v11476_v59 = vsel %vm200_vm1, %v11440_v9, 0.0  ;;  %v11442_v49 = vmul.f32 %v18166_v25, %v15476_v13 }
0x4282   :  { %11471 = vadd.xlane.f32.xlu1 %v11470_v43  ;;  %v15480_v11 = vpop.eup %15479  ;;  %v11467_v63 = vsel %vm200_vm1, %v11437_v8, 0.0  ;;  %v11441_v44 = vmul.f32 %v18166_v25, %v15478_v15 }
0x4283   :  { %v15482_v32 = vpop.eup %15481  ;;  %v11482_v18 = vsel %vm200_vm1, %v11442_v49, 0.0  ;;  %v11444_v29 = vmul.f32 %v18166_v25, %v15480_v11 }
0x4284   :  { %v11479_v36 = vsel %vm200_vm1, %v11441_v44, 0.0  ;;  %v11443_v26 = vmul.f32 %v18166_v25, %v15482_v32  ;;  %v15484_v31 = vpop.eup %15483 }
0x4285   :  { %11462 = vadd.xlane.f32.xlu0 %v11461_v34  ;;  %v11488_v62 = vsel %vm200_vm1, %v11444_v29, 0.0  ;;  %v11445_v37 = vmul.f32 %v18166_v25, %v15484_v31 }
0x4286   :  { %11465 = vadd.xlane.f32.xlu1 %v11464_v56  ;;  %v11485_v5 = vsel %vm200_vm1, %v11443_v26, 0.0 }
0x4287   :  { %v11491_v57 = vsel %vm200_vm1, %v11445_v37, 0.0 }
0x4289   :  { %11474 = vadd.xlane.f32.xlu0 %v11473_v2 }
0x428a   :  { %11477 = vadd.xlane.f32.xlu1 %v11476_v59 }
0x428d   :  { %11468 = vadd.xlane.f32.xlu0 %v11467_v63 }
0x428e   :  { %11483 = vadd.xlane.f32.xlu1 %v11482_v18 }
0x4291   :  { %11480 = vadd.xlane.f32.xlu0 %v11479_v36 }
0x4292   :  { %11489 = vadd.xlane.f32.xlu1 %v11488_v62 }
0x4295   :  { %11486 = vadd.xlane.f32.xlu0 %v11485_v5 }
0x4299   :  { %11492 = vadd.xlane.f32.xlu0 %v11491_v57 }
0x4306   :  { %v11448_v61 = vpop.xlane.xlu0 %11447 }
0x4307   :  { %v11451_v10 = vpop.xlane.xlu1 %11450  ;;  %v11513_v53 = vrot.slane %v11448_v61, %v16381_v3 }
0x4308   :  { %v11517_v25 = vrot.slane %v11451_v10, %v16384_v4 }
0x430a   :  { %v11454_v19 = vpop.xlane.xlu0 %11453  ;;  %v11518_v11 = vsel %vm797_vm2, %v11517_v25, %v11513_v53 }
0x430b   :  { %v11460_v20 = vpop.xlane.xlu1 %11459  ;;  %v11522_v56 = vrot.slane %v11454_v19, %v16381_v3 }
0x430c   :  { %v11531_v13 = vrot.slane %v11460_v20, %v16381_v3 }
0x430e   :  { %v11457_v52 = vpop.xlane.xlu0 %11456 }
0x430f   :  { %v11472_v51 = vpop.xlane.xlu1 %11471  ;;  %v11526_v34 = vrot.slane %v11457_v52, %v16384_v4 }
0x4310   :  { %v11549_v62 = vrot.slane %v11472_v51, %v16381_v3 }
0x4311   :  { %v11527_v15 = vsel %vm797_vm2, %v11526_v34, %v11522_v56 }
0x4312   :  { %v11463_v43 = vpop.xlane.xlu0 %11462  ;;  %v11582_v32 = vsel %vm862_vm3, %v11527_v15, %v11518_v11 }
0x4313   :  { %v11466_v40 = vpop.xlane.xlu1 %11465  ;;  %v11535_v14 = vrot.slane %v11463_v43, %v16384_v4 }
0x4314   :  { %v11540_v59 = vrot.slane %v11466_v40, %v16381_v3 }
0x4315   :  { %v11536_v49 = vsel %vm797_vm2, %v11535_v14, %v11531_v13 }
0x4316   :  { %v11475_v12 = vpop.xlane.xlu0 %11474  ;;  %v11583_v36 = vsel %vm864_vm4, %v11536_v49, %v11582_v32 }
0x4317   :  { %v11478_v16 = vpop.xlane.xlu1 %11477  ;;  %v11553_v18 = vrot.slane %v11475_v12, %v16384_v4 }
0x4318   :  { %v11558_v26 = vrot.slane %v11478_v16, %v16381_v3 }
0x4319   :  { %v11554_v10 = vsel %vm797_vm2, %v11553_v18, %v11549_v62 }
0x431a   :  { %v11469_v1 = vpop.xlane.xlu0 %11468 }
0x431b   :  { %v11544_v9 = vrot.slane %v11469_v1, %v16384_v4  ;;  %v11484_v2 = vpop.xlane.xlu1 %11483 }
0x431c   :  { %v11567_v37 = vrot.slane %v11484_v2, %v16381_v3 }
0x431d   :  { %v11545_v63 = vsel %vm797_vm2, %v11544_v9, %v11540_v59 }
0x431e   :  { %v11481_v8 = vpop.xlane.xlu0 %11480  ;;  %v11584_v5 = vsel %vm866_vm5, %v11545_v63, %v11583_v36 }
0x431f   :  { %v11562_v44 = vrot.slane %v11481_v8, %v16384_v4  ;;  %v11490_v57 = vpop.xlane.xlu1 %11489  ;;  %v11585_v52 = vsel %vm868_vm6, %v11554_v10, %v11584_v5 }
0x4320   :  { %v11576_v43 = vrot.slane %v11490_v57, %v16381_v3 }
0x4321   :  { %v11563_v61 = vsel %vm797_vm2, %v11562_v44, %v11558_v26 }
0x4322   :  { %v11487_v29 = vpop.xlane.xlu0 %11486  ;;  %v11586_v51 = vsel %vm870_vm7, %v11563_v61, %v11585_v52 }
0x4323   :  { %v11571_v31 = vrot.slane %v11487_v29, %v16384_v4 }
0x4325   :  { %v11572_v19 = vsel %vm797_vm2, %v11571_v31, %v11567_v37 }
0x4326   :  { %v11493_v20 = vpop.xlane.xlu0 %11492  ;;  %v11587_v16 = vsel %vm872_vm8, %v11572_v19, %v11586_v51 }
0x4327   :  { %v11580_v40 = vrot.slane %v11493_v20, %v16384_v4 }
0x4329   :  { %v11581_v12 = vsel %vm797_vm2, %v11580_v40, %v11576_v43 }
0x432a   :  { %v11588_v1 = vsel %vm874_vm9, %v11581_v12, %v11587_v16 }
0x432b   :  { %v11590_v34 = vsel %vm16416_vm11, %v11588_v1, -1000000.0 }
0x432c   :  { %v11591_v14 = vsel %vm878_vm10, %v11590_v34, -inf }
0x432d   :  { %11592 = vmax.xlane.f32.xlu1 %v11591_v14 }
0x43ba   :  { %v11593_v25 = vpop.xlane.xlu1 %11592 }
0x43bb   :  { %v11594_v53 = vsub.f32 %v11590_v34, %v11593_v25 }
0x43bd   :  { %v11595_v56 = vmul.f32 1.442695, %v11594_v53 }
0x43bf   :  { %15485 = vpow2.f32 %v11595_v56 }
0x43c9   :  { %v15486_v3 = vpop.eup %15485 }
0x43ca   :  { %v11597_v4 = vsel %vm878_vm10, %v15486_v3, 0.0 }
0x43cb   :  { %11598 = vadd.xlane.f32.xlu0 %v11597_v4 }
0x4458   :  { %v11599_v9 = vpop.xlane.xlu0 %11598 }
0x4459   :  { %15487 = vrcp.f32 %v11599_v9 }
0x4463   :  { %v15488_v13 = vpop.eup %15487 }
0x4464   :  { %v11601_v2 = vmul.f32 %v15488_v13, %v15486_v3 }
0x4466   :  { %11603 = vst.msk [vmem:[#allocation21 + $0x38] sm:$0xff] %vm878_vm10, %v11601_v2  ;;  %v11612_v0 = vrot.slane %v11601_v2, %v16256_v38  ;;  %v11605_v8 = vcombine.high %v11601_v2, %v11601_v2 }
0x4468   :  { %v11628_v15 = vrot.slane %v11612_v0, %v16256_v38  ;;  %v11620_v59 = vcombine.high %v11612_v0, %v11612_v0  ;;  %v11619_v11 = vrot.slane %v11605_v8, %v16256_v38 }
0x446a   :  { %14440 = vmatmul.mubr.msk.f32.vlgmr.msra.gmra.mrb[120].mxu0 %vm878_vm10, %v11628_v15  ;;  %v11650_v49 = vcombine.high %v11628_v15, %v11628_v15  ;;  %v11642_v63 = vrot.slane %v11620_v59, %v16256_v38 }
0x446b   :  { %15038 = vmatpush3.bf16.msra.mxu0 %v16441_v35  ;;  %14446 = vmatprep.mubr.msk.f32.mxu0 %vm15877_vm0, %v18453_v33  ;;  %v11635_v35 = vrot.slane %v11619_v11, %v16256_v38 }
0x446c   :  { %14454 = vmatmul.mubr.msk.f32.vlgmr.msra.gmra.mrb[108].mxu1 %vm878_vm10, %v11650_v49  ;;  %15042 = vmatprep.subr.bf16.mxu0 %v18452_v7  ;;  %v11652_v44 = vcombine.high %v11642_v63, %v11642_v63 }
0x446d   :  { %15047 = vmatpush3.bf16.msra.mxu1 %v16474_v21  ;;  %14467 = vmatprep.mubr.msk.f32.mxu1 %vm15877_vm0, %v18453_v33  ;;  %v11621_v21 = vcombine.high %v11619_v11, %v11619_v11  ;;  %v11651_v32 = vcombine.high %v11635_v35, %v11635_v35 }
0x446e   :  { %14447 = vmatmul.mubr.msk.f32.vlgmr.msra.gmra.mrb[122].mxu0 %vm878_vm10, %v11642_v63  ;;  %15051 = vmatprep.subr.bf16.mxu1 %v18452_v7 }
0x446f   :  { %15044 = vmatpush3.bf16.msra.mxu0 %v16462_v39  ;;  %14460 = vmatprep.mubr.msk.f32.mxu0 %vm15877_vm0, %v18453_v33  ;;  %v11649_v39 = vrot.slane %v11621_v21, %v16256_v38  ;;  %v11233_v38 = vld [vmem:[#allocation3 + $0x38] sm:$0xff] }
0x4470   :  { %14468 = vmatmul.mubr.msk.f32.vlgmr.msra.gmra.mrb[110].mxu1 %vm878_vm10, %v11635_v35  ;;  %15048 = vmatprep.subr.bf16.mxu0 %v18452_v7 }
0x4471   :  { %15053 = vmatpush3.bf16.msra.mxu1 %v16493_v24  ;;  %14481 = vmatprep.mubr.msk.f32.mxu1 %vm15877_vm0, %v18453_v33 }
0x4472   :  { %14461 = vmatmul.mubr.msk.f32.vlgmr.msra.gmra.mrb[124].mxu0 %vm878_vm10, %v11652_v44  ;;  %15057 = vmatprep.subr.bf16.mxu1 %v18452_v7 }
0x4473   :  { %15050 = vmatpush3.bf16.msra.mxu0 %v16483_v23  ;;  %14474 = vmatprep.mubr.msk.f32.mxu0 %vm15877_vm0, %v18453_v33  ;;  %v11653_v23 = vcombine.high %v11649_v39, %v11649_v39 }
0x4474   :  { %14482 = vmatmul.mubr.msk.f32.vlgmr.msra.gmra.mrb[112].mxu1 %vm878_vm10, %v11651_v32  ;;  %15054 = vmatprep.subr.bf16.mxu0 %v18452_v7 }
0x4475   :  { %15059 = vmatpush3.bf16.msra.mxu1 %v16504_v28  ;;  %14499 = vmatprep.mubr.msk.f32.mxu1 %vm15877_vm0, %v18453_v33 }
0x4476   :  { %14475 = vmatmul.mubr.msk.f32.vlgmr.msra.gmra.mrb[126].mxu0 %vm878_vm10, %v11649_v39  ;;  %15060 = vmatprep.subr.bf16.mxu1 %v18452_v7 }
0x4477   :  { %15056 = vmatpush3.bf16.msra.mxu0 %v16433_v54  ;;  %14488 = vmatprep.mubr.msk.f32.mxu0 %vm15877_vm0, %v18453_v33  ;;  %v18300_v54 = vld [vmem:[#allocation23] sm:$0xff] }
0x4478   :  { %15063 = vmatprep.subr.bf16.mxu0 %v18452_v7 }
0x4479   :  { %15062 = vmatpush3.bf16.msra.mxu1 %v16508_v60 }
0x447a   :  { %14489 = vmatmul.mubr.msk.f32.vlgmr.msra.gmra.mrb[128].mxu0 %vm878_vm10, %v11653_v23  ;;  %15069 = vmatprep.subr.bf16.mxu1 %v18452_v7 }
0x447b   :  { %15065 = vmatpush3.bf16.msra.mxu0 %v16517_v45  ;;  %14510 = vmatprep.mubr.msk.f32.mxu0 %vm15877_vm0, %v18453_v33 }
0x447c   :  { %14500 = vmatmul.mubr.msk.f32.vlgmr.msra.gmra.mrb[114].mxu1 %vm200_vm1, %v11233_v38  ;;  %15066 = vmatprep.subr.bf16.mxu0 %v18452_v7 }
0x447d   :  { %15071 = vmatpush3.bf16.msra.mxu1 %v16520_v48  ;;  %14521 = vmatprep.mubr.msk.f32.mxu1 %vm15877_vm0, %v18453_v33 }
0x447e   :  { %15072 = vmatprep.subr.bf16.mxu1 %v18452_v7 }
0x447f   :  { %15068 = vmatpush3.bf16.msra.mxu0 %v16533_v58 }
0x4480   :  { %15075 = vmatprep.subr.bf16.mxu0 %v18452_v7 }
0x4481   :  { %15074 = vmatpush3.bf16.msra.mxu1 %v16538_v30 }
0x4482   :  { %15081 = vmatprep.subr.bf16.mxu1 %v18452_v7 }
0x4484   :  { %14522 = vmatmul.mubr.msk.f32.vlgmr.msra.gmra.mrb[116].mxu1 %vm200_vm1, %v18300_v54 }
0x4485   :  { %15083 = vmatpush3.bf16.msra.mxu1 %v16570_v27  ;;  %14543 = vmatprep.mubr.msk.f32.mxu1 %vm15877_vm0, %v18453_v33 }
0x4486   :  { %15084 = vmatprep.subr.bf16.mxu1 %v18452_v7 }
0x4489   :  { %15086 = vmatpush3.bf16.msra.mxu1 %v16577_v46 }
0x453d   :  { %v11722_v24 = vpop.f32.mrb[120].mxu0 }
0x453e   :  { %v14441_v28 = vpop.f32.mrb[121].mxu0 }
0x453f   :  { %v11866_v60 = vpop.f32.mrb[108].mxu1 }
0x4540   :  { %v14455_v45 = vpop.f32.mrb[109].mxu1  ;;  %v12314_v18 = vrot.slane %v11866_v60, 6 }
0x4541   :  { %v11794_v48 = vpop.f32.mrb[122].mxu0 }
0x4542   :  { %v12312_v58 = vrot.slane %v11794_v48, 7  ;;  %v14448_v30 = vpop.f32.mrb[123].mxu0 }
0x4543   :  { %v12010_v29 = vpop.f32.mrb[110].mxu1 }
0x4544   :  { %v12313_v36 = vsel %vm862_vm3, %v12312_v58, %v11722_v24  ;;  %v14469_v26 = vpop.f32.mrb[111].mxu1  ;;  %v12318_v37 = vrot.slane %v12010_v29, 4 }
0x4545   :  { %v11938_v27 = vpop.f32.mrb[124].mxu0  ;;  %v12315_v31 = vsel %vm864_vm4, %v12314_v18, %v12313_v36 }
0x4546   :  { %v12316_v62 = vrot.slane %v11938_v27, 5  ;;  %v14462_v5 = vpop.f32.mrb[125].mxu0 }
0x4547   :  { %v12154_v57 = vpop.f32.mrb[112].mxu1 }
0x4548   :  { %v12317_v46 = vsel %vm866_vm5, %v12316_v62, %v12315_v31  ;;  %v14483_v61 = vpop.f32.mrb[113].mxu1  ;;  %v12322_v43 = vrot.slane %v12154_v57, 2 }
0x4549   :  { %v12082_v10 = vpop.f32.mrb[126].mxu0  ;;  %v12319_v19 = vsel %vm868_vm6, %v12318_v37, %v12317_v46 }
0x454a   :  { %v12320_v20 = vrot.slane %v12082_v10, 3  ;;  %v14476_v52 = vpop.f32.mrb[127].mxu0 }
0x454c   :  { %v12321_v40 = vsel %vm870_vm7, %v12320_v20, %v12319_v19 }
0x454d   :  { %v12226_v51 = vpop.f32.mrb[128].mxu0  ;;  %v12323_v12 = vsel %vm872_vm8, %v12322_v43, %v12321_v40 }
0x454e   :  { %v12324_v16 = vrot.slane %v12226_v51, 1  ;;  %v14490_v1 = vpop.f32.mrb[129].mxu0 }
0x454f   :  { %v12300_v34 = vpop.f32.mrb[114].mxu1 }
0x4550   :  { %v12325_v14 = vsel %vm874_vm9, %v12324_v16, %v12323_v12  ;;  %v14501_v25 = vpop.f32.mrb[115].mxu1 }
0x4551   :  { %14511 = vmatmul.mubr.msk.f32.vlgmr.msra.gmra.mrb[130].mxu0 %vm200_vm1, %v12325_v14 }
0x4552   :  { %15077 = vmatpush3.bf16.msra.mxu0 %v16568_v22  ;;  %14532 = vmatprep.mubr.msk.f32.mxu0 %vm15877_vm0, %v18453_v33 }
0x4553   :  { %15078 = vmatprep.subr.bf16.mxu0 %v18452_v7 }
0x4556   :  { %15080 = vmatpush3.bf16.msra.mxu0 %v16573_v47 }
0x4557   :  { %v12467_v53 = vpop.f32.mrb[116].mxu1  ;;  %15087 = vmatprep.subr.bf16.mxu0 %v18452_v7 }
0x4558   :  { %v14523_v56 = vpop.f32.mrb[117].mxu1 }
0x4559   :  { %14533 = vmatmul.mubr.msk.f32.vlgmr.msra.gmra.mrb[132].mxu0 %vm200_vm1, %v18126_v50 }
0x455a   :  { %15089 = vmatpush3.bf16.msra.mxu0 %v16610_v41  ;;  %14554 = vmatprep.mubr.msk.f32.mxu0 %vm15877_vm0, %v18453_v33 }
0x455b   :  { %15090 = vmatprep.subr.bf16.mxu0 %v18452_v7 }
0x455e   :  { %15092 = vmatpush3.bf16.msra.mxu0 %v16613_v17 }
0x4624   :  { %v12394_v22 = vpop.f32.mrb[130].mxu0 }
0x4625   :  { %v12395_v3 = vadd.f32 %v12394_v22, %v12300_v34  ;;  %v14512_v4 = vpop.f32.mrb[131].mxu0 }
0x4627   :  { %v12471_v47 = vadd.f32 %v12467_v53, %v12395_v3 }
0x4629   :  { %v12472_v9 = vadd.f32 %v18091_v42, %v12471_v47 }
0x462b   :  { %12480 = vrot.lane.b32.xlu1 %v12472_v9, %s15881_s19  ;;  %v12964_v0 = vmul.f32 -1.442695, %v12472_v9 }
0x462c   :  { %v12576_v13 = vpop.f32.mrb[132].mxu0 }
0x462d   :  { %v14534_v2 = vpop.f32.mrb[133].mxu0  ;;  %15489 = vpow2.f32 %v12964_v0 }
0x4637   :  { %v15490_v41 = vpop.eup %15489 }
0x4638   :  { %v12476_v8 = vadd.f32 1.0, %v15490_v41 }
0x463a   :  { %15491 = vrcp.f32 %v12476_v8 }
0x4644   :  { %v15492_v33 = vpop.eup %15491 }
0x4645   :  { %v12490_v11 = vsub.f32 1.0, %v15492_v33 }
0x469d   :  { %v12481_v15 = vpop.permute.xlu1 %12480 }
0x469e   :  { %v12483_v7 = vmul.f32 %v15492_v33, %v12481_v15 }
0x46a0   :  { %12485 = vrot.lane.b32.xlu0 %v12483_v7, %s15882_s2 }
0x4712   :  { %v12486_v17 = vpop.permute.xlu0 %12485 }
0x4713   :  { %v12488_v59 = vadd.f32 %v12486_v17, %v12472_v9 }
0x4715   :  { %15493 = vtanh.f32 %v12488_v59 }
0x471f   :  { %v15494_v49 = vpop.eup %15493 }
0x4720   :  { %12492 = vrot.lane.b32.xlu1 %v15494_v49, %s15883_s5 }
0x4724   :  { %12496 = vrot.lane.b32.xlu1 %v18300_v54, %s15881_s19 }
0x4792   :  { %v12493_v42 = vpop.permute.xlu1 %12492 }
0x4793   :  { %v12495_v35 = vmul.f32 %v12493_v42, %v12490_v11 }
0x4796   :  { %v12497_v63 = vpop.permute.xlu1 %12496 }
0x4797   :  { %v12499_v44 = vmul.f32 %v15492_v33, %v12497_v63 }
0x4799   :  { %v12500_v21 = vadd.f32 %v12499_v44, %v12495_v35 }
0x479b   :  { %12502 = vrot.lane.b32.xlu0 %v12500_v21, %s15883_s5 }
0x480d   :  { %v12503_v32 = vpop.permute.xlu0 %12502 }
0x480e   :  { %12505 = vst.msk [vmem:[#allocation23] sm:$0xff] %vm200_vm1, %v12503_v32  ;;  %14544 = vmatmul.mubr.msk.f32.vlgmr.msra.gmra.mrb[118].mxu1 %vm200_vm1, %v12503_v32 }
0x48e1   :  { %v12648_v39 = vpop.f32.mrb[118].mxu1 }
0x48e2   :  { %v12649_v23 = vadd.f32 %v12648_v39, %v12576_v13  ;;  %v14545_v38 = vpop.f32.mrb[119].mxu1 }
0x48e4   :  { %v12652_v24 = vadd.f32 %v18111_v6, %v12649_v23 }
0x48e6   :  { %12660 = vrot.lane.b32.xlu1 %v12652_v24, %s15881_s19  ;;  %v12967_v54 = vmul.f32 -1.442695, %v12652_v24 }
0x48e8   :  { %15495 = vpow2.f32 %v12967_v54 }
0x48f2   :  { %v15496_v28 = vpop.eup %15495 }
0x48f3   :  { %v12656_v60 = vadd.f32 1.0, %v15496_v28 }
0x48f5   :  { %15497 = vrcp.f32 %v12656_v60 }
0x48ff   :  { %v15498_v45 = vpop.eup %15497 }
0x4900   :  { %v12670_v36 = vsub.f32 1.0, %v15498_v45 }
0x4958   :  { %v12661_v48 = vpop.permute.xlu1 %12660 }
0x4959   :  { %v12663_v58 = vmul.f32 %v15498_v45, %v12661_v48 }
0x495b   :  { %12665 = vrot.lane.b32.xlu0 %v12663_v58, %s15882_s2 }
0x495f   :  { %12676 = vrot.lane.b32.xlu0 %v18126_v50, %s15881_s19  ;;  %s12777_s19 = sshll.u32 %s15884_s6, 4  ;;  %s12778_s19 = int_to_ptr.vmem [resolvable:$true] %s12777_s19 }
0x4960   :  { %s15782_s2 = scalar_lea.vmem %s12778_s19, 1024  ;;  %p15787_p11 = scmp.lt.s32.totalorder %s12778_s19, %s12778_s19 }
0x4961   :  { %p15783_p10 = scmp.ne.s32.totalorder %s12778_s19, %s15782_s2  ;;  %p15788_p12 = scmp.lt.s32.totalorder %s15782_s2, %s15782_s2 }
0x4963   :  { %p15789_p13 = por %p15788_p12, %p15787_p11 }
0x4965   :  { %p15790_p0 = pnand %p15789_p13, %p15783_p10 }
0x49cd   :  { %v12666_v30 = vpop.permute.xlu0 %12665 }
0x49ce   :  { %v12668_v18 = vadd.f32 %v12666_v30, %v12652_v24 }
0x49d0   :  { %15499 = vtanh.f32 %v12668_v18 }
0x49d1   :  { %v12677_v6 = vpop.permute.xlu0 %12676 }
0x49d2   :  { %v12679_v27 = vmul.f32 %v15498_v45, %v12677_v6 }
0x49da   :  { %v15500_v29 = vpop.eup %15499 }
0x49db   :  { %12672 = vrot.lane.b32.xlu1 %v15500_v29, %s15883_s5 }
0x4a4d   :  { %v12673_v26 = vpop.permute.xlu1 %12672 }
0x4a4e   :  { %v12675_v31 = vmul.f32 %v12673_v26, %v12670_v36 }
0x4a50   :  { %v12680_v62 = vadd.f32 %v12679_v27, %v12675_v31 }
0x4a52   :  { %12682 = vrot.lane.b32.xlu1 %v12680_v62, %s15883_s5 }
0x4ac4   :  { %v12683_v5 = vpop.permute.xlu1 %12682 }
0x4ac5   :  { %12685 = vst.msk [vmem:[#allocation23 + $0x8] sm:$0xff] %vm200_vm1, %v12683_v5  ;;  %14555 = vmatmul.mubr.msk.f32.vlgmr.msra.gmra.mrb[134].mxu0 %vm200_vm1, %v12683_v5 }
0x4ac6   :  { %15793 = shalt.err (!%p15790_p0)
}
0x4ac7   :  { %s15794_s30 = scalar_lea.hbm %s18411_s17, 1024 }
0x4ac8   :  { %p15795_p1 = scmp.ne.s32.totalorder %s18411_s17, %s15794_s30  ;;  %p15798_p2 = scmp.lt.u32.totalorder %s15794_s30, %s18411_s17 }
0x4aca   :  { %p15800_p3 = pnand %p15798_p2, %p15795_p1 }
0x4acc   :  { %15803 = shalt.err (!%p15800_p3)
}
0x4acd   :  { %12783 = dma.vmem_to_hbm [thread:$0]  %s12778_s19, 1024, %s18411_s17, [#allocation22], %s15866_s25, %s15866_s25, %s15867_s26  }
0x4ace   :  { %s15885_s11 = smov [#allocation23]  }
0x4acf   :  { %s12789_s27 = sshll.u32 %s15885_s11, 4  ;;  %s12790_s27 = int_to_ptr.vmem [resolvable:$true] %s12789_s27 }
0x4ad0   :  { %s15804_s20 = scalar_lea.vmem %s12790_s27, 256  ;;  %p15809_p5 = scmp.lt.s32.totalorder %s12790_s27, %s12790_s27 }
0x4ad1   :  { %p15805_p4 = scmp.ne.s32.totalorder %s12790_s27, %s15804_s20  ;;  %p15810_p6 = scmp.lt.s32.totalorder %s15804_s20, %s15804_s20 }
0x4ad3   :  { %p15811_p7 = por %p15810_p6, %p15809_p5 }
0x4ad5   :  { %p15812_p8 = pnand %p15811_p7, %p15805_p4 }
0x4ad7   :  { %15815 = shalt.err (!%p15812_p8)
}
0x4ad8   :  { %s15816_s21 = scalar_lea.hbm %s18412_s18, 256 }
0x4ad9   :  { %p15817_p9 = scmp.ne.s32.totalorder %s18412_s18, %s15816_s21  ;;  %p15820_p10 = scmp.lt.u32.totalorder %s15816_s21, %s18412_s18 }
0x4adb   :  { %p15822_p11 = pnand %p15820_p10, %p15817_p9 }
0x4add   :  { %15825 = shalt.err (!%p15822_p11)
}
0x4ade   :  { %12795 = dma.vmem_to_hbm [thread:$0]  %s12790_s27, 256, %s18412_s18, [#allocation22], %s15866_s25, %s15866_s25, %s15867_s26  }
0x4adf   :  { %s15886_s13 = smov [#allocation20]  }
0x4ae0   :  { %s12765_s14 = sshll.u32 %s15886_s13, 4  ;;  %s12766_s14 = int_to_ptr.vmem [resolvable:$true] %s12765_s14 }
0x4ae1   :  { %s15826_s15 = scalar_lea.vmem %s12766_s14, 1024  ;;  %p15831_p13 = scmp.lt.s32.totalorder %s12766_s14, %s12766_s14 }
0x4ae2   :  { %p15827_p12 = scmp.ne.s32.totalorder %s12766_s14, %s15826_s15  ;;  %p15832_p0 = scmp.lt.s32.totalorder %s15826_s15, %s15826_s15 }
0x4ae4   :  { %p15833_p1 = por %p15832_p0, %p15831_p13 }
0x4ae6   :  { %p15834_p2 = pnand %p15833_p1, %p15827_p12 }
0x4b98   :  { %v12754_v50 = vpop.f32.mrb[134].mxu0 }
0x4b99   :  { %v12755_v37 = vadd.f32 %v18137_v55, %v12754_v50  ;;  %v14556_v57 = vpop.f32.mrb[135].mxu0 }
0x4b9b   :  { %12759 = vst [vmem:[#allocation20 + $0x38] sm:$0xff] %v12755_v37 }
0x4b9c   :  { %15837 = shalt.err (!%p15834_p2)
}
0x4b9d   :  { %s18495_s19 = sld [smem:[#allocation41_spill]] }
0x4ba3   :  { %s15838_s2 = scalar_lea.hbm %s18495_s19, 1024 }
0x4ba4   :  { %p15839_p3 = scmp.ne.s32.totalorder %s18495_s19, %s15838_s2  ;;  %p15842_p4 = scmp.lt.u32.totalorder %s15838_s2, %s18495_s19 }
0x4ba6   :  { %p15844_p5 = pnand %p15842_p4, %p15839_p3 }
0x4ba8   :  { %15847 = shalt.err (!%p15844_p5)
}
0x4ba9   :  { %12771 = dma.vmem_to_hbm [thread:$0]  %s12766_s14, 1024, %s18495_s19, [#allocation5], %s15866_s25, %s15866_s25, %s15867_s26  }
0x4baa   :  { %15860 = dma.done.wait [#allocation5], 1024  }
0x4bab   :  { %15861 = vsyncadd [#allocation5], 4294966272 }
0x4bac   :  { %15862 = dma.done.wait [#allocation22], 1280  }
0x4bad   :  { %15863 = vsyncadd [#allocation22], 4294966016 }
0x4bae   :  { %12805 = vsyncpa [#allocation4], 1 }
0x4baf   :  { %12806 = vsyncpa [#allocation7], 1 }
0x4bb0   :  { %12807 = vsyncpa [#allocation10], 1 }
0x4bb1   :  { %12808 = vsyncpa [#allocation13], 1 }
0x4bb2   :  { %12809 = vsyncpa [#allocation16], 1 }
0x4bb3   :  { %12810 = vsyncpa [#allocation19], 1 }
0x4bb4   :  { %12811 = vsyncpa [#allocation5], 1 }
0x4bb5   :  { %12812 = vsyncpa [#allocation22], 1 }

</bundles_post_ra>
